<compile_context>
chip_gen: v7x
topology: tpu7x:2x2x1
jax: 0.10.0
libtpu: 0.0.40
codegen_flags: <defaults>
</compile_context>

<pallas_src>
import functools

import jax
import jax.numpy as jnp
from jax.experimental import pallas as pl
from jax.experimental.pallas import tpu as pltpu

# mask-'B' allowed taps of a 3x3 kernel, as (dy, dx) offsets relative to the center.
_TAPS = ((-1, -1), (-1, 0), (-1, 1), (0, -1), (0, 0))


# ------------------------------------ kernel ------------------------------------

def _diag_lstm_kernel(x_ref, h_ref, c_ref, wx_ref, wh_ref, b_ref, out_ref, acc_ref):
    # x_ref  : (nb*H*W, Cin)     flattened input pixels (bf16 or f32)
    # h_ref  : (nb, H, W, Ch)    previous hidden state (bf16 or f32), read ONCE
    # c_ref  : (nb*H*W, Ch)      previous cell state (f32)
    # wx_ref : (Cin, 4*Ch)       packed 1x1-conv weights, gate order [i|f|o|g]
    # wh_ref : (Ch, 5*4*Ch)      packed mask-'B' tap weights, taps major / gates minor
    # b_ref  : (1, 4*Ch)         fused bias (W_b + U_b + b) per gate
    # out_ref: (nb*H*W, 2*Ch)    [c_new | h_new] (f32)
    # acc_ref: (nb, H, W, 4*Ch)  f32 pre-activation accumulator (VMEM scratch)
    nb, hgt, wdt, ch = h_ref.shape
    gch = 4 * ch
    m = nb * hgt * wdt

    # (a) 1x1 conv on x + fused bias: one small-K MXU matmul.
    pre_x = jnp.dot(x_ref[...], wx_ref[...], preferred_element_type=jnp.float32)
    pre_x = pre_x + b_ref[...]

    # (b) all 5 mask-'B' taps of the 3x3 conv on h as ONE matmul on the *unshifted*
    #     h (N = 5*4*Ch).  Spatial shifts are applied afterwards on the 128-lane,
    #     f32 tap outputs — VMEM-local, no HBM replication of h.
    h2 = h_ref[...].reshape(m, ch)
    th = jnp.dot(h2, wh_ref[...], preferred_element_type=jnp.float32)   # (m, 5*gch)
    th4 = th.reshape(nb, hgt, wdt, 5 * gch)

    def tap(j):  # aligned 128-lane slice for tap j (taps packed in _TAPS order)
        return th4[..., j * gch:(j + 1) * gch]

    # center tap (0,0) needs no shift.
    acc_ref[...] = pre_x.reshape(nb, hgt, wdt, gch) + tap(4)
    # shifted taps: out[y, x] += t[y+dy, x+dx]; contributions outside the image are
    # zero, so boundary rows/columns are simply never touched.
    if hgt > 1 and wdt > 1:   # (-1, -1)
        acc_ref[:, 1:, 1:, :] = acc_ref[:, 1:, 1:, :] + tap(0)[:, :hgt - 1, :wdt - 1, :]
    if hgt > 1:               # (-1,  0)
        acc_ref[:, 1:, :, :] = acc_ref[:, 1:, :, :] + tap(1)[:, :hgt - 1, :, :]
    if hgt > 1 and wdt > 1:   # (-1, +1)
        acc_ref[:, 1:, :wdt - 1, :] = acc_ref[:, 1:, :wdt - 1, :] + tap(2)[:, :hgt - 1, 1:, :]
    if wdt > 1:               # ( 0, -1)
        acc_ref[:, :, 1:, :] = acc_ref[:, :, 1:, :] + tap(3)[:, :, :wdt - 1, :]

    # (c) gates + state update, all f32.  One sigmoid over i|f|o lanes, one tanh on g.
    pre = acc_ref[...].reshape(m, gch)
    sig = jax.nn.sigmoid(pre[:, :3 * ch])
    g = jnp.tanh(pre[:, 3 * ch:])
    i = sig[:, :ch]
    f = sig[:, ch:2 * ch]
    o = sig[:, 2 * ch:]

    c_old = c_ref[...]
    c_new = f * c_old + i * g
    h_new = o * jnp.tanh(c_new)

    # Direct lane-slice stores (no concat temporary).
    out_ref[:, :ch] = c_new.astype(out_ref.dtype)
    out_ref[:, ch:] = h_new.astype(out_ref.dtype)


# ----------------------------------- wrappers -----------------------------------

def _vmem_limit_bytes():
    """Per-generation scoped-VMEM limit (fallback works on v5e/v6e/v7x)."""
    cap = 64 << 20
    try:
        cap = int(pltpu.get_tpu_info().vmem_capacity_bytes)
    except Exception:
        pass
    return int(min(cap - cap // 4, 96 << 20))   # leave 25% headroom, cap at 96 MiB


def _want_multiple_steps():
    """v7x has 2 TensorCores per chip -> keep >= 2 'parallel' grid steps so both cores
    get work.  v5e/v6e have a single TC, where extra steps are pure overhead."""
    try:
        kind = (jax.devices()[0].device_kind or "").lower()
        return "v7" in kind
    except Exception:
        return False


def _pick_block_batch(n, per_image_bytes, budget_bytes, want_multi):
    """Largest batch block dividing N whose working set fits the VMEM budget; on
    megacore chips keep >= 2 grid steps when possible."""
    if n <= 1:
        return 1
    cap = max(1, budget_bytes // max(per_image_bytes, 1))
    best = 1
    for nb in range(1, min(n, cap) + 1):
        if n % nb:
            continue
        if want_multi and n // nb < 2:
            continue
        best = nb
    return best


def diagonal_lstm_cell_nhwc(x, h, c, wx, wh, bias, *, use_bf16=True):
    """NHWC core. x:(N,H,W,Cin), h/c:(N,H,W,Ch). Returns (h_new, c_new) NHWC, f32."""
    n, hgt, wdt, cin = x.shape
    ch = c.shape[3]
    gch = 4 * ch
    mm_dtype = jnp.bfloat16 if use_bf16 else jnp.float32
    itm = jnp.dtype(mm_dtype).itemsize

    # Cast once at the boundary; flatten x/c/out to 2D (free row-major metadata ops).
    x2 = x.astype(mm_dtype).reshape(n * hgt * wdt, cin)
    h4 = h.astype(mm_dtype)                              # streamed to the kernel ONCE
    c2 = c.astype(jnp.float32).reshape(n * hgt * wdt, ch)
    wxp = wx.astype(mm_dtype)
    whp = wh.astype(mm_dtype)
    b = bias.astype(jnp.float32).reshape(1, gch)

    # Per-step working set: HBM-streamed blocks (double-buffered by Pallas) plus the
    # in-kernel f32 intermediates (tap matmul output, accumulator scratch, gate temps).
    px_io = cin * itm + ch * itm + ch * 4 + 2 * ch * 4
    px_tmp = (5 * gch + gch + 4 * gch) * 4
    per_image = hgt * wdt * (2 * px_io + px_tmp)

    vmem_limit = _vmem_limit_bytes()
    nb = _pick_block_batch(n, per_image, vmem_limit // 2, _want_multiple_steps())
    mb = nb * hgt * wdt

    grid_spec = pltpu.PrefetchScalarGridSpec(
        num_scalar_prefetch=0,
        grid=(n // nb,),
        in_specs=[
            pl.BlockSpec((mb, cin), lambda bi: (bi, 0)),
            pl.BlockSpec((nb, hgt, wdt, ch), lambda bi: (bi, 0, 0, 0)),
            pl.BlockSpec((mb, ch), lambda bi: (bi, 0)),
            pl.BlockSpec((cin, gch), lambda bi: (0, 0)),
            pl.BlockSpec((ch, 5 * gch), lambda bi: (0, 0)),
            pl.BlockSpec((1, gch), lambda bi: (0, 0)),
        ],
        out_specs=pl.BlockSpec((mb, 2 * ch), lambda bi: (bi, 0)),
        scratch_shapes=[pltpu.VMEM((nb, hgt, wdt, gch), jnp.float32)],
    )

    out = pl.pallas_call(
        _diag_lstm_kernel,
        out_shape=jax.ShapeDtypeStruct((n * hgt * wdt, 2 * ch), jnp.float32),
        grid_spec=grid_spec,
        compiler_params=pltpu.CompilerParams(
            dimension_semantics=("parallel",),
            vmem_limit_bytes=vmem_limit,
        ),
    )(x2, h4, c2, wxp, whp, b)

    out4 = out.reshape(n, hgt, wdt, 2 * ch)
    c_new = out4[..., :ch]
    h_new = out4[..., ch:]
    return h_new, c_new


@functools.partial(jax.jit, static_argnames=("use_bf16",))
def diagonal_lstm_cell(x_nchw, h_nchw, c_nchw, wx, wh, bias, *, use_bf16=True):
    """Torch-facing NCHW wrapper. Returns (h_new, c_new) in NCHW.
    (A model should prefer the NHWC entry point to avoid these transposes.)"""
    x = jnp.transpose(x_nchw, (0, 2, 3, 1))
    h = jnp.transpose(h_nchw, (0, 2, 3, 1))
    c = jnp.transpose(c_nchw, (0, 2, 3, 1))
    h_new, c_new = diagonal_lstm_cell_nhwc(x, h, c, wx, wh, bias, use_bf16=use_bf16)
    return jnp.transpose(h_new, (0, 3, 1, 2)), jnp.transpose(c_new, (0, 3, 1, 2))


# ------------------------- parameter construction (glue) -------------------------

def init_params(key, input_size, hidden_size, dtype=jnp.float32):
    """Deterministic synthetic params in torch layouts (OIHW conv weights)."""
    gates = ("i", "f", "o", "g")
    keys = jax.random.split(key, 4 * len(gates))
    raw = {}
    k = 0
    for g in gates:
        raw[f"W_{g}_w"] = 0.1 * jax.random.normal(keys[k], (hidden_size, input_size, 1, 1), dtype); k += 1
        raw[f"W_{g}_b"] = 0.1 * jax.random.normal(keys[k], (hidden_size,), dtype); k += 1
        raw[f"U_{g}_w"] = 0.1 * jax.random.normal(keys[k], (hidden_size, hidden_size, 3, 3), dtype); k += 1
        raw[f"U_{g}_b"] = 0.1 * jax.random.normal(keys[k], (hidden_size,), dtype); k += 1
        raw[f"b_{g}"] = jnp.zeros((hidden_size,), dtype)  # module inits these to zeros
    return raw


def pack_params(raw):
    """Pack params for the kernel:
      wx   : (Cin, 4*Ch)      1x1 conv weights, gate order [i|f|o|g]
      wh   : (Ch, 5*4*Ch)     mask-'B' 3x3 tap weights, taps (in _TAPS order) major,
                              gates minor within each tap
      bias : (1, 4*Ch)        W_b + U_b + b per gate
    """
    gates = ("i", "f", "o", "g")
    wx = jnp.concatenate([raw[f"W_{g}_w"][:, :, 0, 0].T for g in gates], axis=1)
    tap_blocks = []
    for (dy, dx) in _TAPS:
        ky, kx = dy + 1, dx + 1
        tap_blocks.append(
            jnp.concatenate([raw[f"U_{g}_w"][:, :, ky, kx].T for g in gates], axis=1))
    wh = jnp.concatenate(tap_blocks, axis=1)          # (Ch, 5*4*Ch)
    bias = jnp.concatenate(
        [raw[f"W_{g}_b"] + raw[f"U_{g}_b"] + raw[f"b_{g}"] for g in gates], axis=0
    )[None, :]
    return wx, wh, bias


# --------------------------- pure-JAX reference (NCHW) ---------------------------

def _mask_b_3x3(hidden_size, dtype):
    m = jnp.ones((hidden_size, hidden_size, 3, 3), dtype)
    m = m.at[:, :, 1, 2:].set(0.0)   # mask type 'B': kW//2 + 1
    m = m.at[:, :, 2:, :].set(0.0)
    return m


def reference_forward(x, h, c, raw):
    hidden_size = c.shape[1]
    mask = _mask_b_3x3(hidden_size, x.dtype)

    def conv(inp, w, b, pad):
        y = jax.lax.conv_general_dilated(
            inp, w, (1, 1), pad,
            dimension_numbers=("NCHW", "OIHW", "NCHW"),
            precision=jax.lax.Precision.HIGHEST)
        return y + b[None, :, None, None]

    def gate(g, act):
        pre = (conv(x, raw[f"W_{g}_w"], raw[f"W_{g}_b"], "VALID")
               + conv(h, raw[f"U_{g}_w"] * mask, raw[f"U_{g}_b"], ((1, 1), (1, 1)))
               + raw[f"b_{g}"][None, :, None, None])
        return act(pre)

    i = gate("i", jax.nn.sigmoid)
    f = gate("f", jax.nn.sigmoid)
    o = gate("o", jax.nn.sigmoid)
    g = gate("g", jnp.tanh)
    c_new = f * c + i * g
    h_new = o * jnp.tanh(c_new)
    return h_new, c_new


# --------------------------------------- main ---------------------------------------

if __name__ == "__main__":
    key = jax.random.PRNGKey(0)
    N, Cin, Ch, H, W = 2, 4, 32, 16, 16

    kx, kh, kc, kp = jax.random.split(key, 4)
    x = jax.random.normal(kx, (N, Cin, H, W), jnp.float32)
    h = jax.random.normal(kh, (N, Ch, H, W), jnp.float32)
    c = jax.random.normal(kc, (N, Ch, H, W), jnp.float32)

    raw = init_params(kp, Cin, Ch)
    wx, wh, bias = pack_params(raw)

    h_ref, c_ref = reference_forward(x, h, c, raw)

    # f32 matmul path: tight correctness check of the in-kernel tap construction.
    h_f32, c_f32 = diagonal_lstm_cell(x, h, c, wx, wh, bias, use_bf16=False)
    jax.block_until_ready((h_f32, c_f32))
    assert h_f32.shape == (N, Ch, H, W) and c_f32.shape == (N, Ch, H, W)
    assert jnp.allclose(h_f32, h_ref, atol=1e-3, rtol=1e-3), "h mismatch (f32 path)"
    assert jnp.allclose(c_f32, c_ref, atol=1e-3, rtol=1e-3), "c mismatch (f32 path)"

    # bf16 matmul-operand path (f32 accumulation + f32 state math): looser tolerance.
    h_bf16, c_bf16 = diagonal_lstm_cell(x, h, c, wx, wh, bias, use_bf16=True)
    jax.block_until_ready((h_bf16, c_bf16))
    assert jnp.allclose(h_bf16, h_ref, atol=3e-2, rtol=3e-2), "h mismatch (bf16 path)"
    assert jnp.allclose(c_bf16, c_ref, atol=3e-2, rtol=3e-2), "c mismatch (bf16 path)"

    print("KERNEL_OK")
</pallas_src>

<mosaic_0001>
module attributes {stable_mosaic.version = 11 : i64} {
  func.func @_diag_lstm_kernel(%arg0: i32, %arg1: memref<512x4xf32, #tpu.memory_space<vmem>>, %arg2: memref<2x16x16x32xf32, #tpu.memory_space<vmem>>, %arg3: memref<512x32xf32, #tpu.memory_space<vmem>>, %arg4: memref<4x128xf32, #tpu.memory_space<vmem>>, %arg5: memref<32x640xf32, #tpu.memory_space<vmem>>, %arg6: memref<1x128xf32, #tpu.memory_space<vmem>>, %arg7: memref<512x64xf32, #tpu.memory_space<vmem>>, %arg8: memref<2x16x16x128xf32, #tpu.memory_space<vmem>>) attributes {dimension_semantics = [#tpu.dimension_semantics<parallel>], iteration_bounds = array<i64: 1>, scalar_prefetch = 0 : i64, scratch_operands = 1 : i64, tpu.core_type = #tpu.core_type<tc>, window_params = [{transform_indices = @transform_0, window_bounds = array<i64: 512, 4>}, {transform_indices = @transform_1, window_bounds = array<i64: 2, 16, 16, 32>}, {transform_indices = @transform_2, window_bounds = array<i64: 512, 32>}, {pipeline_mode = #tpu.pipeline_mode<synchronous>, transform_indices = @transform_3, window_bounds = array<i64: 4, 128>}, {pipeline_mode = #tpu.pipeline_mode<synchronous>, transform_indices = @transform_4, window_bounds = array<i64: 32, 640>}, {pipeline_mode = #tpu.pipeline_mode<synchronous>, transform_indices = @transform_5, window_bounds = array<i64: 1, 128>}, {transform_indices = @transform_6, window_bounds = array<i64: 512, 64>}]} {
    %c0 = arith.constant 0 : index
    %c0_0 = arith.constant 0 : index
    %0 = vector.load %arg1[%c0, %c0_0] : memref<512x4xf32, #tpu.memory_space<vmem>>, vector<512x4xf32>
    %c0_1 = arith.constant 0 : index
    %c0_2 = arith.constant 0 : index
    %1 = vector.load %arg4[%c0_1, %c0_2] : memref<4x128xf32, #tpu.memory_space<vmem>>, vector<4x128xf32>
    %cst = arith.constant dense<0.000000e+00> : vector<512x128xf32>
    %2 = tpu.matmul %0, %1, %cst {dimension_numbers = #tpu.dot_dimension_numbers<[1], [0], [0], [1], [0, 0, 1, 1], [], []>} : vector<512x4xf32>, vector<4x128xf32>, vector<512x128xf32> -> vector<512x128xf32>
    %c0_3 = arith.constant 0 : index
    %c0_4 = arith.constant 0 : index
    %3 = vector.load %arg6[%c0_3, %c0_4] : memref<1x128xf32, #tpu.memory_space<vmem>>, vector<1x128xf32>
    %4 = vector.broadcast %3 : vector<1x128xf32> to vector<512x128xf32>
    %5 = arith.addf %2, %4 : vector<512x128xf32>
    %c0_5 = arith.constant 0 : index
    %c0_6 = arith.constant 0 : index
    %c0_7 = arith.constant 0 : index
    %c0_8 = arith.constant 0 : index
    %6 = vector.load %arg2[%c0_5, %c0_6, %c0_7, %c0_8] : memref<2x16x16x32xf32, #tpu.memory_space<vmem>>, vector<2x16x16x32xf32>
    %7 = vector.shape_cast %6 : vector<2x16x16x32xf32> to vector<512x32xf32>
    %c0_9 = arith.constant 0 : index
    %c0_10 = arith.constant 0 : index
    %8 = vector.load %arg5[%c0_9, %c0_10] : memref<32x640xf32, #tpu.memory_space<vmem>>, vector<32x640xf32>
    %cst_11 = arith.constant dense<0.000000e+00> : vector<512x640xf32>
    %9 = tpu.matmul %7, %8, %cst_11 {dimension_numbers = #tpu.dot_dimension_numbers<[1], [0], [0], [1], [0, 0, 1, 1], [], []>} : vector<512x32xf32>, vector<32x640xf32>, vector<512x640xf32> -> vector<512x640xf32>
    %10 = vector.shape_cast %9 : vector<512x640xf32> to vector<2x16x16x640xf32>
    %11 = vector.shape_cast %5 : vector<512x128xf32> to vector<2x16x16x128xf32>
    %12 = vector.extract_strided_slice %10 {offsets = [0, 0, 0, 512], sizes = [2, 16, 16, 128], strides = [1, 1, 1, 1]} : vector<2x16x16x640xf32> to vector<2x16x16x128xf32>
    %13 = arith.addf %11, %12 : vector<2x16x16x128xf32>
    %c0_12 = arith.constant 0 : index
    %c0_13 = arith.constant 0 : index
    %c0_14 = arith.constant 0 : index
    %c0_15 = arith.constant 0 : index
    %14 = vector.load %arg8[%c0_12, %c0_13, %c0_14, %c0_15] : memref<2x16x16x128xf32, #tpu.memory_space<vmem>>, vector<2x16x16x128xf32>
    tpu.vector_store %arg8[%c0_12, %c0_13, %c0_14, %c0_15], %13 {strides = array<i32>} : memref<2x16x16x128xf32, #tpu.memory_space<vmem>>, vector<2x16x16x128xf32>,
    %c0_16 = arith.constant 0 : index
    %c1 = arith.constant 1 : index
    %c1_17 = arith.constant 1 : index
    %c0_18 = arith.constant 0 : index
    %15 = vector.load %arg8[%c0_16, %c1, %c1_17, %c0_18] : memref<2x16x16x128xf32, #tpu.memory_space<vmem>>, vector<2x15x15x128xf32>
    %16 = vector.extract_strided_slice %10 {offsets = [0, 0, 0, 0], sizes = [2, 16, 16, 128], strides = [1, 1, 1, 1]} : vector<2x16x16x640xf32> to vector<2x16x16x128xf32>
    %17 = vector.extract_strided_slice %16 {offsets = [0, 0, 0, 0], sizes = [2, 15, 15, 128], strides = [1, 1, 1, 1]} : vector<2x16x16x128xf32> to vector<2x15x15x128xf32>
    %18 = arith.addf %15, %17 : vector<2x15x15x128xf32>
    %c0_19 = arith.constant 0 : index
    %c1_20 = arith.constant 1 : index
    %c1_21 = arith.constant 1 : index
    %c0_22 = arith.constant 0 : index
    %19 = vector.load %arg8[%c0_19, %c1_20, %c1_21, %c0_22] : memref<2x16x16x128xf32, #tpu.memory_space<vmem>>, vector<2x15x15x128xf32>
    tpu.vector_store %arg8[%c0_19, %c1_20, %c1_21, %c0_22], %18 {strides = array<i32>} : memref<2x16x16x128xf32, #tpu.memory_space<vmem>>, vector<2x15x15x128xf32>,
    %c0_23 = arith.constant 0 : index
    %c1_24 = arith.constant 1 : index
    %c0_25 = arith.constant 0 : index
    %c0_26 = arith.constant 0 : index
    %20 = vector.load %arg8[%c0_23, %c1_24, %c0_25, %c0_26] : memref<2x16x16x128xf32, #tpu.memory_space<vmem>>, vector<2x15x16x128xf32>
    %21 = vector.extract_strided_slice %10 {offsets = [0, 0, 0, 128], sizes = [2, 16, 16, 128], strides = [1, 1, 1, 1]} : vector<2x16x16x640xf32> to vector<2x16x16x128xf32>
    %22 = vector.extract_strided_slice %21 {offsets = [0, 0, 0, 0], sizes = [2, 15, 16, 128], strides = [1, 1, 1, 1]} : vector<2x16x16x128xf32> to vector<2x15x16x128xf32>
    %23 = arith.addf %20, %22 : vector<2x15x16x128xf32>
    %c0_27 = arith.constant 0 : index
    %c1_28 = arith.constant 1 : index
    %c0_29 = arith.constant 0 : index
    %c0_30 = arith.constant 0 : index
    %24 = vector.load %arg8[%c0_27, %c1_28, %c0_29, %c0_30] : memref<2x16x16x128xf32, #tpu.memory_space<vmem>>, vector<2x15x16x128xf32>
    tpu.vector_store %arg8[%c0_27, %c1_28, %c0_29, %c0_30], %23 {strides = array<i32>} : memref<2x16x16x128xf32, #tpu.memory_space<vmem>>, vector<2x15x16x128xf32>,
    %c0_31 = arith.constant 0 : index
    %c1_32 = arith.constant 1 : index
    %c0_33 = arith.constant 0 : index
    %c0_34 = arith.constant 0 : index
    %25 = vector.load %arg8[%c0_31, %c1_32, %c0_33, %c0_34] : memref<2x16x16x128xf32, #tpu.memory_space<vmem>>, vector<2x15x15x128xf32>
    %26 = vector.extract_strided_slice %10 {offsets = [0, 0, 0, 256], sizes = [2, 16, 16, 128], strides = [1, 1, 1, 1]} : vector<2x16x16x640xf32> to vector<2x16x16x128xf32>
    %27 = vector.extract_strided_slice %26 {offsets = [0, 0, 1, 0], sizes = [2, 15, 15, 128], strides = [1, 1, 1, 1]} : vector<2x16x16x128xf32> to vector<2x15x15x128xf32>
    %28 = arith.addf %25, %27 : vector<2x15x15x128xf32>
    %c0_35 = arith.constant 0 : index
    %c1_36 = arith.constant 1 : index
    %c0_37 = arith.constant 0 : index
    %c0_38 = arith.constant 0 : index
    %29 = vector.load %arg8[%c0_35, %c1_36, %c0_37, %c0_38] : memref<2x16x16x128xf32, #tpu.memory_space<vmem>>, vector<2x15x15x128xf32>
    tpu.vector_store %arg8[%c0_35, %c1_36, %c0_37, %c0_38], %28 {strides = array<i32>} : memref<2x16x16x128xf32, #tpu.memory_space<vmem>>, vector<2x15x15x128xf32>,
    %c0_39 = arith.constant 0 : index
    %c0_40 = arith.constant 0 : index
    %c1_41 = arith.constant 1 : index
    %c0_42 = arith.constant 0 : index
    %30 = vector.load %arg8[%c0_39, %c0_40, %c1_41, %c0_42] : memref<2x16x16x128xf32, #tpu.memory_space<vmem>>, vector<2x16x15x128xf32>
    %31 = vector.extract_strided_slice %10 {offsets = [0, 0, 0, 384], sizes = [2, 16, 16, 128], strides = [1, 1, 1, 1]} : vector<2x16x16x640xf32> to vector<2x16x16x128xf32>
    %32 = vector.extract_strided_slice %31 {offsets = [0, 0, 0, 0], sizes = [2, 16, 15, 128], strides = [1, 1, 1, 1]} : vector<2x16x16x128xf32> to vector<2x16x15x128xf32>
    %33 = arith.addf %30, %32 : vector<2x16x15x128xf32>
    %c0_43 = arith.constant 0 : index
    %c0_44 = arith.constant 0 : index
    %c1_45 = arith.constant 1 : index
    %c0_46 = arith.constant 0 : index
    %34 = vector.load %arg8[%c0_43, %c0_44, %c1_45, %c0_46] : memref<2x16x16x128xf32, #tpu.memory_space<vmem>>, vector<2x16x15x128xf32>
    tpu.vector_store %arg8[%c0_43, %c0_44, %c1_45, %c0_46], %33 {strides = array<i32>} : memref<2x16x16x128xf32, #tpu.memory_space<vmem>>, vector<2x16x15x128xf32>,
    %c0_47 = arith.constant 0 : index
    %c0_48 = arith.constant 0 : index
    %c0_49 = arith.constant 0 : index
    %c0_50 = arith.constant 0 : index
    %35 = vector.load %arg8[%c0_47, %c0_48, %c0_49, %c0_50] : memref<2x16x16x128xf32, #tpu.memory_space<vmem>>, vector<2x16x16x128xf32>
    %36 = vector.shape_cast %35 : vector<2x16x16x128xf32> to vector<512x128xf32>
    %37 = vector.extract_strided_slice %36 {offsets = [0, 0], sizes = [512, 96], strides = [1, 1]} : vector<512x128xf32> to vector<512x96xf32>
    %38 = arith.negf %37 : vector<512x96xf32>
    %39 = math.exp %38 : vector<512x96xf32>
    %cst_51 = arith.constant 1.000000e+00 : f32
    %40 = vector.broadcast %cst_51 : f32 to vector<512x96xf32>
    %41 = arith.addf %40, %39 : vector<512x96xf32>
    %42 = arith.divf %40, %41 : vector<512x96xf32>
    %43 = vector.extract_strided_slice %36 {offsets = [0, 96], sizes = [512, 32], strides = [1, 1]} : vector<512x128xf32> to vector<512x32xf32>
    %44 = math.tanh %43 : vector<512x32xf32>
    %45 = vector.extract_strided_slice %42 {offsets = [0, 0], sizes = [512, 32], strides = [1, 1]} : vector<512x96xf32> to vector<512x32xf32>
    %46 = vector.extract_strided_slice %42 {offsets = [0, 32], sizes = [512, 32], strides = [1, 1]} : vector<512x96xf32> to vector<512x32xf32>
    %47 = vector.extract_strided_slice %42 {offsets = [0, 64], sizes = [512, 32], strides = [1, 1]} : vector<512x96xf32> to vector<512x32xf32>
    %c0_52 = arith.constant 0 : index
    %c0_53 = arith.constant 0 : index
    %48 = vector.load %arg3[%c0_52, %c0_53] : memref<512x32xf32, #tpu.memory_space<vmem>>, vector<512x32xf32>
    %49 = arith.mulf %46, %48 : vector<512x32xf32>
    %50 = arith.mulf %45, %44 : vector<512x32xf32>
    %51 = arith.addf %49, %50 : vector<512x32xf32>
    %52 = math.tanh %51 : vector<512x32xf32>
    %53 = arith.mulf %47, %52 : vector<512x32xf32>
    %c0_54 = arith.constant 0 : index
    %c0_55 = arith.constant 0 : index
    %54 = vector.load %arg7[%c0_54, %c0_55] : memref<512x64xf32, #tpu.memory_space<vmem>>, vector<512x32xf32>
    tpu.vector_store %arg7[%c0_54, %c0_55], %51 {strides = array<i32>} : memref<512x64xf32, #tpu.memory_space<vmem>>, vector<512x32xf32>,
    %c0_56 = arith.constant 0 : index
    %c32 = arith.constant 32 : index
    %55 = vector.load %arg7[%c0_56, %c32] : memref<512x64xf32, #tpu.memory_space<vmem>>, vector<512x32xf32>
    tpu.vector_store %arg7[%c0_56, %c32], %53 {strides = array<i32>} : memref<512x64xf32, #tpu.memory_space<vmem>>, vector<512x32xf32>,
    return
  }
  func.func @transform_0(%arg0: i32) -> (i32, i32) {
    %c0_i32 = arith.constant 0 : i32
    %c0_i32_0 = arith.constant 0 : i32
    return %arg0, %c0_i32 : i32, i32
  }
  func.func @transform_1(%arg0: i32) -> (i32, i32, i32, i32) {
    %c0_i32 = arith.constant 0 : i32
    %c0_i32_0 = arith.constant 0 : i32
    %c0_i32_1 = arith.constant 0 : i32
    %c0_i32_2 = arith.constant 0 : i32
    return %arg0, %c0_i32, %c0_i32_0, %c0_i32_1 : i32, i32, i32, i32
  }
  func.func @transform_2(%arg0: i32) -> (i32, i32) {
    %c0_i32 = arith.constant 0 : i32
    %c0_i32_0 = arith.constant 0 : i32
    return %arg0, %c0_i32 : i32, i32
  }
  func.func @transform_3(%arg0: i32) -> (i32, i32) {
    %c0_i32 = arith.constant 0 : i32
    %c0_i32_0 = arith.constant 0 : i32
    %c0_i32_1 = arith.constant 0 : i32
    return %c0_i32, %c0_i32_0 : i32, i32
  }
  func.func @transform_4(%arg0: i32) -> (i32, i32) {
    %c0_i32 = arith.constant 0 : i32
    %c0_i32_0 = arith.constant 0 : i32
    %c0_i32_1 = arith.constant 0 : i32
    return %c0_i32, %c0_i32_0 : i32, i32
  }
  func.func @transform_5(%arg0: i32) -> (i32, i32) {
    %c0_i32 = arith.constant 0 : i32
    %c0_i32_0 = arith.constant 0 : i32
    %c0_i32_1 = arith.constant 0 : i32
    return %c0_i32, %c0_i32_0 : i32, i32
  }
  func.func @transform_6(%arg0: i32) -> (i32, i32) {
    %c0_i32 = arith.constant 0 : i32
    %c0_i32_0 = arith.constant 0 : i32
    return %arg0, %c0_i32 : i32, i32
  }
}

</mosaic_0001>

<bundles_post_ra>
// kernel: diagonal_lstm_cell.1
= control target key start
LH: loop header
LB: loop body
LE: loop exit
PB: predicated region body
PF: predicated region fallthrough
CT: control target
= control target key end

     0   :  { %11 = vsyncpa [#allocation4], 0  ;;  %s11433_s0 = inlined_call_operand.vmem [shape: f32[512,4], index: 0, kind: input, shape index: {}]   ;;  %s11434_s1 = inlined_call_operand.vmem [shape: f32[2,16,16,32], index: 1, kind: input, shape index: {}]   ;;  %s11435_s2 = inlined_call_operand.hbm [shape: f32[512,32], index: 2, kind: input, shape index: {}]   ;;  %s11436_s3 = inlined_call_operand.vmem [shape: f32[4,128], index: 3, kind: input, shape index: {}]   ;;  %s11437_s4 = inlined_call_operand.hbm [shape: f32[32,640], index: 4, kind: input, shape index: {}]   ;;  %s11438_s5 = inlined_call_operand.vmem [shape: f32[1,128], index: 5, kind: input, shape index: {}]   ;;  %s11439_s6 = inlined_call_operand.vmem [shape: f32[512,64], index: 6, kind: output, shape index: {}]  }
   0x1   :  { %12 = vsyncpa [#allocation6], 0  ;;  %s7289_s21 = smov [#allocation3]   ;;  %s7241_s25 = scalar_lea.hbm %s11435_s2, 8192 }
   0x2   :  { %s22_s22 = sshll.u32 %s7289_s21, 4  ;;  %p7242_p0 = scmp.ne.s32.totalorder %s11435_s2, %s7241_s25  ;;  %s23_s22 = int_to_ptr.vmem [resolvable:$true] %s22_s22 }
   0x3   :  { %p7245_p1 = scmp.lt.u32.totalorder %s7241_s25, %s11435_s2 }
   0x5   :  { %p7247_p2 = pnand %p7245_p1, %p7242_p0 }
   0x7   :  { %7250 = shalt.err (!%p7247_p2)
}
   0x8   :  { %s7251_s30 = scalar_lea.vmem %s23_s22, 8192  ;;  %p7256_p4 = scmp.lt.s32.totalorder %s23_s22, %s23_s22 }
   0x9   :  { %p7252_p3 = scmp.ne.s32.totalorder %s23_s22, %s7251_s30  ;;  %p7257_p5 = scmp.lt.s32.totalorder %s7251_s30, %s7251_s30 }
   0xb   :  { %p7258_p6 = por %p7257_p5, %p7256_p4 }
   0xd   :  { %p7259_p7 = pnand %p7258_p6, %p7252_p3 }
   0xf   :  { %7262 = shalt.err (!%p7259_p7)
}
  0x10   :  { %s7290_s7 = smov 128   ;;  %s7291_s8 = smov 8  }
  0x11   :  { %28 = dma.hbm_to_vmem [thread:$0]  %s11435_s2, 8192, %s23_s22, [#allocation4], %s7290_s7, %s7290_s7, %s7291_s8  }
  0x12   :  { %s7292_s11 = smov [#allocation5]   ;;  %s7263_s15 = scalar_lea.hbm %s11437_s4, 2560 }
  0x13   :  { %s36_s12 = sshll.u32 %s7292_s11, 4  ;;  %p7264_p8 = scmp.ne.s32.totalorder %s11437_s4, %s7263_s15  ;;  %s37_s12 = int_to_ptr.vmem [resolvable:$true] %s36_s12 }
  0x14   :  { %p7267_p9 = scmp.lt.u32.totalorder %s7263_s15, %s11437_s4 }
  0x16   :  { %p7269_p10 = pnand %p7267_p9, %p7264_p8 }
  0x18   :  { %7272 = shalt.err (!%p7269_p10)
}
  0x19   :  { %s7273_s20 = scalar_lea.vmem %s37_s12, 2560  ;;  %p7278_p12 = scmp.lt.s32.totalorder %s37_s12, %s37_s12 }
  0x1a   :  { %p7274_p11 = scmp.ne.s32.totalorder %s37_s12, %s7273_s20  ;;  %p7279_p13 = scmp.lt.s32.totalorder %s7273_s20, %s7273_s20 }
  0x1c   :  { %p7280_p0 = por %p7279_p13, %p7278_p12 }
  0x1e   :  { %p7281_p1 = pnand %p7280_p0, %p7274_p11 }
  0x20   :  { %7284 = shalt.err (!%p7281_p1)
}
  0x21   :  { %s7293_s2 = smov 640   ;;  %s7294_s21 = smov 40  }
  0x22   :  { %42 = dma.hbm_to_vmem [thread:$0]  %s11437_s4, 2560, %s37_s12, [#allocation6], %s7293_s2, %s7293_s2, %s7294_s21  }
  0x23   :  { %7285 = dma.done.wait [#allocation4], 8192  }
  0x24   :  { %7286 = vsyncadd [#allocation4], 4294959104 }
  0x25   :  { %7287 = dma.done.wait [#allocation6], 2560  }
  0x26   :  { %7288 = vsyncadd [#allocation6], 4294964736  ;;  %v11452_v0 = vmov 0.0   ;;  %vm316_vm0 = vcmask 1043456   ;;  %vm123_vm1 = vcmask 31744   ;;  %v51_v2 = vld [vmem:[%s11433_s0] sm:$0xff] }
  0x27   :  { %1046 = vmatprep.mubr.f32.mxu1 %v11452_v0  ;;  %v115_v1 = vld [vmem:[%s11436_s3] sm:$0xf]  ;;  %v52_v3 = vld [vmem:[%s11433_s0 + $0x8] sm:$0xff]  ;;  %6349 = vmatprep.mubr.msk.f32.mxu0 %vm123_vm1, %v51_v2  ;;  %v775_v5 = vld [vmem:[#allocation5 + $0x30] sm:$0xff]  ;;  %vm789_vm2 = vcmask 261120   ;;  %s7296_s30 = smov 32  }
  0x28   :  { %6347 = vmatprep.subr.msk.mxu0 %vm316_vm0, %v115_v1  ;;  %v770_v4 = vld [vmem:[#allocation5 + $0x8] sm:$0xff]  ;;  %v772_v6 = vld [vmem:[#allocation5 + $0x18] sm:$0xff]  ;;  %v777_v8 = vld [vmem:[#allocation5 + $0x40] sm:$0xff]  ;;  %vm2862_vm3 = vcmask 1046528   ;;  %vm5821_vm4 = vcmask 523520  }
  0x29   :  { %6348 = vmatpush3.msk.msra.mxu0 %vm316_vm0, %v115_v1  ;;  %v6549_v7 = vpack.c.bf16 %v775_v5, %v770_v4  ;;  %v769_v9 = vld [vmem:[#allocation5] sm:$0xff]  ;;  %v774_v10 = vld [vmem:[#allocation5 + $0x28] sm:$0xff]  ;;  %v6557_v11 = vpack.c.bf16 %v777_v8, %v772_v6  ;;  %v771_v13 = vld [vmem:[#allocation5 + $0x10] sm:$0xff] }
  0x2a   :  { %6350 = vmatmul.mubr.msk.f32.vlgmr.msra.gmra.mrb[0].mxu0 %vm123_vm1, %v52_v3  ;;  %v6551_v12 = vpack.c.bf16 %v774_v10, %v769_v9  ;;  %v776_v14 = vld [vmem:[#allocation5 + $0x38] sm:$0xff]  ;;  %v53_v15 = vld [vmem:[%s11433_s0 + $0x10] sm:$0xff]  ;;  %v785_v19 = vld [vmem:[#allocation5 + $0x80] sm:$0xff] }
  0x2b   :  { %6550 = vmatprep.subr.bf16.mxu1 %v6549_v7  ;;  %v6559_v16 = vpack.c.bf16 %v776_v14, %v771_v13  ;;  %6352 = vmatprep.mubr.msk.f32.mxu0 %vm123_vm1, %v53_v15  ;;  %v54_v17 = vld [vmem:[%s11433_s0 + $0x18] sm:$0xff]  ;;  %v779_v21 = vld [vmem:[#allocation5 + $0x50] sm:$0xff]  ;;  %v55_v23 = vld [vmem:[%s11433_s0 + $0x20] sm:$0xff] }
  0x2c   :  { %v780_v18 = vld [vmem:[#allocation5 + $0x58] sm:$0xff]  ;;  %6558 = vmatprep.subr.bf16.mxu0 %v6557_v11  ;;  %6552 = vmatpush1.bf16.msra.mxu1 %v6551_v12  ;;  %v56_v25 = vld [vmem:[%s11433_s0 + $0x28] sm:$0xff]  ;;  %v7387_v26 = vld [vmem:[%s11434_s1] sm:$0xff] }
  0x2d   :  { %v6553_v20 = vpack.c.bf16 %v785_v19, %v780_v18  ;;  %v784_v22 = vld [vmem:[#allocation5 + $0x78] sm:$0xff]  ;;  %6560 = vmatpush1.bf16.msra.mxu0 %v6559_v16  ;;  %v57_v27 = vld [vmem:[%s11433_s0 + $0x30] sm:$0xff]  ;;  %v7403_v29 = vld [vmem:[%s11434_s1 + $0x8] sm:$0xff] }
  0x2e   :  { %v6555_v24 = vpack.c.bf16 %v784_v22, %v779_v21  ;;  %6353 = vmatmul.mubr.msk.f32.gmra.mrb[2].mxu0 %vm123_vm1, %v54_v17  ;;  %v58_v28 = vld [vmem:[%s11433_s0 + $0x38] sm:$0xff]  ;;  %v59_v30 = vld [vmem:[%s11433_s0 + $0x40] sm:$0xff]  ;;  %v60_v31 = vld [vmem:[%s11433_s0 + $0x48] sm:$0xff] }
  0x2f   :  { %6554 = vmatprep.subr.bf16.mxu1 %v6553_v20  ;;  %6355 = vmatprep.mubr.msk.f32.mxu0 %vm123_vm1, %v55_v23  ;;  %v7419_v32 = vld [vmem:[%s11434_s1 + $0x10] sm:$0xff]  ;;  %v62_v34 = vld [vmem:[%s11433_s0 + $0x58] sm:$0xff]  ;;  %v63_v36 = vld [vmem:[%s11433_s0 + $0x60] sm:$0xff] }
  0x30   :  { %6556 = vmatpush1.bf16.msra.mxu1 %v6555_v24  ;;  %v61_v33 = vld [vmem:[%s11433_s0 + $0x50] sm:$0xff]  ;;  %v7434_v35 = vld [vmem:[%s11434_s1 + $0x18] sm:$0xff]  ;;  %v782_v37 = vld [vmem:[#allocation5 + $0x68] sm:$0xff] }
  0x31   :  { %6573 = vmatprep.subr.bf16.mxu1 %v6557_v11  ;;  %v787_v38 = vld [vmem:[#allocation5 + $0x90] sm:$0xff]  ;;  %v781_v39 = vld [vmem:[#allocation5 + $0x60] sm:$0xff]  ;;  %v786_v40 = vld [vmem:[#allocation5 + $0x88] sm:$0xff] }
  0x32   :  { %6356 = vmatmul.mubr.msk.f32.gmra.mrb[4].mxu0 %vm123_vm1, %v56_v25  ;;  %v6561_v41 = vpack.c.bf16 %v787_v38, %v782_v37  ;;  %v6563_v42 = vpack.c.bf16 %v786_v40, %v781_v39  ;;  %v64_v43 = vld [vmem:[%s11433_s0 + $0x68] sm:$0xff]  ;;  %v7451_v44 = vld [vmem:[%s11434_s1 + $0x20] sm:$0xff]  ;;  %v65_v45 = vld [vmem:[%s11433_s0 + $0x70] sm:$0xff] }
  0x33   :  { %5958 = vmatmul.mubr.msk.f32.vlgmr.msra.gmra.mrb[0].mxu1 %vm789_vm2, %v7387_v26  ;;  %6358 = vmatprep.mubr.msk.f32.mxu0 %vm123_vm1, %v57_v27  ;;  %v66_v46 = vld [vmem:[%s11433_s0 + $0x78] sm:$0xff]  ;;  %v7467_v47 = vld [vmem:[%s11434_s1 + $0x28] sm:$0xff]  ;;  %v67_v48 = vld [vmem:[%s11433_s0 + $0x80] sm:$0xff] }
  0x34   :  { %1052 = vmatprep.mubr.f32.mxu1 %v11452_v0  ;;  %6575 = vmatpush1.bf16.msra.mxu1 %v6559_v16  ;;  %v68_v49 = vld [vmem:[%s11433_s0 + $0x88] sm:$0xff]  ;;  %v7483_v50 = vld [vmem:[%s11434_s1 + $0x30] sm:$0xff]  ;;  %v70_v52 = vld [vmem:[%s11433_s0 + $0x98] sm:$0xff] }
  0x35   :  { %6562 = vmatprep.subr.bf16.mxu0 %v6561_v41  ;;  %6574 = vmatprep.subr.bf16.mxu1 %v6561_v41  ;;  %v69_v51 = vld [vmem:[%s11433_s0 + $0x90] sm:$0xff]  ;;  %v7498_v53 = vld [vmem:[%s11434_s1 + $0x38] sm:$0xff]  ;;  %v71_v54 = vld [vmem:[%s11433_s0 + $0xa0] sm:$0xff] }
  0x36   :  { %6359 = vmatmul.mubr.msk.f32.gmra.mrb[6].mxu0 %vm123_vm1, %v58_v28  ;;  %v773_v55 = vld [vmem:[#allocation5 + $0x20] sm:$0xff]  ;;  %v778_v56 = vld [vmem:[#allocation5 + $0x48] sm:$0xff]  ;;  %v73_v60 = vld [vmem:[%s11433_s0 + $0xb0] sm:$0xff] }
  0x37   :  { %5959 = vmatmul.mubr.msk.f32.gmra.mrb[2].mxu1 %vm789_vm2, %v7403_v29  ;;  %6361 = vmatprep.mubr.msk.f32.mxu0 %vm123_vm1, %v59_v30  ;;  %v7504_v57 = vpack.c.bf16 %v778_v56, %v773_v55  ;;  %v72_v58 = vld [vmem:[%s11433_s0 + $0xa8] sm:$0xff]  ;;  %v7517_v59 = vld [vmem:[%s11434_s1 + $0x40] sm:$0xff]  ;;  %v74_v61 = vld [vmem:[%s11433_s0 + $0xb8] sm:$0xff] }
  0x38   :  { %1058 = vmatprep.mubr.f32.mxu1 %v11452_v0  ;;  %6564 = vmatpush1.bf16.msra.mxu0 %v6563_v42  ;;  %v7534_v62 = vld [vmem:[%s11434_s1 + $0x48] sm:$0xff]  ;;  %v75_v63 = vld [vmem:[%s11433_s0 + $0xc0] sm:$0xff]  ;;  %v7550_v2 = vld [vmem:[%s11434_s1 + $0x50] sm:$0xff] }
  0x39   :  { %6576 = vmatpush1.bf16.msra.mxu1 %v6563_v42  ;;  %6566 = vmatprep.subr.bf16.mxu0 %v7504_v57  ;;  %v76_v1 = vld [vmem:[%s11433_s0 + $0xc8] sm:$0xff]  ;;  %v77_v3 = vld [vmem:[%s11433_s0 + $0xd0] sm:$0xff]  ;;  %v78_v4 = vld [vmem:[%s11433_s0 + $0xd8] sm:$0xff] }
  0x3a   :  { %6362 = vmatmul.mubr.msk.f32.gmra.mrb[8].mxu0 %vm123_vm1, %v60_v31  ;;  %v7566_v5 = vld [vmem:[%s11434_s1 + $0x58] sm:$0xff]  ;;  %v79_v6 = vld [vmem:[%s11433_s0 + $0xe0] sm:$0xff]  ;;  %v80_v7 = vld [vmem:[%s11433_s0 + $0xe8] sm:$0xff] }
  0x3b   :  { %5960 = vmatmul.mubr.msk.f32.gmra.mrb[4].mxu1 %vm789_vm2, %v7419_v32  ;;  %6364 = vmatprep.mubr.msk.f32.mxu0 %vm123_vm1, %v61_v33  ;;  %v7582_v8 = vld [vmem:[%s11434_s1 + $0x60] sm:$0xff]  ;;  %v81_v9 = vld [vmem:[%s11433_s0 + $0xf0] sm:$0xff]  ;;  %v82_v10 = vld [vmem:[%s11433_s0 + $0xf8] sm:$0xff] }
  0x3c   :  { %1064 = vmatprep.mubr.f32.mxu1 %v11452_v0  ;;  %v7598_v11 = vld [vmem:[%s11434_s1 + $0x68] sm:$0xff]  ;;  %v83_v12 = vld [vmem:[%s11433_s0 + $0x100] sm:$0xff]  ;;  %v7614_v14 = vld [vmem:[%s11434_s1 + $0x70] sm:$0xff] }
  0x3d   :  { %v84_v13 = vld [vmem:[%s11433_s0 + $0x108] sm:$0xff]  ;;  %v85_v15 = vld [vmem:[%s11433_s0 + $0x110] sm:$0xff]  ;;  %v86_v16 = vld [vmem:[%s11433_s0 + $0x118] sm:$0xff] }
  0x3e   :  { %6365 = vmatmul.mubr.msk.f32.gmra.mrb[10].mxu0 %vm123_vm1, %v62_v34  ;;  %v7630_v17 = vld [vmem:[%s11434_s1 + $0x78] sm:$0xff]  ;;  %v87_v18 = vld [vmem:[%s11433_s0 + $0x120] sm:$0xff]  ;;  %v88_v19 = vld [vmem:[%s11433_s0 + $0x128] sm:$0xff] }
  0x3f   :  { %5961 = vmatmul.mubr.msk.f32.gmra.mrb[6].mxu1 %vm789_vm2, %v7434_v35  ;;  %6367 = vmatprep.mubr.msk.f32.mxu0 %vm123_vm1, %v63_v36  ;;  %v7646_v20 = vld [vmem:[%s11434_s1 + $0x80] sm:$0xff]  ;;  %v89_v21 = vld [vmem:[%s11433_s0 + $0x130] sm:$0xff]  ;;  %v90_v22 = vld [vmem:[%s11433_s0 + $0x138] sm:$0xff] }
  0x40   :  { %1070 = vmatprep.mubr.f32.mxu1 %v11452_v0  ;;  %v7662_v23 = vld [vmem:[%s11434_s1 + $0x88] sm:$0xff]  ;;  %v91_v24 = vld [vmem:[%s11433_s0 + $0x140] sm:$0xff]  ;;  %v7678_v27 = vld [vmem:[%s11434_s1 + $0x90] sm:$0xff] }
  0x41   :  { %v92_v25 = vld [vmem:[%s11433_s0 + $0x148] sm:$0xff]  ;;  %v93_v28 = vld [vmem:[%s11433_s0 + $0x150] sm:$0xff]  ;;  %v94_v30 = vld [vmem:[%s11433_s0 + $0x158] sm:$0xff] }
  0x42   :  { %6368 = vmatmul.mubr.msk.f32.gmra.mrb[12].mxu0 %vm123_vm1, %v64_v43  ;;  %v7694_v31 = vld [vmem:[%s11434_s1 + $0x98] sm:$0xff]  ;;  %v95_v33 = vld [vmem:[%s11433_s0 + $0x160] sm:$0xff]  ;;  %v96_v34 = vld [vmem:[%s11433_s0 + $0x168] sm:$0xff] }
  0x43   :  { %5962 = vmatmul.mubr.msk.f32.gmra.mrb[8].mxu1 %vm789_vm2, %v7451_v44  ;;  %6370 = vmatprep.mubr.msk.f32.mxu0 %vm123_vm1, %v65_v45  ;;  %v7710_v36 = vld [vmem:[%s11434_s1 + $0xa0] sm:$0xff]  ;;  %v97_v37 = vld [vmem:[%s11433_s0 + $0x170] sm:$0xff]  ;;  %v98_v38 = vld [vmem:[%s11433_s0 + $0x178] sm:$0xff] }
  0x44   :  { %1076 = vmatprep.mubr.f32.mxu1 %v11452_v0  ;;  %v7726_v39 = vld [vmem:[%s11434_s1 + $0xa8] sm:$0xff]  ;;  %v99_v40 = vld [vmem:[%s11433_s0 + $0x180] sm:$0xff]  ;;  %v7742_v42 = vld [vmem:[%s11434_s1 + $0xb0] sm:$0xff] }
  0x45   :  { %v100_v41 = vld [vmem:[%s11433_s0 + $0x188] sm:$0xff]  ;;  %v101_v43 = vld [vmem:[%s11433_s0 + $0x190] sm:$0xff]  ;;  %v102_v45 = vld [vmem:[%s11433_s0 + $0x198] sm:$0xff] }
  0x46   :  { %6371 = vmatmul.mubr.msk.f32.gmra.mrb[14].mxu0 %vm123_vm1, %v66_v46  ;;  %v7758_v46 = vld [vmem:[%s11434_s1 + $0xb8] sm:$0xff]  ;;  %v7790_v55 = vld [vmem:[%s11434_s1 + $0xc8] sm:$0xff]  ;;  %v107_v56 = vld [vmem:[%s11433_s0 + $0x1c0] sm:$0xff] }
  0x47   :  { %5963 = vmatmul.mubr.msk.f32.gmra.mrb[10].mxu1 %vm789_vm2, %v7467_v47  ;;  %6373 = vmatprep.mubr.msk.f32.mxu0 %vm123_vm1, %v67_v48  ;;  %v103_v48 = vld [vmem:[%s11433_s0 + $0x1a0] sm:$0xff] }
  0x48   :  { %1082 = vmatprep.mubr.f32.mxu1 %v11452_v0 }
  0x4a   :  { %6374 = vmatmul.mubr.msk.f32.gmra.mrb[16].mxu0 %vm123_vm1, %v68_v49  ;;  %v104_v49 = vld [vmem:[%s11433_s0 + $0x1a8] sm:$0xff] }
  0x4b   :  { %5964 = vmatmul.mubr.msk.f32.gmra.mrb[12].mxu1 %vm789_vm2, %v7483_v50  ;;  %6376 = vmatprep.mubr.msk.f32.mxu0 %vm123_vm1, %v69_v51  ;;  %v7774_v51 = vld [vmem:[%s11434_s1 + $0xc0] sm:$0xff] }
  0x4c   :  { %1088 = vmatprep.mubr.f32.mxu1 %v11452_v0 }
  0x4e   :  { %6377 = vmatmul.mubr.msk.f32.gmra.mrb[18].mxu0 %vm123_vm1, %v70_v52  ;;  %v105_v52 = vld [vmem:[%s11433_s0 + $0x1b0] sm:$0xff] }
  0x4f   :  { %5965 = vmatmul.mubr.msk.f32.gmra.mrb[14].mxu1 %vm789_vm2, %v7498_v53  ;;  %6379 = vmatprep.mubr.msk.f32.mxu0 %vm123_vm1, %v71_v54  ;;  %v106_v54 = vld [vmem:[%s11433_s0 + $0x1b8] sm:$0xff] }
  0x50   :  { %1094 = vmatprep.mubr.f32.mxu1 %v11452_v0 }
  0x52   :  { %6380 = vmatmul.mubr.msk.f32.gmra.mrb[20].mxu0 %vm123_vm1, %v72_v58  ;;  %v108_v58 = vld [vmem:[%s11433_s0 + $0x1c8] sm:$0xff] }
  0x53   :  { %5966 = vmatmul.mubr.msk.f32.gmra.mrb[16].mxu1 %vm789_vm2, %v7517_v59  ;;  %6382 = vmatprep.mubr.msk.f32.mxu0 %vm123_vm1, %v73_v60  ;;  %v7806_v60 = vld [vmem:[%s11434_s1 + $0xd0] sm:$0xff] }
  0x54   :  { %1100 = vmatprep.mubr.f32.mxu1 %v11452_v0 }
  0x56   :  { %6383 = vmatmul.mubr.msk.f32.gmra.mrb[22].mxu0 %vm123_vm1, %v74_v61  ;;  %v109_v61 = vld [vmem:[%s11433_s0 + $0x1d0] sm:$0xff] }
  0x57   :  { %5967 = vmatmul.mubr.msk.f32.gmra.mrb[18].mxu1 %vm789_vm2, %v7534_v62  ;;  %6385 = vmatprep.mubr.msk.f32.mxu0 %vm123_vm1, %v75_v63  ;;  %v110_v63 = vld [vmem:[%s11433_s0 + $0x1d8] sm:$0xff] }
  0x58   :  { %1106 = vmatprep.mubr.f32.mxu1 %v11452_v0 }
  0x5a   :  { %6386 = vmatmul.mubr.msk.f32.gmra.mrb[24].mxu0 %vm123_vm1, %v76_v1  ;;  %v7822_v1 = vld [vmem:[%s11434_s1 + $0xd8] sm:$0xff] }
  0x5b   :  { %5968 = vmatmul.mubr.msk.f32.gmra.mrb[20].mxu1 %vm789_vm2, %v7550_v2  ;;  %6388 = vmatprep.mubr.msk.f32.mxu0 %vm123_vm1, %v77_v3  ;;  %v111_v3 = vld [vmem:[%s11433_s0 + $0x1e0] sm:$0xff] }
  0x5c   :  { %1112 = vmatprep.mubr.f32.mxu1 %v11452_v0 }
  0x5e   :  { %6389 = vmatmul.mubr.msk.f32.gmra.mrb[26].mxu0 %vm123_vm1, %v78_v4  ;;  %v112_v4 = vld [vmem:[%s11433_s0 + $0x1e8] sm:$0xff] }
  0x5f   :  { %5969 = vmatmul.mubr.msk.f32.gmra.mrb[22].mxu1 %vm789_vm2, %v7566_v5  ;;  %6391 = vmatprep.mubr.msk.f32.mxu0 %vm123_vm1, %v79_v6  ;;  %v7838_v6 = vld [vmem:[%s11434_s1 + $0xe0] sm:$0xff] }
  0x60   :  { %1118 = vmatprep.mubr.f32.mxu1 %v11452_v0 }
  0x62   :  { %6392 = vmatmul.mubr.msk.f32.gmra.mrb[28].mxu0 %vm123_vm1, %v80_v7  ;;  %v113_v7 = vld [vmem:[%s11433_s0 + $0x1f0] sm:$0xff] }
  0x63   :  { %5970 = vmatmul.mubr.msk.f32.gmra.mrb[24].mxu1 %vm789_vm2, %v7582_v8  ;;  %6394 = vmatprep.mubr.msk.f32.mxu0 %vm123_vm1, %v81_v9  ;;  %v114_v9 = vld [vmem:[%s11433_s0 + $0x1f8] sm:$0xff] }
  0x64   :  { %1124 = vmatprep.mubr.f32.mxu1 %v11452_v0 }
  0x66   :  { %6395 = vmatmul.mubr.msk.f32.gmra.mrb[30].mxu0 %vm123_vm1, %v82_v10  ;;  %v7854_v10 = vld [vmem:[%s11434_s1 + $0xe8] sm:$0xff] }
  0x67   :  { %5971 = vmatmul.mubr.msk.f32.gmra.mrb[26].mxu1 %vm789_vm2, %v7598_v11  ;;  %6397 = vmatprep.mubr.msk.f32.mxu0 %vm123_vm1, %v83_v12  ;;  %v783_v12 = vld [vmem:[#allocation5 + $0x70] sm:$0xff] }
  0x68   :  { %1130 = vmatprep.mubr.f32.mxu1 %v11452_v0 }
  0x6a   :  { %6398 = vmatmul.mubr.msk.f32.gmra.mrb[32].mxu0 %vm123_vm1, %v84_v13  ;;  %v788_v13 = vld [vmem:[#allocation5 + $0x98] sm:$0xff] }
  0x6b   :  { %5972 = vmatmul.mubr.msk.f32.gmra.mrb[28].mxu1 %vm789_vm2, %v7614_v14  ;;  %6400 = vmatprep.mubr.msk.f32.mxu0 %vm123_vm1, %v85_v15  ;;  %v7864_v15 = vld [vmem:[%s11434_s1 + $0xf0] sm:$0xff] }
  0x6c   :  { %1136 = vmatprep.mubr.f32.mxu1 %v11452_v0 }
  0x6e   :  { %6401 = vmatmul.mubr.msk.f32.gmra.mrb[34].mxu0 %vm123_vm1, %v86_v16  ;;  %v6569_v16 = vpack.c.bf16 %v788_v13, %v783_v12 }
  0x6f   :  { %5973 = vmatmul.mubr.msk.f32.gmra.mrb[30].mxu1 %vm789_vm2, %v7630_v17  ;;  %6403 = vmatprep.mubr.msk.f32.mxu0 %vm123_vm1, %v87_v18  ;;  %v7876_v18 = vld [vmem:[%s11434_s1 + $0xf8] sm:$0xff] }
  0x70   :  { %1142 = vmatprep.mubr.f32.mxu1 %v11452_v0 }
  0x72   :  { %6404 = vmatmul.mubr.msk.f32.gmra.mrb[36].mxu0 %vm123_vm1, %v88_v19  ;;  %v7898_v19 = vld [vmem:[%s11434_s1 + $0x108] sm:$0xff] }
  0x73   :  { %5974 = vmatmul.mubr.msk.f32.gmra.mrb[32].mxu1 %vm789_vm2, %v7646_v20  ;;  %6406 = vmatprep.mubr.msk.f32.mxu0 %vm123_vm1, %v89_v21  ;;  %v7909_v21 = vld [vmem:[%s11434_s1 + $0x110] sm:$0xff] }
  0x74   :  { %1148 = vmatprep.mubr.f32.mxu1 %v11452_v0 }
  0x76   :  { %6407 = vmatmul.mubr.msk.f32.gmra.mrb[38].mxu0 %vm123_vm1, %v90_v22  ;;  %v7920_v22 = vld [vmem:[%s11434_s1 + $0x118] sm:$0xff] }
  0x77   :  { %5975 = vmatmul.mubr.msk.f32.gmra.mrb[34].mxu1 %vm789_vm2, %v7662_v23  ;;  %6409 = vmatprep.mubr.msk.f32.mxu0 %vm123_vm1, %v91_v24  ;;  %v7931_v24 = vld [vmem:[%s11434_s1 + $0x120] sm:$0xff] }
  0x78   :  { %1154 = vmatprep.mubr.f32.mxu1 %v11452_v0 }
  0x7a   :  { %6410 = vmatmul.mubr.msk.f32.gmra.mrb[40].mxu0 %vm123_vm1, %v92_v25  ;;  %v7942_v25 = vld [vmem:[%s11434_s1 + $0x128] sm:$0xff] }
  0x7b   :  { %5976 = vmatmul.mubr.msk.f32.gmra.mrb[36].mxu1 %vm789_vm2, %v7678_v27  ;;  %6412 = vmatprep.mubr.msk.f32.mxu0 %vm123_vm1, %v93_v28  ;;  %v7953_v28 = vld [vmem:[%s11434_s1 + $0x130] sm:$0xff] }
  0x7c   :  { %1160 = vmatprep.mubr.f32.mxu1 %v11452_v0 }
  0x7e   :  { %6413 = vmatmul.mubr.msk.f32.gmra.mrb[42].mxu0 %vm123_vm1, %v94_v30  ;;  %v7964_v30 = vld [vmem:[%s11434_s1 + $0x138] sm:$0xff] }
  0x7f   :  { %5977 = vmatmul.mubr.msk.f32.gmra.mrb[38].mxu1 %vm789_vm2, %v7694_v31  ;;  %6415 = vmatprep.mubr.msk.f32.mxu0 %vm123_vm1, %v95_v33  ;;  %v7975_v33 = vld [vmem:[%s11434_s1 + $0x140] sm:$0xff] }
  0x80   :  { %1166 = vmatprep.mubr.f32.mxu1 %v11452_v0 }
  0x82   :  { %6416 = vmatmul.mubr.msk.f32.gmra.mrb[44].mxu0 %vm123_vm1, %v96_v34  ;;  %v7986_v34 = vld [vmem:[%s11434_s1 + $0x148] sm:$0xff] }
  0x83   :  { %5978 = vmatmul.mubr.msk.f32.gmra.mrb[40].mxu1 %vm789_vm2, %v7710_v36  ;;  %6418 = vmatprep.mubr.msk.f32.mxu0 %vm123_vm1, %v97_v37  ;;  %v7997_v37 = vld [vmem:[%s11434_s1 + $0x150] sm:$0xff] }
  0x84   :  { %1172 = vmatprep.mubr.f32.mxu1 %v11452_v0 }
  0x86   :  { %6419 = vmatmul.mubr.msk.f32.gmra.mrb[46].mxu0 %vm123_vm1, %v98_v38  ;;  %v8008_v38 = vld [vmem:[%s11434_s1 + $0x158] sm:$0xff] }
  0x87   :  { %5979 = vmatmul.mubr.msk.f32.gmra.mrb[42].mxu1 %vm789_vm2, %v7726_v39  ;;  %6421 = vmatprep.mubr.msk.f32.mxu0 %vm123_vm1, %v99_v40  ;;  %v8019_v40 = vld [vmem:[%s11434_s1 + $0x160] sm:$0xff] }
  0x88   :  { %1178 = vmatprep.mubr.f32.mxu1 %v11452_v0 }
  0x8a   :  { %6422 = vmatmul.mubr.msk.f32.gmra.mrb[48].mxu0 %vm123_vm1, %v100_v41  ;;  %v8030_v41 = vld [vmem:[%s11434_s1 + $0x168] sm:$0xff] }
  0x8b   :  { %5980 = vmatmul.mubr.msk.f32.gmra.mrb[44].mxu1 %vm789_vm2, %v7742_v42  ;;  %6424 = vmatprep.mubr.msk.f32.mxu0 %vm123_vm1, %v101_v43  ;;  %v8041_v43 = vld [vmem:[%s11434_s1 + $0x170] sm:$0xff] }
  0x8c   :  { %1184 = vmatprep.mubr.f32.mxu1 %v11452_v0 }
  0x8e   :  { %6425 = vmatmul.mubr.msk.f32.gmra.mrb[50].mxu0 %vm123_vm1, %v102_v45  ;;  %v8052_v45 = vld [vmem:[%s11434_s1 + $0x178] sm:$0xff] }
  0x8f   :  { %5981 = vmatmul.mubr.msk.f32.gmra.mrb[46].mxu1 %vm789_vm2, %v7758_v46  ;;  %6427 = vmatprep.mubr.msk.f32.mxu0 %vm123_vm1, %v103_v48  ;;  %v8063_v48 = vld [vmem:[%s11434_s1 + $0x180] sm:$0xff] }
  0x90   :  { %1190 = vmatprep.mubr.f32.mxu1 %v11452_v0 }
  0x92   :  { %6428 = vmatmul.mubr.msk.f32.gmra.mrb[52].mxu0 %vm123_vm1, %v104_v49  ;;  %v8074_v49 = vld [vmem:[%s11434_s1 + $0x188] sm:$0xff] }
  0x93   :  { %5982 = vmatmul.mubr.msk.f32.gmra.mrb[48].mxu1 %vm789_vm2, %v7774_v51  ;;  %6430 = vmatprep.mubr.msk.f32.mxu0 %vm123_vm1, %v105_v52  ;;  %v8085_v52 = vld [vmem:[%s11434_s1 + $0x190] sm:$0xff] }
  0x94   :  { %1196 = vmatprep.mubr.f32.mxu1 %v11452_v0 }
  0x96   :  { %6431 = vmatmul.mubr.msk.f32.gmra.mrb[54].mxu0 %vm123_vm1, %v106_v54  ;;  %v8096_v54 = vld [vmem:[%s11434_s1 + $0x198] sm:$0xff] }
  0x97   :  { %5983 = vmatmul.mubr.msk.f32.gmra.mrb[50].mxu1 %vm789_vm2, %v7790_v55  ;;  %6433 = vmatprep.mubr.msk.f32.mxu0 %vm123_vm1, %v107_v56  ;;  %v8107_v56 = vld [vmem:[%s11434_s1 + $0x1a0] sm:$0xff] }
  0x98   :  { %1202 = vmatprep.mubr.f32.mxu1 %v11452_v0 }
  0x9a   :  { %6434 = vmatmul.mubr.msk.f32.gmra.mrb[56].mxu0 %vm123_vm1, %v108_v58  ;;  %v8118_v58 = vld [vmem:[%s11434_s1 + $0x1a8] sm:$0xff] }
  0x9b   :  { %5984 = vmatmul.mubr.msk.f32.gmra.mrb[52].mxu1 %vm789_vm2, %v7806_v60  ;;  %6436 = vmatprep.mubr.msk.f32.mxu0 %vm123_vm1, %v109_v61 }
  0x9c   :  { %1208 = vmatprep.mubr.f32.mxu1 %v11452_v0 }
  0x9e   :  { %6437 = vmatmul.mubr.msk.f32.gmra.mrb[58].mxu0 %vm123_vm1, %v110_v63 }
  0x9f   :  { %5985 = vmatmul.mubr.msk.f32.gmra.mrb[54].mxu1 %vm789_vm2, %v7822_v1  ;;  %6439 = vmatprep.mubr.msk.f32.mxu0 %vm123_vm1, %v111_v3  ;;  %v8133_v3 = vld [vmem:[%s11434_s1 + $0x1b0] sm:$0xff] }
  0xa0   :  { %1214 = vmatprep.mubr.f32.mxu1 %v11452_v0 }
  0xa2   :  { %6440 = vmatmul.mubr.msk.f32.gmra.mrb[60].mxu0 %vm123_vm1, %v112_v4 }
  0xa3   :  { %5986 = vmatmul.mubr.msk.f32.gmra.mrb[56].mxu1 %vm789_vm2, %v7838_v6  ;;  %6442 = vmatprep.mubr.msk.f32.mxu0 %vm123_vm1, %v113_v7 }
  0xa4   :  { %1220 = vmatprep.mubr.f32.mxu1 %v11452_v0 }
  0xa6   :  { %6443 = vmatmul.mubr.msk.f32.gmra.mrb[62].mxu0 %vm123_vm1, %v114_v9  ;;  %v8148_v9 = vld [vmem:[%s11434_s1 + $0x1b8] sm:$0xff] }
  0xa7   :  { %5987 = vmatmul.mubr.msk.f32.gmra.mrb[58].mxu1 %vm789_vm2, %v7854_v10  ;;  %1487 = vmatprep.mubr.f32.mxu0 %v11452_v0 }
  0xa8   :  { %1226 = vmatprep.mubr.f32.mxu1 %v11452_v0 }
  0xaa   :  { %6022 = vmatmul.mubr.msk.f32.vlgmr.msra.gmra.mrb[64].mxu0 %vm789_vm2, %v7387_v26 }
  0xab   :  { %5988 = vmatmul.mubr.msk.f32.gmra.mrb[60].mxu1 %vm789_vm2, %v7864_v15  ;;  %6568 = vmatpush3.bf16.msra.mxu0 %v7504_v57  ;;  %v7887_v57 = vld [vmem:[%s11434_s1 + $0x100] sm:$0xff] }
  0xac   :  { %1230 = vmatprep.mubr.f32.mxu1 %v11452_v0  ;;  %1493 = vmatprep.mubr.f32.mxu0 %v11452_v0 }
  0xad   :  { %6570 = vmatprep.subr.bf16.mxu0 %v6569_v16 }
  0xae   :  { %6023 = vmatmul.mubr.msk.f32.gmra.mrb[66].mxu0 %vm789_vm2, %v7403_v29 }
  0xaf   :  { %5989 = vmatmul.mubr.msk.f32.gmra.mrb[62].mxu1 %vm789_vm2, %v7876_v18  ;;  %1499 = vmatprep.mubr.f32.mxu0 %v11452_v0 }
  0xb0   :  { %1234 = vmatprep.mubr.f32.mxu1 %v11452_v0  ;;  %6572 = vmatpush3.bf16.msra.mxu0 %v6569_v16  ;;  %v8163_v16 = vld [vmem:[%s11434_s1 + $0x1c0] sm:$0xff] }
  0xb1   :  { %11579 = vst [vmem:[#allocation15_spill] sm:$0xff] %v8163_v16 }
  0xb2   :  { %6024 = vmatmul.mubr.msk.f32.gmra.mrb[68].mxu0 %vm789_vm2, %v7419_v32 }
  0xb3   :  { %5990 = vmatmul.mubr.msk.f32.gmra.mrb[64].mxu1 %vm789_vm2, %v7887_v57  ;;  %1505 = vmatprep.mubr.f32.mxu0 %v11452_v0 }
  0xb4   :  { %1240 = vmatprep.mubr.f32.mxu1 %v11452_v0 }
  0xb6   :  { %6025 = vmatmul.mubr.msk.f32.gmra.mrb[70].mxu0 %vm789_vm2, %v7434_v35 }
  0xb7   :  { %5991 = vmatmul.mubr.msk.f32.gmra.mrb[66].mxu1 %vm789_vm2, %v7898_v19  ;;  %1511 = vmatprep.mubr.f32.mxu0 %v11452_v0 }
  0xb8   :  { %1246 = vmatprep.mubr.f32.mxu1 %v11452_v0 }
  0xba   :  { %6026 = vmatmul.mubr.msk.f32.gmra.mrb[72].mxu0 %vm789_vm2, %v7451_v44 }
  0xbb   :  { %5992 = vmatmul.mubr.msk.f32.gmra.mrb[68].mxu1 %vm789_vm2, %v7909_v21  ;;  %1517 = vmatprep.mubr.f32.mxu0 %v11452_v0 }
  0xbc   :  { %1252 = vmatprep.mubr.f32.mxu1 %v11452_v0 }
  0xbe   :  { %6027 = vmatmul.mubr.msk.f32.gmra.mrb[74].mxu0 %vm789_vm2, %v7467_v47 }
  0xbf   :  { %5993 = vmatmul.mubr.msk.f32.gmra.mrb[70].mxu1 %vm789_vm2, %v7920_v22  ;;  %1523 = vmatprep.mubr.f32.mxu0 %v11452_v0 }
  0xc0   :  { %1258 = vmatprep.mubr.f32.mxu1 %v11452_v0 }
  0xc2   :  { %6028 = vmatmul.mubr.msk.f32.gmra.mrb[76].mxu0 %vm789_vm2, %v7483_v50 }
  0xc3   :  { %5994 = vmatmul.mubr.msk.f32.gmra.mrb[72].mxu1 %vm789_vm2, %v7931_v24  ;;  %1529 = vmatprep.mubr.f32.mxu0 %v11452_v0 }
  0xc4   :  { %1264 = vmatprep.mubr.f32.mxu1 %v11452_v0 }
  0xc6   :  { %6029 = vmatmul.mubr.msk.f32.gmra.mrb[78].mxu0 %vm789_vm2, %v7498_v53 }
  0xc7   :  { %5995 = vmatmul.mubr.msk.f32.gmra.mrb[74].mxu1 %vm789_vm2, %v7942_v25  ;;  %1535 = vmatprep.mubr.f32.mxu0 %v11452_v0 }
  0xc8   :  { %1270 = vmatprep.mubr.f32.mxu1 %v11452_v0 }
  0xca   :  { %6030 = vmatmul.mubr.msk.f32.gmra.mrb[80].mxu0 %vm789_vm2, %v7517_v59 }
  0xcb   :  { %5996 = vmatmul.mubr.msk.f32.gmra.mrb[76].mxu1 %vm789_vm2, %v7953_v28  ;;  %1541 = vmatprep.mubr.f32.mxu0 %v11452_v0 }
  0xcc   :  { %1276 = vmatprep.mubr.f32.mxu1 %v11452_v0 }
  0xce   :  { %6031 = vmatmul.mubr.msk.f32.gmra.mrb[82].mxu0 %vm789_vm2, %v7534_v62 }
  0xcf   :  { %5997 = vmatmul.mubr.msk.f32.gmra.mrb[78].mxu1 %vm789_vm2, %v7964_v30  ;;  %1547 = vmatprep.mubr.f32.mxu0 %v11452_v0 }
  0xd0   :  { %1282 = vmatprep.mubr.f32.mxu1 %v11452_v0 }
  0xd2   :  { %6032 = vmatmul.mubr.msk.f32.gmra.mrb[84].mxu0 %vm789_vm2, %v7550_v2 }
  0xd3   :  { %5998 = vmatmul.mubr.msk.f32.gmra.mrb[80].mxu1 %vm789_vm2, %v7975_v33  ;;  %1553 = vmatprep.mubr.f32.mxu0 %v11452_v0 }
  0xd4   :  { %1288 = vmatprep.mubr.f32.mxu1 %v11452_v0 }
  0xd6   :  { %6033 = vmatmul.mubr.msk.f32.gmra.mrb[86].mxu0 %vm789_vm2, %v7566_v5 }
  0xd7   :  { %5999 = vmatmul.mubr.msk.f32.gmra.mrb[82].mxu1 %vm789_vm2, %v7986_v34  ;;  %1559 = vmatprep.mubr.f32.mxu0 %v11452_v0 }
  0xd8   :  { %1294 = vmatprep.mubr.f32.mxu1 %v11452_v0 }
  0xda   :  { %6034 = vmatmul.mubr.msk.f32.gmra.mrb[88].mxu0 %vm789_vm2, %v7582_v8 }
  0xdb   :  { %6000 = vmatmul.mubr.msk.f32.gmra.mrb[84].mxu1 %vm789_vm2, %v7997_v37  ;;  %1565 = vmatprep.mubr.f32.mxu0 %v11452_v0 }
  0xdc   :  { %1300 = vmatprep.mubr.f32.mxu1 %v11452_v0 }
  0xde   :  { %6035 = vmatmul.mubr.msk.f32.gmra.mrb[90].mxu0 %vm789_vm2, %v7598_v11 }
  0xdf   :  { %6001 = vmatmul.mubr.msk.f32.gmra.mrb[86].mxu1 %vm789_vm2, %v8008_v38  ;;  %1571 = vmatprep.mubr.f32.mxu0 %v11452_v0 }
  0xe0   :  { %1306 = vmatprep.mubr.f32.mxu1 %v11452_v0 }
  0xe2   :  { %6036 = vmatmul.mubr.msk.f32.gmra.mrb[92].mxu0 %vm789_vm2, %v7614_v14 }
  0xe3   :  { %6002 = vmatmul.mubr.msk.f32.gmra.mrb[88].mxu1 %vm789_vm2, %v8019_v40  ;;  %1577 = vmatprep.mubr.f32.mxu0 %v11452_v0 }
  0xe4   :  { %1312 = vmatprep.mubr.f32.mxu1 %v11452_v0 }
  0xe6   :  { %6037 = vmatmul.mubr.msk.f32.gmra.mrb[94].mxu0 %vm789_vm2, %v7630_v17 }
  0xe7   :  { %6003 = vmatmul.mubr.msk.f32.gmra.mrb[90].mxu1 %vm789_vm2, %v8030_v41  ;;  %1583 = vmatprep.mubr.f32.mxu0 %v11452_v0 }
  0xe8   :  { %1318 = vmatprep.mubr.f32.mxu1 %v11452_v0 }
  0xea   :  { %6038 = vmatmul.mubr.msk.f32.gmra.mrb[96].mxu0 %vm789_vm2, %v7646_v20 }
  0xeb   :  { %6004 = vmatmul.mubr.msk.f32.gmra.mrb[92].mxu1 %vm789_vm2, %v8041_v43  ;;  %1589 = vmatprep.mubr.f32.mxu0 %v11452_v0 }
  0xec   :  { %1324 = vmatprep.mubr.f32.mxu1 %v11452_v0 }
  0xee   :  { %6039 = vmatmul.mubr.msk.f32.gmra.mrb[98].mxu0 %vm789_vm2, %v7662_v23 }
  0xef   :  { %6005 = vmatmul.mubr.msk.f32.gmra.mrb[94].mxu1 %vm789_vm2, %v8052_v45  ;;  %1595 = vmatprep.mubr.f32.mxu0 %v11452_v0 }
  0xf0   :  { %1330 = vmatprep.mubr.f32.mxu1 %v11452_v0 }
  0xf2   :  { %6040 = vmatmul.mubr.msk.f32.gmra.mrb[100].mxu0 %vm789_vm2, %v7678_v27 }
  0xf3   :  { %6006 = vmatmul.mubr.msk.f32.gmra.mrb[96].mxu1 %vm789_vm2, %v8063_v48  ;;  %1601 = vmatprep.mubr.f32.mxu0 %v11452_v0 }
  0xf4   :  { %1336 = vmatprep.mubr.f32.mxu1 %v11452_v0 }
  0xf6   :  { %6041 = vmatmul.mubr.msk.f32.gmra.mrb[102].mxu0 %vm789_vm2, %v7694_v31 }
  0xf7   :  { %6007 = vmatmul.mubr.msk.f32.gmra.mrb[98].mxu1 %vm789_vm2, %v8074_v49  ;;  %1607 = vmatprep.mubr.f32.mxu0 %v11452_v0 }
  0xf8   :  { %1342 = vmatprep.mubr.f32.mxu1 %v11452_v0 }
  0xfa   :  { %6042 = vmatmul.mubr.msk.f32.gmra.mrb[104].mxu0 %vm789_vm2, %v7710_v36 }
  0xfb   :  { %6008 = vmatmul.mubr.msk.f32.gmra.mrb[100].mxu1 %vm789_vm2, %v8085_v52  ;;  %1613 = vmatprep.mubr.f32.mxu0 %v11452_v0 }
  0xfc   :  { %1348 = vmatprep.mubr.f32.mxu1 %v11452_v0 }
  0xfe   :  { %6043 = vmatmul.mubr.msk.f32.gmra.mrb[106].mxu0 %vm789_vm2, %v7726_v39 }
  0xff   :  { %6009 = vmatmul.mubr.msk.f32.gmra.mrb[102].mxu1 %vm789_vm2, %v8096_v54  ;;  %1619 = vmatprep.mubr.f32.mxu0 %v11452_v0 }
 0x100   :  { %1354 = vmatprep.mubr.f32.mxu1 %v11452_v0 }
 0x102   :  { %6044 = vmatmul.mubr.msk.f32.gmra.mrb[108].mxu0 %vm789_vm2, %v7742_v42 }
 0x103   :  { %6010 = vmatmul.mubr.msk.f32.gmra.mrb[104].mxu1 %vm789_vm2, %v8107_v56  ;;  %1625 = vmatprep.mubr.f32.mxu0 %v11452_v0 }
 0x104   :  { %1360 = vmatprep.mubr.f32.mxu1 %v11452_v0 }
 0x106   :  { %6045 = vmatmul.mubr.msk.f32.gmra.mrb[110].mxu0 %vm789_vm2, %v7758_v46  ;;  %v8122_v61 = vpop.f32.mrb[0].mxu1 }
 0x107   :  { %11573 = vst [vmem:[#allocation9_spill] sm:$0xff] %v8122_v61  ;;  %6011 = vmatmul.mubr.msk.f32.gmra.mrb[106].mxu1 %vm789_vm2, %v8118_v58  ;;  %1631 = vmatprep.mubr.f32.mxu0 %v11452_v0  ;;  %v8127_v63 = vpop.f32.mrb[1].mxu1 }
 0x108   :  { %11574 = vst [vmem:[#allocation10_spill] sm:$0xff] %v8127_v63  ;;  %1366 = vmatprep.mubr.f32.mxu1 %v11452_v0 }
 0x10a   :  { %6046 = vmatmul.mubr.msk.f32.gmra.mrb[112].mxu0 %vm789_vm2, %v7774_v51  ;;  %v8137_v4 = vpop.f32.mrb[2].mxu1 }
 0x10b   :  { %11575 = vst [vmem:[#allocation11_spill] sm:$0xff] %v8137_v4  ;;  %6012 = vmatmul.mubr.msk.f32.gmra.mrb[108].mxu1 %vm789_vm2, %v8133_v3  ;;  %1637 = vmatprep.mubr.f32.mxu0 %v11452_v0  ;;  %v8142_v7 = vpop.f32.mrb[3].mxu1 }
 0x10c   :  { %11576 = vst [vmem:[#allocation12_spill] sm:$0xff] %v8142_v7  ;;  %1372 = vmatprep.mubr.f32.mxu1 %v11452_v0 }
 0x10e   :  { %6047 = vmatmul.mubr.msk.f32.gmra.mrb[114].mxu0 %vm789_vm2, %v7790_v55  ;;  %v8152_v12 = vpop.f32.mrb[4].mxu1 }
 0x10f   :  { %11577 = vst [vmem:[#allocation13_spill] sm:$0xff] %v8152_v12  ;;  %6013 = vmatmul.mubr.msk.f32.gmra.mrb[110].mxu1 %vm789_vm2, %v8148_v9  ;;  %1643 = vmatprep.mubr.f32.mxu0 %v11452_v0  ;;  %v8157_v13 = vpop.f32.mrb[5].mxu1 }
 0x110   :  { %11578 = vst [vmem:[#allocation14_spill] sm:$0xff] %v8157_v13  ;;  %1378 = vmatprep.mubr.f32.mxu1 %v11452_v0  ;;  %v8178_v13 = vld [vmem:[%s11434_s1 + $0x1c8] sm:$0xff] }
 0x111   :  { %11582 = vst [vmem:[#allocation18_spill] sm:$0xff] %v8178_v13 }
 0x112   :  { %6048 = vmatmul.mubr.msk.f32.gmra.mrb[116].mxu0 %vm789_vm2, %v7806_v60  ;;  %v8167_v7 = vpop.f32.mrb[6].mxu1 }
 0x113   :  { %11580 = vst [vmem:[#allocation16_spill] sm:$0xff] %v8167_v7  ;;  %6014 = vmatmul.mubr.msk.f32.gmra.mrb[112].mxu1 %vm789_vm2, %v8163_v16  ;;  %1649 = vmatprep.mubr.f32.mxu0 %v11452_v0  ;;  %v8172_v63 = vpop.f32.mrb[7].mxu1  ;;  %v3838_v16 = vld [vmem:[#allocation3 + $0x8] sm:$0xff] }
 0x114   :  { %11581 = vst [vmem:[#allocation17_spill] sm:$0xff] %v8172_v63  ;;  %1384 = vmatprep.mubr.f32.mxu1 %v11452_v0  ;;  %v8193_v63 = vld [vmem:[%s11434_s1 + $0x1d0] sm:$0xff] }
 0x115   :  { %11585 = vst [vmem:[#allocation21_spill] sm:$0xff] %v8193_v63 }
 0x116   :  { %6049 = vmatmul.mubr.msk.f32.gmra.mrb[118].mxu0 %vm789_vm2, %v7822_v1  ;;  %v8182_v12 = vpop.f32.mrb[8].mxu1 }
 0x117   :  { %11583 = vst [vmem:[#allocation19_spill] sm:$0xff] %v8182_v12  ;;  %6015 = vmatmul.mubr.msk.f32.gmra.mrb[114].mxu1 %vm789_vm2, %v8178_v13  ;;  %1655 = vmatprep.mubr.f32.mxu0 %v11452_v0  ;;  %v8187_v7 = vpop.f32.mrb[9].mxu1  ;;  %v3837_v13 = vld [vmem:[#allocation3] sm:$0xff] }
 0x118   :  { %11584 = vst [vmem:[#allocation20_spill] sm:$0xff] %v8187_v7  ;;  %1390 = vmatprep.mubr.f32.mxu1 %v11452_v0  ;;  %v8208_v7 = vld [vmem:[%s11434_s1 + $0x1d8] sm:$0xff]  ;;  %3965 = vrot.lane.b32.xlu0 %v3837_v13, %s7296_s30 }
 0x119   :  { %11588 = vst [vmem:[#allocation24_spill] sm:$0xff] %v8208_v7 }
 0x11a   :  { %6050 = vmatmul.mubr.msk.f32.gmra.mrb[120].mxu0 %vm789_vm2, %v7838_v6  ;;  %v8197_v61 = vpop.f32.mrb[10].mxu1 }
 0x11b   :  { %11586 = vst [vmem:[#allocation22_spill] sm:$0xff] %v8197_v61  ;;  %6016 = vmatmul.mubr.msk.f32.gmra.mrb[116].mxu1 %vm789_vm2, %v8193_v63  ;;  %1661 = vmatprep.mubr.f32.mxu0 %v11452_v0  ;;  %v8202_v12 = vpop.f32.mrb[11].mxu1 }
 0x11c   :  { %11587 = vst [vmem:[#allocation23_spill] sm:$0xff] %v8202_v12  ;;  %1396 = vmatprep.mubr.f32.mxu1 %v11452_v0  ;;  %v8223_v12 = vld [vmem:[%s11434_s1 + $0x1e0] sm:$0xff]  ;;  %3967 = vrot.lane.b32.xlu0 %v3838_v16, %s7296_s30 }
 0x11d   :  { %11591 = vst [vmem:[#allocation27_spill] sm:$0xff] %v8223_v12 }
 0x11e   :  { %6051 = vmatmul.mubr.msk.f32.gmra.mrb[122].mxu0 %vm789_vm2, %v7854_v10  ;;  %v8212_v4 = vpop.f32.mrb[12].mxu1 }
 0x11f   :  { %11589 = vst [vmem:[#allocation25_spill] sm:$0xff] %v8212_v4  ;;  %6017 = vmatmul.mubr.msk.f32.gmra.mrb[118].mxu1 %vm789_vm2, %v8208_v7  ;;  %1667 = vmatprep.mubr.f32.mxu0 %v11452_v0  ;;  %v8217_v61 = vpop.f32.mrb[13].mxu1  ;;  %v3839_v4 = vld [vmem:[#allocation3 + $0x10] sm:$0xff]  ;;  %v8238_v7 = vld [vmem:[%s11434_s1 + $0x1e8] sm:$0xff] }
 0x120   :  { %11590 = vst [vmem:[#allocation26_spill] sm:$0xff] %v8217_v61  ;;  %1402 = vmatprep.mubr.f32.mxu1 %v11452_v0  ;;  %11594 = vst [vmem:[#allocation30_spill] sm:$0xff] %v8238_v7  ;;  %3969 = vrot.lane.b32.xlu1 %v3839_v4, %s7296_s30  ;;  %v8255_v4 = vld [vmem:[%s11434_s1 + $0x1f0] sm:$0xff] }
 0x122   :  { %6052 = vmatmul.mubr.msk.f32.gmra.mrb[124].mxu0 %vm789_vm2, %v7864_v15  ;;  %v8227_v63 = vpop.f32.mrb[14].mxu1 }
 0x123   :  { %11592 = vst [vmem:[#allocation28_spill] sm:$0xff] %v8227_v63  ;;  %6018 = vmatmul.mubr.msk.f32.gmra.mrb[120].mxu1 %vm789_vm2, %v8223_v12  ;;  %1672 = vmatprep.mubr.f32.mxu0 %v11452_v0  ;;  %v8232_v61 = vpop.f32.mrb[15].mxu1  ;;  %v3840_v12 = vld [vmem:[#allocation3 + $0x18] sm:$0xff] }
 0x124   :  { %11593 = vst [vmem:[#allocation29_spill] sm:$0xff] %v8232_v61  ;;  %1408 = vmatprep.mubr.f32.mxu1 %v11452_v0  ;;  %3971 = vrot.lane.b32.xlu1 %v3840_v12, %s7296_s30  ;;  %v8273_v12 = vld [vmem:[%s11434_s1 + $0x1f8] sm:$0xff] }
 0x126   :  { %6053 = vmatmul.mubr.msk.f32.gmra.mrb[126].mxu0 %vm789_vm2, %v7876_v18  ;;  %v8244_v63 = vpop.f32.mrb[16].mxu1 }
 0x127   :  { %11595 = vst [vmem:[#allocation31_spill] sm:$0xff] %v8244_v63  ;;  %6019 = vmatmul.mubr.msk.f32.gmra.mrb[122].mxu1 %vm789_vm2, %v8238_v7  ;;  %1677 = vmatprep.mubr.f32.mxu0 %v11452_v0  ;;  %v8249_v61 = vpop.f32.mrb[17].mxu1  ;;  %v3842_v63 = vld [vmem:[#allocation3 + $0x28] sm:$0xff]  ;;  %v3841_v7 = vld [vmem:[#allocation3 + $0x20] sm:$0xff] }
 0x128   :  { %11596 = vst [vmem:[#allocation32_spill] sm:$0xff] %v8249_v61  ;;  %1414 = vmatprep.mubr.f32.mxu1 %v11452_v0  ;;  %v11599_v61 = vmov 0.0   ;;  %3975 = vrot.lane.b32.xlu1 %v3842_v63, %s7296_s30  ;;  %v3846_v63 = vld [vmem:[#allocation3 + $0x48] sm:$0xff] }
 0x129   :  { %3973 = vrot.lane.b32.xlu0 %v3841_v7, %s7296_s30  ;;  %v3845_v7 = vld [vmem:[#allocation3 + $0x40] sm:$0xff] }
 0x12a   :  { %6054 = vmatmul.mubr.msk.f32.gmra.mrb[128].mxu0 %vm789_vm2, %v7887_v57  ;;  %v8261_v13 = vpop.f32.mrb[18].mxu1 }
 0x12b   :  { %11597 = vst [vmem:[#allocation33_spill] sm:$0xff] %v8261_v13  ;;  %6020 = vmatmul.mubr.msk.f32.gmra.mrb[124].mxu1 %vm789_vm2, %v8255_v4  ;;  %6453 = vmatprep.mubr.msk.f32.mxu0 %vm789_vm2, %v7387_v26  ;;  %v8267_v0 = vpop.f32.mrb[19].mxu1  ;;  %v3844_v13 = vld [vmem:[#allocation3 + $0x38] sm:$0xff]  ;;  %v3843_v26 = vld [vmem:[#allocation3 + $0x30] sm:$0xff] }
 0x12c   :  { %11598 = vst [vmem:[#allocation34_spill] sm:$0xff] %v8267_v0  ;;  %1418 = vmatprep.mubr.f32.mxu1 %v11599_v61  ;;  %3979 = vrot.lane.b32.xlu1 %v3844_v13, %s7296_s30  ;;  %v3848_v13 = vld [vmem:[#allocation3 + $0x58] sm:$0xff] }
 0x12d   :  { %3977 = vrot.lane.b32.xlu0 %v3843_v26, %s7296_s30  ;;  %v3847_v26 = vld [vmem:[#allocation3 + $0x50] sm:$0xff] }
 0x12e   :  { %6454 = vmatmul.mubr.msk.f32.vlgmr.msra.gmra.mrb[0].mxu0 %vm789_vm2, %v7403_v29  ;;  %v8279_v16 = vpop.f32.mrb[20].mxu1 }
 0x12f   :  { %6021 = vmatmul.mubr.msk.f32.gmra.mrb[126].mxu1 %vm789_vm2, %v8273_v12  ;;  %6456 = vmatprep.mubr.msk.f32.mxu0 %vm789_vm2, %v7419_v32  ;;  %v8285_v0 = vpop.f32.mrb[21].mxu1 }
 0x130   :  { %1683 = vmatprep.mubr.f32.mxu1 %v11599_v61  ;;  %3983 = vrot.lane.b32.xlu1 %v3846_v63, %s7296_s30  ;;  %v3850_v63 = vld [vmem:[#allocation3 + $0x68] sm:$0xff] }
 0x131   :  { %3981 = vrot.lane.b32.xlu0 %v3845_v7, %s7296_s30  ;;  %v3849_v7 = vld [vmem:[#allocation3 + $0x60] sm:$0xff] }
 0x132   :  { %6457 = vmatmul.mubr.msk.f32.gmra.mrb[2].mxu0 %vm789_vm2, %v7434_v35  ;;  %v8292_v29 = vpop.f32.mrb[22].mxu1 }
 0x133   :  { %6055 = vmatmul.mubr.msk.f32.vlgmr.msra.gmra.mrb[128].mxu1 %vm789_vm2, %v7898_v19  ;;  %6459 = vmatprep.mubr.msk.f32.mxu0 %vm789_vm2, %v7451_v44  ;;  %v8298_v32 = vpop.f32.mrb[23].mxu1 }
 0x134   :  { %1689 = vmatprep.mubr.f32.mxu1 %v11599_v61  ;;  %3987 = vrot.lane.b32.xlu1 %v3848_v13, %s7296_s30  ;;  %v3852_v13 = vld [vmem:[#allocation3 + $0x78] sm:$0xff] }
 0x135   :  { %3985 = vrot.lane.b32.xlu0 %v3847_v26, %s7296_s30  ;;  %v3851_v26 = vld [vmem:[#allocation3 + $0x70] sm:$0xff] }
 0x136   :  { %6460 = vmatmul.mubr.msk.f32.gmra.mrb[4].mxu0 %vm789_vm2, %v7467_v47  ;;  %v8305_v35 = vpop.f32.mrb[24].mxu1 }
 0x137   :  { %6462 = vmatprep.mubr.msk.f32.mxu0 %vm789_vm2, %v7483_v50  ;;  %6056 = vmatmul.mubr.msk.f32.gmra.mrb[130].mxu1 %vm789_vm2, %v7909_v21  ;;  %v8311_v44 = vpop.f32.mrb[25].mxu1 }
 0x138   :  { %1695 = vmatprep.mubr.f32.mxu1 %v11599_v61  ;;  %3991 = vrot.lane.b32.xlu1 %v3850_v63, %s7296_s30  ;;  %v3854_v63 = vld [vmem:[#allocation3 + $0x88] sm:$0xff] }
 0x139   :  { %3989 = vrot.lane.b32.xlu0 %v3849_v7, %s7296_s30  ;;  %v3853_v7 = vld [vmem:[#allocation3 + $0x80] sm:$0xff] }
 0x13a   :  { %6463 = vmatmul.mubr.msk.f32.gmra.mrb[6].mxu0 %vm789_vm2, %v7498_v53  ;;  %v8318_v47 = vpop.f32.mrb[26].mxu1 }
 0x13b   :  { %6465 = vmatprep.mubr.msk.f32.mxu0 %vm789_vm2, %v7517_v59  ;;  %6057 = vmatmul.mubr.msk.f32.gmra.mrb[132].mxu1 %vm789_vm2, %v7920_v22  ;;  %v8324_v50 = vpop.f32.mrb[27].mxu1 }
 0x13c   :  { %1701 = vmatprep.mubr.f32.mxu1 %v11599_v61  ;;  %3995 = vrot.lane.b32.xlu1 %v3852_v13, %s7296_s30  ;;  %v3856_v13 = vld [vmem:[#allocation3 + $0x98] sm:$0xff] }
 0x13d   :  { %3993 = vrot.lane.b32.xlu0 %v3851_v26, %s7296_s30  ;;  %v3855_v26 = vld [vmem:[#allocation3 + $0x90] sm:$0xff] }
 0x13e   :  { %6466 = vmatmul.mubr.msk.f32.gmra.mrb[8].mxu0 %vm789_vm2, %v7534_v62  ;;  %v8331_v53 = vpop.f32.mrb[28].mxu1 }
 0x13f   :  { %6468 = vmatprep.mubr.msk.f32.mxu0 %vm789_vm2, %v7550_v2  ;;  %6058 = vmatmul.mubr.msk.f32.gmra.mrb[134].mxu1 %vm789_vm2, %v7931_v24  ;;  %v8337_v59 = vpop.f32.mrb[29].mxu1 }
 0x140   :  { %1707 = vmatprep.mubr.f32.mxu1 %v11599_v61  ;;  %3999 = vrot.lane.b32.xlu1 %v3854_v63, %s7296_s30  ;;  %v3858_v63 = vld [vmem:[#allocation3 + $0xa8] sm:$0xff] }
 0x141   :  { %3997 = vrot.lane.b32.xlu0 %v3853_v7, %s7296_s30  ;;  %v3857_v7 = vld [vmem:[#allocation3 + $0xa0] sm:$0xff] }
 0x142   :  { %6469 = vmatmul.mubr.msk.f32.gmra.mrb[10].mxu0 %vm789_vm2, %v7566_v5  ;;  %v8344_v62 = vpop.f32.mrb[30].mxu1 }
 0x143   :  { %6471 = vmatprep.mubr.msk.f32.mxu0 %vm789_vm2, %v7582_v8  ;;  %6059 = vmatmul.mubr.msk.f32.gmra.mrb[136].mxu1 %vm789_vm2, %v7942_v25  ;;  %v8350_v2 = vpop.f32.mrb[31].mxu1 }
 0x144   :  { %1713 = vmatprep.mubr.f32.mxu1 %v11599_v61  ;;  %4003 = vrot.lane.b32.xlu1 %v3856_v13, %s7296_s30  ;;  %v3860_v13 = vld [vmem:[#allocation3 + $0xb8] sm:$0xff] }
 0x145   :  { %4001 = vrot.lane.b32.xlu0 %v3855_v26, %s7296_s30  ;;  %v3859_v26 = vld [vmem:[#allocation3 + $0xb0] sm:$0xff] }
 0x146   :  { %6472 = vmatmul.mubr.msk.f32.gmra.mrb[12].mxu0 %vm789_vm2, %v7598_v11  ;;  %v8357_v5 = vpop.f32.mrb[32].mxu1 }
 0x147   :  { %6474 = vmatprep.mubr.msk.f32.mxu0 %vm789_vm2, %v7614_v14  ;;  %6060 = vmatmul.mubr.msk.f32.gmra.mrb[138].mxu1 %vm789_vm2, %v7953_v28  ;;  %v8363_v8 = vpop.f32.mrb[33].mxu1 }
 0x148   :  { %1719 = vmatprep.mubr.f32.mxu1 %v11599_v61  ;;  %4007 = vrot.lane.b32.xlu1 %v3858_v63, %s7296_s30  ;;  %v3862_v63 = vld [vmem:[#allocation3 + $0xc8] sm:$0xff] }
 0x149   :  { %4005 = vrot.lane.b32.xlu0 %v3857_v7, %s7296_s30  ;;  %v3861_v7 = vld [vmem:[#allocation3 + $0xc0] sm:$0xff] }
 0x14a   :  { %6475 = vmatmul.mubr.msk.f32.gmra.mrb[14].mxu0 %vm789_vm2, %v7630_v17  ;;  %v8370_v11 = vpop.f32.mrb[34].mxu1 }
 0x14b   :  { %6477 = vmatprep.mubr.msk.f32.mxu0 %vm789_vm2, %v7646_v20  ;;  %6061 = vmatmul.mubr.msk.f32.gmra.mrb[140].mxu1 %vm789_vm2, %v7964_v30  ;;  %v8376_v14 = vpop.f32.mrb[35].mxu1 }
 0x14c   :  { %1725 = vmatprep.mubr.f32.mxu1 %v11599_v61  ;;  %4011 = vrot.lane.b32.xlu1 %v3860_v13, %s7296_s30  ;;  %v3864_v13 = vld [vmem:[#allocation3 + $0xd8] sm:$0xff] }
 0x14d   :  { %4009 = vrot.lane.b32.xlu0 %v3859_v26, %s7296_s30  ;;  %v3863_v26 = vld [vmem:[#allocation3 + $0xd0] sm:$0xff] }
 0x14e   :  { %6478 = vmatmul.mubr.msk.f32.gmra.mrb[16].mxu0 %vm789_vm2, %v7662_v23  ;;  %v8383_v17 = vpop.f32.mrb[36].mxu1 }
 0x14f   :  { %6480 = vmatprep.mubr.msk.f32.mxu0 %vm789_vm2, %v7678_v27  ;;  %6062 = vmatmul.mubr.msk.f32.gmra.mrb[142].mxu1 %vm789_vm2, %v7975_v33  ;;  %v8389_v20 = vpop.f32.mrb[37].mxu1 }
 0x150   :  { %11600 = vst [vmem:[#allocation35_spill] sm:$0xff] %v8389_v20  ;;  %1731 = vmatprep.mubr.f32.mxu1 %v11599_v61  ;;  %4015 = vrot.lane.b32.xlu1 %v3862_v63, %s7296_s30  ;;  %v3866_v63 = vld [vmem:[#allocation3 + $0xe8] sm:$0xff] }
 0x151   :  { %4013 = vrot.lane.b32.xlu0 %v3861_v7, %s7296_s30  ;;  %v3865_v7 = vld [vmem:[#allocation3 + $0xe0] sm:$0xff] }
 0x152   :  { %6481 = vmatmul.mubr.msk.f32.gmra.mrb[18].mxu0 %vm789_vm2, %v7694_v31  ;;  %v8396_v23 = vpop.f32.mrb[38].mxu1 }
 0x153   :  { %6483 = vmatprep.mubr.msk.f32.mxu0 %vm789_vm2, %v7710_v36  ;;  %6063 = vmatmul.mubr.msk.f32.gmra.mrb[144].mxu1 %vm789_vm2, %v7986_v34  ;;  %v8402_v27 = vpop.f32.mrb[39].mxu1 }
 0x154   :  { %11601 = vst [vmem:[#allocation36_spill] sm:$0xff] %v8402_v27  ;;  %1737 = vmatprep.mubr.f32.mxu1 %v11599_v61  ;;  %4019 = vrot.lane.b32.xlu1 %v3864_v13, %s7296_s30  ;;  %v3868_v13 = vld [vmem:[#allocation3 + $0xf8] sm:$0xff] }
 0x155   :  { %4017 = vrot.lane.b32.xlu0 %v3863_v26, %s7296_s30  ;;  %v3867_v26 = vld [vmem:[#allocation3 + $0xf0] sm:$0xff] }
 0x156   :  { %6484 = vmatmul.mubr.msk.f32.gmra.mrb[20].mxu0 %vm789_vm2, %v7726_v39  ;;  %v8409_v31 = vpop.f32.mrb[40].mxu1 }
 0x157   :  { %6486 = vmatprep.mubr.msk.f32.mxu0 %vm789_vm2, %v7742_v42  ;;  %6064 = vmatmul.mubr.msk.f32.gmra.mrb[146].mxu1 %vm789_vm2, %v7997_v37  ;;  %v8415_v36 = vpop.f32.mrb[41].mxu1 }
 0x158   :  { %11602 = vst [vmem:[#allocation37_spill] sm:$0xff] %v8415_v36  ;;  %1743 = vmatprep.mubr.f32.mxu1 %v11599_v61  ;;  %4023 = vrot.lane.b32.xlu1 %v3866_v63, %s7296_s30  ;;  %v3870_v63 = vld [vmem:[#allocation3 + $0x108] sm:$0xff] }
 0x159   :  { %4021 = vrot.lane.b32.xlu0 %v3865_v7, %s7296_s30  ;;  %v3869_v7 = vld [vmem:[#allocation3 + $0x100] sm:$0xff] }
 0x15a   :  { %6487 = vmatmul.mubr.msk.f32.gmra.mrb[22].mxu0 %vm789_vm2, %v7758_v46  ;;  %v8422_v39 = vpop.f32.mrb[42].mxu1 }
 0x15b   :  { %6489 = vmatprep.mubr.msk.f32.mxu0 %vm789_vm2, %v7774_v51  ;;  %6065 = vmatmul.mubr.msk.f32.gmra.mrb[148].mxu1 %vm789_vm2, %v8008_v38  ;;  %v8428_v42 = vpop.f32.mrb[43].mxu1 }
 0x15c   :  { %11603 = vst [vmem:[#allocation38_spill] sm:$0xff] %v8428_v42  ;;  %1749 = vmatprep.mubr.f32.mxu1 %v11599_v61  ;;  %4027 = vrot.lane.b32.xlu1 %v3868_v13, %s7296_s30  ;;  %v3872_v13 = vld [vmem:[#allocation3 + $0x118] sm:$0xff] }
 0x15d   :  { %4025 = vrot.lane.b32.xlu0 %v3867_v26, %s7296_s30  ;;  %v3871_v26 = vld [vmem:[#allocation3 + $0x110] sm:$0xff] }
 0x15e   :  { %6490 = vmatmul.mubr.msk.f32.gmra.mrb[24].mxu0 %vm789_vm2, %v7790_v55  ;;  %v8435_v46 = vpop.f32.mrb[44].mxu1 }
 0x15f   :  { %11604 = vst [vmem:[#allocation39_spill] sm:$0xff] %v8435_v46  ;;  %6492 = vmatprep.mubr.msk.f32.mxu0 %vm789_vm2, %v7806_v60  ;;  %6066 = vmatmul.mubr.msk.f32.gmra.mrb[150].mxu1 %vm789_vm2, %v8019_v40  ;;  %v8441_v51 = vpop.f32.mrb[45].mxu1 }
 0x160   :  { %11605 = vst [vmem:[#allocation40_spill] sm:$0xff] %v8441_v51  ;;  %1755 = vmatprep.mubr.f32.mxu1 %v11599_v61  ;;  %4031 = vrot.lane.b32.xlu1 %v3870_v63, %s7296_s30  ;;  %v3874_v63 = vld [vmem:[#allocation3 + $0x128] sm:$0xff] }
 0x161   :  { %4029 = vrot.lane.b32.xlu0 %v3869_v7, %s7296_s30  ;;  %v3873_v7 = vld [vmem:[#allocation3 + $0x120] sm:$0xff] }
 0x162   :  { %6493 = vmatmul.mubr.msk.f32.gmra.mrb[26].mxu0 %vm789_vm2, %v7822_v1  ;;  %v8448_v55 = vpop.f32.mrb[46].mxu1 }
 0x163   :  { %6495 = vmatprep.mubr.msk.f32.mxu0 %vm789_vm2, %v7838_v6  ;;  %6067 = vmatmul.mubr.msk.f32.gmra.mrb[152].mxu1 %vm789_vm2, %v8030_v41  ;;  %v8454_v60 = vpop.f32.mrb[47].mxu1 }
 0x164   :  { %11606 = vst [vmem:[#allocation41_spill] sm:$0xff] %v8454_v60  ;;  %1761 = vmatprep.mubr.f32.mxu1 %v11599_v61  ;;  %4035 = vrot.lane.b32.xlu1 %v3872_v13, %s7296_s30  ;;  %v3876_v13 = vld [vmem:[#allocation3 + $0x138] sm:$0xff] }
 0x165   :  { %4033 = vrot.lane.b32.xlu0 %v3871_v26, %s7296_s30  ;;  %v3875_v26 = vld [vmem:[#allocation3 + $0x130] sm:$0xff] }
 0x166   :  { %6496 = vmatmul.mubr.msk.f32.gmra.mrb[28].mxu0 %vm789_vm2, %v7854_v10  ;;  %v8461_v1 = vpop.f32.mrb[48].mxu1 }
 0x167   :  { %11607 = vst [vmem:[#allocation42_spill] sm:$0xff] %v8461_v1  ;;  %6498 = vmatprep.mubr.msk.f32.mxu0 %vm789_vm2, %v7864_v15  ;;  %6068 = vmatmul.mubr.msk.f32.gmra.mrb[154].mxu1 %vm789_vm2, %v8041_v43  ;;  %v8467_v6 = vpop.f32.mrb[49].mxu1 }
 0x168   :  { %11608 = vst [vmem:[#allocation43_spill] sm:$0xff] %v8467_v6  ;;  %1767 = vmatprep.mubr.f32.mxu1 %v11599_v61  ;;  %4039 = vrot.lane.b32.xlu1 %v3874_v63, %s7296_s30  ;;  %v3878_v63 = vld [vmem:[#allocation3 + $0x148] sm:$0xff] }
 0x169   :  { %4037 = vrot.lane.b32.xlu0 %v3873_v7, %s7296_s30  ;;  %v3877_v7 = vld [vmem:[#allocation3 + $0x140] sm:$0xff] }
 0x16a   :  { %6499 = vmatmul.mubr.msk.f32.gmra.mrb[30].mxu0 %vm789_vm2, %v7876_v18  ;;  %v8474_v10 = vpop.f32.mrb[50].mxu1 }
 0x16b   :  { %11609 = vst [vmem:[#allocation44_spill] sm:$0xff] %v8474_v10  ;;  %6501 = vmatprep.mubr.msk.f32.mxu0 %vm789_vm2, %v7887_v57  ;;  %6069 = vmatmul.mubr.msk.f32.gmra.mrb[156].mxu1 %vm789_vm2, %v8052_v45  ;;  %v8480_v15 = vpop.f32.mrb[51].mxu1 }
 0x16c   :  { %11610 = vst [vmem:[#allocation45_spill] sm:$0xff] %v8480_v15  ;;  %1773 = vmatprep.mubr.f32.mxu1 %v11599_v61  ;;  %4043 = vrot.lane.b32.xlu1 %v3876_v13, %s7296_s30  ;;  %v3880_v13 = vld [vmem:[#allocation3 + $0x158] sm:$0xff] }
 0x16d   :  { %4041 = vrot.lane.b32.xlu0 %v3875_v26, %s7296_s30  ;;  %v3879_v26 = vld [vmem:[#allocation3 + $0x150] sm:$0xff] }
 0x16e   :  { %6502 = vmatmul.mubr.msk.f32.gmra.mrb[32].mxu0 %vm789_vm2, %v7898_v19  ;;  %v8487_v18 = vpop.f32.mrb[52].mxu1 }
 0x16f   :  { %11611 = vst [vmem:[#allocation46_spill] sm:$0xff] %v8487_v18  ;;  %6504 = vmatprep.mubr.msk.f32.mxu0 %vm789_vm2, %v7909_v21  ;;  %6070 = vmatmul.mubr.msk.f32.gmra.mrb[158].mxu1 %vm789_vm2, %v8063_v48  ;;  %v8493_v57 = vpop.f32.mrb[53].mxu1 }
 0x170   :  { %11612 = vst [vmem:[#allocation47_spill] sm:$0xff] %v8493_v57  ;;  %1779 = vmatprep.mubr.f32.mxu1 %v11599_v61  ;;  %4047 = vrot.lane.b32.xlu1 %v3878_v63, %s7296_s30  ;;  %v3882_v63 = vld [vmem:[#allocation3 + $0x168] sm:$0xff] }
 0x171   :  { %4045 = vrot.lane.b32.xlu0 %v3877_v7, %s7296_s30  ;;  %v3881_v7 = vld [vmem:[#allocation3 + $0x160] sm:$0xff]  ;;  %v3894_v57 = vld [vmem:[#allocation3 + $0x1c8] sm:$0xff] }
 0x172   :  { %6505 = vmatmul.mubr.msk.f32.gmra.mrb[34].mxu0 %vm789_vm2, %v7920_v22  ;;  %v8500_v19 = vpop.f32.mrb[54].mxu1 }
 0x173   :  { %11613 = vst [vmem:[#allocation48_spill] sm:$0xff] %v8500_v19  ;;  %6507 = vmatprep.mubr.msk.f32.mxu0 %vm789_vm2, %v7931_v24  ;;  %6071 = vmatmul.mubr.msk.f32.gmra.mrb[160].mxu1 %vm789_vm2, %v8074_v49  ;;  %v8506_v21 = vpop.f32.mrb[55].mxu1 }
 0x174   :  { %11614 = vst [vmem:[#allocation49_spill] sm:$0xff] %v8506_v21  ;;  %1785 = vmatprep.mubr.f32.mxu1 %v11599_v61  ;;  %4051 = vrot.lane.b32.xlu1 %v3880_v13, %s7296_s30  ;;  %v3886_v21 = vld [vmem:[#allocation3 + $0x188] sm:$0xff] }
 0x175   :  { %4049 = vrot.lane.b32.xlu0 %v3879_v26, %s7296_s30 }
 0x176   :  { %6508 = vmatmul.mubr.msk.f32.gmra.mrb[36].mxu0 %vm789_vm2, %v7942_v25  ;;  %v8513_v22 = vpop.f32.mrb[56].mxu1 }
 0x177   :  { %11615 = vst [vmem:[#allocation50_spill] sm:$0xff] %v8513_v22  ;;  %6510 = vmatprep.mubr.msk.f32.mxu0 %vm789_vm2, %v7953_v28  ;;  %6072 = vmatmul.mubr.msk.f32.gmra.mrb[162].mxu1 %vm789_vm2, %v8085_v52  ;;  %v8519_v24 = vpop.f32.mrb[57].mxu1 }
 0x178   :  { %11616 = vst [vmem:[#allocation51_spill] sm:$0xff] %v8519_v24  ;;  %1791 = vmatprep.mubr.f32.mxu1 %v11599_v61  ;;  %4055 = vrot.lane.b32.xlu1 %v3882_v63, %s7296_s30  ;;  %v3884_v24 = vld [vmem:[#allocation3 + $0x178] sm:$0xff] }
 0x179   :  { %4053 = vrot.lane.b32.xlu0 %v3881_v7, %s7296_s30 }
 0x17a   :  { %6511 = vmatmul.mubr.msk.f32.gmra.mrb[38].mxu0 %vm789_vm2, %v7964_v30  ;;  %v8526_v25 = vpop.f32.mrb[58].mxu1 }
 0x17b   :  { %11617 = vst [vmem:[#allocation52_spill] sm:$0xff] %v8526_v25  ;;  %6513 = vmatprep.mubr.msk.f32.mxu0 %vm789_vm2, %v7975_v33  ;;  %6073 = vmatmul.mubr.msk.f32.gmra.mrb[164].mxu1 %vm789_vm2, %v8096_v54  ;;  %v8532_v28 = vpop.f32.mrb[59].mxu1  ;;  %v3883_v33 = vld [vmem:[#allocation3 + $0x170] sm:$0xff]  ;;  %v3898_v25 = vld [vmem:[#allocation3 + $0x1e8] sm:$0xff] }
 0x17c   :  { %11618 = vst [vmem:[#allocation53_spill] sm:$0xff] %v8532_v28  ;;  %1797 = vmatprep.mubr.f32.mxu1 %v11599_v61  ;;  %4059 = vrot.lane.b32.xlu1 %v3884_v24, %s7296_s30 }
 0x17d   :  { %v1489_v13 = vpop.f32.mrb[64].mxu0  ;;  %4057 = vrot.lane.b32.xlu0 %v3883_v33, %s7296_s30 }
 0x17e   :  { %v8537_v26 = vpop.f32.mrb[65].mxu0  ;;  %6514 = vmatmul.mubr.msk.f32.gmra.mrb[40].mxu0 %vm789_vm2, %v7986_v34  ;;  %v1228_v30 = vpop.f32.mrb[60].mxu1  ;;  %v2863_v34 = vrot.slane %v1489_v13, 1 }
 0x17f   :  { %6516 = vmatprep.mubr.msk.f32.mxu0 %vm789_vm2, %v7997_v37  ;;  %6074 = vmatmul.mubr.msk.f32.gmra.mrb[166].mxu1 %vm789_vm2, %v8107_v56  ;;  %v1229_v28 = vpop.f32.mrb[61].mxu1 }
 0x180   :  { %1803 = vmatprep.mubr.f32.mxu1 %v11599_v61  ;;  %v3885_v28 = vld [vmem:[#allocation3 + $0x180] sm:$0xff]  ;;  %4063 = vrot.lane.b32.xlu1 %v3886_v21, %s7296_s30 }
 0x181   :  { %v8547_v63 = vpop.f32.mrb[66].mxu0  ;;  %4061 = vrot.lane.b32.xlu0 %v3885_v28, %s7296_s30 }
 0x182   :  { %v11454_v7 = vrot.slane %v8547_v63, 1  ;;  %v8551_v30 = vpop.f32.mrb[67].mxu0  ;;  %6517 = vmatmul.mubr.msk.f32.gmra.mrb[42].mxu0 %vm789_vm2, %v8008_v38  ;;  %v1232_v37 = vpop.f32.mrb[62].mxu1 }
 0x183   :  { %6519 = vmatprep.mubr.msk.f32.mxu0 %vm789_vm2, %v8019_v40  ;;  %6075 = vmatmul.mubr.msk.f32.gmra.mrb[168].mxu1 %vm789_vm2, %v8118_v58  ;;  %v1233_v24 = vpop.f32.mrb[63].mxu1  ;;  %v3888_v37 = vld [vmem:[#allocation3 + $0x198] sm:$0xff] }
 0x184   :  { %v8562_v13 = vsel %vm2862_vm3, %v2863_v34, %v11454_v7  ;;  %1809 = vmatprep.mubr.f32.mxu1 %v11599_v61  ;;  %v3887_v24 = vld [vmem:[#allocation3 + $0x190] sm:$0xff]  ;;  %4067 = vrot.lane.b32.xlu1 %v3888_v37, %s7296_s30 }
 0x185   :  { %v1501_v38 = vpop.f32.mrb[68].mxu0  ;;  %4065 = vrot.lane.b32.xlu0 %v3887_v24, %s7296_s30 }
 0x186   :  { %v8567_v33 = vpop.f32.mrb[69].mxu0  ;;  %6520 = vmatmul.mubr.msk.f32.gmra.mrb[44].mxu0 %vm789_vm2, %v8030_v41  ;;  %v8571_v40 = vpop.f32.mrb[64].mxu1  ;;  %v2866_v41 = vrot.slane %v1501_v38, 1 }
 0x187   :  { %11619 = vst [vmem:[#allocation54_spill] sm:$0xff] %v8571_v40  ;;  %6522 = vmatprep.mubr.msk.f32.mxu0 %vm789_vm2, %v8041_v43  ;;  %6076 = vmatmul.mubr.msk.f32.gmra.mrb[170].mxu1 %vm789_vm2, %v8133_v3  ;;  %v8577_v34 = vpop.f32.mrb[65].mxu1  ;;  %v3890_v40 = vld [vmem:[#allocation3 + $0x1a8] sm:$0xff] }
 0x188   :  { %11620 = vst [vmem:[#allocation55_spill] sm:$0xff] %v8577_v34  ;;  %1815 = vmatprep.mubr.f32.mxu1 %v11599_v61  ;;  %v3889_v34 = vld [vmem:[#allocation3 + $0x1a0] sm:$0xff]  ;;  %4071 = vrot.lane.b32.xlu1 %v3890_v40, %s7296_s30 }
 0x189   :  { %v8581_v21 = vpop.f32.mrb[70].mxu0  ;;  %4069 = vrot.lane.b32.xlu0 %v3889_v34, %s7296_s30 }
 0x18a   :  { %v11455_v28 = vrot.slane %v8581_v21, 1  ;;  %v8585_v7 = vpop.f32.mrb[71].mxu0  ;;  %6523 = vmatmul.mubr.msk.f32.gmra.mrb[46].mxu0 %vm789_vm2, %v8052_v45  ;;  %v8589_v43 = vpop.f32.mrb[66].mxu1 }
 0x18b   :  { %11621 = vst [vmem:[#allocation56_spill] sm:$0xff] %v8589_v43  ;;  %6525 = vmatprep.mubr.msk.f32.mxu0 %vm789_vm2, %v8063_v48  ;;  %6077 = vmatmul.mubr.msk.f32.gmra.mrb[172].mxu1 %vm789_vm2, %v8148_v9  ;;  %v8595_v37 = vpop.f32.mrb[67].mxu1  ;;  %v3891_v43 = vld [vmem:[#allocation3 + $0x1b0] sm:$0xff] }
 0x18c   :  { %11622 = vst [vmem:[#allocation57_spill] sm:$0xff] %v8595_v37  ;;  %v8600_v38 = vsel %vm2862_vm3, %v2866_v41, %v11455_v28  ;;  %1821 = vmatprep.mubr.f32.mxu1 %v11599_v61  ;;  %v3892_v37 = vld [vmem:[#allocation3 + $0x1b8] sm:$0xff]  ;;  %v11624_v41 = vld [vmem:[#allocation15_spill] sm:$0xff] }
 0x18d   :  { %v1513_v45 = vpop.f32.mrb[72].mxu0  ;;  %4075 = vrot.lane.b32.xlu1 %v3892_v37, %s7296_s30  ;;  %4073 = vrot.lane.b32.xlu0 %v3891_v43, %s7296_s30  ;;  %v11627_v37 = vld [vmem:[#allocation18_spill] sm:$0xff] }
 0x18e   :  { %v8605_v24 = vpop.f32.mrb[73].mxu0  ;;  %6526 = vmatmul.mubr.msk.f32.gmra.mrb[48].mxu0 %vm789_vm2, %v8074_v49  ;;  %v8609_v48 = vpop.f32.mrb[68].mxu1  ;;  %v2869_v49 = vrot.slane %v1513_v45, 1 }
 0x18f   :  { %11623 = vst [vmem:[#allocation58_spill] sm:$0xff] %v8609_v48  ;;  %6528 = vmatprep.mubr.msk.f32.mxu0 %vm789_vm2, %v8085_v52  ;;  %6078 = vmatmul.mubr.msk.f32.gmra.mrb[174].mxu1 %vm789_vm2, %v11624_v41  ;;  %v8615_v28 = vpop.f32.mrb[69].mxu1 }
 0x190   :  { %11625 = vst [vmem:[#allocation15_spill] sm:$0xff] %v8615_v28  ;;  %1827 = vmatprep.mubr.f32.mxu1 %v11599_v61  ;;  %v3893_v28 = vld [vmem:[#allocation3 + $0x1c0] sm:$0xff] }
 0x191   :  { %v8619_v40 = vpop.f32.mrb[74].mxu0  ;;  %4079 = vrot.lane.b32.xlu1 %v3894_v57, %s7296_s30  ;;  %4077 = vrot.lane.b32.xlu0 %v3893_v28, %s7296_s30 }
 0x192   :  { %v11456_v34 = vrot.slane %v8619_v40, 1  ;;  %v8623_v48 = vpop.f32.mrb[75].mxu0  ;;  %6529 = vmatmul.mubr.msk.f32.gmra.mrb[50].mxu0 %vm789_vm2, %v8096_v54  ;;  %v8627_v52 = vpop.f32.mrb[70].mxu1 }
 0x193   :  { %11626 = vst [vmem:[#allocation59_spill] sm:$0xff] %v8627_v52  ;;  %6531 = vmatprep.mubr.msk.f32.mxu0 %vm789_vm2, %v8107_v56  ;;  %6079 = vmatmul.mubr.msk.f32.gmra.mrb[176].mxu1 %vm789_vm2, %v11627_v37  ;;  %v8633_v22 = vpop.f32.mrb[71].mxu1  ;;  %v3895_v52 = vld [vmem:[#allocation3 + $0x1d0] sm:$0xff] }
 0x194   :  { %11628 = vst [vmem:[#allocation18_spill] sm:$0xff] %v8633_v22  ;;  %v8638_v43 = vsel %vm2862_vm3, %v2869_v49, %v11456_v34  ;;  %1833 = vmatprep.mubr.f32.mxu1 %v11599_v61  ;;  %v3896_v22 = vld [vmem:[#allocation3 + $0x1d8] sm:$0xff]  ;;  %v11630_v49 = vld [vmem:[#allocation21_spill] sm:$0xff] }
 0x195   :  { %v1525_v54 = vpop.f32.mrb[76].mxu0  ;;  %4083 = vrot.lane.b32.xlu1 %v3896_v22, %s7296_s30  ;;  %4081 = vrot.lane.b32.xlu0 %v3895_v52, %s7296_s30  ;;  %v11633_v22 = vld [vmem:[#allocation24_spill] sm:$0xff] }
 0x196   :  { %v8643_v45 = vpop.f32.mrb[77].mxu0  ;;  %6532 = vmatmul.mubr.msk.f32.gmra.mrb[52].mxu0 %vm789_vm2, %v8118_v58  ;;  %v8647_v56 = vpop.f32.mrb[72].mxu1  ;;  %v2872_v58 = vrot.slane %v1525_v54, 1 }
 0x197   :  { %11629 = vst [vmem:[#allocation60_spill] sm:$0xff] %v8647_v56  ;;  %6534 = vmatprep.mubr.msk.f32.mxu0 %vm789_vm2, %v8133_v3  ;;  %6080 = vmatmul.mubr.msk.f32.gmra.mrb[178].mxu1 %vm789_vm2, %v11630_v49  ;;  %v8653_v34 = vpop.f32.mrb[73].mxu1 }
 0x198   :  { %11631 = vst [vmem:[#allocation21_spill] sm:$0xff] %v8653_v34  ;;  %1839 = vmatprep.mubr.f32.mxu1 %v11599_v61  ;;  %v3897_v34 = vld [vmem:[#allocation3 + $0x1e0] sm:$0xff] }
 0x199   :  { %v8657_v57 = vpop.f32.mrb[78].mxu0  ;;  %4087 = vrot.lane.b32.xlu1 %v3898_v25, %s7296_s30  ;;  %4085 = vrot.lane.b32.xlu0 %v3897_v34, %s7296_s30 }
 0x19a   :  { %v11457_v28 = vrot.slane %v8657_v57, 1  ;;  %v8661_v56 = vpop.f32.mrb[79].mxu0  ;;  %6535 = vmatmul.mubr.msk.f32.gmra.mrb[54].mxu0 %vm789_vm2, %v8148_v9  ;;  %v8665_v3 = vpop.f32.mrb[74].mxu1 }
 0x19b   :  { %11632 = vst [vmem:[#allocation61_spill] sm:$0xff] %v8665_v3  ;;  %6537 = vmatprep.mubr.msk.f32.mxu0 %vm789_vm2, %v11624_v41  ;;  %6081 = vmatmul.mubr.msk.f32.gmra.mrb[180].mxu1 %vm789_vm2, %v11633_v22  ;;  %v8671_v15 = vpop.f32.mrb[75].mxu1  ;;  %v3899_v3 = vld [vmem:[#allocation3 + $0x1f0] sm:$0xff] }
 0x19c   :  { %11634 = vst [vmem:[#allocation24_spill] sm:$0xff] %v8671_v15  ;;  %v8676_v52 = vsel %vm2862_vm3, %v2872_v58, %v11457_v28  ;;  %1845 = vmatprep.mubr.f32.mxu1 %v11599_v61  ;;  %v3900_v15 = vld [vmem:[#allocation3 + $0x1f8] sm:$0xff]  ;;  %v11636_v58 = vld [vmem:[#allocation27_spill] sm:$0xff] }
 0x19d   :  { %v1537_v9 = vpop.f32.mrb[80].mxu0  ;;  %4091 = vrot.lane.b32.xlu1 %v3900_v15, %s7296_s30  ;;  %4089 = vrot.lane.b32.xlu0 %v3899_v3, %s7296_s30 }
 0x19e   :  { %v8681_v54 = vpop.f32.mrb[81].mxu0  ;;  %6538 = vmatmul.mubr.msk.f32.gmra.mrb[56].mxu0 %vm789_vm2, %v11627_v37  ;;  %v8685_v41 = vpop.f32.mrb[76].mxu1  ;;  %v2875_v34 = vrot.slane %v1537_v9, 1 }
 0x19f   :  { %11635 = vst [vmem:[#allocation62_spill] sm:$0xff] %v8685_v41  ;;  %6540 = vmatprep.mubr.msk.f32.mxu0 %vm789_vm2, %v11630_v49  ;;  %6082 = vmatmul.mubr.msk.f32.gmra.mrb[182].mxu1 %vm789_vm2, %v11636_v58  ;;  %v8691_v28 = vpop.f32.mrb[77].mxu1 }
 0x1a0   :  { %11637 = vst [vmem:[#allocation27_spill] sm:$0xff] %v8691_v28  ;;  %1851 = vmatprep.mubr.f32.mxu1 %v11599_v61  ;;  %v11639_v28 = vld [vmem:[#allocation30_spill] sm:$0xff] }
 0x1a1   :  { %v8695_v25 = vpop.f32.mrb[82].mxu0 }
 0x1a2   :  { %v11458_v37 = vrot.slane %v8695_v25, 1  ;;  %v8699_v41 = vpop.f32.mrb[83].mxu0  ;;  %6541 = vmatmul.mubr.msk.f32.gmra.mrb[58].mxu0 %vm789_vm2, %v11633_v22  ;;  %v8703_v49 = vpop.f32.mrb[78].mxu1 }
 0x1a3   :  { %11638 = vst [vmem:[#allocation63_spill] sm:$0xff] %v8703_v49  ;;  %6543 = vmatprep.mubr.msk.f32.mxu0 %vm789_vm2, %v11636_v58  ;;  %6083 = vmatmul.mubr.msk.f32.gmra.mrb[184].mxu1 %vm789_vm2, %v11639_v28  ;;  %v8709_v15 = vpop.f32.mrb[79].mxu1 }
 0x1a4   :  { %11640 = vst [vmem:[#allocation30_spill] sm:$0xff] %v8709_v15  ;;  %v8714_v3 = vsel %vm2862_vm3, %v2875_v34, %v11458_v37  ;;  %1857 = vmatprep.mubr.f32.mxu1 %v11599_v61 }
 0x1a5   :  { %v1549_v9 = vpop.f32.mrb[84].mxu0 }
 0x1a6   :  { %v8717_v6 = vpop.f32.mrb[85].mxu0  ;;  %6544 = vmatmul.mubr.msk.f32.gmra.mrb[60].mxu0 %vm789_vm2, %v11639_v28  ;;  %v8721_v22 = vpop.f32.mrb[80].mxu1  ;;  %v2878_v37 = vrot.slane %v1549_v9, 1 }
 0x1a7   :  { %11641 = vst [vmem:[#allocation64_spill] sm:$0xff] %v8717_v6  ;;  %11642 = vst [vmem:[#allocation65_spill] sm:$0xff] %v8721_v22  ;;  %6546 = vmatprep.mubr.msk.f32.mxu0 %vm789_vm2, %v8255_v4  ;;  %6084 = vmatmul.mubr.msk.f32.gmra.mrb[186].mxu1 %vm789_vm2, %v8255_v4  ;;  %v8727_v58 = vpop.f32.mrb[81].mxu1 }
 0x1a8   :  { %11643 = vst [vmem:[#allocation66_spill] sm:$0xff] %v8727_v58  ;;  %1862 = vmatprep.mubr.f32.mxu1 %v11599_v61 }
 0x1a9   :  { %v8730_v34 = vpop.f32.mrb[86].mxu0 }
 0x1aa   :  { %v11459_v15 = vrot.slane %v8730_v34, 1  ;;  %v8733_v49 = vpop.f32.mrb[87].mxu0  ;;  %6547 = vmatmul.mubr.msk.f32.gmra.mrb[62].mxu0 %vm789_vm2, %v8273_v12  ;;  %v8737_v28 = vpop.f32.mrb[82].mxu1 }
 0x1ab   :  { %11644 = vst [vmem:[#allocation67_spill] sm:$0xff] %v8733_v49  ;;  %11645 = vst [vmem:[#allocation68_spill] sm:$0xff] %v8737_v28  ;;  %6085 = vmatmul.mubr.msk.f32.gmra.mrb[188].mxu1 %vm789_vm2, %v8273_v12  ;;  %v8741_v4 = vpop.f32.mrb[83].mxu1 }
 0x1ac   :  { %11646 = vst [vmem:[#allocation69_spill] sm:$0xff] %v8741_v4  ;;  %v8746_v61 = vsel %vm2862_vm3, %v2878_v37, %v11459_v15 }
 0x1ad   :  { %v1561_v9 = vpop.f32.mrb[88].mxu0 }
 0x1ae   :  { %v8748_v58 = vpop.f32.mrb[89].mxu0  ;;  %v8750_v22 = vpop.f32.mrb[84].mxu1  ;;  %v2881_v28 = vrot.slane %v1561_v9, 1 }
 0x1af   :  { %11647 = vst [vmem:[#allocation70_spill] sm:$0xff] %v8748_v58  ;;  %11648 = vst [vmem:[#allocation71_spill] sm:$0xff] %v8750_v22  ;;  %v8752_v18 = vpop.f32.mrb[85].mxu1 }
 0x1b0   :  { %11649 = vst [vmem:[#allocation72_spill] sm:$0xff] %v8752_v18 }
 0x1b1   :  { %v8754_v19 = vpop.f32.mrb[90].mxu0 }
 0x1b2   :  { %11650 = vst [vmem:[#allocation73_spill] sm:$0xff] %v8754_v19  ;;  %v11460_v60 = vrot.slane %v8754_v19, 1  ;;  %v8757_v12 = vpop.f32.mrb[91].mxu0  ;;  %v8759_v4 = vpop.f32.mrb[86].mxu1 }
 0x1b3   :  { %11651 = vst [vmem:[#allocation74_spill] sm:$0xff] %v8757_v12  ;;  %11652 = vst [vmem:[#allocation75_spill] sm:$0xff] %v8759_v4  ;;  %v8761_v51 = vpop.f32.mrb[87].mxu1 }
 0x1b4   :  { %11653 = vst [vmem:[#allocation76_spill] sm:$0xff] %v8761_v51  ;;  %v8766_v37 = vsel %vm2862_vm3, %v2881_v28, %v11460_v60 }
 0x1b5   :  { %v1573_v15 = vpop.f32.mrb[92].mxu0 }
 0x1b6   :  { %v8768_v22 = vpop.f32.mrb[93].mxu0  ;;  %v8770_v18 = vpop.f32.mrb[88].mxu1  ;;  %v2884_v42 = vrot.slane %v1573_v15, 1 }
 0x1b7   :  { %11654 = vst [vmem:[#allocation77_spill] sm:$0xff] %v8768_v22  ;;  %11655 = vst [vmem:[#allocation78_spill] sm:$0xff] %v8770_v18  ;;  %v8772_v58 = vpop.f32.mrb[89].mxu1 }
 0x1b8   :  { %11656 = vst [vmem:[#allocation79_spill] sm:$0xff] %v8772_v58 }
 0x1b9   :  { %v8774_v9 = vpop.f32.mrb[94].mxu0 }
 0x1ba   :  { %11657 = vst [vmem:[#allocation80_spill] sm:$0xff] %v8774_v9  ;;  %v11462_v12 = vrot.slane %v8774_v9, 1  ;;  %v8777_v4 = vpop.f32.mrb[95].mxu0  ;;  %v8779_v51 = vpop.f32.mrb[90].mxu1 }
 0x1bb   :  { %11658 = vst [vmem:[#allocation81_spill] sm:$0xff] %v8777_v4  ;;  %11659 = vst [vmem:[#allocation82_spill] sm:$0xff] %v8779_v51  ;;  %v8781_v36 = vpop.f32.mrb[91].mxu1 }
 0x1bc   :  { %11660 = vst [vmem:[#allocation83_spill] sm:$0xff] %v8781_v36  ;;  %v8786_v28 = vsel %vm2862_vm3, %v2884_v42, %v11462_v12 }
 0x1bd   :  { %v1585_v60 = vpop.f32.mrb[96].mxu0 }
 0x1be   :  { %v8788_v18 = vpop.f32.mrb[97].mxu0  ;;  %v8790_v58 = vpop.f32.mrb[92].mxu1  ;;  %v2887_v1 = vrot.slane %v1585_v60, 1 }
 0x1bf   :  { %11661 = vst [vmem:[#allocation84_spill] sm:$0xff] %v8788_v18  ;;  %11662 = vst [vmem:[#allocation85_spill] sm:$0xff] %v8790_v58  ;;  %v8792_v22 = vpop.f32.mrb[93].mxu1 }
 0x1c0   :  { %11663 = vst [vmem:[#allocation86_spill] sm:$0xff] %v8792_v22 }
 0x1c1   :  { %v8794_v15 = vpop.f32.mrb[98].mxu0 }
 0x1c2   :  { %11664 = vst [vmem:[#allocation87_spill] sm:$0xff] %v8794_v15  ;;  %v11464_v4 = vrot.slane %v8794_v15, 1  ;;  %v8797_v51 = vpop.f32.mrb[99].mxu0  ;;  %v8799_v36 = vpop.f32.mrb[94].mxu1 }
 0x1c3   :  { %11665 = vst [vmem:[#allocation88_spill] sm:$0xff] %v8797_v51  ;;  %11666 = vst [vmem:[#allocation89_spill] sm:$0xff] %v8799_v36  ;;  %v8801_v9 = vpop.f32.mrb[95].mxu1 }
 0x1c4   :  { %11667 = vst [vmem:[#allocation90_spill] sm:$0xff] %v8801_v9  ;;  %v8806_v42 = vsel %vm2862_vm3, %v2887_v1, %v11464_v4 }
 0x1c5   :  { %11668 = vst [vmem:[#allocation91_spill] sm:$0xff] %v8806_v42  ;;  %v1597_v12 = vpop.f32.mrb[100].mxu0 }
 0x1c6   :  { %v8808_v58 = vpop.f32.mrb[101].mxu0  ;;  %v8810_v22 = vpop.f32.mrb[96].mxu1  ;;  %v2890_v10 = vrot.slane %v1597_v12, 1 }
 0x1c7   :  { %11669 = vst [vmem:[#allocation92_spill] sm:$0xff] %v8808_v58  ;;  %11670 = vst [vmem:[#allocation93_spill] sm:$0xff] %v8810_v22  ;;  %v8812_v18 = vpop.f32.mrb[97].mxu1 }
 0x1c8   :  { %11671 = vst [vmem:[#allocation94_spill] sm:$0xff] %v8812_v18 }
 0x1c9   :  { %v8814_v60 = vpop.f32.mrb[102].mxu0 }
 0x1ca   :  { %11672 = vst [vmem:[#allocation95_spill] sm:$0xff] %v8814_v60  ;;  %v11466_v51 = vrot.slane %v8814_v60, 1  ;;  %v8817_v36 = vpop.f32.mrb[103].mxu0  ;;  %v8819_v9 = vpop.f32.mrb[98].mxu1 }
 0x1cb   :  { %11673 = vst [vmem:[#allocation96_spill] sm:$0xff] %v8817_v36  ;;  %11674 = vst [vmem:[#allocation97_spill] sm:$0xff] %v8819_v9  ;;  %v8821_v15 = vpop.f32.mrb[99].mxu1 }
 0x1cc   :  { %11675 = vst [vmem:[#allocation98_spill] sm:$0xff] %v8821_v15  ;;  %v8826_v1 = vsel %vm2862_vm3, %v2890_v10, %v11466_v51 }
 0x1cd   :  { %11676 = vst [vmem:[#allocation99_spill] sm:$0xff] %v8826_v1  ;;  %v1609_v4 = vpop.f32.mrb[104].mxu0 }
 0x1ce   :  { %v8828_v22 = vpop.f32.mrb[105].mxu0  ;;  %v8830_v18 = vpop.f32.mrb[100].mxu1  ;;  %v2893_v27 = vrot.slane %v1609_v4, 1 }
 0x1cf   :  { %11677 = vst [vmem:[#allocation100_spill] sm:$0xff] %v8828_v22  ;;  %11678 = vst [vmem:[#allocation101_spill] sm:$0xff] %v8830_v18  ;;  %v8832_v58 = vpop.f32.mrb[101].mxu1 }
 0x1d0   :  { %11679 = vst [vmem:[#allocation102_spill] sm:$0xff] %v8832_v58 }
 0x1d1   :  { %v8834_v12 = vpop.f32.mrb[106].mxu0 }
 0x1d2   :  { %11680 = vst [vmem:[#allocation103_spill] sm:$0xff] %v8834_v12  ;;  %v11468_v36 = vrot.slane %v8834_v12, 1  ;;  %v8837_v9 = vpop.f32.mrb[107].mxu0  ;;  %v8839_v15 = vpop.f32.mrb[102].mxu1 }
 0x1d3   :  { %11681 = vst [vmem:[#allocation104_spill] sm:$0xff] %v8837_v9  ;;  %11682 = vst [vmem:[#allocation105_spill] sm:$0xff] %v8839_v15  ;;  %v8841_v60 = vpop.f32.mrb[103].mxu1 }
 0x1d4   :  { %11683 = vst [vmem:[#allocation106_spill] sm:$0xff] %v8841_v60  ;;  %v8846_v10 = vsel %vm2862_vm3, %v2893_v27, %v11468_v36 }
 0x1d5   :  { %11684 = vst [vmem:[#allocation107_spill] sm:$0xff] %v8846_v10  ;;  %v1621_v51 = vpop.f32.mrb[108].mxu0 }
 0x1d6   :  { %v8848_v18 = vpop.f32.mrb[109].mxu0  ;;  %v8850_v58 = vpop.f32.mrb[104].mxu1  ;;  %v2896_v1 = vrot.slane %v1621_v51, 1 }
 0x1d7   :  { %11685 = vst [vmem:[#allocation108_spill] sm:$0xff] %v8848_v18  ;;  %11686 = vst [vmem:[#allocation109_spill] sm:$0xff] %v8850_v58  ;;  %v8852_v22 = vpop.f32.mrb[105].mxu1 }
 0x1d8   :  { %11687 = vst [vmem:[#allocation110_spill] sm:$0xff] %v8852_v22 }
 0x1d9   :  { %v8854_v4 = vpop.f32.mrb[110].mxu0 }
 0x1da   :  { %11688 = vst [vmem:[#allocation111_spill] sm:$0xff] %v8854_v4  ;;  %v11470_v9 = vrot.slane %v8854_v4, 1  ;;  %v8857_v15 = vpop.f32.mrb[111].mxu0  ;;  %v8859_v60 = vpop.f32.mrb[106].mxu1 }
 0x1db   :  { %11689 = vst [vmem:[#allocation112_spill] sm:$0xff] %v8857_v15  ;;  %11690 = vst [vmem:[#allocation113_spill] sm:$0xff] %v8859_v60  ;;  %v8861_v12 = vpop.f32.mrb[107].mxu1 }
 0x1dc   :  { %11691 = vst [vmem:[#allocation114_spill] sm:$0xff] %v8861_v12  ;;  %v8866_v27 = vsel %vm2862_vm3, %v2896_v1, %v11470_v9 }
 0x1dd   :  { %11692 = vst [vmem:[#allocation115_spill] sm:$0xff] %v8866_v27  ;;  %v1633_v36 = vpop.f32.mrb[112].mxu0 }
 0x1de   :  { %v8868_v58 = vpop.f32.mrb[113].mxu0  ;;  %v8870_v22 = vpop.f32.mrb[108].mxu1  ;;  %v2899_v10 = vrot.slane %v1633_v36, 1 }
 0x1df   :  { %11693 = vst [vmem:[#allocation116_spill] sm:$0xff] %v8868_v58  ;;  %11694 = vst [vmem:[#allocation117_spill] sm:$0xff] %v8870_v22  ;;  %v8872_v18 = vpop.f32.mrb[109].mxu1 }
 0x1e0   :  { %11695 = vst [vmem:[#allocation118_spill] sm:$0xff] %v8872_v18 }
 0x1e1   :  { %v8874_v51 = vpop.f32.mrb[114].mxu0 }
 0x1e2   :  { %11696 = vst [vmem:[#allocation119_spill] sm:$0xff] %v8874_v51  ;;  %v11472_v15 = vrot.slane %v8874_v51, 1  ;;  %v8877_v60 = vpop.f32.mrb[115].mxu0  ;;  %v8879_v12 = vpop.f32.mrb[110].mxu1 }
 0x1e3   :  { %11697 = vst [vmem:[#allocation120_spill] sm:$0xff] %v8877_v60  ;;  %11698 = vst [vmem:[#allocation121_spill] sm:$0xff] %v8879_v12  ;;  %v8881_v4 = vpop.f32.mrb[111].mxu1 }
 0x1e4   :  { %11699 = vst [vmem:[#allocation122_spill] sm:$0xff] %v8881_v4  ;;  %v8886_v1 = vsel %vm2862_vm3, %v2899_v10, %v11472_v15 }
 0x1e5   :  { %11700 = vst [vmem:[#allocation123_spill] sm:$0xff] %v8886_v1  ;;  %v1645_v9 = vpop.f32.mrb[116].mxu0 }
 0x1e6   :  { %v8888_v22 = vpop.f32.mrb[117].mxu0  ;;  %v8890_v18 = vpop.f32.mrb[112].mxu1  ;;  %v2902_v27 = vrot.slane %v1645_v9, 1 }
 0x1e7   :  { %11701 = vst [vmem:[#allocation124_spill] sm:$0xff] %v8888_v22  ;;  %11702 = vst [vmem:[#allocation125_spill] sm:$0xff] %v8890_v18  ;;  %v8892_v58 = vpop.f32.mrb[113].mxu1 }
 0x1e8   :  { %11703 = vst [vmem:[#allocation126_spill] sm:$0xff] %v8892_v58 }
 0x1e9   :  { %v8894_v36 = vpop.f32.mrb[118].mxu0 }
 0x1ea   :  { %11704 = vst [vmem:[#allocation127_spill] sm:$0xff] %v8894_v36  ;;  %v11474_v60 = vrot.slane %v8894_v36, 1  ;;  %v8897_v12 = vpop.f32.mrb[119].mxu0  ;;  %v8899_v4 = vpop.f32.mrb[114].mxu1 }
 0x1eb   :  { %11705 = vst [vmem:[#allocation128_spill] sm:$0xff] %v8897_v12  ;;  %11706 = vst [vmem:[#allocation129_spill] sm:$0xff] %v8899_v4  ;;  %v8901_v51 = vpop.f32.mrb[115].mxu1 }
 0x1ec   :  { %11707 = vst [vmem:[#allocation130_spill] sm:$0xff] %v8901_v51  ;;  %v8906_v10 = vsel %vm2862_vm3, %v2902_v27, %v11474_v60 }
 0x1ed   :  { %11708 = vst [vmem:[#allocation131_spill] sm:$0xff] %v8906_v10  ;;  %v1657_v15 = vpop.f32.mrb[120].mxu0 }
 0x1ee   :  { %v8908_v18 = vpop.f32.mrb[121].mxu0  ;;  %v8910_v58 = vpop.f32.mrb[116].mxu1  ;;  %v2905_v1 = vrot.slane %v1657_v15, 1 }
 0x1ef   :  { %11709 = vst [vmem:[#allocation132_spill] sm:$0xff] %v8908_v18  ;;  %11710 = vst [vmem:[#allocation133_spill] sm:$0xff] %v8910_v58  ;;  %v8912_v22 = vpop.f32.mrb[117].mxu1 }
 0x1f0   :  { %11711 = vst [vmem:[#allocation134_spill] sm:$0xff] %v8912_v22 }
 0x1f1   :  { %v8914_v9 = vpop.f32.mrb[122].mxu0 }
 0x1f2   :  { %11712 = vst [vmem:[#allocation135_spill] sm:$0xff] %v8914_v9  ;;  %v11476_v12 = vrot.slane %v8914_v9, 1  ;;  %v8917_v4 = vpop.f32.mrb[123].mxu0  ;;  %v8919_v51 = vpop.f32.mrb[118].mxu1 }
 0x1f3   :  { %11713 = vst [vmem:[#allocation136_spill] sm:$0xff] %v8917_v4  ;;  %11714 = vst [vmem:[#allocation137_spill] sm:$0xff] %v8919_v51  ;;  %v8921_v36 = vpop.f32.mrb[119].mxu1 }
 0x1f4   :  { %11715 = vst [vmem:[#allocation138_spill] sm:$0xff] %v8921_v36  ;;  %v8926_v27 = vsel %vm2862_vm3, %v2905_v1, %v11476_v12 }
 0x1f5   :  { %11716 = vst [vmem:[#allocation139_spill] sm:$0xff] %v8926_v27  ;;  %v1669_v60 = vpop.f32.mrb[124].mxu0 }
 0x1f6   :  { %v8928_v58 = vpop.f32.mrb[125].mxu0  ;;  %v8930_v22 = vpop.f32.mrb[120].mxu1  ;;  %v8945_v60 = vld [vmem:[%s11438_s5] ss:$0 sm:$0xff] }
 0x1f7   :  { %11717 = vst [vmem:[#allocation140_spill] sm:$0xff] %v8928_v58  ;;  %11718 = vst [vmem:[#allocation141_spill] sm:$0xff] %v8930_v22  ;;  %v8932_v18 = vpop.f32.mrb[121].mxu1 }
 0x1f8   :  { %11719 = vst [vmem:[#allocation142_spill] sm:$0xff] %v8932_v18 }
 0x1f9   :  { %v1674_v15 = vpop.f32.mrb[126].mxu0 }
 0x1fa   :  { %v8934_v10 = vpop.f32.mrb[127].mxu0  ;;  %v8936_v4 = vpop.f32.mrb[122].mxu1 }
 0x1fb   :  { %11720 = vst [vmem:[#allocation143_spill] sm:$0xff] %v8934_v10  ;;  %11721 = vst [vmem:[#allocation144_spill] sm:$0xff] %v8936_v4  ;;  %v8938_v51 = vpop.f32.mrb[123].mxu1 }
 0x1fc   :  { %11722 = vst [vmem:[#allocation145_spill] sm:$0xff] %v8938_v51 }
 0x1fd   :  { %v1679_v36 = vpop.f32.mrb[128].mxu0 }
 0x1fe   :  { %v8940_v20 = vpop.f32.mrb[129].mxu0  ;;  %v1416_v9 = vpop.f32.mrb[124].mxu1 }
 0x1ff   :  { %11723 = vst [vmem:[#allocation146_spill] sm:$0xff] %v8940_v20  ;;  %v1417_v1 = vpop.f32.mrb[125].mxu1  ;;  %v2908_v20 = vrot.slane %v1679_v36, 1 }
 0x201   :  { %v6455_v12 = vpop.f32.mrb[0].mxu0 }
 0x202   :  { %v6577_v18 = vadd.f32 %v6455_v12, %v8945_v60  ;;  %v1934_v15 = vpop.f32.mrb[1].mxu0  ;;  %v1420_v22 = vpop.f32.mrb[126].mxu1 }
 0x203   :  { %v6578_v10 = vadd.f32 %v8945_v60, %v1934_v15  ;;  %v1421_v4 = vpop.f32.mrb[127].mxu1 }
 0x204   :  { %2318 = vst [vmem:[#allocation2 + $0x8] sm:$0xff] %v6577_v18 }
 0x205   :  { %2317 = vst [vmem:[#allocation2] sm:$0xff] %v6578_v10  ;;  %v6458_v51 = vpop.f32.mrb[2].mxu0 }
 0x206   :  { %v8949_v58 = vpop.f32.mrb[128].mxu1  ;;  %v6579_v9 = vadd.f32 %v6458_v51, %v8945_v60  ;;  %v1944_v27 = vpop.f32.mrb[3].mxu0 }
 0x207   :  { %11724 = vst [vmem:[#allocation147_spill] sm:$0xff] %v8949_v58  ;;  %v11477_v49 = vrot.slane %v8949_v58, 1  ;;  %v6580_v1 = vadd.f32 %v8945_v60, %v1944_v27  ;;  %v8954_v6 = vpop.f32.mrb[129].mxu1 }
 0x208   :  { %11725 = vst [vmem:[#allocation148_spill] sm:$0xff] %v8954_v6  ;;  %2320 = vst [vmem:[#allocation2 + $0x18] sm:$0xff] %v6579_v9 }
 0x209   :  { %v8959_v22 = vsel %vm2862_vm3, %v2908_v20, %v11477_v49  ;;  %2319 = vst [vmem:[#allocation2 + $0x10] sm:$0xff] %v6580_v1  ;;  %v6461_v18 = vpop.f32.mrb[4].mxu0 }
 0x20a   :  { %11726 = vst [vmem:[#allocation149_spill] sm:$0xff] %v8959_v22  ;;  %v6581_v12 = vadd.f32 %v6461_v18, %v8945_v60  ;;  %v1954_v4 = vpop.f32.mrb[5].mxu0  ;;  %v1691_v51 = vpop.f32.mrb[130].mxu1 }
 0x20b   :  { %v3134_v10 = vld [vmem:[#allocation2 + $0x9] sm:$0x7f]  ;;  %v6582_v36 = vadd.f32 %v8945_v60, %v1954_v4  ;;  %v8963_v15 = vpop.f32.mrb[131].mxu1  ;;  %v2911_v49 = vrot.slane %v1691_v51, 1 }
 0x20c   :  { %11727 = vst [vmem:[#allocation150_spill] sm:$0xff] %v8963_v15  ;;  %v3198_v27 = vadd.f32 %v3134_v10, %v8551_v30  ;;  %v3133_v6 = vld [vmem:[#allocation2 + $0x1] sm:$0xff]  ;;  %2322 = vst [vmem:[#allocation2 + $0x28] sm:$0xff] %v6581_v12  ;;  %v11730_v12 = vld [vmem:[#allocation11_spill] sm:$0xff] }
 0x20d   :  { %v3197_v9 = vadd.f32 %v3133_v6, %v8537_v26  ;;  %2321 = vst [vmem:[#allocation2 + $0x20] sm:$0xff] %v6582_v36  ;;  %v6464_v20 = vpop.f32.mrb[6].mxu0  ;;  %v11731_v26 = vld [vmem:[#allocation9_spill] sm:$0xff] }
 0x20e   :  { %3262 = vst [vmem:[#allocation2 + $0x9] sm:$0x7f] %v3198_v27  ;;  %v6583_v1 = vadd.f32 %v6464_v20, %v8945_v60  ;;  %v1964_v18 = vpop.f32.mrb[7].mxu0  ;;  %v8968_v58 = vpop.f32.mrb[132].mxu1 }
 0x20f   :  { %11728 = vst [vmem:[#allocation151_spill] sm:$0xff] %v8968_v58  ;;  %3261 = vst [vmem:[#allocation2 + $0x1] sm:$0xff] %v3197_v9  ;;  %v2383_v22 = vld [vmem:[#allocation2 + $0x19] sm:$0x7f]  ;;  %v6584_v4 = vadd.f32 %v8945_v60, %v1964_v18  ;;  %v11480_v15 = vrot.slane %v8968_v58, 1  ;;  %v8972_v30 = vpop.f32.mrb[133].mxu1 }
 0x210   :  { %11729 = vst [vmem:[#allocation152_spill] sm:$0xff] %v8972_v30  ;;  %v2443_v10 = vadd.f32 %v2383_v22, %v11730_v12  ;;  %v2382_v6 = vld [vmem:[#allocation2 + $0x11] sm:$0xff]  ;;  %2324 = vst [vmem:[#allocation2 + $0x38] sm:$0xff] %v6583_v1 }
 0x211   :  { %v2442_v51 = vadd.f32 %v2382_v6, %v11731_v26  ;;  %2323 = vst [vmem:[#allocation2 + $0x30] sm:$0xff] %v6584_v4  ;;  %v6467_v36 = vpop.f32.mrb[8].mxu0  ;;  %v8979_v27 = vsel %vm2862_vm3, %v2911_v49, %v11480_v15  ;;  %v11734_v1 = vld [vmem:[#allocation16_spill] sm:$0xff]  ;;  %v11735_v26 = vld [vmem:[#allocation13_spill] sm:$0xff] }
 0x212   :  { %11732 = vst [vmem:[#allocation11_spill] sm:$0xff] %v8979_v27  ;;  %2503 = vst [vmem:[#allocation2 + $0x19] sm:$0x7f] %v2443_v10  ;;  %v6585_v9 = vadd.f32 %v6467_v36, %v8945_v60  ;;  %v1974_v20 = vpop.f32.mrb[9].mxu0  ;;  %v1703_v18 = vpop.f32.mrb[134].mxu1 }
 0x213   :  { %2502 = vst [vmem:[#allocation2 + $0x11] sm:$0xff] %v2442_v51  ;;  %v2385_v30 = vld [vmem:[#allocation2 + $0x29] sm:$0x7f]  ;;  %v6586_v22 = vadd.f32 %v8945_v60, %v1974_v20  ;;  %v8983_v12 = vpop.f32.mrb[135].mxu1  ;;  %v2914_v51 = vrot.slane %v1703_v18, 1 }
 0x214   :  { %11733 = vst [vmem:[#allocation9_spill] sm:$0xff] %v8983_v12  ;;  %v2445_v6 = vadd.f32 %v2385_v30, %v11734_v1  ;;  %v2384_v4 = vld [vmem:[#allocation2 + $0x21] sm:$0xff]  ;;  %2326 = vst [vmem:[#allocation2 + $0x48] sm:$0xff] %v6585_v9 }
 0x215   :  { %v2444_v58 = vadd.f32 %v2384_v4, %v11735_v26  ;;  %2325 = vst [vmem:[#allocation2 + $0x40] sm:$0xff] %v6586_v22  ;;  %v6470_v49 = vpop.f32.mrb[10].mxu0  ;;  %v11737_v30 = vld [vmem:[#allocation22_spill] sm:$0xff]  ;;  %v11739_v4 = vld [vmem:[#allocation19_spill] sm:$0xff] }
 0x216   :  { %2505 = vst [vmem:[#allocation2 + $0x29] sm:$0x7f] %v2445_v6  ;;  %v3325_v10 = vld [vmem:[#allocation2] sm:$0xff]  ;;  %v6587_v36 = vadd.f32 %v6470_v49, %v8945_v60  ;;  %v1984_v15 = vpop.f32.mrb[11].mxu0  ;;  %v3326_v27 = vld [vmem:[#allocation2 + $0x8] sm:$0xff]  ;;  %v8988_v19 = vpop.f32.mrb[136].mxu1 }
 0x217   :  { %11736 = vst [vmem:[#allocation16_spill] sm:$0xff] %v8988_v19  ;;  %2504 = vst [vmem:[#allocation2 + $0x21] sm:$0xff] %v2444_v58  ;;  %v2387_v20 = vld [vmem:[#allocation2 + $0x39] sm:$0x7f]  ;;  %v6588_v12 = vadd.f32 %v8945_v60, %v1984_v15  ;;  %6714 = vtanh.f32 %v3326_v27  ;;  %v11483_v22 = vrot.slane %v8988_v19, 1  ;;  %v8993_v6 = vpop.f32.mrb[137].mxu1 }
 0x218   :  { %v2447_v9 = vadd.f32 %v2387_v20, %v11737_v30  ;;  %v2386_v1 = vld [vmem:[#allocation2 + $0x31] sm:$0xff]  ;;  %2328 = vst [vmem:[#allocation2 + $0x58] sm:$0xff] %v6587_v36  ;;  %6716 = vtanh.f32 %v3325_v10  ;;  %11738 = vst [vmem:[#allocation13_spill] sm:$0xff] %v8993_v6  ;;  %v11741_v36 = vld [vmem:[#allocation10_spill] sm:$0xff] }
 0x219   :  { %v2446_v26 = vadd.f32 %v2386_v1, %v11739_v4  ;;  %2327 = vst [vmem:[#allocation2 + $0x50] sm:$0xff] %v6588_v12  ;;  %v6473_v18 = vpop.f32.mrb[12].mxu0  ;;  %v9000_v27 = vsel %vm2862_vm3, %v2914_v51, %v11483_v22  ;;  %v11742_v30 = vld [vmem:[#allocation12_spill] sm:$0xff]  ;;  %v11745_v51 = vld [vmem:[#allocation25_spill] sm:$0xff] }
 0x21a   :  { %v2562_v49 = vld [vmem:[#allocation2 + $0x10] sm:$0xff]  ;;  %v2563_v46 = vld [vmem:[#allocation2 + $0x18] sm:$0xff]  ;;  %2507 = vst [vmem:[#allocation2 + $0x39] sm:$0x7f] %v2447_v9  ;;  %v6589_v58 = vadd.f32 %v6473_v18, %v8945_v60  ;;  %v1994_v15 = vpop.f32.mrb[13].mxu0  ;;  %11740 = vst [vmem:[#allocation22_spill] sm:$0xff] %v9000_v27 }
 0x21b   :  { %v1715_v10 = vpop.f32.mrb[138].mxu1  ;;  %v2622_v20 = vadd.f32 %v2562_v49, %v11741_v36  ;;  %v2623_v6 = vadd.f32 %v2563_v46, %v11742_v30  ;;  %2506 = vst [vmem:[#allocation2 + $0x31] sm:$0xff] %v2446_v26  ;;  %v2389_v1 = vld [vmem:[#allocation2 + $0x49] sm:$0x7f]  ;;  %v6590_v12 = vadd.f32 %v8945_v60, %v1994_v15  ;;  %v11744_v9 = vld [vmem:[#allocation28_spill] sm:$0xff] }
 0x21c   :  { %v9005_v4 = vpop.f32.mrb[139].mxu1  ;;  %v2449_v42 = vadd.f32 %v2389_v1, %v11744_v9  ;;  %v2388_v18 = vld [vmem:[#allocation2 + $0x41] sm:$0xff]  ;;  %2330 = vst [vmem:[#allocation2 + $0x68] sm:$0xff] %v6589_v58  ;;  %v2917_v49 = vrot.slane %v1715_v10, 1 }
 0x21d   :  { %11743 = vst [vmem:[#allocation19_spill] sm:$0xff] %v9005_v4  ;;  %2683 = vst [vmem:[#allocation2 + $0x18] sm:$0xff] %v2623_v6  ;;  %v3013_v19 = vadd.f32 %v8562_v13, %v2622_v20  ;;  %v2448_v22 = vadd.f32 %v2388_v18, %v11745_v51  ;;  %v6476_v27 = vpop.f32.mrb[14].mxu0  ;;  %v11746_v1 = vld [vmem:[#allocation14_spill] sm:$0xff]  ;;  %v11747_v58 = vld [vmem:[#allocation17_spill] sm:$0xff] }
 0x21e   :  { %2329 = vst [vmem:[#allocation2 + $0x60] sm:$0xff] %v6590_v12  ;;  %v2564_v36 = vld [vmem:[#allocation2 + $0x20] sm:$0xff]  ;;  %v2565_v46 = vld [vmem:[#allocation2 + $0x28] sm:$0xff]  ;;  %2509 = vst [vmem:[#allocation2 + $0x49] sm:$0x7f] %v2449_v42  ;;  %v6591_v26 = vadd.f32 %v6476_v27, %v8945_v60  ;;  %v2004_v15 = vpop.f32.mrb[15].mxu0 }
 0x21f   :  { %v9011_v30 = vpop.f32.mrb[140].mxu1  ;;  %3073 = vst [vmem:[#allocation2 + $0x10] sm:$0xff] %v3013_v19  ;;  %v2624_v9 = vadd.f32 %v2564_v36, %v11746_v1  ;;  %v2625_v6 = vadd.f32 %v2565_v46, %v11747_v58  ;;  %2508 = vst [vmem:[#allocation2 + $0x41] sm:$0xff] %v2448_v22  ;;  %v2391_v13 = vld [vmem:[#allocation2 + $0x59] sm:$0x7f]  ;;  %v6592_v20 = vadd.f32 %v8945_v60, %v2004_v15  ;;  %v11748_v18 = vld [vmem:[#allocation33_spill] sm:$0xff] }
 0x220   :  { %v11484_v12 = vrot.slane %v9011_v30, 1  ;;  %v9017_v10 = vpop.f32.mrb[141].mxu1  ;;  %v2451_v42 = vadd.f32 %v2391_v13, %v11748_v18  ;;  %v2390_v51 = vld [vmem:[#allocation2 + $0x51] sm:$0xff]  ;;  %2332 = vst [vmem:[#allocation2 + $0x78] sm:$0xff] %v6591_v26 }
 0x221   :  { %v6715_v27 = vpop.eup %6714  ;;  %2685 = vst [vmem:[#allocation2 + $0x28] sm:$0xff] %v2625_v6  ;;  %v3015_v19 = vadd.f32 %v8600_v38, %v2624_v9  ;;  %v11749_v4 = vld [vmem:[#allocation31_spill] sm:$0xff]  ;;  %2331 = vst [vmem:[#allocation2 + $0x70] sm:$0xff] %v6592_v20  ;;  %v6479_v46 = vpop.f32.mrb[16].mxu0  ;;  %v11750_v38 = vld [vmem:[#allocation20_spill] sm:$0xff] }
 0x222   :  { %v2450_v36 = vadd.f32 %v2390_v51, %v11749_v4  ;;  %v9025_v22 = vsel %vm2862_vm3, %v2917_v49, %v11484_v12  ;;  %v6717_v15 = vpop.eup %6716  ;;  %v2566_v1 = vld [vmem:[#allocation2 + $0x30] sm:$0xff]  ;;  %v2567_v58 = vld [vmem:[#allocation2 + $0x38] sm:$0xff]  ;;  %2511 = vst [vmem:[#allocation2 + $0x59] sm:$0x7f] %v2451_v42  ;;  %v6593_v13 = vadd.f32 %v6479_v46, %v8945_v60  ;;  %4287 = vrot.lane.b32.xlu1 %v6715_v27, %s7296_s30  ;;  %v2014_v26 = vpop.f32.mrb[17].mxu0  ;;  %v11752_v27 = vrot.slane %v8547_v63, 1 }
 0x223   :  { %v1727_v6 = vpop.f32.mrb[142].mxu1  ;;  %3075 = vst [vmem:[#allocation2 + $0x20] sm:$0xff] %v3015_v19  ;;  %v2626_v4 = vadd.f32 %v2566_v1, %v11750_v38  ;;  %v11751_v9 = vld [vmem:[#allocation23_spill] sm:$0xff]  ;;  %v2393_v18 = vld [vmem:[#allocation2 + $0x69] sm:$0x7f]  ;;  %4285 = vrot.lane.b32.xlu0 %v6717_v15, %s7296_s30  ;;  %v6594_v49 = vadd.f32 %v8945_v60, %v2014_v26 }
 0x224   :  { %v2627_v20 = vadd.f32 %v2567_v58, %v11751_v9  ;;  %2510 = vst [vmem:[#allocation2 + $0x51] sm:$0xff] %v2450_v36  ;;  %v9033_v51 = vpop.f32.mrb[143].mxu1  ;;  %v2743_v42 = vld [vmem:[#allocation2 + $0x18] sm:$0x7f]  ;;  %v2453_v46 = vadd.f32 %v2393_v18, %v8292_v29  ;;  %2334 = vst [vmem:[#allocation2 + $0x88] sm:$0xff] %v6593_v13  ;;  %v9039_v58 = vpop.permute.xlu1 %3969  ;;  %v2920_v18 = vrot.slane %v1727_v6, 1 }
 0x225   :  { %v2392_v12 = vld [vmem:[#allocation2 + $0x61] sm:$0xff]  ;;  %v3014_v19 = vadd.f32 %v11752_v27, %v2743_v42  ;;  %v3017_v1 = vadd.f32 %v8638_v43, %v2626_v4  ;;  %11753 = vst [vmem:[#allocation10_spill] sm:$0xff] %v9039_v58  ;;  %2333 = vst [vmem:[#allocation2 + $0x80] sm:$0xff] %v6594_v49  ;;  %v6482_v15 = vpop.f32.mrb[18].mxu0  ;;  %v9047_v42 = vpop.permute.xlu0 %3965 }
 0x226   :  { %2687 = vst [vmem:[#allocation2 + $0x38] sm:$0xff] %v2627_v20  ;;  %v2452_v36 = vadd.f32 %v2392_v12, %v8279_v16  ;;  %v2568_v26 = vld [vmem:[#allocation2 + $0x40] sm:$0xff]  ;;  %v2569_v38 = vld [vmem:[#allocation2 + $0x48] sm:$0xff]  ;;  %2513 = vst [vmem:[#allocation2 + $0x69] sm:$0x7f] %v2453_v46  ;;  %v6595_v9 = vadd.f32 %v6482_v15, %v8945_v60  ;;  %v2024_v29 = vpop.f32.mrb[19].mxu0 }
 0x227   :  { %v9043_v13 = vpop.f32.mrb[144].mxu1  ;;  %3074 = vst [vmem:[#allocation2 + $0x18] sm:$0x7f] %v3014_v19  ;;  %3077 = vst [vmem:[#allocation2 + $0x30] sm:$0xff] %v3017_v1  ;;  %v11754_v63 = vld [vmem:[#allocation26_spill] sm:$0xff]  ;;  %v11755_v43 = vld [vmem:[#allocation29_spill] sm:$0xff]  ;;  %v6596_v12 = vadd.f32 %v8945_v60, %v2024_v29 }
 0x228   :  { %v2628_v20 = vadd.f32 %v2568_v26, %v11754_v63  ;;  %v2629_v4 = vadd.f32 %v2569_v38, %v11755_v43  ;;  %11756 = vst [vmem:[#allocation12_spill] sm:$0xff] %v9047_v42  ;;  %2512 = vst [vmem:[#allocation2 + $0x61] sm:$0xff] %v2452_v36  ;;  %v2395_v16 = vld [vmem:[#allocation2 + $0x79] sm:$0x7f]  ;;  %v9050_v49 = vpop.f32.mrb[145].mxu1  ;;  %v2394_v6 = vld [vmem:[#allocation2 + $0x71] sm:$0xff] }
 0x229   :  { %v2745_v46 = vld [vmem:[#allocation2 + $0x28] sm:$0x7f]  ;;  %v2455_v27 = vadd.f32 %v2395_v16, %v8318_v47  ;;  %2336 = vst [vmem:[#allocation2 + $0x98] sm:$0xff] %v6595_v9  ;;  %v11485_v19 = vrot.slane %v9043_v13, 1  ;;  %v11757_v1 = vrot.slane %v8581_v21, 1  ;;  %v2454_v36 = vadd.f32 %v2394_v6, %v8305_v35  ;;  %2335 = vst [vmem:[#allocation2 + $0x90] sm:$0xff] %v6596_v12  ;;  %v9066_v16 = vpop.permute.xlu1 %3971 }
 0x22a   :  { %2689 = vst [vmem:[#allocation2 + $0x48] sm:$0xff] %v2629_v4  ;;  %v3019_v26 = vadd.f32 %v8676_v52, %v2628_v20  ;;  %v6485_v38 = vpop.f32.mrb[20].mxu0  ;;  %v1739_v21 = vpop.f32.mrb[146].mxu1  ;;  %v11758_v4 = vld [vmem:[#allocation32_spill] sm:$0xff]  ;;  %v11759_v20 = vld [vmem:[#allocation34_spill] sm:$0xff]  ;;  %11760 = vst [vmem:[#allocation28_spill] sm:$0xff] %v9066_v16 }
 0x22b   :  { %v3016_v15 = vadd.f32 %v11757_v1, %v2745_v46  ;;  %v2570_v29 = vld [vmem:[#allocation2 + $0x50] sm:$0xff]  ;;  %v2571_v63 = vld [vmem:[#allocation2 + $0x58] sm:$0xff]  ;;  %2515 = vst [vmem:[#allocation2 + $0x79] sm:$0x7f] %v2455_v27  ;;  %v6597_v43 = vadd.f32 %v6485_v38, %v8945_v60  ;;  %v2034_v47 = vpop.f32.mrb[21].mxu0  ;;  %v9062_v9 = vsel %vm2862_vm3, %v2920_v18, %v11485_v19  ;;  %2514 = vst [vmem:[#allocation2 + $0x71] sm:$0xff] %v2454_v36 }
 0x22c   :  { %3079 = vst [vmem:[#allocation2 + $0x40] sm:$0xff] %v3019_v26  ;;  %v2630_v52 = vadd.f32 %v2570_v29, %v11758_v4  ;;  %v2631_v35 = vadd.f32 %v2571_v63, %v11759_v20  ;;  %v2397_v12 = vld [vmem:[#allocation2 + $0x89] sm:$0x7f]  ;;  %v6598_v46 = vadd.f32 %v8945_v60, %v2034_v47  ;;  %v9069_v27 = vpop.f32.mrb[147].mxu1  ;;  %v2396_v18 = vld [vmem:[#allocation2 + $0x81] sm:$0xff]  ;;  %v9075_v29 = vpop.permute.xlu0 %3967  ;;  %v2923_v47 = vrot.slane %v1739_v21, 1 }
 0x22d   :  { %3076 = vst [vmem:[#allocation2 + $0x28] sm:$0x7f] %v3016_v15  ;;  %v2747_v6 = vld [vmem:[#allocation2 + $0x38] sm:$0x7f]  ;;  %v2457_v1 = vadd.f32 %v2397_v12, %v8344_v62  ;;  %2338 = vst [vmem:[#allocation2 + $0xa8] sm:$0xff] %v6597_v43  ;;  %v11761_v15 = vrot.slane %v8619_v40, 1  ;;  %v2456_v36 = vadd.f32 %v2396_v18, %v8331_v53 }
 0x22e   :  { %2691 = vst [vmem:[#allocation2 + $0x58] sm:$0xff] %v2631_v35  ;;  %v3021_v38 = vadd.f32 %v8714_v3, %v2630_v52  ;;  %11762 = vst [vmem:[#allocation25_spill] sm:$0xff] %v9075_v29  ;;  %v6488_v63 = vpop.f32.mrb[22].mxu0  ;;  %v3135_v4 = vld [vmem:[#allocation2 + $0x11] sm:$0xff]  ;;  %v3136_v20 = vld [vmem:[#allocation2 + $0x19] sm:$0x7f] }
 0x22f   :  { %v3018_v26 = vadd.f32 %v11761_v15, %v2747_v6  ;;  %2337 = vst [vmem:[#allocation2 + $0xa0] sm:$0xff] %v6598_v46  ;;  %v2572_v19 = vld [vmem:[#allocation2 + $0x60] sm:$0xff]  ;;  %2517 = vst [vmem:[#allocation2 + $0x89] sm:$0x7f] %v2457_v1  ;;  %v6599_v62 = vadd.f32 %v6488_v63, %v8945_v60  ;;  %v2044_v43 = vpop.f32.mrb[23].mxu0  ;;  %v9079_v12 = vpop.f32.mrb[148].mxu1  ;;  %v3199_v40 = vadd.f32 %v3135_v4, %v8567_v33 }
 0x230   :  { %v3200_v3 = vadd.f32 %v3136_v20, %v8585_v7  ;;  %3081 = vst [vmem:[#allocation2 + $0x50] sm:$0xff] %v3021_v38  ;;  %v2573_v52 = vld [vmem:[#allocation2 + $0x68] sm:$0xff]  ;;  %v2632_v53 = vadd.f32 %v2572_v19, %v8285_v0  ;;  %2516 = vst [vmem:[#allocation2 + $0x81] sm:$0xff] %v2456_v36  ;;  %v2399_v21 = vld [vmem:[#allocation2 + $0x99] sm:$0x7f]  ;;  %v6600_v35 = vadd.f32 %v8945_v60, %v2044_v43  ;;  %v9085_v46 = vpop.f32.mrb[149].mxu1  ;;  %v9106_v43 = vpop.permute.xlu0 %3973 }
 0x231   :  { %3078 = vst [vmem:[#allocation2 + $0x38] sm:$0x7f] %v3018_v26  ;;  %v2749_v6 = vld [vmem:[#allocation2 + $0x48] sm:$0x7f]  ;;  %v2633_v1 = vadd.f32 %v2573_v52, %v8298_v32  ;;  %v2459_v18 = vadd.f32 %v2399_v21, %v8370_v11  ;;  %v2398_v15 = vld [vmem:[#allocation2 + $0x91] sm:$0xff]  ;;  %2340 = vst [vmem:[#allocation2 + $0xb8] sm:$0xff] %v6599_v62  ;;  %v9093_v26 = vpop.permute.xlu1 %3975 }
 0x232   :  { %v11488_v7 = vrot.slane %v9079_v12, 1  ;;  %3263 = vst [vmem:[#allocation2 + $0x11] sm:$0xff] %v3199_v40  ;;  %3264 = vst [vmem:[#allocation2 + $0x19] sm:$0x7f] %v3200_v3  ;;  %v11763_v33 = vrot.slane %v8657_v57, 1  ;;  %v3023_v19 = vadd.f32 %v8746_v61, %v2632_v53  ;;  %v2458_v38 = vadd.f32 %v2398_v15, %v8357_v5  ;;  %v6491_v36 = vpop.f32.mrb[24].mxu0 }
 0x233   :  { %11764 = vst [vmem:[#allocation14_spill] sm:$0xff] %v9093_v26  ;;  %2339 = vst [vmem:[#allocation2 + $0xb0] sm:$0xff] %v6600_v35  ;;  %v2574_v11 = vld [vmem:[#allocation2 + $0x70] sm:$0xff]  ;;  %v6601_v4 = vadd.f32 %v6491_v36, %v8945_v60  ;;  %v2054_v20 = vpop.f32.mrb[25].mxu0  ;;  %v9102_v61 = vpop.f32.mrb[150].mxu1  ;;  %v2575_v40 = vld [vmem:[#allocation2 + $0x78] sm:$0xff] }
 0x234   :  { %v3020_v0 = vadd.f32 %v11763_v33, %v2749_v6  ;;  %v3137_v32 = vld [vmem:[#allocation2 + $0x21] sm:$0xff]  ;;  %v3138_v63 = vld [vmem:[#allocation2 + $0x29] sm:$0x7f]  ;;  %2693 = vst [vmem:[#allocation2 + $0x68] sm:$0xff] %v2633_v1  ;;  %2519 = vst [vmem:[#allocation2 + $0x99] sm:$0x7f] %v2459_v18  ;;  %v9100_v57 = vsel %vm2862_vm3, %v2923_v47, %v11488_v7  ;;  %v2634_v3 = vadd.f32 %v2574_v11, %v8311_v44 }
 0x235   :  { %v3201_v62 = vadd.f32 %v3137_v32, %v8605_v24  ;;  %v3202_v5 = vadd.f32 %v3138_v63, %v8623_v48  ;;  %3083 = vst [vmem:[#allocation2 + $0x60] sm:$0xff] %v3023_v19  ;;  %11765 = vst [vmem:[#allocation17_spill] sm:$0xff] %v9106_v43  ;;  %v2401_v52 = vld [vmem:[#allocation2 + $0xa9] sm:$0x7f]  ;;  %v6602_v53 = vadd.f32 %v8945_v60, %v2054_v20  ;;  %v9110_v21 = vpop.f32.mrb[151].mxu1  ;;  %v11766_v48 = vrot.slane %v8695_v25, 1 }
 0x236   :  { %3080 = vst [vmem:[#allocation2 + $0x48] sm:$0x7f] %v3020_v0  ;;  %2518 = vst [vmem:[#allocation2 + $0x91] sm:$0xff] %v2458_v38  ;;  %v2751_v47 = vld [vmem:[#allocation2 + $0x58] sm:$0x7f]  ;;  %v2635_v35 = vadd.f32 %v2575_v40, %v8324_v50  ;;  %v2461_v24 = vadd.f32 %v2401_v52, %v8396_v23  ;;  %v2400_v6 = vld [vmem:[#allocation2 + $0xa1] sm:$0xff]  ;;  %v3025_v44 = vadd.f32 %v8766_v37, %v2634_v3  ;;  %v9131_v40 = vpop.permute.xlu1 %3979 }
 0x237   :  { %2342 = vst [vmem:[#allocation2 + $0xc8] sm:$0xff] %v6601_v4  ;;  %3265 = vst [vmem:[#allocation2 + $0x21] sm:$0xff] %v3201_v62  ;;  %v3022_v1 = vadd.f32 %v11766_v48, %v2751_v47  ;;  %v2460_v18 = vadd.f32 %v2400_v6, %v8383_v17  ;;  %v6494_v15 = vpop.f32.mrb[26].mxu0  ;;  %v2926_v33 = vrot.slane %v9102_v61, 1  ;;  %v2576_v50 = vld [vmem:[#allocation2 + $0x80] sm:$0xff]  ;;  %v9120_v36 = vpop.f32.mrb[152].mxu1 }
 0x238   :  { %3266 = vst [vmem:[#allocation2 + $0x29] sm:$0x7f] %v3202_v5  ;;  %2341 = vst [vmem:[#allocation2 + $0xc0] sm:$0xff] %v6602_v53  ;;  %v3139_v0 = vld [vmem:[#allocation2 + $0x31] sm:$0xff]  ;;  %v3140_v19 = vld [vmem:[#allocation2 + $0x39] sm:$0x7f]  ;;  %v6603_v23 = vadd.f32 %v6494_v15, %v8945_v60  ;;  %v2636_v32 = vadd.f32 %v2576_v50, %v8337_v59  ;;  %v9133_v59 = vpop.permute.xlu0 %3977 }
 0x239   :  { %2695 = vst [vmem:[#allocation2 + $0x78] sm:$0xff] %v2635_v35  ;;  %2521 = vst [vmem:[#allocation2 + $0xa9] sm:$0x7f] %v2461_v24  ;;  %v2064_v38 = vpop.f32.mrb[27].mxu0  ;;  %v3203_v25 = vadd.f32 %v3139_v0, %v8643_v45  ;;  %v3204_v37 = vadd.f32 %v3140_v19, %v8661_v56  ;;  %v2577_v17 = vld [vmem:[#allocation2 + $0x88] sm:$0xff]  ;;  %v9126_v4 = vpop.f32.mrb[153].mxu1 }
 0x23a   :  { %3082 = vst [vmem:[#allocation2 + $0x58] sm:$0x7f] %v3022_v1  ;;  %3085 = vst [vmem:[#allocation2 + $0x70] sm:$0xff] %v3025_v44  ;;  %v2403_v63 = vld [vmem:[#allocation2 + $0xb9] sm:$0x7f]  ;;  %v6604_v11 = vadd.f32 %v8945_v60, %v2064_v38  ;;  %v2637_v61 = vadd.f32 %v2577_v17, %v8350_v2  ;;  %v2402_v5 = vld [vmem:[#allocation2 + $0xb1] sm:$0xff]  ;;  %v3027_v3 = vadd.f32 %v8786_v28, %v2636_v32 }
 0x23b   :  { %2520 = vst [vmem:[#allocation2 + $0xa1] sm:$0xff] %v2460_v18  ;;  %v3328_v20 = vld [vmem:[#allocation2 + $0x18] sm:$0xff]  ;;  %v2463_v62 = vadd.f32 %v2403_v63, %v8422_v39  ;;  %2344 = vst [vmem:[#allocation2 + $0xd8] sm:$0xff] %v6603_v23  ;;  %v11487_v45 = vrot.slane %v9120_v36, 1  ;;  %v2753_v56 = vld [vmem:[#allocation2 + $0x68] sm:$0x7f]  ;;  %v2462_v52 = vadd.f32 %v2402_v5, %v8409_v31 }
 0x23c   :  { %3267 = vst [vmem:[#allocation2 + $0x31] sm:$0xff] %v3203_v25  ;;  %3268 = vst [vmem:[#allocation2 + $0x39] sm:$0x7f] %v3204_v37  ;;  %v11769_v39 = vrot.slane %v8730_v34, 1  ;;  %v6497_v24 = vpop.f32.mrb[28].mxu0  ;;  %6718 = vtanh.f32 %v3328_v20  ;;  %v9144_v48 = vpop.f32.mrb[154].mxu1 }
 0x23d   :  { %11767 = vst [vmem:[#allocation33_spill] sm:$0xff] %v9131_v40  ;;  %11768 = vst [vmem:[#allocation31_spill] sm:$0xff] %v9133_v59  ;;  %v3141_v53 = vld [vmem:[#allocation2 + $0x41] sm:$0xff]  ;;  %v3142_v2 = vld [vmem:[#allocation2 + $0x49] sm:$0x7f]  ;;  %v9142_v6 = vsel %vm2862_vm3, %v2926_v33, %v11487_v45  ;;  %v2074_v15 = vpop.f32.mrb[29].mxu0 }
 0x23e   :  { %2343 = vst [vmem:[#allocation2 + $0xd0] sm:$0xff] %v6604_v11  ;;  %v3024_v47 = vadd.f32 %v11769_v39, %v2753_v56  ;;  %2697 = vst [vmem:[#allocation2 + $0x88] sm:$0xff] %v2637_v61  ;;  %v2578_v35 = vld [vmem:[#allocation2 + $0x90] sm:$0xff]  ;;  %v3205_v31 = vadd.f32 %v3141_v53, %v8681_v54  ;;  %v3206_v28 = vadd.f32 %v3142_v2, %v8699_v41  ;;  %v2579_v34 = vld [vmem:[#allocation2 + $0x98] sm:$0xff]  ;;  %v9149_v0 = vpop.f32.mrb[155].mxu1 }
 0x23f   :  { %2523 = vst [vmem:[#allocation2 + $0xb9] sm:$0x7f] %v2463_v62  ;;  %v3327_v1 = vld [vmem:[#allocation2 + $0x10] sm:$0xff]  ;;  %3087 = vst [vmem:[#allocation2 + $0x80] sm:$0xff] %v3027_v3  ;;  %v2638_v44 = vadd.f32 %v2578_v35, %v8363_v8  ;;  %v2405_v18 = vld [vmem:[#allocation2 + $0xc9] sm:$0x7f]  ;;  %v2639_v33 = vadd.f32 %v2579_v34, %v8376_v14  ;;  %v6605_v54 = vadd.f32 %v6497_v24, %v8945_v60  ;;  %v9164_v24 = vpop.permute.xlu1 %3983 }
 0x240   :  { %2522 = vst [vmem:[#allocation2 + $0xb1] sm:$0xff] %v2462_v52  ;;  %3084 = vst [vmem:[#allocation2 + $0x68] sm:$0x7f] %v3024_v47  ;;  %v2465_v19 = vadd.f32 %v2405_v18, %v8448_v55  ;;  %v2404_v50 = vld [vmem:[#allocation2 + $0xc1] sm:$0xff]  ;;  %v2755_v41 = vld [vmem:[#allocation2 + $0x78] sm:$0x7f]  ;;  %v6606_v14 = vadd.f32 %v8945_v60, %v2074_v15  ;;  %6720 = vtanh.f32 %v3327_v1 }
 0x241   :  { %3269 = vst [vmem:[#allocation2 + $0x41] sm:$0xff] %v3205_v31  ;;  %3270 = vst [vmem:[#allocation2 + $0x49] sm:$0x7f] %v3206_v28  ;;  %v11770_v23 = vld [vmem:[#allocation91_spill] sm:$0xff]  ;;  %v3144_v17 = vld [vmem:[#allocation2 + $0x59] sm:$0x7f] }
 0x242   :  { %v3029_v38 = vadd.f32 %v11770_v23, %v2638_v44  ;;  %v11771_v25 = vld [vmem:[#allocation39_spill] sm:$0xff]  ;;  %v11772_v32 = vld [vmem:[#allocation73_spill] sm:$0xff]  ;;  %2699 = vst [vmem:[#allocation2 + $0x98] sm:$0xff] %v2639_v33  ;;  %2525 = vst [vmem:[#allocation2 + $0xc9] sm:$0x7f] %v2465_v19  ;;  %v6500_v55 = vpop.f32.mrb[30].mxu0  ;;  %v9171_v19 = vpop.permute.xlu0 %3981 }
 0x243   :  { %v2464_v8 = vadd.f32 %v2404_v50, %v11771_v25  ;;  %v3143_v37 = vld [vmem:[#allocation2 + $0x51] sm:$0xff]  ;;  %v11773_v63 = vrot.slane %v11772_v32, 1  ;;  %v2580_v20 = vld [vmem:[#allocation2 + $0xa0] sm:$0xff]  ;;  %2346 = vst [vmem:[#allocation2 + $0xe8] sm:$0xff] %v6605_v54  ;;  %v3330_v3 = vld [vmem:[#allocation2 + $0x28] sm:$0xff]  ;;  %v2084_v47 = vpop.f32.mrb[31].mxu0  ;;  %v6607_v18 = vadd.f32 %v6500_v55, %v8945_v60 }
 0x244   :  { %v11774_v61 = vld [vmem:[#allocation64_spill] sm:$0xff]  ;;  %v11775_v5 = vld [vmem:[#allocation67_spill] sm:$0xff]  ;;  %3089 = vst [vmem:[#allocation2 + $0x90] sm:$0xff] %v3029_v38  ;;  %v2581_v52 = vld [vmem:[#allocation2 + $0xa8] sm:$0xff]  ;;  %v9162_v35 = vpop.f32.mrb[156].mxu1  ;;  %v2929_v38 = vrot.slane %v9144_v48, 1  ;;  %6722 = vtanh.f32 %v3330_v3 }
 0x245   :  { %v3026_v11 = vadd.f32 %v11773_v63, %v2755_v41  ;;  %v3207_v62 = vadd.f32 %v3143_v37, %v11774_v61  ;;  %v3208_v56 = vadd.f32 %v3144_v17, %v11775_v5  ;;  %v11776_v53 = vld [vmem:[#allocation35_spill] sm:$0xff]  ;;  %2524 = vst [vmem:[#allocation2 + $0xc1] sm:$0xff] %v2464_v8  ;;  %v2407_v39 = vld [vmem:[#allocation2 + $0xd9] sm:$0x7f]  ;;  %11777 = vst [vmem:[#allocation20_spill] sm:$0xff] %v9164_v24  ;;  %v9169_v15 = vpop.f32.mrb[157].mxu1 }
 0x246   :  { %v2640_v2 = vadd.f32 %v2580_v20, %v11776_v53  ;;  %v11778_v31 = vld [vmem:[#allocation36_spill] sm:$0xff]  ;;  %2345 = vst [vmem:[#allocation2 + $0xe0] sm:$0xff] %v6606_v14  ;;  %v2757_v33 = vld [vmem:[#allocation2 + $0x88] sm:$0x7f]  ;;  %11780 = vst [vmem:[#allocation23_spill] sm:$0xff] %v9171_v19  ;;  %v6503_v20 = vpop.f32.mrb[32].mxu0 }
 0x247   :  { %3086 = vst [vmem:[#allocation2 + $0x78] sm:$0x7f] %v3026_v11  ;;  %v2641_v28 = vadd.f32 %v2581_v52, %v11778_v31  ;;  %v11779_v1 = vld [vmem:[#allocation44_spill] sm:$0xff]  ;;  %3271 = vst [vmem:[#allocation2 + $0x51] sm:$0xff] %v3207_v62  ;;  %v11781_v50 = vld [vmem:[#allocation99_spill] sm:$0xff]  ;;  %v6608_v11 = vadd.f32 %v8945_v60, %v2084_v47  ;;  %v11486_v14 = vrot.slane %v9162_v35, 1  ;;  %v6719_v47 = vpop.eup %6718 }
 0x248   :  { %v2467_v34 = vadd.f32 %v2407_v39, %v11779_v1  ;;  %v2406_v44 = vld [vmem:[#allocation2 + $0xd1] sm:$0xff]  ;;  %3272 = vst [vmem:[#allocation2 + $0x59] sm:$0x7f] %v3208_v56  ;;  %v3031_v54 = vadd.f32 %v11781_v50, %v2640_v2  ;;  %v11782_v41 = vld [vmem:[#allocation42_spill] sm:$0xff]  ;;  %v3329_v25 = vld [vmem:[#allocation2 + $0x20] sm:$0xff]  ;;  %v9180_v55 = vpop.f32.mrb[158].mxu1  ;;  %v6609_v2 = vadd.f32 %v6503_v20, %v8945_v60  ;;  %4291 = vrot.lane.b32.xlu1 %v6719_v47, %s7296_s30 }
 0x249   :  { %v2466_v23 = vadd.f32 %v2406_v44, %v11782_v41  ;;  %v11783_v8 = vld [vmem:[#allocation80_spill] sm:$0xff]  ;;  %2701 = vst [vmem:[#allocation2 + $0xa8] sm:$0xff] %v2641_v28  ;;  %v2582_v32 = vld [vmem:[#allocation2 + $0xb0] sm:$0xff]  ;;  %2348 = vst [vmem:[#allocation2 + $0xf8] sm:$0xff] %v6607_v18  ;;  %v2094_v39 = vpop.f32.mrb[33].mxu0  ;;  %v9185_v31 = vpop.f32.mrb[159].mxu1  ;;  %6724 = vtanh.f32 %v3329_v25 }
 0x24a   :  { %v11784_v37 = vrot.slane %v11783_v8, 1  ;;  %v2583_v63 = vld [vmem:[#allocation2 + $0xb8] sm:$0xff]  ;;  %2527 = vst [vmem:[#allocation2 + $0xd9] sm:$0x7f] %v2467_v34  ;;  %v3145_v61 = vld [vmem:[#allocation2 + $0x61] sm:$0xff]  ;;  %3091 = vst [vmem:[#allocation2 + $0xa0] sm:$0xff] %v3031_v54  ;;  %v6610_v44 = vadd.f32 %v8945_v60, %v2094_v39  ;;  %v9194_v8 = vpop.permute.xlu1 %3987 }
 0x24b   :  { %v3146_v62 = vld [vmem:[#allocation2 + $0x69] sm:$0x7f]  ;;  %v3332_v48 = vld [vmem:[#allocation2 + $0x38] sm:$0xff]  ;;  %v11785_v5 = vld [vmem:[#allocation37_spill] sm:$0xff]  ;;  %2526 = vst [vmem:[#allocation2 + $0xd1] sm:$0xff] %v2466_v23 }
 0x24c   :  { %v3028_v17 = vadd.f32 %v11784_v37, %v2757_v33  ;;  %v2642_v56 = vadd.f32 %v2582_v32, %v11785_v5  ;;  %v11786_v52 = vld [vmem:[#allocation38_spill] sm:$0xff]  ;;  %2347 = vst [vmem:[#allocation2 + $0xf0] sm:$0xff] %v6608_v11  ;;  %v2759_v18 = vld [vmem:[#allocation2 + $0x98] sm:$0x7f]  ;;  %v11789_v33 = vld [vmem:[#allocation107_spill] sm:$0xff]  ;;  %6726 = vtanh.f32 %v3332_v48  ;;  %v9201_v11 = vsel %vm2862_vm3, %v2929_v38, %v11486_v14  ;;  %v9210_v38 = vpop.f32.mrb[160].mxu1 }
 0x24d   :  { %v2643_v53 = vadd.f32 %v2583_v63, %v11786_v52  ;;  %v11787_v3 = vld [vmem:[#allocation70_spill] sm:$0xff]  ;;  %2350 = vst [vmem:[#allocation2 + $0x108] sm:$0xff] %v6609_v2  ;;  %v11790_v54 = vld [vmem:[#allocation87_spill] sm:$0xff]  ;;  %11792 = vst [vmem:[#allocation26_spill] sm:$0xff] %v9194_v8  ;;  %v9196_v63 = vpop.f32.mrb[34].mxu0  ;;  %v6721_v2 = vpop.eup %6720 }
 0x24e   :  { %v3209_v28 = vadd.f32 %v3145_v61, %v11787_v3  ;;  %v11788_v1 = vld [vmem:[#allocation74_spill] sm:$0xff]  ;;  %3088 = vst [vmem:[#allocation2 + $0x88] sm:$0x7f] %v3028_v17  ;;  %v3033_v50 = vadd.f32 %v11789_v33, %v2642_v56  ;;  %v11791_v41 = vrot.slane %v11790_v54, 1  ;;  %v2584_v37 = vld [vmem:[#allocation2 + $0xc0] sm:$0xff]  ;;  %2349 = vst [vmem:[#allocation2 + $0x100] sm:$0xff] %v6610_v44  ;;  %4289 = vrot.lane.b32.xlu0 %v6721_v2, %s7296_s30 }
 0x24f   :  { %v3210_v34 = vadd.f32 %v3146_v62, %v11788_v1  ;;  %2703 = vst [vmem:[#allocation2 + $0xb8] sm:$0xff] %v2643_v53  ;;  %v2585_v17 = vld [vmem:[#allocation2 + $0xc8] sm:$0xff]  ;;  %v3147_v25 = vld [vmem:[#allocation2 + $0x71] sm:$0xff]  ;;  %v3148_v20 = vld [vmem:[#allocation2 + $0x79] sm:$0x7f]  ;;  %v9205_v53 = vpop.f32.mrb[35].mxu0 }
 0x250   :  { %3273 = vst [vmem:[#allocation2 + $0x61] sm:$0xff] %v3209_v28  ;;  %v3030_v23 = vadd.f32 %v11791_v41, %v2759_v18  ;;  %v2409_v32 = vld [vmem:[#allocation2 + $0xe9] sm:$0x7f]  ;;  %3093 = vst [vmem:[#allocation2 + $0xb0] sm:$0xff] %v3033_v50  ;;  %v11793_v61 = vld [vmem:[#allocation40_spill] sm:$0xff] }
 0x251   :  { %3274 = vst [vmem:[#allocation2 + $0x69] sm:$0x7f] %v3210_v34  ;;  %v2644_v62 = vadd.f32 %v2584_v37, %v11793_v61  ;;  %v11794_v5 = vld [vmem:[#allocation41_spill] sm:$0xff]  ;;  %v11797_v28 = vld [vmem:[#allocation48_spill] sm:$0xff]  ;;  %v9212_v34 = vpop.permute.xlu0 %3985  ;;  %v2761_v44 = vld [vmem:[#allocation2 + $0xa8] sm:$0x7f] }
 0x252   :  { %v2645_v56 = vadd.f32 %v2585_v17, %v11794_v5  ;;  %v2408_v52 = vld [vmem:[#allocation2 + $0xe1] sm:$0xff]  ;;  %3090 = vst [vmem:[#allocation2 + $0x98] sm:$0x7f] %v3030_v23  ;;  %v2469_v1 = vadd.f32 %v2409_v32, %v11797_v28  ;;  %11798 = vst [vmem:[#allocation29_spill] sm:$0xff] %v9212_v34  ;;  %v11799_v18 = vld [vmem:[#allocation115_spill] sm:$0xff] }
 0x253   :  { %v11795_v39 = vld [vmem:[#allocation77_spill] sm:$0xff]  ;;  %v3035_v33 = vadd.f32 %v11799_v18, %v2644_v62  ;;  %v11800_v50 = vld [vmem:[#allocation95_spill] sm:$0xff]  ;;  %v2587_v17 = vld [vmem:[#allocation2 + $0xd8] sm:$0xff] }
 0x254   :  { %v3211_v47 = vadd.f32 %v3147_v25, %v11795_v39  ;;  %v11796_v3 = vld [vmem:[#allocation81_spill] sm:$0xff]  ;;  %2705 = vst [vmem:[#allocation2 + $0xc8] sm:$0xff] %v2645_v56  ;;  %v11801_v54 = vrot.slane %v11800_v50, 1  ;;  %v2586_v37 = vld [vmem:[#allocation2 + $0xd0] sm:$0xff]  ;;  %2529 = vst [vmem:[#allocation2 + $0xe9] sm:$0x7f] %v2469_v1  ;;  %v9223_v1 = vpop.permute.xlu1 %3991 }
 0x255   :  { %v3212_v48 = vadd.f32 %v3148_v20, %v11796_v3  ;;  %v11802_v23 = vld [vmem:[#allocation46_spill] sm:$0xff]  ;;  %v2411_v25 = vld [vmem:[#allocation2 + $0xf9] sm:$0x7f]  ;;  %v6509_v20 = vpop.f32.mrb[36].mxu0  ;;  %3095 = vst [vmem:[#allocation2 + $0xc0] sm:$0xff] %v3035_v33  ;;  %v11803_v56 = vld [vmem:[#allocation43_spill] sm:$0xff] }
 0x256   :  { %3275 = vst [vmem:[#allocation2 + $0x71] sm:$0xff] %v3211_v47  ;;  %v3032_v41 = vadd.f32 %v11801_v54, %v2761_v44  ;;  %v2468_v32 = vadd.f32 %v2408_v52, %v11802_v23  ;;  %v3149_v61 = vld [vmem:[#allocation2 + $0x81] sm:$0xff]  ;;  %v3150_v5 = vld [vmem:[#allocation2 + $0x89] sm:$0x7f]  ;;  %v2646_v39 = vadd.f32 %v2586_v37, %v11803_v56  ;;  %v2410_v2 = vld [vmem:[#allocation2 + $0xf1] sm:$0xff]  ;;  %v2114_v47 = vpop.f32.mrb[37].mxu0 }
 0x257   :  { %3276 = vst [vmem:[#allocation2 + $0x79] sm:$0x7f] %v3212_v48  ;;  %v11804_v62 = vld [vmem:[#allocation45_spill] sm:$0xff]  ;;  %v6723_v48 = vpop.eup %6722  ;;  %v11805_v28 = vld [vmem:[#allocation84_spill] sm:$0xff]  ;;  %11807 = vst [vmem:[#allocation32_spill] sm:$0xff] %v9223_v1  ;;  %v9226_v33 = vpop.f32.mrb[161].mxu1  ;;  %v6612_v1 = vadd.f32 %v8945_v60, %v9205_v53 }
 0x258   :  { %v2647_v3 = vadd.f32 %v2587_v17, %v11804_v62  ;;  %v3213_v18 = vadd.f32 %v3149_v61, %v11805_v28  ;;  %v11806_v44 = vld [vmem:[#allocation88_spill] sm:$0xff]  ;;  %3092 = vst [vmem:[#allocation2 + $0xa8] sm:$0x7f] %v3032_v41  ;;  %2528 = vst [vmem:[#allocation2 + $0xe1] sm:$0xff] %v2468_v32  ;;  %v3166_v14 = vld [vmem:[#allocation2 + $0x109] sm:$0x7f]  ;;  %4295 = vrot.lane.b32.xlu1 %v6723_v48, %s7296_s30  ;;  %v6611_v48 = vadd.f32 %v9196_v63, %v8945_v60 }
 0x259   :  { %v3214_v50 = vadd.f32 %v3150_v5, %v11806_v44  ;;  %v2763_v52 = vld [vmem:[#allocation2 + $0xb8] sm:$0x7f]  ;;  %v11809_v37 = vld [vmem:[#allocation103_spill] sm:$0xff]  ;;  %v11812_v7 = vld [vmem:[#allocation50_spill] sm:$0xff]  ;;  %v6512_v41 = vpop.f32.mrb[38].mxu0  ;;  %v9233_v5 = vpop.f32.mrb[162].mxu1  ;;  %v6614_v63 = vadd.f32 %v8945_v60, %v2114_v47 }
 0x25a   :  { %v11808_v54 = vld [vmem:[#allocation52_spill] sm:$0xff]  ;;  %v11810_v56 = vrot.slane %v11809_v37, 1  ;;  %2707 = vst [vmem:[#allocation2 + $0xd8] sm:$0xff] %v2647_v3  ;;  %v11811_v62 = vld [vmem:[#allocation123_spill] sm:$0xff]  ;;  %v2470_v61 = vadd.f32 %v2410_v2, %v11812_v7  ;;  %v3165_v28 = vld [vmem:[#allocation2 + $0x101] sm:$0xff]  ;;  %v2124_v32 = vpop.f32.mrb[39].mxu0  ;;  %v9235_v37 = vpop.permute.xlu0 %3989 }
 0x25b   :  { %v2471_v23 = vadd.f32 %v2411_v25, %v11808_v54  ;;  %v3037_v45 = vadd.f32 %v11811_v62, %v2646_v39  ;;  %3277 = vst [vmem:[#allocation2 + $0x81] sm:$0xff] %v3213_v18  ;;  %3278 = vst [vmem:[#allocation2 + $0x89] sm:$0x7f] %v3214_v50  ;;  %v6725_v25 = vpop.eup %6724  ;;  %v3151_v44 = vld [vmem:[#allocation2 + $0x91] sm:$0xff]  ;;  %v3152_v54 = vld [vmem:[#allocation2 + $0x99] sm:$0x7f]  ;;  %v6616_v47 = vadd.f32 %v8945_v60, %v2124_v32 }
 0x25c   :  { %v3034_v17 = vadd.f32 %v11810_v56, %v2763_v52  ;;  %11813 = vst [vmem:[#allocation34_spill] sm:$0xff] %v9235_v37  ;;  %2530 = vst [vmem:[#allocation2 + $0xf1] sm:$0xff] %v2470_v61  ;;  %v11814_v39 = vld [vmem:[#allocation148_spill] sm:$0xff]  ;;  %v11815_v3 = vld [vmem:[#allocation146_spill] sm:$0xff]  ;;  %v6727_v52 = vpop.eup %6726  ;;  %4293 = vrot.lane.b32.xlu0 %v6725_v25, %s7296_s30 }
 0x25d   :  { %2531 = vst [vmem:[#allocation2 + $0xf9] sm:$0x7f] %v2471_v23  ;;  %3097 = vst [vmem:[#allocation2 + $0xd0] sm:$0xff] %v3037_v45  ;;  %v3230_v7 = vadd.f32 %v3166_v14, %v11814_v39  ;;  %v3229_v2 = vadd.f32 %v3165_v28, %v11815_v3  ;;  %v11816_v18 = vld [vmem:[#allocation92_spill] sm:$0xff]  ;;  %v2765_v62 = vld [vmem:[#allocation2 + $0xc8] sm:$0x7f]  ;;  %v6613_v14 = vadd.f32 %v6509_v20, %v8945_v60  ;;  %4299 = vrot.lane.b32.xlu1 %v6727_v52, %s7296_s30 }
 0x25e   :  { %3094 = vst [vmem:[#allocation2 + $0xb8] sm:$0x7f] %v3034_v17  ;;  %v3215_v50 = vadd.f32 %v3151_v44, %v11816_v18  ;;  %v11817_v23 = vld [vmem:[#allocation96_spill] sm:$0xff]  ;;  %v11818_v45 = vld [vmem:[#allocation111_spill] sm:$0xff]  ;;  %2352 = vst [vmem:[#allocation2 + $0x118] sm:$0xff] %v6611_v48  ;;  %v9251_v28 = vpop.f32.mrb[40].mxu0  ;;  %v9253_v44 = vpop.permute.xlu1 %3995  ;;  %v6615_v20 = vadd.f32 %v6512_v41, %v8945_v60 }
 0x25f   :  { %v3216_v56 = vadd.f32 %v3152_v54, %v11817_v23  ;;  %v11819_v17 = vrot.slane %v11818_v45, 1  ;;  %3294 = vst [vmem:[#allocation2 + $0x109] sm:$0x7f] %v3230_v7  ;;  %3293 = vst [vmem:[#allocation2 + $0x101] sm:$0xff] %v3229_v2  ;;  %v9255_v53 = vpop.f32.mrb[41].mxu0  ;;  %v3153_v25 = vld [vmem:[#allocation2 + $0xa1] sm:$0xff]  ;;  %v9265_v23 = vpop.permute.xlu0 %3993 }
 0x260   :  { %3279 = vst [vmem:[#allocation2 + $0x91] sm:$0xff] %v3215_v50  ;;  %11820 = vst [vmem:[#allocation91_spill] sm:$0xff] %v9253_v44  ;;  %v3154_v54 = vld [vmem:[#allocation2 + $0xa9] sm:$0x7f]  ;;  %v2588_v39 = vld [vmem:[#allocation2 + $0xe0] sm:$0xff]  ;;  %v9259_v7 = vpop.f32.mrb[163].mxu1 }
 0x261   :  { %v3036_v61 = vadd.f32 %v11819_v17, %v2765_v62  ;;  %3280 = vst [vmem:[#allocation2 + $0x99] sm:$0x7f] %v3216_v56  ;;  %2351 = vst [vmem:[#allocation2 + $0x110] sm:$0xff] %v6612_v1  ;;  %v11821_v3 = vld [vmem:[#allocation100_spill] sm:$0xff]  ;;  %v2589_v1 = vld [vmem:[#allocation2 + $0xe8] sm:$0xff]  ;;  %v9263_v50 = vpop.f32.mrb[164].mxu1 }
 0x262   :  { %2354 = vst [vmem:[#allocation2 + $0x128] sm:$0xff] %v6613_v14  ;;  %2353 = vst [vmem:[#allocation2 + $0x120] sm:$0xff] %v6614_v63  ;;  %v3217_v2 = vadd.f32 %v3153_v25, %v11821_v3  ;;  %v11822_v48 = vld [vmem:[#allocation104_spill] sm:$0xff]  ;;  %v11824_v56 = vld [vmem:[#allocation119_spill] sm:$0xff]  ;;  %v9270_v60 = vpop.f32.mrb[42].mxu0 }
 0x263   :  { %3096 = vst [vmem:[#allocation2 + $0xc8] sm:$0x7f] %v3036_v61  ;;  %v3218_v52 = vadd.f32 %v3154_v54, %v11822_v48  ;;  %v2767_v18 = vld [vmem:[#allocation2 + $0xd8] sm:$0x7f]  ;;  %11823 = vst [vmem:[#allocation39_spill] sm:$0xff] %v9265_v23  ;;  %v11825_v62 = vrot.slane %v11824_v56, 1 }
 0x264   :  { %v11826_v17 = vld [vmem:[#allocation47_spill] sm:$0xff]  ;;  %2356 = vst [vmem:[#allocation2 + $0x138] sm:$0xff] %v6615_v20  ;;  %2355 = vst [vmem:[#allocation2 + $0x130] sm:$0xff] %v6616_v47  ;;  %v11827_v14 = vld [vmem:[#allocation49_spill] sm:$0xff] }
 0x265   :  { %v3038_v45 = vadd.f32 %v11825_v62, %v2767_v18  ;;  %v2648_v61 = vadd.f32 %v2588_v39, %v11826_v17  ;;  %3281 = vst [vmem:[#allocation2 + $0xa1] sm:$0xff] %v3217_v2  ;;  %3282 = vst [vmem:[#allocation2 + $0xa9] sm:$0x7f] %v3218_v52  ;;  %v3155_v41 = vld [vmem:[#allocation2 + $0xb1] sm:$0xff]  ;;  %v3156_v32 = vld [vmem:[#allocation2 + $0xb9] sm:$0x7f]  ;;  %v2649_v63 = vadd.f32 %v2589_v1, %v11827_v14  ;;  %v9277_v39 = vpop.permute.xlu1 %3999 }
 0x266   :  { %v11828_v25 = vld [vmem:[#allocation108_spill] sm:$0xff]  ;;  %v2590_v23 = vld [vmem:[#allocation2 + $0xf0] sm:$0xff]  ;;  %v9275_v18 = vpop.f32.mrb[43].mxu0  ;;  %11830 = vst [vmem:[#allocation73_spill] sm:$0xff] %v9277_v39  ;;  %v11833_v17 = vld [vmem:[#allocation53_spill] sm:$0xff] }
 0x267   :  { %v3219_v54 = vadd.f32 %v3155_v41, %v11828_v25  ;;  %v11829_v3 = vld [vmem:[#allocation112_spill] sm:$0xff]  ;;  %3098 = vst [vmem:[#allocation2 + $0xd8] sm:$0x7f] %v3038_v45  ;;  %2709 = vst [vmem:[#allocation2 + $0xe8] sm:$0xff] %v2649_v63  ;;  %v11831_v20 = vld [vmem:[#allocation131_spill] sm:$0xff]  ;;  %v9284_v45 = vpop.f32.mrb[165].mxu1 }
 0x268   :  { %v3220_v48 = vadd.f32 %v3156_v32, %v11829_v3  ;;  %v2591_v56 = vld [vmem:[#allocation2 + $0xf8] sm:$0xff]  ;;  %v3039_v47 = vadd.f32 %v11831_v20, %v2648_v61  ;;  %v3331_v52 = vld [vmem:[#allocation2 + $0x30] sm:$0xff]  ;;  %v9282_v32 = vpop.f32.mrb[44].mxu0  ;;  %v11835_v44 = vld [vmem:[#allocation54_spill] sm:$0xff]  ;;  %v9295_v19 = vpop.f32.mrb[166].mxu1 }
 0x269   :  { %v2413_v2 = vld [vmem:[#allocation2 + $0x119] sm:$0x7f]  ;;  %3283 = vst [vmem:[#allocation2 + $0xb1] sm:$0xff] %v3219_v54  ;;  %v11832_v62 = vld [vmem:[#allocation51_spill] sm:$0xff]  ;;  %v2651_v41 = vadd.f32 %v2591_v56, %v11833_v17  ;;  %v2414_v20 = vld [vmem:[#allocation2 + $0x121] sm:$0xff]  ;;  %6728 = vtanh.f32 %v3331_v52 }
 0x26a   :  { %3284 = vst [vmem:[#allocation2 + $0xb9] sm:$0x7f] %v3220_v48  ;;  %v2650_v1 = vadd.f32 %v2590_v23, %v11832_v62  ;;  %v2412_v14 = vld [vmem:[#allocation2 + $0x111] sm:$0xff]  ;;  %v3157_v25 = vld [vmem:[#allocation2 + $0xc1] sm:$0xff]  ;;  %v3158_v3 = vld [vmem:[#allocation2 + $0xc9] sm:$0x7f]  ;;  %v9290_v23 = vpop.permute.xlu0 %3997 }
 0x26b   :  { %3099 = vst [vmem:[#allocation2 + $0xe0] sm:$0xff] %v3039_v47  ;;  %v11834_v39 = vld [vmem:[#allocation56_spill] sm:$0xff]  ;;  %v2472_v61 = vadd.f32 %v2412_v14, %v11835_v44  ;;  %11838 = vst [vmem:[#allocation64_spill] sm:$0xff] %v9290_v23  ;;  %v2415_v56 = vld [vmem:[#allocation2 + $0x129] sm:$0x7f]  ;;  %v9292_v62 = vpop.f32.mrb[45].mxu0 }
 0x26c   :  { %v2473_v63 = vadd.f32 %v2413_v2, %v11834_v39  ;;  %v11836_v37 = vld [vmem:[#allocation116_spill] sm:$0xff]  ;;  %2711 = vst [vmem:[#allocation2 + $0xf8] sm:$0xff] %v2651_v41  ;;  %v11839_v17 = vld [vmem:[#allocation139_spill] sm:$0xff]  ;;  %v9299_v14 = vpop.f32.mrb[46].mxu0  ;;  %v9301_v41 = vpop.f32.mrb[167].mxu1 }
 0x26d   :  { %v3221_v54 = vadd.f32 %v3157_v25, %v11836_v37  ;;  %v11837_v48 = vld [vmem:[#allocation120_spill] sm:$0xff]  ;;  %v3041_v8 = vadd.f32 %v11839_v17, %v2650_v1  ;;  %2532 = vst [vmem:[#allocation2 + $0x111] sm:$0xff] %v2472_v61  ;;  %v11840_v44 = vld [vmem:[#allocation59_spill] sm:$0xff]  ;;  %v11841_v37 = vld [vmem:[#allocation58_spill] sm:$0xff]  ;;  %v9308_v52 = vpop.f32.mrb[47].mxu0 }
 0x26e   :  { %v3222_v34 = vadd.f32 %v3158_v3, %v11837_v48  ;;  %2533 = vst [vmem:[#allocation2 + $0x119] sm:$0x7f] %v2473_v63  ;;  %v2417_v47 = vld [vmem:[#allocation2 + $0x139] sm:$0x7f]  ;;  %v2475_v39 = vadd.f32 %v2415_v56, %v11840_v44  ;;  %v2474_v2 = vadd.f32 %v2414_v20, %v11841_v37  ;;  %11842 = vst [vmem:[#allocation67_spill] sm:$0xff] %v9301_v41  ;;  %v3159_v25 = vld [vmem:[#allocation2 + $0xd1] sm:$0xff]  ;;  %v9303_v48 = vpop.permute.xlu1 %4003 }
 0x26f   :  { %3285 = vst [vmem:[#allocation2 + $0xc1] sm:$0xff] %v3221_v54  ;;  %v3160_v3 = vld [vmem:[#allocation2 + $0xd9] sm:$0x7f]  ;;  %11843 = vst [vmem:[#allocation35_spill] sm:$0xff] %v9303_v48  ;;  %v11844_v1 = vld [vmem:[#allocation61_spill] sm:$0xff]  ;;  %v9310_v56 = vpop.f32.mrb[168].mxu1 }
 0x270   :  { %3286 = vst [vmem:[#allocation2 + $0xc9] sm:$0x7f] %v3222_v34  ;;  %3101 = vst [vmem:[#allocation2 + $0xf0] sm:$0xff] %v3041_v8  ;;  %v2477_v63 = vadd.f32 %v2417_v47, %v11844_v1  ;;  %v11845_v61 = vld [vmem:[#allocation124_spill] sm:$0xff]  ;;  %v2769_v23 = vld [vmem:[#allocation2 + $0xe8] sm:$0x7f]  ;;  %v9314_v8 = vpop.permute.xlu0 %4001 }
 0x271   :  { %v3223_v17 = vadd.f32 %v3159_v25, %v11845_v61  ;;  %v11846_v54 = vld [vmem:[#allocation128_spill] sm:$0xff]  ;;  %2535 = vst [vmem:[#allocation2 + $0x129] sm:$0x7f] %v2475_v39  ;;  %2534 = vst [vmem:[#allocation2 + $0x121] sm:$0xff] %v2474_v2  ;;  %v11847_v44 = vld [vmem:[#allocation127_spill] sm:$0xff]  ;;  %v9316_v47 = vpop.f32.mrb[48].mxu0 }
 0x272   :  { %v3224_v34 = vadd.f32 %v3160_v3, %v11846_v54  ;;  %v2416_v20 = vld [vmem:[#allocation2 + $0x131] sm:$0xff]  ;;  %v11848_v37 = vrot.slane %v11847_v44, 1  ;;  %2537 = vst [vmem:[#allocation2 + $0x139] sm:$0x7f] %v2477_v63  ;;  %11849 = vst [vmem:[#allocation36_spill] sm:$0xff] %v9314_v8  ;;  %v9328_v63 = vpop.f32.mrb[169].mxu1 }
 0x273   :  { %3287 = vst [vmem:[#allocation2 + $0xd1] sm:$0xff] %v3223_v17  ;;  %v2771_v25 = vld [vmem:[#allocation2 + $0xf8] sm:$0x7f]  ;;  %v9322_v2 = vld [vmem:[%s11438_s5] ss:$0 sm:$0xff]  ;;  %11851 = vst [vmem:[#allocation44_spill] sm:$0xff] %v9328_v63 }
 0x274   :  { %v3040_v24 = vadd.f32 %v11848_v37, %v2769_v23  ;;  %3288 = vst [vmem:[#allocation2 + $0xd9] sm:$0x7f] %v3224_v34  ;;  %v11850_v3 = vld [vmem:[#allocation60_spill] sm:$0xff]  ;;  %v6617_v1 = vadd.f32 %v9322_v2, %v9251_v28  ;;  %v9326_v23 = vpop.f32.mrb[49].mxu0  ;;  %v11852_v61 = vld [vmem:[#allocation135_spill] sm:$0xff]  ;;  %v9334_v44 = vpop.f32.mrb[170].mxu1 }
 0x275   :  { %v2476_v39 = vadd.f32 %v2416_v20, %v11850_v3  ;;  %v11853_v17 = vrot.slane %v11852_v61, 1  ;;  %v2592_v34 = vld [vmem:[#allocation2 + $0x110] sm:$0xff]  ;;  %v6618_v20 = vadd.f32 %v9322_v2, %v9255_v53  ;;  %v11855_v8 = vld [vmem:[#allocation57_spill] sm:$0xff]  ;;  %v9338_v28 = vpop.permute.xlu1 %4007  ;;  %v9340_v59 = vpop.f32.mrb[50].mxu0  ;;  %v11863_v26 = vld [vmem:[#allocation132_spill] sm:$0xff]  ;;  %s7297_s5 = smov 96  }
 0x276   :  { %3100 = vst [vmem:[#allocation2 + $0xe8] sm:$0x7f] %v3040_v24  ;;  %v2593_v24 = vld [vmem:[#allocation2 + $0x118] sm:$0xff]  ;;  %v11854_v37 = vld [vmem:[#allocation55_spill] sm:$0xff]  ;;  %2358 = vst [vmem:[#allocation2 + $0x148] sm:$0xff] %v6617_v1  ;;  %v9343_v53 = vpop.f32.mrb[51].mxu0 }
 0x277   :  { %v3042_v54 = vadd.f32 %v11853_v17, %v2771_v25  ;;  %v2652_v3 = vadd.f32 %v2592_v34, %v11854_v37  ;;  %v2653_v48 = vadd.f32 %v2593_v24, %v11855_v8  ;;  %2536 = vst [vmem:[#allocation2 + $0x131] sm:$0xff] %v2476_v39  ;;  %11856 = vst [vmem:[#allocation99_spill] sm:$0xff] %v9338_v28  ;;  %v11857_v25 = vld [vmem:[#allocation149_spill] sm:$0xff]  ;;  %v9345_v43 = vpop.f32.mrb[171].mxu1  ;;  %v6729_v34 = vpop.eup %6728  ;;  %v11860_v8 = vld [vmem:[#allocation15_spill] sm:$0xff] }
 0x278   :  { %2357 = vst [vmem:[#allocation2 + $0x140] sm:$0xff] %v6618_v20  ;;  %v2594_v17 = vld [vmem:[#allocation2 + $0x120] sm:$0xff]  ;;  %v2595_v40 = vld [vmem:[#allocation2 + $0x128] sm:$0xff]  ;;  %11858 = vst [vmem:[#allocation42_spill] sm:$0xff] %v9345_v43  ;;  %v9347_v37 = vpop.permute.xlu0 %4005  ;;  %4297 = vrot.lane.b32.xlu0 %v6729_v34, %s7296_s30  ;;  %v6620_v20 = vadd.f32 %v9322_v2, %v9275_v18  ;;  %v6621_v18 = vadd.f32 %v9322_v2, %v9282_v32 }
 0x279   :  { %3102 = vst [vmem:[#allocation2 + $0xf8] sm:$0x7f] %v3042_v54  ;;  %2713 = vst [vmem:[#allocation2 + $0x118] sm:$0xff] %v2653_v48  ;;  %v3043_v61 = vadd.f32 %v11857_v25, %v2652_v3  ;;  %v2654_v39 = vadd.f32 %v2594_v17, %v11860_v8  ;;  %v11861_v1 = vld [vmem:[#allocation18_spill] sm:$0xff]  ;;  %v9351_v54 = vpop.f32.mrb[172].mxu1  ;;  %v6619_v48 = vadd.f32 %v9322_v2, %v9270_v60  ;;  %v11862_v28 = vld [vmem:[#allocation11_spill] sm:$0xff] }
 0x27a   :  { %11859 = vst [vmem:[#allocation80_spill] sm:$0xff] %v9347_v37  ;;  %v2655_v24 = vadd.f32 %v2595_v40, %v11861_v1  ;;  %v11864_v8 = vld [vmem:[#allocation136_spill] sm:$0xff]  ;;  %2359 = vst [vmem:[#allocation2 + $0x150] sm:$0xff] %v6620_v20  ;;  %v9363_v34 = vpop.f32.mrb[173].mxu1  ;;  %v11870_v29 = vld [vmem:[#allocation143_spill] sm:$0xff] }
 0x27b   :  { %3103 = vst [vmem:[#allocation2 + $0x110] sm:$0xff] %v3043_v61  ;;  %v3045_v37 = vadd.f32 %v11862_v28, %v2654_v39  ;;  %2360 = vst [vmem:[#allocation2 + $0x158] sm:$0xff] %v6619_v48  ;;  %v9361_v61 = vpop.f32.mrb[52].mxu0  ;;  %v11868_v20 = vld [vmem:[#allocation24_spill] sm:$0xff] }
 0x27c   :  { %2715 = vst [vmem:[#allocation2 + $0x128] sm:$0xff] %v2655_v24  ;;  %11865 = vst [vmem:[#allocation37_spill] sm:$0xff] %v9363_v34  ;;  %v11867_v24 = vld [vmem:[#allocation21_spill] sm:$0xff]  ;;  %v11869_v16 = vld [vmem:[#allocation140_spill] sm:$0xff]  ;;  %v9375_v43 = vpop.permute.xlu0 %4009 }
 0x27d   :  { %v3161_v3 = vld [vmem:[#allocation2 + $0xe1] sm:$0xff]  ;;  %v3162_v25 = vld [vmem:[#allocation2 + $0xe9] sm:$0x7f]  ;;  %3105 = vst [vmem:[#allocation2 + $0x120] sm:$0xff] %v3045_v37  ;;  %11871 = vst [vmem:[#allocation70_spill] sm:$0xff] %v9375_v43 }
 0x27e   :  { %v3225_v17 = vadd.f32 %v3161_v3, %v11863_v26  ;;  %v3226_v40 = vadd.f32 %v3162_v25, %v11864_v8  ;;  %v2596_v60 = vld [vmem:[#allocation2 + $0x130] sm:$0xff]  ;;  %v2597_v1 = vld [vmem:[#allocation2 + $0x138] sm:$0xff]  ;;  %v2419_v58 = vld [vmem:[#allocation2 + $0x149] sm:$0x7f]  ;;  %v9367_v26 = vpop.permute.xlu1 %4011  ;;  %v9371_v8 = vpop.f32.mrb[53].mxu0  ;;  %2362 = vst [vmem:[#allocation2 + $0x168] sm:$0xff] %v6621_v18 }
 0x27f   :  { %11866 = vst [vmem:[#allocation38_spill] sm:$0xff] %v9367_v26  ;;  %v2656_v48 = vadd.f32 %v2596_v60, %v11867_v24  ;;  %v2657_v3 = vadd.f32 %v2597_v1, %v11868_v20  ;;  %v2418_v25 = vld [vmem:[#allocation2 + $0x141] sm:$0xff]  ;;  %v9384_v20 = vpop.f32.mrb[174].mxu1 }
 0x280   :  { %3289 = vst [vmem:[#allocation2 + $0xe1] sm:$0xff] %v3225_v17  ;;  %3290 = vst [vmem:[#allocation2 + $0xe9] sm:$0x7f] %v3226_v40  ;;  %v3163_v28 = vld [vmem:[#allocation2 + $0xf1] sm:$0xff]  ;;  %v3164_v39 = vld [vmem:[#allocation2 + $0xf9] sm:$0x7f] }
 0x281   :  { %v3334_v37 = vld [vmem:[#allocation2 + $0x48] sm:$0xff]  ;;  %v3227_v42 = vadd.f32 %v3163_v28, %v11869_v16  ;;  %v3228_v34 = vadd.f32 %v3164_v39, %v11870_v29  ;;  %v2773_v32 = vld [vmem:[#allocation2 + $0x118] sm:$0x7f]  ;;  %v9377_v17 = vpop.f32.mrb[54].mxu0  ;;  %v11872_v40 = vld [vmem:[#allocation147_spill] sm:$0xff]  ;;  %2717 = vst [vmem:[#allocation2 + $0x138] sm:$0xff] %v2657_v3 }
 0x282   :  { %v11873_v26 = vrot.slane %v11872_v40, 1  ;;  %v11874_v60 = vld [vmem:[#allocation22_spill] sm:$0xff]  ;;  %v9382_v24 = vpop.f32.mrb[55].mxu0  ;;  %11875 = vst [vmem:[#allocation74_spill] sm:$0xff] %v9384_v20  ;;  %v11876_v16 = vld [vmem:[#allocation63_spill] sm:$0xff]  ;;  %v9388_v43 = vpop.f32.mrb[175].mxu1  ;;  %6730 = vtanh.f32 %v3334_v37 }
 0x283   :  { %v3047_v1 = vadd.f32 %v11874_v60, %v2656_v48  ;;  %3291 = vst [vmem:[#allocation2 + $0xf1] sm:$0xff] %v3227_v42  ;;  %3292 = vst [vmem:[#allocation2 + $0xf9] sm:$0x7f] %v3228_v34  ;;  %v2479_v29 = vadd.f32 %v2419_v58, %v11876_v16  ;;  %v11877_v28 = vld [vmem:[#allocation62_spill] sm:$0xff]  ;;  %v3333_v18 = vld [vmem:[#allocation2 + $0x40] sm:$0xff]  ;;  %v6623_v48 = vadd.f32 %v9322_v2, %v9299_v14  ;;  %v9394_v3 = vpop.f32.mrb[176].mxu1 }
 0x284   :  { %v3044_v63 = vadd.f32 %v11873_v26, %v2773_v32  ;;  %v2478_v39 = vadd.f32 %v2418_v25, %v11877_v28  ;;  %11878 = vst [vmem:[#allocation107_spill] sm:$0xff] %v9388_v43  ;;  %v2775_v41 = vld [vmem:[#allocation2 + $0x128] sm:$0x7f]  ;;  %v6622_v26 = vadd.f32 %v9322_v2, %v9292_v62  ;;  %11879 = vst [vmem:[#allocation87_spill] sm:$0xff] %v9394_v3  ;;  %v11880_v42 = vld [vmem:[#allocation151_spill] sm:$0xff]  ;;  %v9400_v40 = vpop.f32.mrb[56].mxu0  ;;  %6732 = vtanh.f32 %v3333_v18 }
 0x285   :  { %3107 = vst [vmem:[#allocation2 + $0x130] sm:$0xff] %v3047_v1  ;;  %v11881_v34 = vrot.slane %v11880_v42, 1  ;;  %2539 = vst [vmem:[#allocation2 + $0x149] sm:$0x7f] %v2479_v29  ;;  %v2421_v25 = vld [vmem:[#allocation2 + $0x159] sm:$0x7f]  ;;  %v6626_v29 = vadd.f32 %v9322_v2, %v9326_v23  ;;  %v6627_v18 = vadd.f32 %v9322_v2, %v9340_v59  ;;  %v6629_v59 = vadd.f32 %v9322_v2, %v9361_v61 }
 0x286   :  { %3104 = vst [vmem:[#allocation2 + $0x118] sm:$0x7f] %v3044_v63  ;;  %2538 = vst [vmem:[#allocation2 + $0x141] sm:$0xff] %v2478_v39  ;;  %v2420_v32 = vld [vmem:[#allocation2 + $0x151] sm:$0xff]  ;;  %v6624_v63 = vadd.f32 %v9322_v2, %v9308_v52  ;;  %v11883_v62 = vld [vmem:[#allocation65_spill] sm:$0xff]  ;;  %v9404_v14 = vpop.f32.mrb[57].mxu0  ;;  %v6625_v52 = vadd.f32 %v9322_v2, %v9316_v47  ;;  %v9416_v39 = vpop.permute.xlu0 %4013 }
 0x287   :  { %v3046_v58 = vadd.f32 %v11881_v34, %v2775_v41  ;;  %v11882_v37 = vld [vmem:[#allocation68_spill] sm:$0xff]  ;;  %v2480_v1 = vadd.f32 %v2420_v32, %v11883_v62  ;;  %2361 = vst [vmem:[#allocation2 + $0x160] sm:$0xff] %v6622_v26  ;;  %2364 = vst [vmem:[#allocation2 + $0x178] sm:$0xff] %v6623_v48  ;;  %v9406_v16 = vpop.f32.mrb[177].mxu1  ;;  %v9408_v41 = vpop.permute.xlu1 %4015  ;;  %v2423_v26 = vld [vmem:[#allocation2 + $0x169] sm:$0x7f] }
 0x288   :  { %v2481_v60 = vadd.f32 %v2421_v25, %v11882_v37  ;;  %11884 = vst [vmem:[#allocation40_spill] sm:$0xff] %v9406_v16  ;;  %11885 = vst [vmem:[#allocation41_spill] sm:$0xff] %v9408_v41  ;;  %v9414_v28 = vpop.f32.mrb[178].mxu1  ;;  %v2777_v48 = vld [vmem:[#allocation2 + $0x138] sm:$0x7f]  ;;  %v11888_v42 = vld [vmem:[#allocation75_spill] sm:$0xff] }
 0x289   :  { %3106 = vst [vmem:[#allocation2 + $0x128] sm:$0x7f] %v3046_v58  ;;  %2363 = vst [vmem:[#allocation2 + $0x170] sm:$0xff] %v6624_v63  ;;  %v2483_v34 = vadd.f32 %v2423_v26, %v11888_v42  ;;  %v9421_v58 = vpop.f32.mrb[58].mxu0  ;;  %v9423_v47 = vpop.f32.mrb[179].mxu1  ;;  %v11890_v23 = vld [vmem:[#allocation16_spill] sm:$0xff]  ;;  %v6628_v63 = vadd.f32 %v9322_v2, %v9343_v53 }
 0x28a   :  { %11886 = vst [vmem:[#allocation77_spill] sm:$0xff] %v9414_v28  ;;  %11887 = vst [vmem:[#allocation81_spill] sm:$0xff] %v9416_v39  ;;  %v11891_v25 = vrot.slane %v11890_v23, 1  ;;  %v9429_v37 = vpop.f32.mrb[59].mxu0  ;;  %v11894_v26 = vld [vmem:[#allocation152_spill] sm:$0xff]  ;;  %v11897_v39 = vld [vmem:[#allocation27_spill] sm:$0xff] }
 0x28b   :  { %2541 = vst [vmem:[#allocation2 + $0x159] sm:$0x7f] %v2481_v60  ;;  %2540 = vst [vmem:[#allocation2 + $0x151] sm:$0xff] %v2480_v1  ;;  %v9431_v60 = vpop.f32.mrb[180].mxu1  ;;  %v11902_v43 = vld [vmem:[#allocation13_spill] sm:$0xff]  ;;  %v3336_v28 = vld [vmem:[#allocation2 + $0x58] sm:$0xff] }
 0x28c   :  { %2366 = vst [vmem:[#allocation2 + $0x188] sm:$0xff] %v6625_v52  ;;  %2365 = vst [vmem:[#allocation2 + $0x180] sm:$0xff] %v6626_v29  ;;  %v3048_v32 = vadd.f32 %v11891_v25, %v2777_v48  ;;  %v11893_v52 = vld [vmem:[#allocation150_spill] sm:$0xff]  ;;  %v9437_v53 = vpop.f32.mrb[181].mxu1  ;;  %v9439_v25 = vpop.permute.xlu1 %4019  ;;  %6734 = vtanh.f32 %v3336_v28 }
 0x28d   :  { %11889 = vst [vmem:[#allocation48_spill] sm:$0xff] %v9423_v47  ;;  %11892 = vst [vmem:[#allocation115_spill] sm:$0xff] %v9431_v60  ;;  %v3167_v62 = vld [vmem:[#allocation2 + $0x111] sm:$0xff]  ;;  %v3168_v1 = vld [vmem:[#allocation2 + $0x119] sm:$0x7f]  ;;  %v6731_v61 = vpop.eup %6730 }
 0x28e   :  { %2543 = vst [vmem:[#allocation2 + $0x169] sm:$0x7f] %v2483_v34  ;;  %2368 = vst [vmem:[#allocation2 + $0x198] sm:$0xff] %v6627_v18  ;;  %v3231_v29 = vadd.f32 %v3167_v62, %v11893_v52  ;;  %v3232_v42 = vadd.f32 %v3168_v1, %v11894_v26  ;;  %v2598_v48 = vld [vmem:[#allocation2 + $0x140] sm:$0xff]  ;;  %v2599_v23 = vld [vmem:[#allocation2 + $0x148] sm:$0xff]  ;;  %v9442_v18 = vpop.f32.mrb[60].mxu0  ;;  %v9444_v62 = vpop.permute.xlu0 %4017  ;;  %4303 = vrot.lane.b32.xlu1 %v6731_v61, %s7296_s30 }
 0x28f   :  { %3108 = vst [vmem:[#allocation2 + $0x138] sm:$0x7f] %v3048_v32  ;;  %2367 = vst [vmem:[#allocation2 + $0x190] sm:$0xff] %v6628_v63  ;;  %v2658_v41 = vadd.f32 %v2598_v48, %v11897_v39  ;;  %v2422_v47 = vld [vmem:[#allocation2 + $0x161] sm:$0xff]  ;;  %v2425_v34 = vld [vmem:[#allocation2 + $0x179] sm:$0x7f] }
 0x290   :  { %11895 = vst [vmem:[#allocation95_spill] sm:$0xff] %v9437_v53  ;;  %11896 = vst [vmem:[#allocation46_spill] sm:$0xff] %v9439_v25  ;;  %v3169_v32 = vld [vmem:[#allocation2 + $0x121] sm:$0xff]  ;;  %v3170_v1 = vld [vmem:[#allocation2 + $0x129] sm:$0x7f]  ;;  %v9448_v25 = vpop.f32.mrb[61].mxu0 }
 0x291   :  { %2370 = vst [vmem:[#allocation2 + $0x1a8] sm:$0xff] %v6629_v59  ;;  %3295 = vst [vmem:[#allocation2 + $0x111] sm:$0xff] %v3231_v29  ;;  %v11899_v52 = vld [vmem:[#allocation30_spill] sm:$0xff]  ;;  %v11900_v26 = vld [vmem:[#allocation71_spill] sm:$0xff]  ;;  %v3234_v59 = vadd.f32 %v3170_v1, %v11902_v43  ;;  %v3049_v29 = vadd.f32 %v9025_v22, %v2658_v41  ;;  %v6733_v43 = vpop.eup %6732 }
 0x292   :  { %3296 = vst [vmem:[#allocation2 + $0x119] sm:$0x7f] %v3232_v42  ;;  %11898 = vst [vmem:[#allocation43_spill] sm:$0xff] %v9444_v62  ;;  %v2659_v63 = vadd.f32 %v2599_v23, %v11899_v52  ;;  %v2482_v53 = vadd.f32 %v2422_v47, %v11900_v26  ;;  %v2424_v16 = vld [vmem:[#allocation2 + $0x171] sm:$0xff]  ;;  %v11901_v39 = vld [vmem:[#allocation9_spill] sm:$0xff]  ;;  %v9454_v62 = vpop.f32.mrb[182].mxu1  ;;  %4301 = vrot.lane.b32.xlu0 %v6733_v43, %s7296_s30 }
 0x293   :  { %v3233_v48 = vadd.f32 %v3169_v32, %v11901_v39  ;;  %v2600_v42 = vld [vmem:[#allocation2 + $0x150] sm:$0xff]  ;;  %v2601_v60 = vld [vmem:[#allocation2 + $0x158] sm:$0xff]  ;;  %11903 = vst [vmem:[#allocation45_spill] sm:$0xff] %v9454_v62  ;;  %v11904_v23 = vld [vmem:[#allocation66_spill] sm:$0xff]  ;;  %v9458_v32 = vpop.f32.mrb[183].mxu1  ;;  %v9462_v62 = vpop.f32.mrb[62].mxu0 }
 0x294   :  { %2719 = vst [vmem:[#allocation2 + $0x148] sm:$0xff] %v2659_v63  ;;  %v2660_v52 = vadd.f32 %v2600_v42, %v11904_v23  ;;  %v11905_v47 = vld [vmem:[#allocation69_spill] sm:$0xff]  ;;  %2542 = vst [vmem:[#allocation2 + $0x161] sm:$0xff] %v2482_v53  ;;  %v2427_v3 = vld [vmem:[#allocation2 + $0x189] sm:$0x7f]  ;;  %v9464_v63 = vpop.f32.mrb[184].mxu1 }
 0x295   :  { %v2661_v26 = vadd.f32 %v2601_v60, %v11905_v47  ;;  %v2426_v20 = vld [vmem:[#allocation2 + $0x181] sm:$0xff]  ;;  %v3335_v1 = vld [vmem:[#allocation2 + $0x50] sm:$0xff]  ;;  %3297 = vst [vmem:[#allocation2 + $0x121] sm:$0xff] %v3233_v48  ;;  %3298 = vst [vmem:[#allocation2 + $0x129] sm:$0x7f] %v3234_v59  ;;  %v9470_v59 = vpop.f32.mrb[63].mxu0 }
 0x296   :  { %3109 = vst [vmem:[#allocation2 + $0x140] sm:$0xff] %v3049_v29  ;;  %v11906_v22 = vld [vmem:[#allocation82_spill] sm:$0xff]  ;;  %v3051_v60 = vadd.f32 %v9062_v9, %v2660_v52  ;;  %v11908_v53 = vld [vmem:[#allocation89_spill] sm:$0xff]  ;;  %v2429_v48 = vld [vmem:[#allocation2 + $0x199] sm:$0x7f]  ;;  %v9472_v29 = vpop.f32.mrb[185].mxu1  ;;  %v6630_v9 = vadd.f32 %v9322_v2, %v9371_v8  ;;  %6736 = vtanh.f32 %v3335_v1 }
 0x297   :  { %v2485_v41 = vadd.f32 %v2425_v34, %v11906_v22  ;;  %v11907_v61 = vld [vmem:[#allocation78_spill] sm:$0xff]  ;;  %2721 = vst [vmem:[#allocation2 + $0x158] sm:$0xff] %v2661_v26  ;;  %v2487_v42 = vadd.f32 %v2427_v3, %v11908_v53  ;;  %v11909_v23 = vld [vmem:[#allocation85_spill] sm:$0xff]  ;;  %v9474_v34 = vpop.permute.xlu1 %4023  ;;  %v3172_v22 = vld [vmem:[#allocation2 + $0x139] sm:$0x7f]  ;;  %v1859_v3 = vpop.f32.mrb[186].mxu1 }
 0x298   :  { %v2484_v39 = vadd.f32 %v2424_v16, %v11907_v61  ;;  %v2486_v47 = vadd.f32 %v2426_v20, %v11909_v23  ;;  %11910 = vst [vmem:[#allocation84_spill] sm:$0xff] %v9474_v34  ;;  %v3171_v16 = vld [vmem:[#allocation2 + $0x131] sm:$0xff]  ;;  %v11911_v43 = vld [vmem:[#allocation97_spill] sm:$0xff]  ;;  %v9479_v20 = vpop.permute.xlu0 %4021  ;;  %v3236_v23 = vadd.f32 %v3172_v22, %v9017_v10  ;;  %3111 = vst [vmem:[#allocation2 + $0x150] sm:$0xff] %v3051_v60 }
 0x299   :  { %2545 = vst [vmem:[#allocation2 + $0x179] sm:$0x7f] %v2485_v41  ;;  %v2489_v26 = vadd.f32 %v2429_v48, %v11911_v43  ;;  %v2428_v61 = vld [vmem:[#allocation2 + $0x191] sm:$0xff]  ;;  %11912 = vst [vmem:[#allocation88_spill] sm:$0xff] %v9479_v20  ;;  %v2431_v28 = vld [vmem:[#allocation2 + $0x1a9] sm:$0x7f]  ;;  %v6631_v60 = vadd.f32 %v9322_v2, %v9377_v17 }
 0x29a   :  { %2544 = vst [vmem:[#allocation2 + $0x171] sm:$0xff] %v2484_v39  ;;  %v11913_v52 = vld [vmem:[#allocation19_spill] sm:$0xff]  ;;  %2547 = vst [vmem:[#allocation2 + $0x189] sm:$0x7f] %v2487_v42  ;;  %v9483_v41 = vpop.f32.mrb[187].mxu1  ;;  %v11914_v39 = vld [vmem:[#allocation93_spill] sm:$0xff] }
 0x29b   :  { %v3235_v53 = vadd.f32 %v3171_v16, %v11913_v52  ;;  %2546 = vst [vmem:[#allocation2 + $0x181] sm:$0xff] %v2486_v47  ;;  %2549 = vst [vmem:[#allocation2 + $0x199] sm:$0x7f] %v2489_v26  ;;  %v2488_v48 = vadd.f32 %v2428_v61, %v11914_v39  ;;  %v11915_v43 = vld [vmem:[#allocation105_spill] sm:$0xff]  ;;  %v1864_v8 = vpop.f32.mrb[188].mxu1  ;;  %v2603_v1 = vld [vmem:[#allocation2 + $0x168] sm:$0xff]  ;;  %v9494_v61 = vpop.permute.xlu1 %4027 }
 0x29c   :  { %v2491_v34 = vadd.f32 %v2431_v28, %v11915_v43  ;;  %2369 = vst [vmem:[#allocation2 + $0x1a0] sm:$0xff] %v6630_v9  ;;  %3300 = vst [vmem:[#allocation2 + $0x139] sm:$0x7f] %v3236_v23  ;;  %v9487_v3 = vpop.f32.mrb[189].mxu1  ;;  %v2779_v16 = vld [vmem:[#allocation2 + $0x148] sm:$0x7f]  ;;  %v9497_v28 = vpop.permute.xlu0 %4025 }
 0x29d   :  { %3299 = vst [vmem:[#allocation2 + $0x131] sm:$0xff] %v3235_v53  ;;  %v2602_v10 = vld [vmem:[#allocation2 + $0x160] sm:$0xff]  ;;  %2548 = vst [vmem:[#allocation2 + $0x191] sm:$0xff] %v2488_v48  ;;  %v11916_v42 = vrot.slane %v9011_v30, 1  ;;  %v11917_v22 = vld [vmem:[#allocation72_spill] sm:$0xff] }
 0x29e   :  { %2551 = vst [vmem:[#allocation2 + $0x1a9] sm:$0x7f] %v2491_v34  ;;  %v2662_v26 = vadd.f32 %v2602_v10, %v11917_v22  ;;  %11918 = vst [vmem:[#allocation52_spill] sm:$0xff] %v9494_v61  ;;  %v2781_v9 = vld [vmem:[#allocation2 + $0x158] sm:$0x7f]  ;;  %v3338_v23 = vld [vmem:[#allocation2 + $0x68] sm:$0xff] }
 0x29f   :  { %v3050_v47 = vadd.f32 %v11916_v42, %v2779_v16  ;;  %v11919_v52 = vld [vmem:[#allocation76_spill] sm:$0xff]  ;;  %2372 = vst [vmem:[#allocation2 + $0x1b8] sm:$0xff] %v6631_v60  ;;  %11920 = vst [vmem:[#allocation103_spill] sm:$0xff] %v9497_v28  ;;  %v11921_v34 = vrot.slane %v9043_v13, 1  ;;  %v11922_v43 = vld [vmem:[#allocation79_spill] sm:$0xff]  ;;  %6738 = vtanh.f32 %v3338_v23 }
 0x2a0   :  { %v2663_v53 = vadd.f32 %v2603_v1, %v11919_v52  ;;  %v3053_v17 = vadd.f32 %v9100_v57, %v2662_v26  ;;  %v11923_v1 = vld [vmem:[#allocation83_spill] sm:$0xff]  ;;  %v11924_v42 = vld [vmem:[#allocation86_spill] sm:$0xff]  ;;  %v3337_v28 = vld [vmem:[#allocation2 + $0x60] sm:$0xff] }
 0x2a1   :  { %3110 = vst [vmem:[#allocation2 + $0x148] sm:$0x7f] %v3050_v47  ;;  %v3052_v39 = vadd.f32 %v11921_v34, %v2781_v9  ;;  %v2604_v48 = vld [vmem:[#allocation2 + $0x170] sm:$0xff]  ;;  %v2605_v30 = vld [vmem:[#allocation2 + $0x178] sm:$0xff]  ;;  %v6735_v47 = vpop.eup %6734  ;;  %v11925_v57 = vld [vmem:[#allocation90_spill] sm:$0xff]  ;;  %6740 = vtanh.f32 %v3337_v28  ;;  %v6634_v28 = vadd.f32 %v9322_v2, %v9404_v14 }
 0x2a2   :  { %2723 = vst [vmem:[#allocation2 + $0x168] sm:$0xff] %v2663_v53  ;;  %v2664_v8 = vadd.f32 %v2604_v48, %v11922_v43  ;;  %v2606_v16 = vld [vmem:[#allocation2 + $0x180] sm:$0xff]  ;;  %v2607_v10 = vld [vmem:[#allocation2 + $0x188] sm:$0xff]  ;;  %3113 = vst [vmem:[#allocation2 + $0x160] sm:$0xff] %v3053_v17  ;;  %v2665_v60 = vadd.f32 %v2605_v30, %v11923_v1  ;;  %v6737_v9 = vpop.eup %6736  ;;  %4307 = vrot.lane.b32.xlu1 %v6735_v47, %s7296_s30  ;;  %v9509_v17 = vpop.permute.xlu1 %4031  ;;  %v2932_v43 = vrot.slane %v9180_v55, 1 }
 0x2a3   :  { %3112 = vst [vmem:[#allocation2 + $0x158] sm:$0x7f] %v3052_v39  ;;  %v2666_v22 = vadd.f32 %v2606_v16, %v11924_v42  ;;  %v2430_v52 = vld [vmem:[#allocation2 + $0x1a1] sm:$0xff]  ;;  %v2667_v26 = vadd.f32 %v2607_v10, %v11925_v57  ;;  %11926 = vst [vmem:[#allocation123_spill] sm:$0xff] %v9509_v17  ;;  %4305 = vrot.lane.b32.xlu0 %v6737_v9, %s7296_s30  ;;  %v6632_v10 = vadd.f32 %v9322_v2, %v9382_v24  ;;  %v9528_v24 = vld [vmem:[#allocation2 + $0x78] sm:$0xff] }
 0x2a4   :  { %v3055_v13 = vadd.f32 %v9142_v6, %v2664_v8  ;;  %2725 = vst [vmem:[#allocation2 + $0x178] sm:$0xff] %v2665_v60  ;;  %v2608_v34 = vld [vmem:[#allocation2 + $0x190] sm:$0xff]  ;;  %v2609_v39 = vld [vmem:[#allocation2 + $0x198] sm:$0xff]  ;;  %v11927_v48 = vld [vmem:[#allocation98_spill] sm:$0xff]  ;;  %v9515_v8 = vpop.permute.xlu0 %4029  ;;  %v6633_v55 = vadd.f32 %v9322_v2, %v9400_v40  ;;  %6742 = vtanh.f32 %v9528_v24 }
 0x2a5   :  { %v3057_v53 = vadd.f32 %v9201_v11, %v2666_v22  ;;  %2727 = vst [vmem:[#allocation2 + $0x188] sm:$0xff] %v2667_v26  ;;  %v2669_v23 = vadd.f32 %v2609_v39, %v11927_v48  ;;  %v11928_v30 = vld [vmem:[#allocation101_spill] sm:$0xff]  ;;  %11929 = vst [vmem:[#allocation50_spill] sm:$0xff] %v9515_v8  ;;  %v2933_v11 = vrot.slane %v9210_v38, 1  ;;  %v11930_v42 = vld [vmem:[#allocation94_spill] sm:$0xff] }
 0x2a6   :  { %3115 = vst [vmem:[#allocation2 + $0x170] sm:$0xff] %v3055_v13  ;;  %v2490_v6 = vadd.f32 %v2430_v52, %v11928_v30  ;;  %v2433_v16 = vld [vmem:[#allocation2 + $0x1b9] sm:$0x7f]  ;;  %v2668_v22 = vadd.f32 %v2608_v34, %v11930_v42  ;;  %v11931_v47 = vld [vmem:[#allocation113_spill] sm:$0xff]  ;;  %2371 = vst [vmem:[#allocation2 + $0x1b0] sm:$0xff] %v6632_v10  ;;  %v9537_v14 = vpop.permute.xlu1 %4035 }
 0x2a7   :  { %3117 = vst [vmem:[#allocation2 + $0x180] sm:$0xff] %v3057_v53  ;;  %2729 = vst [vmem:[#allocation2 + $0x198] sm:$0xff] %v2669_v23  ;;  %v2493_v52 = vadd.f32 %v2433_v16, %v11931_v47  ;;  %v11932_v53 = vrot.slane %v9079_v12, 1  ;;  %v2934_v39 = vsel %vm2862_vm3, %v2932_v43, %v2933_v11  ;;  %v9535_v40 = vld [vmem:[#allocation2 + $0x70] sm:$0xff]  ;;  %v2935_v12 = vrot.slane %v9233_v5, 1  ;;  %v7236_v20 = vld [vmem:[#allocation2 + $0x40] sm:$0xff] }
 0x2a8   :  { %v3173_v1 = vld [vmem:[#allocation2 + $0x141] sm:$0xff]  ;;  %v3174_v60 = vld [vmem:[#allocation2 + $0x149] sm:$0x7f]  ;;  %2550 = vst [vmem:[#allocation2 + $0x1a1] sm:$0xff] %v2490_v6  ;;  %2374 = vst [vmem:[#allocation2 + $0x1c8] sm:$0xff] %v6633_v55  ;;  %v3059_v23 = vadd.f32 %v2934_v39, %v2668_v22  ;;  %v9540_v30 = vpop.permute.xlu0 %4033  ;;  %v11935_v6 = vrot.slane %v9120_v36, 1  ;;  %v6636_v5 = vadd.f32 %v9322_v2, %v9429_v37  ;;  %6744 = vtanh.f32 %v9535_v40 }
 0x2a9   :  { %v3237_v13 = vadd.f32 %v3173_v1, %v9033_v51  ;;  %v3238_v38 = vadd.f32 %v3174_v60, %v9050_v49  ;;  %v2783_v57 = vld [vmem:[#allocation2 + $0x168] sm:$0x7f]  ;;  %2553 = vst [vmem:[#allocation2 + $0x1b9] sm:$0x7f] %v2493_v52  ;;  %2373 = vst [vmem:[#allocation2 + $0x1c0] sm:$0xff] %v6634_v28  ;;  %v2936_v16 = vrot.slane %v9263_v50, 1  ;;  %v6739_v10 = vpop.eup %6738  ;;  %v6638_v47 = vadd.f32 %v9322_v2, %v9448_v25 }
 0x2aa   :  { %v3175_v26 = vld [vmem:[#allocation2 + $0x151] sm:$0xff]  ;;  %v3176_v9 = vld [vmem:[#allocation2 + $0x159] sm:$0x7f]  ;;  %v3054_v34 = vadd.f32 %v11932_v53, %v2783_v57  ;;  %11933 = vst [vmem:[#allocation148_spill] sm:$0xff] %v9537_v14  ;;  %11934 = vst [vmem:[#allocation146_spill] sm:$0xff] %v9540_v30  ;;  %v11936_v1 = vrot.slane %v9162_v35, 1  ;;  %4311 = vrot.lane.b32.xlu1 %v6739_v10, %s7296_s30  ;;  %v6637_v35 = vadd.f32 %v9322_v2, %v9442_v18  ;;  %v9567_v25 = vpop.permute.xlu1 %4039 }
 0x2ab   :  { %3301 = vst [vmem:[#allocation2 + $0x141] sm:$0xff] %v3237_v13  ;;  %3302 = vst [vmem:[#allocation2 + $0x149] sm:$0x7f] %v3238_v38  ;;  %v3239_v51 = vadd.f32 %v3175_v26, %v9069_v27  ;;  %v3240_v49 = vadd.f32 %v3176_v9, %v9085_v46  ;;  %v2785_v48 = vld [vmem:[#allocation2 + $0x178] sm:$0x7f]  ;;  %v6635_v46 = vadd.f32 %v9322_v2, %v9421_v58  ;;  %v11937_v37 = vld [vmem:[#allocation102_spill] sm:$0xff]  ;;  %v6741_v38 = vpop.eup %6740 }
 0x2ac   :  { %3114 = vst [vmem:[#allocation2 + $0x168] sm:$0x7f] %v3054_v34  ;;  %v3056_v27 = vadd.f32 %v11935_v6, %v2785_v48  ;;  %v2787_v43 = vld [vmem:[#allocation2 + $0x188] sm:$0x7f]  ;;  %3119 = vst [vmem:[#allocation2 + $0x190] sm:$0xff] %v3059_v23  ;;  %v2937_v58 = vsel %vm2862_vm3, %v2935_v12, %v2936_v16  ;;  %v11939_v9 = vld [vmem:[#allocation109_spill] sm:$0xff]  ;;  %4309 = vrot.lane.b32.xlu0 %v6741_v38, %s7296_s30  ;;  %v9573_v6 = vpop.permute.xlu0 %4037 }
 0x2ad   :  { %3303 = vst [vmem:[#allocation2 + $0x151] sm:$0xff] %v3239_v51  ;;  %3304 = vst [vmem:[#allocation2 + $0x159] sm:$0x7f] %v3240_v49  ;;  %v3058_v60 = vadd.f32 %v11936_v1, %v2787_v43  ;;  %v11938_v55 = vld [vmem:[#allocation106_spill] sm:$0xff]  ;;  %v2432_v13 = vld [vmem:[#allocation2 + $0x1b1] sm:$0xff]  ;;  %v6639_v43 = vadd.f32 %v9322_v2, %v9462_v62  ;;  %v6640_v62 = vadd.f32 %v9322_v2, %v9470_v59 }
 0x2ae   :  { %3116 = vst [vmem:[#allocation2 + $0x178] sm:$0x7f] %v3056_v27  ;;  %v2789_v22 = vld [vmem:[#allocation2 + $0x198] sm:$0x7f]  ;;  %2376 = vst [vmem:[#allocation2 + $0x1d8] sm:$0xff] %v6635_v46  ;;  %v9563_v57 = vld [vmem:[#allocation2 + $0x88] sm:$0xff]  ;;  %v2492_v53 = vadd.f32 %v2432_v13, %v11939_v9 }
 0x2af   :  { %v2610_v36 = vld [vmem:[#allocation2 + $0x1a0] sm:$0xff]  ;;  %v2611_v42 = vld [vmem:[#allocation2 + $0x1a8] sm:$0xff]  ;;  %3118 = vst [vmem:[#allocation2 + $0x188] sm:$0x7f] %v3058_v60  ;;  %2375 = vst [vmem:[#allocation2 + $0x1d0] sm:$0xff] %v6636_v5  ;;  %v3060_v26 = vadd.f32 %v2933_v11, %v2789_v22  ;;  %6746 = vtanh.f32 %v9563_v57 }
 0x2b0   :  { %v2670_v52 = vadd.f32 %v2610_v36, %v11937_v37  ;;  %v2671_v28 = vadd.f32 %v2611_v42, %v11938_v55  ;;  %v2435_v34 = vld [vmem:[#allocation2 + $0x1c9] sm:$0x7f]  ;;  %v2434_v39 = vld [vmem:[#allocation2 + $0x1c1] sm:$0xff]  ;;  %2378 = vst [vmem:[#allocation2 + $0x1e8] sm:$0xff] %v6637_v35  ;;  %2377 = vst [vmem:[#allocation2 + $0x1e0] sm:$0xff] %v6638_v47  ;;  %v6743_v36 = vpop.eup %6742  ;;  %v9586_v35 = vpop.permute.xlu1 %4043 }
 0x2b1   :  { %11940 = vst [vmem:[#allocation92_spill] sm:$0xff] %v9567_v25  ;;  %v11941_v18 = vld [vmem:[#allocation121_spill] sm:$0xff]  ;;  %11943 = vst [vmem:[#allocation96_spill] sm:$0xff] %v9573_v6  ;;  %4315 = vrot.lane.b32.xlu1 %v6743_v36, %s7296_s30  ;;  %v11952_v50 = vld [vmem:[#allocation122_spill] sm:$0xff] }
 0x2b2   :  { %2731 = vst [vmem:[#allocation2 + $0x1a8] sm:$0xff] %v2671_v28  ;;  %v2495_v51 = vadd.f32 %v2435_v34, %v11941_v18  ;;  %v11942_v49 = vld [vmem:[#allocation117_spill] sm:$0xff]  ;;  %v3061_v23 = vadd.f32 %v2937_v58, %v2670_v52  ;;  %3120 = vst [vmem:[#allocation2 + $0x198] sm:$0x7f] %v3060_v26  ;;  %v6745_v59 = vpop.eup %6744  ;;  %v7235_v25 = vld [vmem:[#allocation2 + $0x48] sm:$0xff] }
 0x2b3   :  { %v2494_v48 = vadd.f32 %v2434_v39, %v11942_v49  ;;  %v9571_v12 = vld [vmem:[#allocation2 + $0x80] sm:$0xff]  ;;  %v3178_v27 = vld [vmem:[#allocation2 + $0x169] sm:$0x7f]  ;;  %2552 = vst [vmem:[#allocation2 + $0x1b1] sm:$0xff] %v2492_v53  ;;  %2380 = vst [vmem:[#allocation2 + $0x1f8] sm:$0xff] %v6639_v43  ;;  %4313 = vrot.lane.b32.xlu0 %v6745_v59, %s7296_s30  ;;  %v2938_v49 = vrot.slane %v9295_v19, 1 }
 0x2b4   :  { %v3177_v11 = vld [vmem:[#allocation2 + $0x161] sm:$0xff]  ;;  %v3242_v10 = vadd.f32 %v3178_v27, %v9126_v4  ;;  %2555 = vst [vmem:[#allocation2 + $0x1c9] sm:$0x7f] %v2495_v51  ;;  %3121 = vst [vmem:[#allocation2 + $0x1a0] sm:$0xff] %v3061_v23  ;;  %6748 = vtanh.f32 %v9571_v12  ;;  %v6159_v30 = vmul.f32 -1.442695, %v7235_v25 }
 0x2b5   :  { %v3241_v46 = vadd.f32 %v3177_v11, %v9110_v21  ;;  %2554 = vst [vmem:[#allocation2 + $0x1c1] sm:$0xff] %v2494_v48  ;;  %v3179_v1 = vld [vmem:[#allocation2 + $0x171] sm:$0xff]  ;;  %v3180_v60 = vld [vmem:[#allocation2 + $0x179] sm:$0x7f]  ;;  %11944 = vst [vmem:[#allocation111_spill] sm:$0xff] %v9586_v35  ;;  %v2939_v48 = vrot.slane %v9310_v56, 1 }
 0x2b6   :  { %3306 = vst [vmem:[#allocation2 + $0x169] sm:$0x7f] %v3242_v10  ;;  %v2437_v5 = vld [vmem:[#allocation2 + $0x1d9] sm:$0x7f]  ;;  %v3243_v21 = vadd.f32 %v3179_v1, %v9149_v0  ;;  %v3244_v42 = vadd.f32 %v3180_v60, %v9169_v15  ;;  %v3181_v4 = vld [vmem:[#allocation2 + $0x181] sm:$0xff]  ;;  %v2436_v58 = vld [vmem:[#allocation2 + $0x1d1] sm:$0xff]  ;;  %v9593_v15 = vpop.permute.xlu0 %4041 }
 0x2b7   :  { %3305 = vst [vmem:[#allocation2 + $0x161] sm:$0xff] %v3241_v46  ;;  %v3182_v22 = vld [vmem:[#allocation2 + $0x189] sm:$0x7f]  ;;  %v3245_v47 = vadd.f32 %v3181_v4, %v9185_v31  ;;  %v11945_v52 = vld [vmem:[#allocation129_spill] sm:$0xff]  ;;  %2379 = vst [vmem:[#allocation2 + $0x1f0] sm:$0xff] %v6640_v62 }
 0x2b8   :  { %v3246_v37 = vadd.f32 %v3182_v22, %v9226_v33  ;;  %v2497_v55 = vadd.f32 %v2437_v5, %v11945_v52  ;;  %v2439_v28 = vld [vmem:[#allocation2 + $0x1e9] sm:$0x7f]  ;;  %v2438_v2 = vld [vmem:[#allocation2 + $0x1e1] sm:$0xff]  ;;  %11946 = vst [vmem:[#allocation100_spill] sm:$0xff] %v9593_v15  ;;  %3307 = vst [vmem:[#allocation2 + $0x171] sm:$0xff] %v3243_v21  ;;  %v9612_v21 = vpop.permute.xlu1 %4047 }
 0x2b9   :  { %v9591_v0 = vld [vmem:[#allocation2 + $0x108] sm:$0xff]  ;;  %3308 = vst [vmem:[#allocation2 + $0x179] sm:$0x7f] %v3244_v42  ;;  %v11947_v38 = vld [vmem:[#allocation125_spill] sm:$0xff]  ;;  %3309 = vst [vmem:[#allocation2 + $0x181] sm:$0xff] %v3245_v47  ;;  %v6747_v36 = vpop.eup %6746  ;;  %v2940_v42 = vsel %vm2862_vm3, %v2938_v49, %v2939_v48  ;;  %v2942_v47 = vrot.slane %v9351_v54, 1 }
 0x2ba   :  { %v2791_v13 = vld [vmem:[#allocation2 + $0x1a8] sm:$0x7f]  ;;  %v2496_v26 = vadd.f32 %v2436_v58, %v11947_v38  ;;  %v11948_v9 = vld [vmem:[#allocation137_spill] sm:$0xff]  ;;  %v2612_v31 = vld [vmem:[#allocation2 + $0x1b0] sm:$0xff]  ;;  %3310 = vst [vmem:[#allocation2 + $0x189] sm:$0x7f] %v3246_v37  ;;  %6750 = vtanh.f32 %v9591_v0  ;;  %4319 = vrot.lane.b32.xlu1 %v6747_v36, %s7296_s30 }
 0x2bb   :  { %v2499_v53 = vadd.f32 %v2439_v28, %v11948_v9  ;;  %v2613_v33 = vld [vmem:[#allocation2 + $0x1b8] sm:$0xff]  ;;  %2557 = vst [vmem:[#allocation2 + $0x1d9] sm:$0x7f] %v2497_v55  ;;  %v3062_v39 = vadd.f32 %v2936_v16, %v2791_v13  ;;  %v11949_v18 = vld [vmem:[#allocation133_spill] sm:$0xff]  ;;  %v11950_v11 = vld [vmem:[#allocation110_spill] sm:$0xff]  ;;  %v2941_v58 = vrot.slane %v9334_v44, 1 }
 0x2bc   :  { %v3183_v34 = vld [vmem:[#allocation2 + $0x191] sm:$0xff]  ;;  %v2498_v51 = vadd.f32 %v2438_v2, %v11949_v18  ;;  %v9603_v23 = vld [vmem:[#allocation2 + $0x100] sm:$0xff]  ;;  %v2672_v27 = vadd.f32 %v2612_v31, %v11950_v11  ;;  %v11951_v43 = vld [vmem:[#allocation114_spill] sm:$0xff]  ;;  %2556 = vst [vmem:[#allocation2 + $0x1d1] sm:$0xff] %v2496_v26  ;;  %v9630_v31 = vpop.permute.xlu1 %4051 }
 0x2bd   :  { %v2673_v46 = vadd.f32 %v2613_v33, %v11951_v43  ;;  %v2615_v10 = vld [vmem:[#allocation2 + $0x1c8] sm:$0xff]  ;;  %2559 = vst [vmem:[#allocation2 + $0x1e9] sm:$0x7f] %v2499_v53  ;;  %v3184_v1 = vld [vmem:[#allocation2 + $0x199] sm:$0x7f]  ;;  %v3247_v60 = vadd.f32 %v3183_v34, %v9259_v7  ;;  %11954 = vst [vmem:[#allocation104_spill] sm:$0xff] %v9612_v21  ;;  %6752 = vtanh.f32 %v9603_v23  ;;  %v9617_v7 = vpop.permute.xlu0 %4045  ;;  %v2943_v2 = vsel %vm2862_vm3, %v2941_v58, %v2942_v47 }
 0x2be   :  { %v2675_v16 = vadd.f32 %v2615_v10, %v11952_v50  ;;  %3122 = vst [vmem:[#allocation2 + $0x1a8] sm:$0x7f] %v3062_v39  ;;  %2558 = vst [vmem:[#allocation2 + $0x1e1] sm:$0xff] %v2498_v51  ;;  %v2441_v19 = vld [vmem:[#allocation2 + $0x1f9] sm:$0x7f]  ;;  %v3248_v56 = vadd.f32 %v3184_v1, %v9284_v45  ;;  %v2614_v4 = vld [vmem:[#allocation2 + $0x1c0] sm:$0xff]  ;;  %v3063_v22 = vadd.f32 %v2940_v42, %v2672_v27  ;;  %v6749_v37 = vpop.eup %6748 }
 0x2bf   :  { %2733 = vst [vmem:[#allocation2 + $0x1b8] sm:$0xff] %v2673_v46  ;;  %v11953_v5 = vld [vmem:[#allocation144_spill] sm:$0xff]  ;;  %3311 = vst [vmem:[#allocation2 + $0x191] sm:$0xff] %v3247_v60  ;;  %v11956_v52 = vld [vmem:[#allocation141_spill] sm:$0xff]  ;;  %4317 = vrot.lane.b32.xlu0 %v6749_v37, %s7296_s30 }
 0x2c0   :  { %v2501_v62 = vadd.f32 %v2441_v19, %v11953_v5  ;;  %2735 = vst [vmem:[#allocation2 + $0x1c8] sm:$0xff] %v2675_v16  ;;  %11955 = vst [vmem:[#allocation119_spill] sm:$0xff] %v9617_v7  ;;  %v2440_v45 = vld [vmem:[#allocation2 + $0x1f1] sm:$0xff]  ;;  %v11957_v59 = vld [vmem:[#allocation118_spill] sm:$0xff] }
 0x2c1   :  { %3312 = vst [vmem:[#allocation2 + $0x199] sm:$0x7f] %v3248_v56  ;;  %v2500_v55 = vadd.f32 %v2440_v45, %v11956_v52  ;;  %v9622_v28 = vld [vmem:[#allocation2 + $0x98] sm:$0xff]  ;;  %3123 = vst [vmem:[#allocation2 + $0x1b0] sm:$0xff] %v3063_v22  ;;  %v2674_v13 = vadd.f32 %v2614_v4, %v11957_v59  ;;  %v9627_v26 = vld [vmem:[#allocation2 + $0x90] sm:$0xff]  ;;  %v9635_v27 = vpop.permute.xlu0 %4049 }
 0x2c2   :  { %2561 = vst [vmem:[#allocation2 + $0x1f9] sm:$0x7f] %v2501_v62  ;;  %v11958_v9 = vld [vmem:[#allocation130_spill] sm:$0xff]  ;;  %11959 = vst [vmem:[#allocation47_spill] sm:$0xff] %v9630_v31  ;;  %6754 = vtanh.f32 %v9622_v28  ;;  %v11961_v18 = vld [vmem:[#allocation67_spill] sm:$0xff] }
 0x2c3   :  { %v2617_v38 = vld [vmem:[#allocation2 + $0x1d8] sm:$0xff]  ;;  %2560 = vst [vmem:[#allocation2 + $0x1f1] sm:$0xff] %v2500_v55  ;;  %v2616_v33 = vld [vmem:[#allocation2 + $0x1d0] sm:$0xff]  ;;  %v11960_v34 = vld [vmem:[#allocation138_spill] sm:$0xff]  ;;  %6756 = vtanh.f32 %v9627_v26  ;;  %v3065_v56 = vadd.f32 %v2943_v2, %v2674_v13 }
 0x2c4   :  { %v2677_v44 = vadd.f32 %v2617_v38, %v11958_v9  ;;  %11962 = vst [vmem:[#allocation49_spill] sm:$0xff] %v9635_v27  ;;  %v11963_v10 = vld [vmem:[#allocation44_spill] sm:$0xff]  ;;  %v11964_v16 = vld [vmem:[#allocation74_spill] sm:$0xff]  ;;  %v6751_v19 = vpop.eup %6750  ;;  %v11966_v42 = vld [vmem:[#allocation87_spill] sm:$0xff] }
 0x2c5   :  { %v2619_v53 = vld [vmem:[#allocation2 + $0x1e8] sm:$0xff]  ;;  %v2618_v43 = vld [vmem:[#allocation2 + $0x1e0] sm:$0xff]  ;;  %v2944_v60 = vrot.slane %v11964_v16, 1  ;;  %4351 = vrot.lane.b32.xlu1 %v6751_v19, %s7296_s30  ;;  %3125 = vst [vmem:[#allocation2 + $0x1c0] sm:$0xff] %v3065_v56  ;;  %v11969_v52 = vld [vmem:[#allocation115_spill] sm:$0xff] }
 0x2c6   :  { %v3185_v54 = vld [vmem:[#allocation2 + $0x1a1] sm:$0xff]  ;;  %v2679_v39 = vadd.f32 %v2619_v53, %v11960_v34  ;;  %v2793_v49 = vld [vmem:[#allocation2 + $0x1b8] sm:$0x7f]  ;;  %v3186_v11 = vld [vmem:[#allocation2 + $0x1a9] sm:$0x7f]  ;;  %2737 = vst [vmem:[#allocation2 + $0x1d8] sm:$0xff] %v2677_v44  ;;  %v9652_v53 = vpop.permute.xlu1 %4055 }
 0x2c7   :  { %v3249_v51 = vadd.f32 %v3185_v54, %v11961_v18  ;;  %v3064_v46 = vadd.f32 %v2939_v48, %v2793_v49  ;;  %v3250_v1 = vadd.f32 %v3186_v11, %v11963_v10  ;;  %v2795_v50 = vld [vmem:[#allocation2 + $0x1c8] sm:$0x7f]  ;;  %v2945_v48 = vrot.slane %v11966_v42, 1  ;;  %v11967_v4 = vld [vmem:[#allocation77_spill] sm:$0xff]  ;;  %v6753_v45 = vpop.eup %6752  ;;  %11971 = vst [vmem:[#allocation108_spill] sm:$0xff] %v9652_v53  ;;  %v7237_v8 = vld [vmem:[#allocation2 + $0x58] sm:$0xff] }
 0x2c8   :  { %2739 = vst [vmem:[#allocation2 + $0x1e8] sm:$0xff] %v2679_v39  ;;  %v3066_v5 = vadd.f32 %v2942_v47, %v2795_v50  ;;  %v11965_v62 = vld [vmem:[#allocation126_spill] sm:$0xff]  ;;  %v2947_v22 = vrot.slane %v11967_v4, 1  ;;  %v2948_v55 = vrot.slane %v11969_v52, 1  ;;  %v11970_v59 = vld [vmem:[#allocation45_spill] sm:$0xff]  ;;  %4349 = vrot.lane.b32.xlu0 %v6753_v45, %s7296_s30  ;;  %v2951_v44 = vrot.slane %v9464_v63, 1 }
 0x2c9   :  { %3313 = vst [vmem:[#allocation2 + $0x1a1] sm:$0xff] %v3249_v51  ;;  %v2676_v36 = vadd.f32 %v2616_v33, %v11965_v62  ;;  %3124 = vst [vmem:[#allocation2 + $0x1b8] sm:$0x7f] %v3064_v46  ;;  %v11968_v58 = vld [vmem:[#allocation134_spill] sm:$0xff]  ;;  %v2950_v2 = vrot.slane %v11970_v59, 1  ;;  %v2946_v9 = vsel %vm2862_vm3, %v2944_v60, %v2945_v48  ;;  %v11973_v34 = vld [vmem:[#allocation145_spill] sm:$0xff]  ;;  %v9658_v51 = vpop.permute.xlu0 %4053 }
 0x2ca   :  { %3314 = vst [vmem:[#allocation2 + $0x1a9] sm:$0x7f] %v3250_v1  ;;  %v2678_v37 = vadd.f32 %v2618_v43, %v11968_v58  ;;  %3126 = vst [vmem:[#allocation2 + $0x1c8] sm:$0x7f] %v3066_v5  ;;  %v9647_v47 = vld [vmem:[#allocation2 + $0xa8] sm:$0xff]  ;;  %v2620_v13 = vld [vmem:[#allocation2 + $0x1f0] sm:$0xff]  ;;  %v2949_v11 = vsel %vm2862_vm3, %v2947_v22, %v2948_v55  ;;  %v9667_v45 = vpop.permute.xlu1 %4059 }
 0x2cb   :  { %v2621_v38 = vld [vmem:[#allocation2 + $0x1f8] sm:$0xff]  ;;  %v11972_v54 = vld [vmem:[#allocation142_spill] sm:$0xff]  ;;  %v9656_v18 = vld [vmem:[#allocation2 + $0xa0] sm:$0xff]  ;;  %11974 = vst [vmem:[#allocation112_spill] sm:$0xff] %v9658_v51  ;;  %v3067_v49 = vadd.f32 %v2946_v9, %v2676_v36  ;;  %6758 = vtanh.f32 %v9647_v47  ;;  %v2952_v63 = vsel %vm2862_vm3, %v2950_v2, %v2951_v44  ;;  %v6161_v17 = vmul.f32 -1.442695, %v7237_v8 }
 0x2cc   :  { %v2680_v33 = vadd.f32 %v2620_v13, %v11972_v54  ;;  %v2681_v39 = vadd.f32 %v2621_v38, %v11973_v34  ;;  %v3069_v46 = vadd.f32 %v2949_v11, %v2678_v37  ;;  %v6755_v16 = vpop.eup %6754  ;;  %6760 = vtanh.f32 %v9656_v18  ;;  %v11975_v5 = vld [vmem:[#allocation42_spill] sm:$0xff]  ;;  %v11976_v36 = vld [vmem:[#allocation37_spill] sm:$0xff]  ;;  %11977 = vst [vmem:[#allocation131_spill] sm:$0xff] %v9667_v45  ;;  %v11978_v58 = vld [vmem:[#allocation107_spill] sm:$0xff] }
 0x2cd   :  { %v2797_v43 = vld [vmem:[#allocation2 + $0x1d8] sm:$0x7f]  ;;  %3127 = vst [vmem:[#allocation2 + $0x1d0] sm:$0xff] %v3067_v49  ;;  %4323 = vrot.lane.b32.xlu1 %v6755_v16, %s7296_s30  ;;  %v9674_v2 = vpop.permute.xlu0 %4057  ;;  %v9676_v13 = vld [vmem:[#allocation2 + $0xb0] sm:$0xff]  ;;  %v7231_v51 = vld [vmem:[#allocation2 + $0x28] sm:$0xff] }
 0x2ce   :  { %2741 = vst [vmem:[#allocation2 + $0x1f8] sm:$0xff] %v2681_v39  ;;  %v3068_v10 = vadd.f32 %v2945_v48, %v2797_v43  ;;  %v3071_v50 = vadd.f32 %v2952_v63, %v2680_v33  ;;  %3129 = vst [vmem:[#allocation2 + $0x1e0] sm:$0xff] %v3069_v46  ;;  %v6757_v48 = vpop.eup %6756  ;;  %v11979_v52 = vld [vmem:[#allocation40_spill] sm:$0xff]  ;;  %v9680_v33 = vpop.permute.xlu1 %4063  ;;  %v11984_v46 = vld [vmem:[#allocation95_spill] sm:$0xff]  ;;  %v6155_v53 = vmul.f32 -1.442695, %v7231_v51 }
 0x2cf   :  { %v2799_v1 = vld [vmem:[#allocation2 + $0x1e8] sm:$0x7f]  ;;  %4321 = vrot.lane.b32.xlu0 %v6757_v48, %s7296_s30  ;;  %11980 = vst [vmem:[#allocation51_spill] sm:$0xff] %v9674_v2  ;;  %11981 = vst [vmem:[#allocation53_spill] sm:$0xff] %v9680_v33  ;;  %v11983_v11 = vld [vmem:[#allocation48_spill] sm:$0xff] }
 0x2d0   :  { %v3187_v60 = vld [vmem:[#allocation2 + $0x1b1] sm:$0xff]  ;;  %v3188_v19 = vld [vmem:[#allocation2 + $0x1b9] sm:$0x7f]  ;;  %v3070_v56 = vadd.f32 %v2948_v55, %v2799_v1  ;;  %3128 = vst [vmem:[#allocation2 + $0x1d8] sm:$0x7f] %v3068_v10  ;;  %3131 = vst [vmem:[#allocation2 + $0x1f0] sm:$0xff] %v3071_v50 }
 0x2d1   :  { %v3251_v62 = vadd.f32 %v3187_v60, %v11975_v5  ;;  %v3252_v42 = vadd.f32 %v3188_v19, %v11976_v36  ;;  %v3189_v4 = vld [vmem:[#allocation2 + $0x1c1] sm:$0xff]  ;;  %v3190_v22 = vld [vmem:[#allocation2 + $0x1c9] sm:$0x7f]  ;;  %v9671_v55 = vld [vmem:[#allocation2 + $0xb8] sm:$0xff]  ;;  %v9683_v49 = vpop.permute.xlu0 %4061 }
 0x2d2   :  { %v3253_v37 = vadd.f32 %v3189_v4, %v11978_v58  ;;  %v3254_v59 = vadd.f32 %v3190_v22, %v11979_v52  ;;  %3130 = vst [vmem:[#allocation2 + $0x1e8] sm:$0x7f] %v3070_v56  ;;  %6762 = vtanh.f32 %v9671_v55  ;;  %11982 = vst [vmem:[#allocation56_spill] sm:$0xff] %v9683_v49  ;;  %v9689_v60 = vld [vmem:[#allocation2 + $0xc8] sm:$0xff]  ;;  %v9692_v19 = vld [vmem:[#allocation2 + $0xc0] sm:$0xff]  ;;  %v9695_v56 = vpop.permute.xlu1 %4067 }
 0x2d3   :  { %3315 = vst [vmem:[#allocation2 + $0x1b1] sm:$0xff] %v3251_v62  ;;  %3316 = vst [vmem:[#allocation2 + $0x1b9] sm:$0x7f] %v3252_v42  ;;  %6764 = vtanh.f32 %v9676_v13  ;;  %v9702_v4 = vld [vmem:[#allocation2 + $0xd8] sm:$0xff]  ;;  %v9705_v48 = vld [vmem:[#allocation2 + $0xd0] sm:$0xff] }
 0x2d4   :  { %3317 = vst [vmem:[#allocation2 + $0x1c1] sm:$0xff] %v3253_v37  ;;  %3318 = vst [vmem:[#allocation2 + $0x1c9] sm:$0x7f] %v3254_v59  ;;  %6766 = vtanh.f32 %v9689_v60  ;;  %v9711_v37 = vld [vmem:[#allocation2 + $0xe8] sm:$0xff]  ;;  %v9814_v33 = vld [vmem:[#allocation2 + $0x180] sm:$0xff] }
 0x2d5   :  { %v2801_v38 = vld [vmem:[#allocation2 + $0x1f8] sm:$0x7f]  ;;  %v6759_v54 = vpop.eup %6758  ;;  %11985 = vst [vmem:[#allocation54_spill] sm:$0xff] %v9695_v56  ;;  %v9697_v5 = vpop.permute.xlu0 %4065  ;;  %6768 = vtanh.f32 %v9692_v19  ;;  %v7227_v52 = vld [vmem:[#allocation2 + $0x8] sm:$0xff]  ;;  %v7230_v2 = vld [vmem:[#allocation2 + $0x10] sm:$0xff] }
 0x2d6   :  { %v3072_v9 = vadd.f32 %v2951_v44, %v2801_v38  ;;  %4327 = vrot.lane.b32.xlu1 %v6759_v54, %s7296_s30  ;;  %v6761_v50 = vpop.eup %6760  ;;  %11986 = vst [vmem:[#allocation116_spill] sm:$0xff] %v9697_v5  ;;  %6770 = vtanh.f32 %v9702_v4  ;;  %v9709_v58 = vpop.permute.xlu1 %4071  ;;  %v6151_v59 = vmul.f32 -1.442695, %v7227_v52  ;;  %v9812_v5 = vld [vmem:[#allocation2 + $0x188] sm:$0xff]  ;;  %v7229_v56 = vld [vmem:[#allocation2 + $0x18] sm:$0xff]  ;;  %v9834_v27 = vld [vmem:[#allocation2 + $0x1a0] sm:$0xff] }
 0x2d7   :  { %v3191_v34 = vld [vmem:[#allocation2 + $0x1d1] sm:$0xff]  ;;  %v3192_v39 = vld [vmem:[#allocation2 + $0x1d9] sm:$0x7f]  ;;  %4325 = vrot.lane.b32.xlu0 %v6761_v50, %s7296_s30  ;;  %11987 = vst [vmem:[#allocation120_spill] sm:$0xff] %v9709_v58  ;;  %6772 = vtanh.f32 %v9705_v48  ;;  %v9792_v58 = vld [vmem:[#allocation2 + $0x160] sm:$0xff] }
 0x2d8   :  { %3132 = vst [vmem:[#allocation2 + $0x1f8] sm:$0x7f] %v3072_v9  ;;  %v3255_v43 = vadd.f32 %v3191_v34, %v11983_v11  ;;  %v3256_v63 = vadd.f32 %v3192_v39, %v11984_v46  ;;  %6774 = vtanh.f32 %v9711_v37  ;;  %v9719_v9 = vld [vmem:[#allocation2 + $0xf8] sm:$0xff]  ;;  %v9723_v34 = vld [vmem:[#allocation2 + $0xf0] sm:$0xff]  ;;  %v7228_v46 = vld [vmem:[#allocation2] sm:$0xff] }
 0x2d9   :  { %v3193_v10 = vld [vmem:[#allocation2 + $0x1e1] sm:$0xff]  ;;  %v3194_v1 = vld [vmem:[#allocation2 + $0x1e9] sm:$0x7f]  ;;  %v9727_v11 = vld [vmem:[#allocation2 + $0x118] sm:$0xff]  ;;  %v6153_v49 = vmul.f32 -1.442695, %v7229_v56 }
 0x2da   :  { %v3257_v44 = vadd.f32 %v3193_v10, %v9458_v32  ;;  %v3258_v16 = vadd.f32 %v3194_v1, %v9472_v29  ;;  %3319 = vst [vmem:[#allocation2 + $0x1d1] sm:$0xff] %v3255_v43  ;;  %3320 = vst [vmem:[#allocation2 + $0x1d9] sm:$0x7f] %v3256_v63  ;;  %v9725_v39 = vpop.permute.xlu1 %4075  ;;  %v6150_v63 = vmul.f32 -1.442695, %v7228_v46  ;;  %v9732_v10 = vld [vmem:[#allocation2 + $0x110] sm:$0xff] }
 0x2db   :  { %11989 = vst [vmem:[#allocation59_spill] sm:$0xff] %v9725_v39  ;;  %v9760_v46 = vld [vmem:[#allocation2 + $0x148] sm:$0xff]  ;;  %v6152_v45 = vmul.f32 -1.442695, %v7230_v2  ;;  %12004 = vst [vmem:[#allocation136_spill] sm:$0xff] %v9834_v27  ;;  %v7233_v51 = vld [vmem:[#allocation2 + $0x38] sm:$0xff] }
 0x2dc   :  { %3321 = vst [vmem:[#allocation2 + $0x1e1] sm:$0xff] %v3257_v44  ;;  %3322 = vst [vmem:[#allocation2 + $0x1e9] sm:$0x7f] %v3258_v16  ;;  %v6763_v36 = vpop.eup %6762  ;;  %v9738_v44 = vld [vmem:[#allocation2 + $0x128] sm:$0xff]  ;;  %v9741_v16 = vld [vmem:[#allocation2 + $0x120] sm:$0xff] }
 0x2dd   :  { %4331 = vrot.lane.b32.xlu1 %v6763_v36, %s7296_s30  ;;  %v6765_v22 = vpop.eup %6764  ;;  %v6157_v15 = vmul.f32 -1.442695, %v7233_v51  ;;  %v9844_v35 = vld [vmem:[#allocation2 + $0x1b0] sm:$0xff] }
 0x2de   :  { %4329 = vrot.lane.b32.xlu0 %v6765_v22, %s7296_s30  ;;  %v6767_v38 = vpop.eup %6766  ;;  %v9753_v22 = vld [vmem:[#allocation2 + $0x130] sm:$0xff]  ;;  %12006 = vst [vmem:[#allocation24_spill] sm:$0xff] %v9844_v35 }
 0x2df   :  { %v3195_v62 = vld [vmem:[#allocation2 + $0x1f1] sm:$0xff]  ;;  %v3196_v32 = vld [vmem:[#allocation2 + $0x1f9] sm:$0x7f]  ;;  %v6769_v54 = vpop.eup %6768 }
 0x2e0   :  { %v3259_v29 = vadd.f32 %v3195_v62, %v9483_v41  ;;  %v3260_v42 = vadd.f32 %v3196_v32, %v9487_v3  ;;  %v9714_v41 = vpop.permute.xlu0 %4069  ;;  %v9716_v3 = vld [vmem:[#allocation2 + $0xe0] sm:$0xff]  ;;  %v6771_v1 = vpop.eup %6770 }
 0x2e1   :  { %11988 = vst [vmem:[#allocation139_spill] sm:$0xff] %v9714_v41  ;;  %4335 = vrot.lane.b32.xlu1 %v6767_v38, %s7296_s30  ;;  %6776 = vtanh.f32 %v9716_v3  ;;  %v6773_v50 = vpop.eup %6772  ;;  %v9744_v62 = vpop.permute.xlu1 %4079  ;;  %v9862_v61 = vld [vmem:[#allocation2 + $0x1d8] sm:$0xff] }
 0x2e2   :  { %3323 = vst [vmem:[#allocation2 + $0x1f1] sm:$0xff] %v3259_v29  ;;  %3324 = vst [vmem:[#allocation2 + $0x1f9] sm:$0x7f] %v3260_v42  ;;  %6778 = vpow2.f32 %v6151_v59  ;;  %4333 = vrot.lane.b32.xlu0 %v6769_v54, %s7296_s30  ;;  %v6775_v36 = vpop.eup %6774  ;;  %v9750_v42 = vld [vmem:[#allocation2 + $0x138] sm:$0xff] }
 0x2e3   :  { %6780 = vtanh.f32 %v9719_v9  ;;  %11991 = vst [vmem:[#allocation61_spill] sm:$0xff] %v9744_v62  ;;  %12009 = vst [vmem:[#allocation147_spill] sm:$0xff] %v9862_v61 }
 0x2e4   :  { %v9730_v43 = vpop.permute.xlu0 %4073  ;;  %6782 = vtanh.f32 %v9723_v34 }
 0x2e5   :  { %11990 = vst [vmem:[#allocation58_spill] sm:$0xff] %v9730_v43  ;;  %6784 = vtanh.f32 %v9727_v11  ;;  %4339 = vrot.lane.b32.xlu1 %v6771_v1, %s7296_s30  ;;  %v9757_v38 = vpop.permute.xlu1 %4083 }
 0x2e6   :  { %6786 = vtanh.f32 %v9732_v10  ;;  %4337 = vrot.lane.b32.xlu0 %v6773_v50, %s7296_s30  ;;  %11993 = vst [vmem:[#allocation128_spill] sm:$0xff] %v9757_v38  ;;  %v9765_v50 = vld [vmem:[#allocation2 + $0x140] sm:$0xff]  ;;  %v9770_v38 = vld [vmem:[#allocation2 + $0x158] sm:$0xff] }
 0x2e7   :  { %6788 = vpow2.f32 %v6150_v63 }
 0x2e8   :  { %v9746_v32 = vpop.permute.xlu0 %4077  ;;  %6790 = vtanh.f32 %v9738_v44 }
 0x2e9   :  { %11992 = vst [vmem:[#allocation124_spill] sm:$0xff] %v9746_v32  ;;  %6792 = vtanh.f32 %v9741_v16  ;;  %4343 = vrot.lane.b32.xlu1 %v6775_v36, %s7296_s30 }
 0x2ea   :  { %6794 = vtanh.f32 %v9750_v42 }
 0x2eb   :  { %v6777_v29 = vpop.eup %6776  ;;  %6796 = vtanh.f32 %v9753_v22 }
 0x2ec   :  { %4341 = vrot.lane.b32.xlu0 %v6777_v29, %s7296_s30  ;;  %v6779_v52 = vpop.eup %6778  ;;  %v9763_v63 = vpop.permute.xlu0 %4081  ;;  %6798 = vtanh.f32 %v9760_v46 }
 0x2ed   :  { %v6781_v59 = vpop.eup %6780  ;;  %11994 = vst [vmem:[#allocation127_spill] sm:$0xff] %v9763_v63  ;;  %6800 = vtanh.f32 %v9765_v50  ;;  %v3582_v62 = vadd.f32 1.0, %v6779_v52  ;;  %v9776_v63 = vpop.permute.xlu1 %4087 }
 0x2ee   :  { %v6783_v54 = vpop.eup %6782  ;;  %4347 = vrot.lane.b32.xlu1 %v6781_v59, %s7296_s30  ;;  %v9773_v59 = vld [vmem:[#allocation2 + $0x150] sm:$0xff]  ;;  %11995 = vst [vmem:[#allocation60_spill] sm:$0xff] %v9776_v63  ;;  %6802 = vtanh.f32 %v9770_v38  ;;  %v9790_v63 = vld [vmem:[#allocation2 + $0x168] sm:$0xff] }
 0x2ef   :  { %v6785_v1 = vpop.eup %6784  ;;  %6804 = vtanh.f32 %v9773_v59 }
 0x2f0   :  { %4345 = vrot.lane.b32.xlu0 %v6783_v54, %s7296_s30  ;;  %v6787_v36 = vpop.eup %6786  ;;  %v9778_v39 = vpop.permute.xlu0 %4085  ;;  %6806 = vrcp.f32 %v3582_v62 }
 0x2f1   :  { %v6789_v29 = vpop.eup %6788  ;;  %11996 = vst [vmem:[#allocation135_spill] sm:$0xff] %v9778_v39 }
 0x2f2   :  { %4355 = vrot.lane.b32.xlu1 %v6785_v1, %s7296_s30  ;;  %v6791_v32 = vpop.eup %6790  ;;  %v3581_v54 = vadd.f32 1.0, %v6789_v29  ;;  %v9784_v1 = vpop.permute.xlu1 %4091 }
 0x2f3   :  { %v6793_v43 = vpop.eup %6792  ;;  %11997 = vst [vmem:[#allocation55_spill] sm:$0xff] %v9784_v1 }
 0x2f4   :  { %4353 = vrot.lane.b32.xlu0 %v6787_v36, %s7296_s30  ;;  %v6795_v41 = vpop.eup %6794  ;;  %6808 = vrcp.f32 %v3581_v54  ;;  %v9787_v36 = vpop.permute.xlu0 %4089 }
 0x2f5   :  { %v6797_v52 = vpop.eup %6796  ;;  %11998 = vst [vmem:[#allocation57_spill] sm:$0xff] %v9787_v36  ;;  %6810 = vtanh.f32 %v9790_v63  ;;  %v9802_v36 = vld [vmem:[#allocation2 + $0x170] sm:$0xff] }
 0x2f6   :  { %4359 = vrot.lane.b32.xlu1 %v6791_v32, %s7296_s30  ;;  %v6799_v29 = vpop.eup %6798  ;;  %6812 = vtanh.f32 %v9792_v58 }
 0x2f7   :  { %v6801_v39 = vpop.eup %6800 }
 0x2f8   :  { %4357 = vrot.lane.b32.xlu0 %v6793_v43, %s7296_s30  ;;  %v6803_v62 = vpop.eup %6802  ;;  %v4288_v43 = vpop.permute.xlu1 %4287 }
 0x2f9   :  { %v6805_v32 = vpop.eup %6804  ;;  %v4286_v54 = vpop.permute.xlu0 %4285 }
 0x2fa   :  { %4363 = vrot.lane.b32.xlu1 %v6795_v41, %s7296_s30  ;;  %v9798_v41 = vld [vmem:[#allocation2 + $0x178] sm:$0xff] }
 0x2fb   :  { %6814 = vtanh.f32 %v9798_v41 }
 0x2fc   :  { %4361 = vrot.lane.b32.xlu0 %v6797_v52, %s7296_s30  ;;  %v9800_v52 = vpop.eup %6806  ;;  %6816 = vtanh.f32 %v9802_v36  ;;  %v9825_v56 = vpop.permute.xlu1 %4291 }
 0x2fd   :  { %11999 = vst [vmem:[#allocation149_spill] sm:$0xff] %v9800_v52  ;;  %6818 = vtanh.f32 %v9812_v5 }
 0x2fe   :  { %4367 = vrot.lane.b32.xlu1 %v6799_v29, %s7296_s30  ;;  %v9804_v1 = vpop.eup %6808  ;;  %v4478_v29 = vmul.f32 %v9800_v52, %v4288_v43  ;;  %6820 = vtanh.f32 %v9814_v33  ;;  %v9876_v52 = vld [vmem:[#allocation2 + $0x1e0] sm:$0xff] }
 0x2ff   :  { %12000 = vst [vmem:[#allocation15_spill] sm:$0xff] %v9804_v1  ;;  %v6811_v43 = vpop.eup %6810  ;;  %6822 = vpow2.f32 %v6153_v49  ;;  %12012 = vst [vmem:[#allocation62_spill] sm:$0xff] %v9876_v52 }
 0x300   :  { %4365 = vrot.lane.b32.xlu0 %v6801_v39, %s7296_s30  ;;  %v4477_v39 = vmul.f32 %v9804_v1, %v4286_v54  ;;  %v6813_v54 = vpop.eup %6812  ;;  %v9842_v7 = vpop.permute.xlu1 %4295  ;;  %v7238_v1 = vld [vmem:[#allocation2 + $0x50] sm:$0xff] }
 0x302   :  { %4371 = vrot.lane.b32.xlu1 %v6803_v62, %s7296_s30  ;;  %v9820_v62 = vld [vmem:[#allocation2 + $0x198] sm:$0xff] }
 0x303   :  { %12001 = vst [vmem:[#allocation18_spill] sm:$0xff] %v9820_v62  ;;  %6824 = vtanh.f32 %v9820_v62 }
 0x304   :  { %4369 = vrot.lane.b32.xlu0 %v6805_v32, %s7296_s30  ;;  %v9822_v32 = vld [vmem:[#allocation2 + $0x190] sm:$0xff] }
 0x305   :  { %12002 = vst [vmem:[#allocation11_spill] sm:$0xff] %v9822_v32  ;;  %6826 = vtanh.f32 %v9822_v32  ;;  %v6815_v49 = vpop.eup %6814 }
 0x306   :  { %4607 = vrot.lane.b32.xlu1 %v4478_v29, %s7296_s30  ;;  %v9830_v29 = vld [vmem:[#allocation2 + $0x1a8] sm:$0xff]  ;;  %v6817_v2 = vpop.eup %6816  ;;  %6828 = vpow2.f32 %v6152_v45 }
 0x307   :  { %12003 = vst [vmem:[#allocation132_spill] sm:$0xff] %v9830_v29  ;;  %6830 = vtanh.f32 %v9830_v29  ;;  %v6819_v21 = vpop.eup %6818 }
 0x308   :  { %4605 = vrot.lane.b32.xlu0 %v4477_v39, %s7296_s30  ;;  %v9832_v39 = vpop.permute.xlu0 %4289  ;;  %6832 = vtanh.f32 %v9834_v27  ;;  %v6821_v45 = vpop.eup %6820 }
 0x309   :  { %6834 = vpow2.f32 %v6155_v53  ;;  %v6823_v6 = vpop.eup %6822  ;;  %v9852_v53 = vld [vmem:[#allocation2 + $0x1c8] sm:$0xff] }
 0x30a   :  { %4375 = vrot.lane.b32.xlu1 %v6811_v43, %s7296_s30  ;;  %v7232_v43 = vld [vmem:[#allocation2 + $0x20] sm:$0xff]  ;;  %12007 = vst [vmem:[#allocation140_spill] sm:$0xff] %v9852_v53  ;;  %v3584_v14 = vadd.f32 1.0, %v6823_v6  ;;  %v6158_v6 = vmul.f32 -1.442695, %v7236_v20 }
 0x30b   :  { %v6154_v31 = vmul.f32 -1.442695, %v7232_v43  ;;  %v7234_v43 = vld [vmem:[#allocation2 + $0x30] sm:$0xff] }
 0x30c   :  { %4373 = vrot.lane.b32.xlu0 %v6813_v54, %s7296_s30  ;;  %v9840_v54 = vld [vmem:[#allocation2 + $0x1b8] sm:$0xff] }
 0x30d   :  { %12005 = vst [vmem:[#allocation21_spill] sm:$0xff] %v9840_v54  ;;  %6836 = vpow2.f32 %v6154_v31  ;;  %v6825_v51 = vpop.eup %6824  ;;  %v9854_v31 = vld [vmem:[#allocation2 + $0x1c0] sm:$0xff] }
 0x30e   :  { %4379 = vrot.lane.b32.xlu1 %v6815_v49, %s7296_s30  ;;  %v6156_v49 = vmul.f32 -1.442695, %v7234_v43  ;;  %6838 = vtanh.f32 %v9840_v54  ;;  %12008 = vst [vmem:[#allocation143_spill] sm:$0xff] %v9854_v31 }
 0x30f   :  { %6840 = vtanh.f32 %v9844_v35  ;;  %v6827_v43 = vpop.eup %6826 }
 0x310   :  { %4377 = vrot.lane.b32.xlu0 %v6817_v2, %s7296_s30  ;;  %v9847_v2 = vpop.permute.xlu0 %4293  ;;  %6842 = vpow2.f32 %v6157_v15 }
 0x311   :  { %6844 = vpow2.f32 %v6156_v49  ;;  %v9866_v49 = vld [vmem:[#allocation2 + $0x1d0] sm:$0xff] }
 0x312   :  { %4383 = vrot.lane.b32.xlu1 %v6819_v21, %s7296_s30  ;;  %v9857_v21 = vpop.permute.xlu1 %4299  ;;  %6846 = vtanh.f32 %v9852_v53  ;;  %12010 = vst [vmem:[#allocation22_spill] sm:$0xff] %v9866_v49  ;;  %v9872_v53 = vld [vmem:[#allocation2 + $0x1e8] sm:$0xff] }
 0x313   :  { %6848 = vtanh.f32 %v9854_v31  ;;  %12011 = vst [vmem:[#allocation63_spill] sm:$0xff] %v9872_v53 }
 0x314   :  { %4381 = vrot.lane.b32.xlu0 %v6821_v45, %s7296_s30  ;;  %v6829_v45 = vpop.eup %6828  ;;  %v9864_v15 = vpop.permute.xlu0 %4297  ;;  %6850 = vpow2.f32 %v6159_v30 }
 0x315   :  { %v6831_v25 = vpop.eup %6830  ;;  %6852 = vrcp.f32 %v3584_v14  ;;  %v6160_v14 = vmul.f32 -1.442695, %v7238_v1 }
 0x316   :  { %4387 = vrot.lane.b32.xlu1 %v6825_v51, %s7296_s30  ;;  %v6833_v51 = vpop.eup %6832  ;;  %6854 = vtanh.f32 %v9862_v61  ;;  %v9874_v30 = vpop.permute.xlu1 %4303 }
 0x317   :  { %6856 = vtanh.f32 %v9866_v49 }
 0x318   :  { %4385 = vrot.lane.b32.xlu0 %v6827_v43, %s7296_s30  ;;  %v6835_v43 = vpop.eup %6834  ;;  %6858 = vpow2.f32 %v6158_v6  ;;  %v7239_v6 = vld [vmem:[#allocation2 + $0x68] sm:$0xff] }
 0x319   :  { %v6837_v31 = vpop.eup %6836  ;;  %6860 = vpow2.f32 %v6161_v17  ;;  %v3586_v35 = vadd.f32 1.0, %v6835_v43  ;;  %v6163_v27 = vmul.f32 -1.442695, %v7239_v6  ;;  %v7240_v17 = vld [vmem:[#allocation2 + $0x60] sm:$0xff] }
 0x31a   :  { %4391 = vrot.lane.b32.xlu1 %v6831_v25, %s7296_s30  ;;  %v6839_v20 = vpop.eup %6838  ;;  %v3583_v25 = vadd.f32 1.0, %v6829_v45  ;;  %6862 = vtanh.f32 %v9872_v53  ;;  %v3585_v54 = vadd.f32 1.0, %v6837_v31  ;;  %v9885_v29 = vpop.permute.xlu1 %4307  ;;  %v9890_v31 = vld [vmem:[#allocation2 + $0x1f8] sm:$0xff] }
 0x31b   :  { %v6841_v8 = vpop.eup %6840  ;;  %6864 = vtanh.f32 %v9876_v52  ;;  %v6164_v52 = vmul.f32 -1.442695, %v9535_v40 }
 0x31c   :  { %4389 = vrot.lane.b32.xlu0 %v6833_v51, %s7296_s30  ;;  %v9879_v51 = vpop.permute.xlu0 %4301  ;;  %v6843_v61 = vpop.eup %6842  ;;  %6866 = vpow2.f32 %v6160_v14 }
 0x31d   :  { %v6845_v49 = vpop.eup %6844  ;;  %6868 = vrcp.f32 %v3583_v25  ;;  %v6165_v25 = vmul.f32 -1.442695, %v9528_v24 }
 0x31e   :  { %4395 = vrot.lane.b32.xlu1 %v6839_v20, %s7296_s30  ;;  %v6847_v1 = vpop.eup %6846  ;;  %v6162_v20 = vmul.f32 -1.442695, %v7240_v17  ;;  %6870 = vrcp.f32 %v3586_v35  ;;  %v9895_v17 = vld [vmem:[#allocation2 + $0x1f0] sm:$0xff]  ;;  %v3587_v53 = vadd.f32 1.0, %v6845_v49 }
 0x31f   :  { %v6849_v45 = vpop.eup %6848  ;;  %6872 = vrcp.f32 %v3585_v54 }
 0x320   :  { %4393 = vrot.lane.b32.xlu0 %v6841_v8, %s7296_s30  ;;  %v6851_v43 = vpop.eup %6850  ;;  %v9892_v14 = vpop.permute.xlu0 %4305  ;;  %6874 = vpow2.f32 %v6163_v27 }
 0x321   :  { %v9888_v8 = vpop.eup %6852  ;;  %6876 = vpow2.f32 %v6162_v20  ;;  %v9902_v27 = vpop.permute.xlu1 %4311  ;;  %v3590_v32 = vadd.f32 1.0, %v6851_v43 }
 0x322   :  { %4399 = vrot.lane.b32.xlu1 %v6847_v1, %s7296_s30  ;;  %12013 = vst [vmem:[#allocation151_spill] sm:$0xff] %v9888_v8  ;;  %v6855_v6 = vpop.eup %6854  ;;  %6878 = vtanh.f32 %v9890_v31  ;;  %v4480_v43 = vmul.f32 %v9888_v8, %v9825_v56  ;;  %v6169_v56 = vmul.f32 -1.442695, %v9622_v28 }
 0x323   :  { %v6857_v1 = vpop.eup %6856  ;;  %6880 = vtanh.f32 %v9895_v17 }
 0x324   :  { %4397 = vrot.lane.b32.xlu0 %v6849_v45, %s7296_s30  ;;  %v6859_v35 = vpop.eup %6858  ;;  %v3588_v45 = vadd.f32 1.0, %v6843_v61  ;;  %6882 = vpow2.f32 %v6165_v25  ;;  %v9905_v40 = vpop.permute.xlu0 %4309 }
 0x325   :  { %v6861_v54 = vpop.eup %6860  ;;  %v3589_v62 = vadd.f32 1.0, %v6859_v35  ;;  %6884 = vpow2.f32 %v6164_v52  ;;  %v6166_v52 = vmul.f32 -1.442695, %v9571_v12  ;;  %v6183_v12 = vmul.f32 -1.442695, %v9591_v0 }
 0x326   :  { %4403 = vrot.lane.b32.xlu1 %v6855_v6, %s7296_s30  ;;  %v6863_v24 = vpop.eup %6862  ;;  %6886 = vrcp.f32 %v3588_v45  ;;  %v6167_v6 = vmul.f32 -1.442695, %v9563_v57 }
 0x327   :  { %v6865_v20 = vpop.eup %6864  ;;  %6888 = vrcp.f32 %v3587_v53 }
 0x328   :  { %4401 = vrot.lane.b32.xlu0 %v6857_v1, %s7296_s30  ;;  %v6867_v61 = vpop.eup %6866  ;;  %v3592_v1 = vadd.f32 1.0, %v6861_v54  ;;  %6890 = vrcp.f32 %v3590_v32  ;;  %v9926_v54 = vpop.permute.xlu0 %4313 }
 0x329   :  { %v9909_v49 = vpop.eup %6868  ;;  %6892 = vrcp.f32 %v3589_v62  ;;  %v3591_v57 = vadd.f32 1.0, %v6867_v61  ;;  %v6182_v62 = vmul.f32 -1.442695, %v9603_v23  ;;  %v6168_v61 = vmul.f32 -1.442695, %v9627_v26 }
 0x32a   :  { %4407 = vrot.lane.b32.xlu1 %v6863_v24, %s7296_s30  ;;  %12014 = vst [vmem:[#allocation68_spill] sm:$0xff] %v9909_v49  ;;  %v9913_v25 = vpop.eup %6870  ;;  %v4479_v35 = vmul.f32 %v9909_v49, %v9832_v39  ;;  %v9921_v24 = vpop.permute.xlu1 %4315  ;;  %6894 = vpow2.f32 %v6167_v6 }
 0x32b   :  { %v9918_v45 = vpop.eup %6872  ;;  %6896 = vrcp.f32 %v3592_v1  ;;  %v4482_v0 = vmul.f32 %v9913_v25, %v9842_v7 }
 0x32c   :  { %4405 = vrot.lane.b32.xlu0 %v6865_v20, %s7296_s30  ;;  %v6875_v53 = vpop.eup %6874  ;;  %6898 = vpow2.f32 %v6166_v52  ;;  %v4481_v26 = vmul.f32 %v9918_v45, %v9847_v2 }
 0x32d   :  { %v6877_v32 = vpop.eup %6876  ;;  %6900 = vrcp.f32 %v3591_v57  ;;  %v3594_v28 = vadd.f32 1.0, %v6875_v53 }
 0x32e   :  { %4611 = vrot.lane.b32.xlu1 %v4480_v43, %s7296_s30  ;;  %v6879_v39 = vpop.eup %6878  ;;  %6902 = vpow2.f32 %v6169_v56  ;;  %v3593_v43 = vadd.f32 1.0, %v6877_v32  ;;  %v9934_v52 = vpop.permute.xlu1 %4319 }
 0x32f   :  { %v6881_v20 = vpop.eup %6880  ;;  %6904 = vpow2.f32 %v6183_v12 }
 0x330   :  { %4609 = vrot.lane.b32.xlu0 %v4479_v35, %s7296_s30  ;;  %v6883_v6 = vpop.eup %6882  ;;  %v6171_v35 = vmul.f32 -1.442695, %v9647_v47  ;;  %6906 = vpow2.f32 %v6182_v62  ;;  %v6170_v47 = vmul.f32 -1.442695, %v9656_v18  ;;  %v6173_v62 = vmul.f32 -1.442695, %v9671_v55 }
 0x331   :  { %v6885_v1 = vpop.eup %6884  ;;  %v3596_v53 = vadd.f32 1.0, %v6883_v6  ;;  %6908 = vpow2.f32 %v6168_v61  ;;  %v9944_v56 = vpop.permute.xlu0 %4317  ;;  %v6172_v6 = vmul.f32 -1.442695, %v9676_v13  ;;  %v6175_v13 = vmul.f32 -1.442695, %v9689_v60 }
 0x332   :  { %4411 = vrot.lane.b32.xlu1 %v6879_v39, %s7296_s30  ;;  %v9936_v23 = vpop.eup %6886  ;;  %6910 = vrcp.f32 %v3594_v28  ;;  %v3595_v7 = vadd.f32 1.0, %v6885_v1 }
 0x333   :  { %12015 = vst [vmem:[#allocation65_spill] sm:$0xff] %v9936_v23  ;;  %v9941_v57 = vpop.eup %6888  ;;  %6912 = vrcp.f32 %v3593_v43  ;;  %v4484_v2 = vmul.f32 %v9936_v23, %v9857_v21 }
 0x334   :  { %4409 = vrot.lane.b32.xlu0 %v6881_v20, %s7296_s30  ;;  %12016 = vst [vmem:[#allocation75_spill] sm:$0xff] %v9941_v57  ;;  %v9946_v32 = vpop.eup %6890  ;;  %6914 = vpow2.f32 %v6171_v35  ;;  %v4483_v20 = vmul.f32 %v9941_v57, %v9864_v15 }
 0x335   :  { %12017 = vst [vmem:[#allocation16_spill] sm:$0xff] %v9946_v32  ;;  %v9949_v12 = vpop.eup %6892  ;;  %6916 = vrcp.f32 %v3596_v53  ;;  %v4486_v55 = vmul.f32 %v9946_v32, %v9874_v30 }
 0x336   :  { %4615 = vrot.lane.b32.xlu1 %v4482_v0, %s7296_s30  ;;  %12018 = vst [vmem:[#allocation150_spill] sm:$0xff] %v9949_v12  ;;  %v6895_v39 = vpop.eup %6894  ;;  %6918 = vrcp.f32 %v3595_v7  ;;  %v4485_v0 = vmul.f32 %v9949_v12, %v9879_v51  ;;  %v6174_v7 = vmul.f32 -1.442695, %v9692_v19 }
 0x337   :  { %v9957_v61 = vpop.eup %6896  ;;  %v9961_v28 = vpop.permute.xlu1 %4351  ;;  %v3598_v1 = vadd.f32 1.0, %v6895_v39  ;;  %6920 = vpow2.f32 %v6170_v47  ;;  %v6177_v47 = vmul.f32 -1.442695, %v9702_v4 }
 0x338   :  { %4613 = vrot.lane.b32.xlu0 %v4481_v26, %s7296_s30  ;;  %12019 = vst [vmem:[#allocation152_spill] sm:$0xff] %v9957_v61  ;;  %v6899_v18 = vpop.eup %6898  ;;  %6922 = vpow2.f32 %v6173_v62  ;;  %v4488_v60 = vmul.f32 %v9957_v61, %v9885_v29 }
 0x339   :  { %v9964_v21 = vpop.eup %6900  ;;  %v3597_v26 = vadd.f32 1.0, %v6899_v18  ;;  %6924 = vpow2.f32 %v6172_v6 }
 0x33a   :  { %4619 = vrot.lane.b32.xlu1 %v4484_v2, %s7296_s30  ;;  %12020 = vst [vmem:[#allocation27_spill] sm:$0xff] %v9964_v21  ;;  %v9968_v15 = vpop.permute.xlu0 %4349  ;;  %v6903_v43 = vpop.eup %6902  ;;  %6926 = vrcp.f32 %v3598_v1  ;;  %v4487_v62 = vmul.f32 %v9964_v21, %v9892_v14  ;;  %v6176_v1 = vmul.f32 -1.442695, %v9705_v48  ;;  %v6179_v48 = vmul.f32 -1.442695, %v9711_v37 }
 0x33b   :  { %v6905_v35 = vpop.eup %6904  ;;  %6928 = vpow2.f32 %v6175_v13  ;;  %v3600_v18 = vadd.f32 1.0, %v6903_v43 }
 0x33c   :  { %4617 = vrot.lane.b32.xlu0 %v4483_v20, %s7296_s30  ;;  %v6907_v53 = vpop.eup %6906  ;;  %v3614_v39 = vadd.f32 1.0, %v6905_v35  ;;  %6930 = vrcp.f32 %v3597_v26 }
 0x33d   :  { %v6909_v30 = vpop.eup %6908  ;;  %v3613_v19 = vadd.f32 1.0, %v6907_v53  ;;  %6932 = vpow2.f32 %v6174_v7  ;;  %v6178_v7 = vmul.f32 -1.442695, %v9716_v3 }
 0x33e   :  { %4623 = vrot.lane.b32.xlu1 %v4486_v55, %s7296_s30  ;;  %v9981_v51 = vpop.eup %6910  ;;  %6934 = vpow2.f32 %v6177_v47  ;;  %v3599_v13 = vadd.f32 1.0, %v6909_v30 }
 0x33f   :  { %v9979_v2 = vpop.permute.xlu1 %4323  ;;  %12021 = vst [vmem:[#allocation30_spill] sm:$0xff] %v9981_v51  ;;  %v9985_v20 = vpop.eup %6912  ;;  %v4490_v14 = vmul.f32 %v9981_v51, %v9902_v27  ;;  %6936 = vrcp.f32 %v3614_v39 }
 0x340   :  { %4621 = vrot.lane.b32.xlu0 %v4485_v0, %s7296_s30  ;;  %12022 = vst [vmem:[#allocation71_spill] sm:$0xff] %v9985_v20  ;;  %v6915_v4 = vpop.eup %6914  ;;  %v4489_v0 = vmul.f32 %v9985_v20, %v9905_v40  ;;  %6938 = vrcp.f32 %v3613_v19 }
 0x341   :  { %v9988_v6 = vpop.permute.xlu0 %4321  ;;  %v9991_v29 = vpop.eup %6916  ;;  %v3602_v43 = vadd.f32 1.0, %v6915_v4  ;;  %6940 = vrcp.f32 %v3600_v18 }
 0x342   :  { %4627 = vrot.lane.b32.xlu1 %v4488_v60, %s7296_s30  ;;  %12023 = vst [vmem:[#allocation9_spill] sm:$0xff] %v9991_v29  ;;  %v9996_v55 = vpop.eup %6918  ;;  %6942 = vpow2.f32 %v6176_v1  ;;  %v4492_v40 = vmul.f32 %v9991_v29, %v9921_v24  ;;  %v6181_v24 = vmul.f32 -1.442695, %v9719_v9  ;;  %v6180_v1 = vmul.f32 -1.442695, %v9723_v34 }
 0x343   :  { %12024 = vst [vmem:[#allocation13_spill] sm:$0xff] %v9996_v55  ;;  %v6921_v35 = vpop.eup %6920  ;;  %6944 = vrcp.f32 %v3599_v13  ;;  %v4491_v60 = vmul.f32 %v9996_v55, %v9926_v54 }
 0x344   :  { %4625 = vrot.lane.b32.xlu0 %v4487_v62, %s7296_s30  ;;  %v6923_v53 = vpop.eup %6922  ;;  %v3601_v47 = vadd.f32 1.0, %v6921_v35  ;;  %6946 = vrcp.f32 %v3602_v43 }
 0x345   :  { %v6925_v27 = vpop.eup %6924  ;;  %v3604_v37 = vadd.f32 1.0, %v6923_v53  ;;  %6948 = vpow2.f32 %v6179_v48  ;;  %v6184_v48 = vmul.f32 -1.442695, %v9732_v10  ;;  %v6186_v10 = vmul.f32 -1.442695, %v9741_v16 }
 0x346   :  { %4631 = vrot.lane.b32.xlu1 %v4490_v14, %s7296_s30  ;;  %v10012_v39 = vpop.eup %6926  ;;  %v3603_v19 = vadd.f32 1.0, %v6925_v27  ;;  %6950 = vpow2.f32 %v6178_v7  ;;  %v6188_v16 = vmul.f32 -1.442695, %v9753_v22  ;;  %v6191_v22 = vmul.f32 -1.442695, %v9760_v46 }
 0x347   :  { %v6929_v62 = vpop.eup %6928  ;;  %v4494_v4 = vmul.f32 %v10012_v39, %v9934_v52  ;;  %6952 = vrcp.f32 %v3601_v47  ;;  %v6185_v52 = vmul.f32 -1.442695, %v9727_v11 }
 0x348   :  { %v10001_v26 = vpop.permute.xlu1 %4327  ;;  %4629 = vrot.lane.b32.xlu0 %v4489_v0, %s7296_s30  ;;  %v10016_v3 = vpop.eup %6930  ;;  %6954 = vrcp.f32 %v3604_v37  ;;  %v3606_v0 = vadd.f32 1.0, %v6929_v62 }
 0x349   :  { %v10008_v30 = vpop.permute.xlu0 %4325  ;;  %v6933_v18 = vpop.eup %6932  ;;  %v4493_v14 = vmul.f32 %v10016_v3, %v9944_v56  ;;  %6956 = vrcp.f32 %v3603_v19 }
 0x34a   :  { %4635 = vrot.lane.b32.xlu1 %v4492_v40, %s7296_s30  ;;  %v6935_v13 = vpop.eup %6934  ;;  %v3605_v34 = vadd.f32 1.0, %v6933_v18  ;;  %6958 = vpow2.f32 %v6181_v24 }
 0x34b   :  { %v10029_v9 = vpop.eup %6936  ;;  %6960 = vpow2.f32 %v6180_v1  ;;  %v3608_v11 = vadd.f32 1.0, %v6935_v13 }
 0x34c   :  { %4633 = vrot.lane.b32.xlu0 %v4491_v60, %s7296_s30  ;;  %v10033_v43 = vpop.eup %6938  ;;  %v4510_v56 = vmul.f32 %v10029_v9, %v9961_v28  ;;  %6962 = vrcp.f32 %v3606_v0  ;;  %v6187_v60 = vmul.f32 -1.442695, %v9738_v44  ;;  %v6189_v44 = vmul.f32 -1.442695, %v9750_v42 }
 0x34d   :  { %12025 = vst [vmem:[#allocation66_spill] sm:$0xff] %v10033_v43  ;;  %v10037_v53 = vpop.eup %6940  ;;  %v4509_v27 = vmul.f32 %v10033_v43, %v9968_v15  ;;  %6964 = vpow2.f32 %v6185_v52 }
 0x34e   :  { %4639 = vrot.lane.b32.xlu1 %v4494_v4, %s7296_s30  ;;  %12026 = vst [vmem:[#allocation69_spill] sm:$0xff] %v10037_v53  ;;  %v6943_v7 = vpop.eup %6942  ;;  %6966 = vrcp.f32 %v3605_v34  ;;  %v4496_v15 = vmul.f32 %v10037_v53, %v9979_v2 }
 0x34f   :  { %v10021_v54 = vpop.permute.xlu1 %4331  ;;  %v10043_v47 = vpop.eup %6944  ;;  %v3607_v19 = vadd.f32 1.0, %v6943_v7  ;;  %6968 = vpow2.f32 %v6184_v48  ;;  %v6190_v48 = vmul.f32 -1.442695, %v9765_v50 }
 0x350   :  { %v10027_v35 = vpop.permute.xlu0 %4329  ;;  %4637 = vrot.lane.b32.xlu0 %v4493_v14, %s7296_s30  ;;  %12027 = vst [vmem:[#allocation82_spill] sm:$0xff] %v10043_v47  ;;  %v10047_v28 = vpop.eup %6946  ;;  %v4495_v24 = vmul.f32 %v10043_v47, %v9988_v6  ;;  %6970 = vrcp.f32 %v3608_v11 }
 0x351   :  { %v6949_v62 = vpop.eup %6948  ;;  %6972 = vpow2.f32 %v6187_v60  ;;  %v4498_v6 = vmul.f32 %v10047_v28, %v10001_v26 }
 0x352   :  { %4671 = vrot.lane.b32.xlu1 %v4510_v56, %s7296_s30  ;;  %v6951_v4 = vpop.eup %6950  ;;  %v3610_v1 = vadd.f32 1.0, %v6949_v62  ;;  %6974 = vpow2.f32 %v6186_v10  ;;  %v6193_v62 = vmul.f32 -1.442695, %v9770_v38 }
 0x353   :  { %v4336_v40 = vpop.permute.xlu1 %4335  ;;  %v10056_v18 = vpop.eup %6952  ;;  %6976 = vrcp.f32 %v3607_v19  ;;  %v3609_v42 = vadd.f32 1.0, %v6951_v4 }
 0x354   :  { %4669 = vrot.lane.b32.xlu0 %v4509_v27, %s7296_s30  ;;  %v4334_v37 = vpop.permute.xlu0 %4333  ;;  %v10060_v2 = vpop.eup %6954  ;;  %v4497_v0 = vmul.f32 %v10056_v18, %v10008_v30  ;;  %6978 = vpow2.f32 %v6189_v44  ;;  %v6192_v44 = vmul.f32 -1.442695, %v9773_v59 }
 0x355   :  { %12028 = vst [vmem:[#allocation78_spill] sm:$0xff] %v10060_v2  ;;  %v10064_v13 = vpop.eup %6956  ;;  %6980 = vpow2.f32 %v6188_v16  ;;  %v4500_v27 = vmul.f32 %v10060_v2, %v10021_v54 }
 0x356   :  { %4643 = vrot.lane.b32.xlu1 %v4496_v15, %s7296_s30  ;;  %12029 = vst [vmem:[#allocation89_spill] sm:$0xff] %v10064_v13  ;;  %v6959_v34 = vpop.eup %6958  ;;  %6982 = vrcp.f32 %v3610_v1  ;;  %v4499_v46 = vmul.f32 %v10064_v13, %v10027_v35 }
 0x357   :  { %v4340_v14 = vpop.permute.xlu1 %4339  ;;  %v6961_v56 = vpop.eup %6960  ;;  %6984 = vrcp.f32 %v3609_v42  ;;  %v3612_v11 = vadd.f32 1.0, %v6959_v34 }
 0x358   :  { %4641 = vrot.lane.b32.xlu0 %v4495_v24, %s7296_s30  ;;  %v4338_v52 = vpop.permute.xlu0 %4337  ;;  %v10072_v26 = vpop.eup %6962  ;;  %v3611_v15 = vadd.f32 1.0, %v6961_v56  ;;  %6986 = vpow2.f32 %v6191_v22 }
 0x359   :  { %12030 = vst [vmem:[#allocation85_spill] sm:$0xff] %v10072_v26  ;;  %v6965_v7 = vpop.eup %6964  ;;  %6988 = vpow2.f32 %v6190_v48  ;;  %v4502_v24 = vmul.f32 %v10072_v26, %v4336_v40 }
 0x35a   :  { %4647 = vrot.lane.b32.xlu1 %v4498_v6, %s7296_s30  ;;  %v10078_v10 = vpop.eup %6966  ;;  %v3616_v19 = vadd.f32 1.0, %v6965_v7  ;;  %6990 = vrcp.f32 %v3612_v11  ;;  %v6195_v7 = vmul.f32 -1.442695, %v9790_v63 }
 0x35b   :  { %v4344_v30 = vpop.permute.xlu1 %4343  ;;  %12031 = vst [vmem:[#allocation97_spill] sm:$0xff] %v10078_v10  ;;  %v6969_v50 = vpop.eup %6968  ;;  %v4501_v16 = vmul.f32 %v10078_v10, %v4334_v37  ;;  %6992 = vrcp.f32 %v3611_v15 }
 0x35c   :  { %4645 = vrot.lane.b32.xlu0 %v4497_v0, %s7296_s30  ;;  %v10083_v54 = vpop.eup %6970  ;;  %v3615_v42 = vadd.f32 1.0, %v6969_v50  ;;  %6994 = vpow2.f32 %v6193_v62 }
 0x35d   :  { %12032 = vst [vmem:[#allocation19_spill] sm:$0xff] %v10083_v54  ;;  %v6973_v35 = vpop.eup %6972  ;;  %6996 = vrcp.f32 %v3616_v19  ;;  %v4504_v34 = vmul.f32 %v10083_v54, %v4340_v14  ;;  %v6194_v19 = vmul.f32 -1.442695, %v9792_v58 }
 0x35e   :  { %v4342_v60 = vpop.permute.xlu0 %4341  ;;  %4651 = vrot.lane.b32.xlu1 %v4500_v27, %s7296_s30  ;;  %v6975_v6 = vpop.eup %6974  ;;  %v3618_v40 = vadd.f32 1.0, %v6973_v35  ;;  %6998 = vpow2.f32 %v6192_v44  ;;  %v6197_v35 = vmul.f32 -1.442695, %v9798_v41 }
 0x35f   :  { %v10089_v38 = vpop.eup %6976  ;;  %v3617_v56 = vadd.f32 1.0, %v6975_v6  ;;  %7000 = vrcp.f32 %v3615_v42 }
 0x360   :  { %4649 = vrot.lane.b32.xlu0 %v4499_v46, %s7296_s30  ;;  %v4348_v4 = vpop.permute.xlu1 %4347  ;;  %12033 = vst [vmem:[#allocation93_spill] sm:$0xff] %v10089_v38  ;;  %v6979_v0 = vpop.eup %6978  ;;  %v4503_v37 = vmul.f32 %v10089_v38, %v4338_v52  ;;  %7002 = vrcp.f32 %v3618_v40 }
 0x361   :  { %v6981_v59 = vpop.eup %6980  ;;  %v3620_v46 = vadd.f32 1.0, %v6979_v0  ;;  %7004 = vrcp.f32 %v3617_v56  ;;  %v6196_v0 = vmul.f32 -1.442695, %v9802_v36 }
 0x362   :  { %v4346_v1 = vpop.permute.xlu0 %4345  ;;  %4655 = vrot.lane.b32.xlu1 %v4502_v24, %s7296_s30  ;;  %v10094_v27 = vpop.eup %6982  ;;  %v3619_v15 = vadd.f32 1.0, %v6981_v59  ;;  %7006 = vpow2.f32 %v6195_v7  ;;  %v6199_v59 = vmul.f32 -1.442695, %v9812_v5 }
 0x363   :  { %v10098_v11 = vpop.eup %6984  ;;  %v4506_v50 = vmul.f32 %v10094_v27, %v4344_v30  ;;  %7008 = vrcp.f32 %v3620_v46 }
 0x364   :  { %4653 = vrot.lane.b32.xlu0 %v4501_v16, %s7296_s30  ;;  %v4356_v22 = vpop.permute.xlu1 %4355  ;;  %12034 = vst [vmem:[#allocation105_spill] sm:$0xff] %v10098_v11  ;;  %v6987_v14 = vpop.eup %6986  ;;  %v4505_v24 = vmul.f32 %v10098_v11, %v4342_v60  ;;  %7010 = vrcp.f32 %v3619_v15 }
 0x365   :  { %v6989_v52 = vpop.eup %6988  ;;  %v3622_v16 = vadd.f32 1.0, %v6987_v14  ;;  %7012 = vpow2.f32 %v6194_v19 }
 0x366   :  { %v4354_v48 = vpop.permute.xlu0 %4353  ;;  %4659 = vrot.lane.b32.xlu1 %v4504_v34, %s7296_s30  ;;  %v10106_v44 = vpop.eup %6990  ;;  %v3621_v6 = vadd.f32 1.0, %v6989_v52  ;;  %7014 = vpow2.f32 %v6197_v35 }
 0x367   :  { %v10109_v30 = vpop.eup %6992  ;;  %v4508_v58 = vmul.f32 %v10106_v44, %v4348_v4  ;;  %7016 = vrcp.f32 %v3622_v16 }
 0x368   :  { %4657 = vrot.lane.b32.xlu0 %v4503_v37, %s7296_s30  ;;  %v4360_v62 = vpop.permute.xlu1 %4359  ;;  %v6995_v60 = vpop.eup %6994  ;;  %v4507_v41 = vmul.f32 %v10109_v30, %v4346_v1  ;;  %7018 = vrcp.f32 %v3621_v6  ;;  %v6198_v1 = vmul.f32 -1.442695, %v9814_v33 }
 0x369   :  { %v10114_v34 = vpop.eup %6996  ;;  %v3624_v37 = vadd.f32 1.0, %v6995_v60  ;;  %7020 = vpow2.f32 %v6196_v0  ;;  %v12041_v0 = vld [vmem:[#allocation18_spill] sm:$0xff] }
 0x36a   :  { %v4358_v63 = vpop.permute.xlu0 %4357  ;;  %4663 = vrot.lane.b32.xlu1 %v4506_v50, %s7296_s30  ;;  %12035 = vst [vmem:[#allocation72_spill] sm:$0xff] %v10114_v34  ;;  %v6999_v56 = vpop.eup %6998  ;;  %v4512_v36 = vmul.f32 %v10114_v34, %v4356_v22  ;;  %7022 = vpow2.f32 %v6199_v59 }
 0x36b   :  { %v10119_v4 = vpop.eup %7000  ;;  %v3623_v15 = vadd.f32 1.0, %v6999_v56  ;;  %7024 = vrcp.f32 %v3624_v37  ;;  %v12043_v56 = vld [vmem:[#allocation11_spill] sm:$0xff] }
 0x36c   :  { %4661 = vrot.lane.b32.xlu0 %v4505_v24, %s7296_s30  ;;  %v4364_v42 = vpop.permute.xlu1 %4363  ;;  %12036 = vst [vmem:[#allocation76_spill] sm:$0xff] %v10119_v4  ;;  %v4511_v46 = vmul.f32 %v10119_v4, %v4354_v48  ;;  %v10124_v5 = vpop.eup %7002  ;;  %7026 = vpow2.f32 %v6198_v1 }
 0x36d   :  { %12037 = vst [vmem:[#allocation79_spill] sm:$0xff] %v10124_v5  ;;  %v10127_v50 = vpop.eup %7004  ;;  %v4514_v22 = vmul.f32 %v10124_v5, %v4360_v62  ;;  %7028 = vrcp.f32 %v3623_v15 }
 0x36e   :  { %v4362_v40 = vpop.permute.xlu0 %4361  ;;  %4667 = vrot.lane.b32.xlu1 %v4508_v58, %s7296_s30  ;;  %12038 = vst [vmem:[#allocation83_spill] sm:$0xff] %v10127_v50  ;;  %v7007_v52 = vpop.eup %7006  ;;  %v4513_v33 = vmul.f32 %v10127_v50, %v4358_v63  ;;  %v6200_v63 = vmul.f32 -1.442695, %v12043_v56 }
 0x36f   :  { %v10131_v24 = vpop.eup %7008  ;;  %v3626_v6 = vadd.f32 1.0, %v7007_v52 }
 0x370   :  { %4665 = vrot.lane.b32.xlu0 %v4507_v41, %s7296_s30  ;;  %v4368_v7 = vpop.permute.xlu1 %4367  ;;  %12039 = vst [vmem:[#allocation86_spill] sm:$0xff] %v10131_v24  ;;  %v10134_v35 = vpop.eup %7010  ;;  %v4516_v60 = vmul.f32 %v10131_v24, %v4364_v42  ;;  %v6201_v41 = vmul.f32 -1.442695, %v12041_v0  ;;  %v12045_v0 = vld [vmem:[#allocation132_spill] sm:$0xff] }
 0x371   :  { %12040 = vst [vmem:[#allocation90_spill] sm:$0xff] %v10134_v35  ;;  %v7013_v16 = vpop.eup %7012  ;;  %v4515_v37 = vmul.f32 %v10134_v35, %v4362_v40  ;;  %7030 = vrcp.f32 %v3626_v6  ;;  %v6203_v56 = vmul.f32 -1.442695, %v12045_v0  ;;  %v12046_v24 = vld [vmem:[#allocation136_spill] sm:$0xff] }
 0x372   :  { %v4366_v14 = vpop.permute.xlu0 %4365  ;;  %4675 = vrot.lane.b32.xlu1 %v4512_v36, %s7296_s30  ;;  %v7015_v58 = vpop.eup %7014  ;;  %7032 = vpow2.f32 %v6201_v41 }
 0x373   :  { %v10140_v59 = vpop.eup %7016  ;;  %v3628_v52 = vadd.f32 1.0, %v7015_v58  ;;  %7034 = vpow2.f32 %v6200_v63 }
 0x374   :  { %4673 = vrot.lane.b32.xlu0 %v4511_v46, %s7296_s30  ;;  %v4372_v19 = vpop.permute.xlu1 %4371  ;;  %12042 = vst [vmem:[#allocation98_spill] sm:$0xff] %v10140_v59  ;;  %v10144_v1 = vpop.eup %7018  ;;  %v3625_v46 = vadd.f32 1.0, %v7013_v16  ;;  %v6202_v16 = vmul.f32 -1.442695, %v12046_v24 }
 0x375   :  { %12044 = vst [vmem:[#allocation101_spill] sm:$0xff] %v10144_v1  ;;  %v7021_v15 = vpop.eup %7020  ;;  %v4517_v40 = vmul.f32 %v10144_v1, %v4366_v14  ;;  %v12049_v14 = vld [vmem:[#allocation21_spill] sm:$0xff] }
 0x376   :  { %v4370_v48 = vpop.permute.xlu0 %4369  ;;  %4679 = vrot.lane.b32.xlu1 %v4514_v22, %s7296_s30  ;;  %v7023_v42 = vpop.eup %7022  ;;  %v4518_v22 = vmul.f32 %v10140_v59, %v4368_v7  ;;  %7036 = vrcp.f32 %v3625_v46  ;;  %v3627_v6 = vadd.f32 1.0, %v7021_v15  ;;  %v12050_v46 = vld [vmem:[#allocation24_spill] sm:$0xff]  ;;  %v12052_v1 = vld [vmem:[#allocation149_spill] sm:$0xff]  ;;  %v12054_v59 = vld [vmem:[#allocation15_spill] sm:$0xff] }
 0x377   :  { %v10152_v50 = vpop.eup %7024  ;;  %7038 = vrcp.f32 %v3628_v52  ;;  %v6204_v15 = vmul.f32 -1.442695, %v12050_v46 }
 0x378   :  { %4677 = vrot.lane.b32.xlu0 %v4513_v33, %s7296_s30  ;;  %v4608_v62 = vpop.permute.xlu1 %4607  ;;  %12047 = vst [vmem:[#allocation94_spill] sm:$0xff] %v10152_v50  ;;  %v7027_v58 = vpop.eup %7026  ;;  %v4520_v41 = vmul.f32 %v10152_v50, %v4372_v19  ;;  %7040 = vpow2.f32 %v6203_v56  ;;  %v12055_v56 = vld [vmem:[#allocation140_spill] sm:$0xff] }
 0x379   :  { %v10156_v7 = vpop.eup %7028  ;;  %7042 = vpow2.f32 %v6202_v16  ;;  %v12056_v16 = vld [vmem:[#allocation143_spill] sm:$0xff] }
 0x37a   :  { %v4606_v36 = vpop.permute.xlu0 %4605  ;;  %4683 = vrot.lane.b32.xlu1 %v4516_v60, %s7296_s30  ;;  %v3630_v60 = vadd.f32 1.0, %v7023_v42  ;;  %12048 = vst [vmem:[#allocation113_spill] sm:$0xff] %v10156_v7  ;;  %v4519_v24 = vmul.f32 %v10156_v7, %v4370_v48  ;;  %7044 = vrcp.f32 %v3627_v6  ;;  %v3629_v42 = vadd.f32 1.0, %v7027_v58  ;;  %v12057_v58 = vld [vmem:[#allocation147_spill] sm:$0xff] }
 0x37b   :  { %v6206_v46 = vmul.f32 -1.442695, %v12056_v16  ;;  %v10170_v50 = vpop.eup %7030 }
 0x37c   :  { %4681 = vrot.lane.b32.xlu0 %v4515_v37, %s7296_s30  ;;  %v4376_v33 = vpop.permute.xlu1 %4375  ;;  %v6205_v37 = vmul.f32 -1.442695, %v12049_v14  ;;  %7046 = vrcp.f32 %v3630_v60  ;;  %v6207_v14 = vmul.f32 -1.442695, %v12055_v56  ;;  %v12058_v60 = vld [vmem:[#allocation22_spill] sm:$0xff] }
 0x37e   :  { %v4374_v35 = vpop.permute.xlu0 %4373  ;;  %4687 = vrot.lane.b32.xlu1 %v4518_v22, %s7296_s30  ;;  %v12051_v22 = vld [vmem:[#allocation25_spill] sm:$0xff]  ;;  %7048 = vpow2.f32 %v6205_v37  ;;  %v4522_v37 = vmul.f32 %v10170_v50, %v4376_v33  ;;  %v12061_v33 = vld [vmem:[#allocation63_spill] sm:$0xff] }
 0x37f   :  { %v4158_v52 = vmul.f32 %v12052_v1, %v12051_v22  ;;  %7050 = vpow2.f32 %v6204_v15  ;;  %v7033_v1 = vpop.eup %7032 }
 0x380   :  { %4685 = vrot.lane.b32.xlu0 %v4517_v40, %s7296_s30  ;;  %v4380_v63 = vpop.permute.xlu1 %4379  ;;  %v12053_v40 = vld [vmem:[#allocation12_spill] sm:$0xff]  ;;  %7052 = vrcp.f32 %v3629_v42  ;;  %v3632_v42 = vadd.f32 1.0, %v7033_v1  ;;  %v12063_v1 = vld [vmem:[#allocation62_spill] sm:$0xff] }
 0x381   :  { %v4157_v19 = vmul.f32 %v12054_v59, %v12053_v40  ;;  %v4798_v48 = vadd.f32 %v4608_v62, %v4158_v52  ;;  %v7035_v40 = vpop.eup %7034  ;;  %7054 = vpow2.f32 %v6207_v14  ;;  %v6210_v59 = vmul.f32 -1.442695, %v12063_v1 }
 0x382   :  { %v4378_v0 = vpop.permute.xlu0 %4377  ;;  %4691 = vrot.lane.b32.xlu1 %v4520_v41, %s7296_s30  ;;  %v6209_v41 = vmul.f32 -1.442695, %v12057_v58  ;;  %v10176_v62 = vpop.eup %7036  ;;  %7056 = vpow2.f32 %v6206_v46  ;;  %v3631_v16 = vadd.f32 1.0, %v7035_v40  ;;  %v6211_v58 = vmul.f32 -1.442695, %v12061_v33 }
 0x383   :  { %v4797_v22 = vadd.f32 %v4606_v36, %v4157_v19  ;;  %12059 = vst [vmem:[#allocation102_spill] sm:$0xff] %v10176_v62  ;;  %v10181_v15 = vpop.eup %7038  ;;  %v4521_v52 = vmul.f32 %v10176_v62, %v4374_v35 }
 0x384   :  { %4689 = vrot.lane.b32.xlu0 %v4519_v24, %s7296_s30  ;;  %v4384_v7 = vpop.permute.xlu1 %4383  ;;  %v6208_v24 = vmul.f32 -1.442695, %v12058_v60  ;;  %12060 = vst [vmem:[#allocation106_spill] sm:$0xff] %v10181_v15  ;;  %7058 = vpow2.f32 %v6209_v41  ;;  %v7041_v56 = vpop.eup %7040  ;;  %v4524_v46 = vmul.f32 %v10181_v15, %v4380_v63 }
 0x385   :  { %v7043_v14 = vpop.eup %7042 }
 0x386   :  { %v4382_v6 = vpop.permute.xlu0 %4381  ;;  %5311 = vrot.lane.b32.xlu1 %v4798_v48, %s7297_s5  ;;  %7060 = vpow2.f32 %v6208_v24  ;;  %v10187_v60 = vpop.eup %7044  ;;  %v3634_v24 = vadd.f32 1.0, %v7041_v56 }
 0x387   :  { %7062 = vtanh.f32 %v4798_v48  ;;  %12062 = vst [vmem:[#allocation109_spill] sm:$0xff] %v10187_v60  ;;  %v10191_v41 = vpop.eup %7046  ;;  %v4523_v40 = vmul.f32 %v10187_v60, %v4378_v0 }
 0x388   :  { %5309 = vrot.lane.b32.xlu0 %v4797_v22, %s7297_s5  ;;  %v10179_v36 = vpop.permute.xlu1 %4387  ;;  %7064 = vtanh.f32 %v4797_v22  ;;  %12064 = vst [vmem:[#allocation121_spill] sm:$0xff] %v10191_v41  ;;  %v7049_v48 = vpop.eup %7048  ;;  %v4526_v22 = vmul.f32 %v10191_v41, %v4384_v7 }
 0x389   :  { %7066 = vrcp.f32 %v3632_v42  ;;  %v7051_v33 = vpop.eup %7050  ;;  %v3636_v42 = vadd.f32 1.0, %v7049_v48 }
 0x38a   :  { %v4386_v19 = vpop.permute.xlu0 %4385  ;;  %4695 = vrot.lane.b32.xlu1 %v4522_v37, %s7296_s30  ;;  %7068 = vrcp.f32 %v3631_v16  ;;  %v10196_v63 = vpop.eup %7052 }
 0x38b   :  { %7070 = vpow2.f32 %v6211_v58  ;;  %12065 = vst [vmem:[#allocation117_spill] sm:$0xff] %v10196_v63  ;;  %v7055_v15 = vpop.eup %7054  ;;  %v4525_v0 = vmul.f32 %v10196_v63, %v4382_v6  ;;  %v6213_v58 = vmul.f32 -1.442695, %v9890_v31 }
 0x38c   :  { %4693 = vrot.lane.b32.xlu0 %v4521_v52, %s7296_s30  ;;  %v4392_v35 = vpop.permute.xlu1 %4391  ;;  %v3633_v52 = vadd.f32 1.0, %v7043_v14  ;;  %7072 = vpow2.f32 %v6210_v59  ;;  %v7057_v16 = vpop.eup %7056  ;;  %v3635_v14 = vadd.f32 1.0, %v7051_v33  ;;  %v6212_v59 = vmul.f32 -1.442695, %v9895_v17 }
 0x38d   :  { %7074 = vrcp.f32 %v3634_v24  ;;  %v3638_v6 = vadd.f32 1.0, %v7055_v15  ;;  %v3637_v63 = vadd.f32 1.0, %v7057_v16 }
 0x38e   :  { %v4390_v37 = vpop.permute.xlu0 %4389  ;;  %4699 = vrot.lane.b32.xlu1 %v4524_v46, %s7296_s30  ;;  %7076 = vrcp.f32 %v3633_v52  ;;  %v7059_v46 = vpop.eup %7058 }
 0x38f   :  { %7078 = vrcp.f32 %v3636_v42 }
 0x390   :  { %4697 = vrot.lane.b32.xlu0 %v4523_v40, %s7296_s30  ;;  %v4396_v1 = vpop.permute.xlu1 %4395  ;;  %v7061_v40 = vpop.eup %7060  ;;  %7080 = vrcp.f32 %v3635_v14 }
 0x391   :  { %v7063_v41 = vpop.eup %7062  ;;  %7082 = vpow2.f32 %v6213_v58 }
 0x392   :  { %v4394_v56 = vpop.permute.xlu0 %4393  ;;  %4703 = vrot.lane.b32.xlu1 %v4526_v22, %s7296_s30  ;;  %v7065_v48 = vpop.eup %7064  ;;  %7084 = vpow2.f32 %v6212_v59 }
 0x393   :  { %v10205_v52 = vpop.eup %7066  ;;  %7086 = vrcp.f32 %v3638_v6 }
 0x394   :  { %4701 = vrot.lane.b32.xlu0 %v4525_v0, %s7296_s30  ;;  %v4400_v7 = vpop.permute.xlu1 %4399  ;;  %v10208_v33 = vpop.eup %7068  ;;  %v4528_v31 = vmul.f32 %v10205_v52, %v10179_v36  ;;  %v3640_v0 = vadd.f32 1.0, %v7059_v46  ;;  %7088 = vrcp.f32 %v3637_v63 }
 0x395   :  { %v7071_v22 = vpop.eup %7070  ;;  %v4527_v15 = vmul.f32 %v10208_v33, %v4386_v19 }
 0x396   :  { %v4398_v24 = vpop.permute.xlu0 %4397  ;;  %4991 = vrot.lane.b32.xlu1 %v7063_v41, %s7296_s30  ;;  %v7073_v16 = vpop.eup %7072  ;;  %v3639_v41 = vadd.f32 1.0, %v7061_v40  ;;  %7090 = vrcp.f32 %v3640_v0  ;;  %v3642_v19 = vadd.f32 1.0, %v7071_v22 }
 0x397   :  { %v10214_v14 = vpop.eup %7074  ;;  %v3641_v6 = vadd.f32 1.0, %v7073_v16 }
 0x398   :  { %4989 = vrot.lane.b32.xlu0 %v7065_v48, %s7296_s30  ;;  %v4404_v17 = vpop.permute.xlu1 %4403  ;;  %12066 = vst [vmem:[#allocation129_spill] sm:$0xff] %v10214_v14  ;;  %v10217_v58 = vpop.eup %7076  ;;  %v4530_v36 = vmul.f32 %v10214_v14, %v4392_v35  ;;  %7092 = vrcp.f32 %v3639_v41 }
 0x399   :  { %12067 = vst [vmem:[#allocation125_spill] sm:$0xff] %v10217_v58  ;;  %v4529_v48 = vmul.f32 %v10217_v58, %v4390_v37  ;;  %v10222_v63 = vpop.eup %7078  ;;  %7094 = vrcp.f32 %v3642_v19 }
 0x39a   :  { %v4402_v42 = vpop.permute.xlu0 %4401  ;;  %4707 = vrot.lane.b32.xlu1 %v4528_v31, %s7296_s30  ;;  %12068 = vst [vmem:[#allocation137_spill] sm:$0xff] %v10222_v63  ;;  %v10225_v40 = vpop.eup %7080  ;;  %v4532_v31 = vmul.f32 %v10222_v63, %v4396_v1  ;;  %7096 = vrcp.f32 %v3641_v6 }
 0x39b   :  { %12069 = vst [vmem:[#allocation133_spill] sm:$0xff] %v10225_v40  ;;  %v7083_v35 = vpop.eup %7082  ;;  %v4531_v14 = vmul.f32 %v10225_v40, %v4394_v56 }
 0x39c   :  { %4705 = vrot.lane.b32.xlu0 %v4527_v15, %s7296_s30  ;;  %v4408_v59 = vpop.permute.xlu1 %4407  ;;  %v7085_v22 = vpop.eup %7084 }
 0x39d   :  { %v10230_v0 = vpop.eup %7086  ;;  %v3643_v56 = vadd.f32 1.0, %v7085_v22 }
 0x39e   :  { %v4406_v46 = vpop.permute.xlu0 %4405  ;;  %4711 = vrot.lane.b32.xlu1 %v4530_v36, %s7296_s30  ;;  %12070 = vst [vmem:[#allocation110_spill] sm:$0xff] %v10230_v0  ;;  %v10233_v16 = vpop.eup %7088  ;;  %v4534_v41 = vmul.f32 %v10230_v0, %v4400_v7 }
 0x39f   :  { %12071 = vst [vmem:[#allocation114_spill] sm:$0xff] %v10233_v16  ;;  %v4533_v1 = vmul.f32 %v10233_v16, %v4398_v24 }
 0x3a0   :  { %4709 = vrot.lane.b32.xlu0 %v4529_v48, %s7296_s30  ;;  %v4612_v15 = vpop.permute.xlu1 %4611  ;;  %v3644_v48 = vadd.f32 1.0, %v7083_v35  ;;  %v10238_v19 = vpop.eup %7090 }
 0x3a1   :  { %12072 = vst [vmem:[#allocation122_spill] sm:$0xff] %v10238_v19 }
 0x3a2   :  { %v4610_v37 = vpop.permute.xlu0 %4609  ;;  %4715 = vrot.lane.b32.xlu1 %v4532_v31, %s7296_s30  ;;  %v10241_v6 = vpop.eup %7092  ;;  %7098 = vrcp.f32 %v3644_v48  ;;  %v12077_v48 = vld [vmem:[#allocation10_spill] sm:$0xff] }
 0x3a3   :  { %12073 = vst [vmem:[#allocation144_spill] sm:$0xff] %v10241_v6  ;;  %v4535_v40 = vmul.f32 %v10241_v6, %v4402_v42  ;;  %7100 = vrcp.f32 %v3643_v56  ;;  %v10246_v24 = vpop.eup %7094  ;;  %v4159_v56 = vmul.f32 %v9909_v49, %v12077_v48  ;;  %v12080_v49 = vld [vmem:[#allocation14_spill] sm:$0xff] }
 0x3a4   :  { %4713 = vrot.lane.b32.xlu0 %v4531_v14, %s7296_s30  ;;  %v4412_v36 = vpop.permute.xlu1 %4411  ;;  %v4536_v14 = vmul.f32 %v10238_v19, %v4404_v17  ;;  %12074 = vst [vmem:[#allocation141_spill] sm:$0xff] %v10246_v24  ;;  %v10249_v35 = vpop.eup %7096  ;;  %v4538_v22 = vmul.f32 %v10246_v24, %v4408_v59  ;;  %v12076_v19 = vld [vmem:[#allocation28_spill] sm:$0xff] }
 0x3a5   :  { %12075 = vst [vmem:[#allocation118_spill] sm:$0xff] %v10249_v35  ;;  %v4160_v42 = vmul.f32 %v9888_v8, %v12076_v19  ;;  %v4799_v6 = vadd.f32 %v4610_v37, %v4159_v56  ;;  %v12081_v37 = vld [vmem:[#allocation17_spill] sm:$0xff] }
 0x3a6   :  { %v4410_v63 = vpop.permute.xlu0 %4409  ;;  %4719 = vrot.lane.b32.xlu1 %v4534_v41, %s7296_s30 }
 0x3a8   :  { %4717 = vrot.lane.b32.xlu0 %v4533_v1, %s7296_s30  ;;  %v4616_v31 = vpop.permute.xlu1 %4615  ;;  %v4537_v1 = vmul.f32 %v10249_v35, %v4406_v46 }
 0x3aa   :  { %v4614_v7 = vpop.permute.xlu0 %4613  ;;  %4723 = vrot.lane.b32.xlu1 %v4536_v14, %s7296_s30  ;;  %v4800_v14 = vadd.f32 %v4612_v15, %v4160_v42  ;;  %v4162_v15 = vmul.f32 %v9913_v25, %v12080_v49 }
 0x3ac   :  { %4721 = vrot.lane.b32.xlu0 %v4535_v40, %s7296_s30  ;;  %v4620_v41 = vpop.permute.xlu1 %4619  ;;  %v10260_v59 = vpop.eup %7098  ;;  %7102 = vtanh.f32 %v4800_v14  ;;  %v4802_v42 = vadd.f32 %v4616_v31, %v4162_v15 }
 0x3ad   :  { %12078 = vst [vmem:[#allocation130_spill] sm:$0xff] %v10260_v59  ;;  %v10263_v46 = vpop.eup %7100  ;;  %v4540_v19 = vmul.f32 %v10260_v59, %v4412_v36  ;;  %7104 = vtanh.f32 %v4799_v6  ;;  %v12082_v59 = vld [vmem:[#allocation33_spill] sm:$0xff] }
 0x3ae   :  { %v4618_v17 = vpop.permute.xlu0 %4617  ;;  %4727 = vrot.lane.b32.xlu1 %v4538_v22, %s7296_s30  ;;  %12079 = vst [vmem:[#allocation138_spill] sm:$0xff] %v10263_v46  ;;  %v4539_v8 = vmul.f32 %v10263_v46, %v4410_v63  ;;  %v4164_v63 = vmul.f32 %v9936_v23, %v12082_v59  ;;  %v12083_v46 = vld [vmem:[#allocation31_spill] sm:$0xff]  ;;  %7106 = vtanh.f32 %v4802_v42 }
 0x3af   :  { %v4163_v49 = vmul.f32 %v9941_v57, %v12083_v46  ;;  %v12084_v46 = vld [vmem:[#allocation20_spill] sm:$0xff]  ;;  %v12094_v23 = vld [vmem:[#allocation123_spill] sm:$0xff] }
 0x3b0   :  { %4725 = vrot.lane.b32.xlu0 %v4537_v1, %s7296_s30  ;;  %v4624_v40 = vpop.permute.xlu1 %4623  ;;  %v4161_v1 = vmul.f32 %v9918_v45, %v12081_v37 }
 0x3b2   :  { %v4622_v16 = vpop.permute.xlu0 %4621  ;;  %5315 = vrot.lane.b32.xlu1 %v4800_v14, %s7297_s5  ;;  %v4801_v35 = vadd.f32 %v4614_v7, %v4161_v1  ;;  %v4803_v14 = vadd.f32 %v4618_v17, %v4163_v49  ;;  %v12085_v17 = vld [vmem:[#allocation23_spill] sm:$0xff] }
 0x3b3   :  { %v4165_v15 = vmul.f32 %v9949_v12, %v12085_v17  ;;  %v12086_v12 = vld [vmem:[#allocation26_spill] sm:$0xff] }
 0x3b4   :  { %5313 = vrot.lane.b32.xlu0 %v4799_v6, %s7297_s5  ;;  %v4628_v22 = vpop.permute.xlu1 %4627  ;;  %7108 = vtanh.f32 %v4801_v35 }
 0x3b6   :  { %v4626_v48 = vpop.permute.xlu0 %4625  ;;  %4731 = vrot.lane.b32.xlu1 %v4540_v19, %s7296_s30  ;;  %v4804_v19 = vadd.f32 %v4620_v41, %v4164_v63  ;;  %v7103_v31 = vpop.eup %7102  ;;  %v4166_v41 = vmul.f32 %v9946_v32, %v12084_v46 }
 0x3b7   :  { %v7105_v59 = vpop.eup %7104 }
 0x3b8   :  { %4729 = vrot.lane.b32.xlu0 %v4539_v8, %s7296_s30  ;;  %v4632_v56 = vpop.permute.xlu1 %4631  ;;  %v4806_v1 = vadd.f32 %v4624_v40, %v4166_v41  ;;  %7110 = vtanh.f32 %v4804_v19  ;;  %v4168_v40 = vmul.f32 %v9957_v61, %v12086_v12 }
 0x3b9   :  { %7112 = vtanh.f32 %v4803_v14 }
 0x3ba   :  { %v4630_v36 = vpop.permute.xlu0 %4629  ;;  %5319 = vrot.lane.b32.xlu1 %v4802_v42, %s7297_s5  ;;  %7114 = vtanh.f32 %v4806_v1 }
 0x3bc   :  { %5317 = vrot.lane.b32.xlu0 %v4801_v35, %s7297_s5  ;;  %v10279_v37 = vpop.permute.xlu1 %4635  ;;  %v4805_v35 = vadd.f32 %v4622_v16, %v4165_v15  ;;  %v12087_v16 = vld [vmem:[#allocation29_spill] sm:$0xff] }
 0x3be   :  { %v10281_v8 = vpop.permute.xlu0 %4633  ;;  %5323 = vrot.lane.b32.xlu1 %v4804_v19, %s7297_s5  ;;  %v4808_v19 = vadd.f32 %v4628_v22, %v4168_v40  ;;  %7116 = vtanh.f32 %v4805_v35 }
 0x3c0   :  { %5321 = vrot.lane.b32.xlu0 %v4803_v14, %s7297_s5  ;;  %v10285_v6 = vpop.permute.xlu1 %4639  ;;  %7118 = vtanh.f32 %v4808_v19 }
 0x3c2   :  { %v10287_v7 = vpop.permute.xlu0 %4637  ;;  %4995 = vrot.lane.b32.xlu1 %v7103_v31, %s7296_s30  ;;  %v7107_v31 = vpop.eup %7106 }
 0x3c3   :  { %v7109_v17 = vpop.eup %7108 }
 0x3c4   :  { %4993 = vrot.lane.b32.xlu0 %v7105_v59, %s7296_s30  ;;  %v10295_v42 = vpop.permute.xlu1 %4671  ;;  %v4167_v59 = vmul.f32 %v9964_v21, %v12087_v16  ;;  %v12088_v21 = vld [vmem:[#allocation32_spill] sm:$0xff] }
 0x3c5   :  { %v4170_v22 = vmul.f32 %v9981_v51, %v12088_v21 }
 0x3c6   :  { %v10297_v63 = vpop.permute.xlu0 %4669  ;;  %5327 = vrot.lane.b32.xlu1 %v4806_v1, %s7297_s5  ;;  %v4807_v14 = vadd.f32 %v4626_v48, %v4167_v59  ;;  %v12089_v48 = vld [vmem:[#allocation34_spill] sm:$0xff] }
 0x3c7   :  { %v4810_v1 = vadd.f32 %v4632_v56, %v4170_v22 }
 0x3c8   :  { %5325 = vrot.lane.b32.xlu0 %v4805_v35, %s7297_s5  ;;  %v10301_v49 = vpop.permute.xlu1 %4643  ;;  %7120 = vtanh.f32 %v4807_v14 }
 0x3c9   :  { %7122 = vtanh.f32 %v4810_v1 }
 0x3ca   :  { %v10303_v46 = vpop.permute.xlu0 %4641  ;;  %4999 = vrot.lane.b32.xlu1 %v7107_v31, %s7296_s30  ;;  %v7111_v31 = vpop.eup %7110 }
 0x3cb   :  { %v7113_v16 = vpop.eup %7112 }
 0x3cc   :  { %4997 = vrot.lane.b32.xlu0 %v7109_v17, %s7296_s30  ;;  %v10311_v41 = vpop.permute.xlu1 %4647  ;;  %v4169_v17 = vmul.f32 %v9985_v20, %v12089_v48  ;;  %v12090_v20 = vld [vmem:[#allocation91_spill] sm:$0xff] }
 0x3cd   :  { %v4172_v56 = vmul.f32 %v9991_v29, %v12090_v20 }
 0x3ce   :  { %v10313_v15 = vpop.permute.xlu0 %4645  ;;  %5331 = vrot.lane.b32.xlu1 %v4808_v19, %s7297_s5  ;;  %v4809_v35 = vadd.f32 %v4630_v36, %v4169_v17  ;;  %v12091_v36 = vld [vmem:[#allocation39_spill] sm:$0xff] }
 0x3cf   :  { %v4812_v19 = vadd.f32 %v10279_v37, %v4172_v56  ;;  %v12093_v37 = vld [vmem:[#allocation64_spill] sm:$0xff] }
 0x3d0   :  { %5329 = vrot.lane.b32.xlu0 %v4807_v14, %s7297_s5  ;;  %v10317_v12 = vpop.permute.xlu1 %4651  ;;  %7124 = vtanh.f32 %v4809_v35 }
 0x3d1   :  { %7126 = vtanh.f32 %v4812_v19 }
 0x3d2   :  { %v10319_v61 = vpop.permute.xlu0 %4649  ;;  %5003 = vrot.lane.b32.xlu1 %v7111_v31, %s7296_s30  ;;  %v7115_v31 = vpop.eup %7114 }
 0x3d3   :  { %v7117_v48 = vpop.eup %7116 }
 0x3d4   :  { %5001 = vrot.lane.b32.xlu0 %v7113_v16, %s7296_s30  ;;  %v10327_v40 = vpop.permute.xlu1 %4655  ;;  %v4171_v16 = vmul.f32 %v9996_v55, %v12091_v36  ;;  %v12092_v55 = vld [vmem:[#allocation73_spill] sm:$0xff] }
 0x3d6   :  { %v10329_v59 = vpop.permute.xlu0 %4653  ;;  %5335 = vrot.lane.b32.xlu1 %v4810_v1, %s7297_s5  ;;  %v4811_v14 = vadd.f32 %v10281_v8, %v4171_v16  ;;  %v4173_v8 = vmul.f32 %v10016_v3, %v12093_v37 }
 0x3d8   :  { %5333 = vrot.lane.b32.xlu0 %v4809_v35, %s7297_s5  ;;  %v10333_v21 = vpop.permute.xlu1 %4659  ;;  %v4813_v32 = vadd.f32 %v10287_v7, %v4173_v8  ;;  %7128 = vtanh.f32 %v4811_v14 }
 0x3da   :  { %v10335_v51 = vpop.permute.xlu0 %4657  ;;  %5007 = vrot.lane.b32.xlu1 %v7115_v31, %s7296_s30  ;;  %v7119_v31 = vpop.eup %7118 }
 0x3db   :  { %v7121_v36 = vpop.eup %7120 }
 0x3dc   :  { %5005 = vrot.lane.b32.xlu0 %v7117_v48, %s7296_s30  ;;  %v10344_v22 = vpop.permute.xlu1 %4663  ;;  %v4174_v48 = vmul.f32 %v10012_v39, %v12092_v55  ;;  %v4190_v55 = vmul.f32 %v10029_v9, %v12094_v23  ;;  %v7123_v7 = vpop.eup %7122 }
 0x3dd   :  { %v7125_v8 = vpop.eup %7124 }
 0x3de   :  { %v10347_v17 = vpop.permute.xlu0 %4661  ;;  %5339 = vrot.lane.b32.xlu1 %v4812_v19, %s7297_s5  ;;  %v4814_v56 = vadd.f32 %v10285_v6, %v4174_v48  ;;  %v4830_v1 = vadd.f32 %v10295_v42, %v4190_v55 }
 0x3e0   :  { %5337 = vrot.lane.b32.xlu0 %v4811_v14, %s7297_s5  ;;  %v10351_v20 = vpop.permute.xlu1 %4667  ;;  %7130 = vtanh.f32 %v4814_v56 }
 0x3e1   :  { %7132 = vtanh.f32 %v4813_v32 }
 0x3e2   :  { %v10353_v29 = vpop.permute.xlu0 %4665  ;;  %5011 = vrot.lane.b32.xlu1 %v7119_v31, %s7296_s30  ;;  %v12095_v31 = vld [vmem:[#allocation50_spill] sm:$0xff]  ;;  %7134 = vtanh.f32 %v4830_v1 }
 0x3e3   :  { %v4189_v37 = vmul.f32 %v10033_v43, %v12095_v31  ;;  %v12096_v31 = vld [vmem:[#allocation35_spill] sm:$0xff] }
 0x3e4   :  { %5009 = vrot.lane.b32.xlu0 %v7121_v36, %s7296_s30  ;;  %v10362_v16 = vpop.permute.xlu1 %4675  ;;  %v4176_v42 = vmul.f32 %v10037_v53, %v12096_v31  ;;  %v7127_v31 = vpop.eup %7126 }
 0x3e5   :  { %v4829_v6 = vadd.f32 %v10297_v63, %v4189_v37  ;;  %v12097_v63 = vld [vmem:[#allocation36_spill] sm:$0xff] }
 0x3e6   :  { %v10365_v57 = vpop.permute.xlu0 %4673  ;;  %5343 = vrot.lane.b32.xlu1 %v4814_v56, %s7297_s5  ;;  %v4175_v55 = vmul.f32 %v10043_v47, %v12097_v63  ;;  %v4816_v19 = vadd.f32 %v10301_v49, %v4176_v42  ;;  %v12098_v47 = vld [vmem:[#allocation99_spill] sm:$0xff] }
 0x3e7   :  { %v4178_v49 = vmul.f32 %v10047_v28, %v12098_v47  ;;  %7136 = vtanh.f32 %v4829_v6 }
 0x3e8   :  { %5341 = vrot.lane.b32.xlu0 %v4813_v32, %s7297_s5  ;;  %v10374_v35 = vpop.permute.xlu1 %4679  ;;  %v4815_v14 = vadd.f32 %v10303_v46, %v4175_v55  ;;  %v12099_v46 = vld [vmem:[#allocation80_spill] sm:$0xff]  ;;  %7138 = vtanh.f32 %v4816_v19 }
 0x3e9   :  { %v4177_v42 = vmul.f32 %v10056_v18, %v12099_v46  ;;  %v4818_v56 = vadd.f32 %v10311_v41, %v4178_v49  ;;  %v12101_v46 = vld [vmem:[#allocation70_spill] sm:$0xff] }
 0x3ea   :  { %v10377_v36 = vpop.permute.xlu0 %4677  ;;  %5375 = vrot.lane.b32.xlu1 %v4830_v1, %s7297_s5  ;;  %7140 = vtanh.f32 %v4815_v14 }
 0x3eb   :  { %v4817_v32 = vadd.f32 %v10313_v15, %v4177_v42  ;;  %7142 = vtanh.f32 %v4818_v56 }
 0x3ec   :  { %5373 = vrot.lane.b32.xlu0 %v4829_v6, %s7297_s5  ;;  %v10381_v23 = vpop.permute.xlu1 %4683 }
 0x3ed   :  { %7144 = vtanh.f32 %v4817_v32 }
 0x3ee   :  { %v10383_v48 = vpop.permute.xlu0 %4681  ;;  %5015 = vrot.lane.b32.xlu1 %v7123_v7, %s7296_s30 }
 0x3f0   :  { %5013 = vrot.lane.b32.xlu0 %v7125_v8, %s7296_s30  ;;  %v10392_v37 = vpop.permute.xlu1 %4687  ;;  %v7129_v8 = vpop.eup %7128 }
 0x3f1   :  { %v7131_v41 = vpop.eup %7130 }
 0x3f2   :  { %v10395_v43 = vpop.permute.xlu0 %4685  ;;  %5347 = vrot.lane.b32.xlu1 %v4816_v19, %s7297_s5 }
 0x3f4   :  { %5345 = vrot.lane.b32.xlu0 %v4815_v14, %s7297_s5  ;;  %v10399_v7 = vpop.permute.xlu1 %4691 }
 0x3f6   :  { %v10401_v63 = vpop.permute.xlu0 %4689  ;;  %5019 = vrot.lane.b32.xlu1 %v7127_v31, %s7296_s30  ;;  %v7133_v31 = vpop.eup %7132 }
 0x3f8   :  { %5017 = vrot.lane.b32.xlu0 %v7129_v8, %s7296_s30  ;;  %v5312_v55 = vpop.permute.xlu1 %5311  ;;  %v12100_v8 = vld [vmem:[#allocation38_spill] sm:$0xff] }
 0x3f9   :  { %5502 = vst.msk [vmem:[%s11439_s6 + $0x8] sm:$0xff] %vm789_vm2, %v5312_v55  ;;  %v4180_v49 = vmul.f32 %v10060_v2, %v12100_v8  ;;  %v7135_v8 = vpop.eup %7134 }
 0x3fa   :  { %v5310_v53 = vpop.permute.xlu0 %5309  ;;  %5351 = vrot.lane.b32.xlu1 %v4818_v56, %s7297_s5  ;;  %v7137_v19 = vpop.eup %7136 }
 0x3fb   :  { %5501 = vst.msk [vmem:[%s11439_s6] sm:$0xff] %vm789_vm2, %v5310_v53  ;;  %v4179_v53 = vmul.f32 %v10064_v13, %v12101_v46  ;;  %v4820_v1 = vadd.f32 %v10317_v12, %v4180_v49  ;;  %v12102_v49 = vld [vmem:[#allocation41_spill] sm:$0xff] }
 0x3fc   :  { %5349 = vrot.lane.b32.xlu0 %v4817_v32, %s7297_s5  ;;  %v10421_v47 = vpop.permute.xlu1 %4695  ;;  %v12103_v13 = vld [vmem:[#allocation81_spill] sm:$0xff] }
 0x3fd   :  { %v4819_v42 = vadd.f32 %v10319_v61, %v4179_v53  ;;  %v7139_v61 = vpop.eup %7138  ;;  %v4182_v53 = vmul.f32 %v10072_v26, %v12102_v49  ;;  %v4181_v2 = vmul.f32 %v10078_v10, %v12103_v13  ;;  %7146 = vtanh.f32 %v4820_v1  ;;  %v12104_v10 = vld [vmem:[#allocation46_spill] sm:$0xff] }
 0x3fe   :  { %v10423_v15 = vpop.permute.xlu0 %4693  ;;  %5023 = vrot.lane.b32.xlu1 %v7131_v41, %s7296_s30 }
 0x3ff   :  { %v4822_v56 = vadd.f32 %v10327_v40, %v4182_v53  ;;  %v4821_v32 = vadd.f32 %v10329_v59, %v4181_v2  ;;  %7148 = vtanh.f32 %v4819_v42  ;;  %v4184_v40 = vmul.f32 %v10083_v54, %v12104_v10  ;;  %v12105_v2 = vld [vmem:[#allocation43_spill] sm:$0xff] }
 0x400   :  { %5021 = vrot.lane.b32.xlu0 %v7133_v31, %s7296_s30  ;;  %v10432_v6 = vpop.permute.xlu1 %4699  ;;  %v7141_v31 = vpop.eup %7140  ;;  %v4183_v59 = vmul.f32 %v10089_v38, %v12105_v2  ;;  %v12106_v38 = vld [vmem:[#allocation84_spill] sm:$0xff] }
 0x401   :  { %v7143_v49 = vpop.eup %7142  ;;  %7150 = vtanh.f32 %v4822_v56 }
 0x402   :  { %v10435_v55 = vpop.permute.xlu0 %4697  ;;  %5355 = vrot.lane.b32.xlu1 %v4820_v1, %s7297_s5  ;;  %v4824_v1 = vadd.f32 %v10333_v21, %v4184_v40  ;;  %7152 = vtanh.f32 %v4821_v32  ;;  %v4186_v21 = vmul.f32 %v10094_v27, %v12106_v38 }
 0x404   :  { %5353 = vrot.lane.b32.xlu0 %v4819_v42, %s7297_s5  ;;  %v10439_v41 = vpop.permute.xlu1 %4703  ;;  %v4823_v42 = vadd.f32 %v10335_v51, %v4183_v59  ;;  %v12107_v51 = vld [vmem:[#allocation88_spill] sm:$0xff]  ;;  %7154 = vtanh.f32 %v4824_v1 }
 0x405   :  { %v4185_v40 = vmul.f32 %v10098_v11, %v12107_v51  ;;  %v12108_v11 = vld [vmem:[#allocation52_spill] sm:$0xff] }
 0x406   :  { %v10441_v46 = vpop.permute.xlu0 %4701  ;;  %5055 = vrot.lane.b32.xlu1 %v7135_v8, %s7296_s30  ;;  %7156 = vtanh.f32 %v4823_v42 }
 0x408   :  { %5053 = vrot.lane.b32.xlu0 %v7137_v19, %s7296_s30  ;;  %v10445_v12 = vpop.permute.xlu1 %4991 }
 0x40a   :  { %v10447_v14 = vpop.permute.xlu0 %4989  ;;  %5027 = vrot.lane.b32.xlu1 %v7139_v61, %s7296_s30 }
 0x40c   :  { %5025 = vrot.lane.b32.xlu0 %v7141_v31, %s7296_s30  ;;  %v10456_v8 = vpop.permute.xlu1 %4707  ;;  %v7145_v31 = vpop.eup %7144 }
 0x40e   :  { %v10459_v19 = vpop.permute.xlu0 %4705  ;;  %5359 = vrot.lane.b32.xlu1 %v4822_v56, %s7297_s5  ;;  %v4826_v56 = vadd.f32 %v10344_v22, %v4186_v21  ;;  %v4188_v22 = vmul.f32 %v10106_v44, %v12108_v11 }
 0x410   :  { %5357 = vrot.lane.b32.xlu0 %v4821_v32, %s7297_s5  ;;  %v10463_v61 = vpop.permute.xlu1 %4711  ;;  %v4825_v32 = vadd.f32 %v10347_v17, %v4185_v40  ;;  %v12109_v17 = vld [vmem:[#allocation103_spill] sm:$0xff]  ;;  %7158 = vtanh.f32 %v4826_v56 }
 0x411   :  { %v4187_v21 = vmul.f32 %v10109_v30, %v12109_v17 }
 0x412   :  { %v10465_v13 = vpop.permute.xlu0 %4709  ;;  %5031 = vrot.lane.b32.xlu1 %v7143_v49, %s7296_s30  ;;  %v7147_v49 = vpop.eup %7146  ;;  %7160 = vtanh.f32 %v4825_v32 }
 0x413   :  { %v4827_v40 = vadd.f32 %v10353_v29, %v4187_v21  ;;  %v12110_v21 = vld [vmem:[#allocation148_spill] sm:$0xff] }
 0x414   :  { %5029 = vrot.lane.b32.xlu0 %v7145_v31, %s7296_s30  ;;  %v10474_v53 = vpop.permute.xlu1 %4715  ;;  %v7149_v31 = vpop.eup %7148 }
 0x416   :  { %v10477_v26 = vpop.permute.xlu0 %4713  ;;  %5363 = vrot.lane.b32.xlu1 %v4824_v1, %s7297_s5  ;;  %v4828_v1 = vadd.f32 %v10351_v20, %v4188_v22 }
 0x418   :  { %5361 = vrot.lane.b32.xlu0 %v4823_v42, %s7297_s5  ;;  %v10481_v10 = vpop.permute.xlu1 %4719  ;;  %7162 = vtanh.f32 %v4828_v1 }
 0x419   :  { %7164 = vtanh.f32 %v4827_v40 }
 0x41a   :  { %v10483_v2 = vpop.permute.xlu0 %4717  ;;  %5035 = vrot.lane.b32.xlu1 %v7147_v49, %s7296_s30  ;;  %v7151_v49 = vpop.eup %7150 }
 0x41c   :  { %5033 = vrot.lane.b32.xlu0 %v7149_v31, %s7296_s30  ;;  %v10492_v59 = vpop.permute.xlu1 %4723  ;;  %v7153_v31 = vpop.eup %7152 }
 0x41d   :  { %v7155_v20 = vpop.eup %7154 }
 0x41e   :  { %v10495_v54 = vpop.permute.xlu0 %4721  ;;  %5367 = vrot.lane.b32.xlu1 %v4826_v56, %s7297_s5  ;;  %v7157_v29 = vpop.eup %7156 }
 0x420   :  { %5365 = vrot.lane.b32.xlu0 %v4825_v32, %s7297_s5  ;;  %v10499_v38 = vpop.permute.xlu1 %4727 }
 0x422   :  { %v10501_v51 = vpop.permute.xlu0 %4725  ;;  %5039 = vrot.lane.b32.xlu1 %v7151_v49, %s7296_s30 }
 0x424   :  { %5037 = vrot.lane.b32.xlu0 %v7153_v31, %s7296_s30  ;;  %v5316_v42 = vpop.permute.xlu1 %5315  ;;  %v7159_v31 = vpop.eup %7158 }
 0x425   :  { %5504 = vst.msk [vmem:[%s11439_s6 + $0x18] sm:$0xff] %vm789_vm2, %v5316_v42  ;;  %v7161_v17 = vpop.eup %7160  ;;  %v4192_v42 = vmul.f32 %v10114_v34, %v12110_v21 }
 0x426   :  { %v5314_v11 = vpop.permute.xlu0 %5313  ;;  %5371 = vrot.lane.b32.xlu1 %v4828_v1, %s7297_s5  ;;  %v12111_v1 = vld [vmem:[#allocation146_spill] sm:$0xff] }
 0x427   :  { %5503 = vst.msk [vmem:[%s11439_s6 + $0x10] sm:$0xff] %vm789_vm2, %v5314_v11  ;;  %v4832_v11 = vadd.f32 %v10362_v16, %v4192_v42  ;;  %v7163_v16 = vpop.eup %7162  ;;  %v12113_v42 = vld [vmem:[#allocation96_spill] sm:$0xff] }
 0x428   :  { %5369 = vrot.lane.b32.xlu0 %v4827_v40, %s7297_s5  ;;  %v10521_v56 = vpop.permute.xlu1 %4731  ;;  %v4191_v40 = vmul.f32 %v10119_v4, %v12111_v1  ;;  %v12114_v1 = vld [vmem:[#allocation83_spill] sm:$0xff] }
 0x429   :  { %7166 = vtanh.f32 %v4832_v11 }
 0x42a   :  { %v10523_v32 = vpop.permute.xlu0 %4729  ;;  %5043 = vrot.lane.b32.xlu1 %v7155_v20, %s7296_s30 }
 0x42c   :  { %5041 = vrot.lane.b32.xlu0 %v7157_v29, %s7296_s30  ;;  %v5320_v49 = vpop.permute.xlu1 %5319  ;;  %v4831_v29 = vadd.f32 %v10365_v57, %v4191_v40  ;;  %v7165_v57 = vpop.eup %7164  ;;  %v4193_v40 = vmul.f32 %v12114_v1, %v12113_v42 }
 0x42d   :  { %5506 = vst.msk [vmem:[%s11439_s6 + $0x28] sm:$0xff] %vm789_vm2, %v5320_v49 }
 0x42e   :  { %v5318_v22 = vpop.permute.xlu0 %5317  ;;  %5047 = vrot.lane.b32.xlu1 %v7159_v31, %s7296_s30  ;;  %7168 = vtanh.f32 %v4831_v29  ;;  %v4833_v4 = vadd.f32 %v10377_v36, %v4193_v40 }
 0x42f   :  { %5505 = vst.msk [vmem:[%s11439_s6 + $0x20] sm:$0xff] %vm789_vm2, %v5318_v22 }
 0x430   :  { %5045 = vrot.lane.b32.xlu0 %v7161_v17, %s7296_s30  ;;  %v5324_v20 = vpop.permute.xlu1 %5323  ;;  %v12112_v17 = vld [vmem:[#allocation92_spill] sm:$0xff] }
 0x431   :  { %5508 = vst.msk [vmem:[%s11439_s6 + $0x38] sm:$0xff] %vm789_vm2, %v5324_v20  ;;  %v4194_v21 = vmul.f32 %v10124_v5, %v12112_v17  ;;  %v12115_v5 = vld [vmem:[#allocation111_spill] sm:$0xff] }
 0x432   :  { %v5322_v49 = vpop.permute.xlu0 %5321  ;;  %5379 = vrot.lane.b32.xlu1 %v4832_v11, %s7297_s5  ;;  %v12118_v11 = vld [vmem:[#allocation90_spill] sm:$0xff] }
 0x433   :  { %5507 = vst.msk [vmem:[%s11439_s6 + $0x30] sm:$0xff] %vm789_vm2, %v5322_v49  ;;  %v4834_v20 = vadd.f32 %v10374_v35, %v4194_v21  ;;  %v12117_v35 = vld [vmem:[#allocation100_spill] sm:$0xff]  ;;  %v7167_v40 = vpop.eup %7166 }
 0x434   :  { %5377 = vrot.lane.b32.xlu0 %v4831_v29, %s7297_s5  ;;  %v10553_v31 = vpop.permute.xlu1 %4995  ;;  %v4195_v29 = vmul.f32 %v12118_v11, %v12117_v35 }
 0x435   :  { %7170 = vtanh.f32 %v4834_v20 }
 0x436   :  { %v10555_v22 = vpop.permute.xlu0 %4993  ;;  %5051 = vrot.lane.b32.xlu1 %v7163_v16, %s7296_s30  ;;  %v12116_v16 = vld [vmem:[#allocation86_spill] sm:$0xff]  ;;  %v4835_v21 = vadd.f32 %v10383_v48, %v4195_v29  ;;  %7172 = vtanh.f32 %v4833_v4 }
 0x437   :  { %v4196_v34 = vmul.f32 %v12116_v16, %v12115_v5 }
 0x438   :  { %5049 = vrot.lane.b32.xlu0 %v7165_v57, %s7296_s30  ;;  %v5328_v49 = vpop.permute.xlu1 %5327 }
 0x439   :  { %5510 = vst.msk [vmem:[%s11439_s6 + $0x48] sm:$0xff] %vm789_vm2, %v5328_v49  ;;  %v4836_v36 = vadd.f32 %v10381_v23, %v4196_v34  ;;  %v7169_v23 = vpop.eup %7168  ;;  %v12119_v49 = vld [vmem:[#allocation104_spill] sm:$0xff] }
 0x43a   :  { %v5326_v17 = vpop.permute.xlu0 %5325  ;;  %5383 = vrot.lane.b32.xlu1 %v4834_v20, %s7297_s5  ;;  %v12122_v20 = vld [vmem:[#allocation101_spill] sm:$0xff] }
 0x43b   :  { %5509 = vst.msk [vmem:[%s11439_s6 + $0x40] sm:$0xff] %vm789_vm2, %v5326_v17  ;;  %v12120_v17 = vld [vmem:[#allocation98_spill] sm:$0xff]  ;;  %7174 = vtanh.f32 %v4836_v36 }
 0x43c   :  { %5381 = vrot.lane.b32.xlu0 %v4833_v4, %s7297_s5  ;;  %v10580_v57 = vpop.permute.xlu1 %4999  ;;  %v4198_v48 = vmul.f32 %v12120_v17, %v12119_v49  ;;  %v12121_v4 = vld [vmem:[#allocation119_spill] sm:$0xff]  ;;  %7176 = vtanh.f32 %v4835_v21 }
 0x43d   :  { %v4197_v35 = vmul.f32 %v12122_v20, %v12121_v4  ;;  %v12123_v49 = vld [vmem:[#allocation47_spill] sm:$0xff] }
 0x43e   :  { %v10583_v42 = vpop.permute.xlu0 %4997  ;;  %5387 = vrot.lane.b32.xlu1 %v4836_v36, %s7297_s5  ;;  %v4838_v29 = vadd.f32 %v10392_v37, %v4198_v48  ;;  %v12124_v48 = vld [vmem:[#allocation94_spill] sm:$0xff]  ;;  %v12125_v36 = vld [vmem:[#allocation49_spill] sm:$0xff] }
 0x43f   :  { %v4837_v11 = vadd.f32 %v10395_v43, %v4197_v35  ;;  %v4200_v43 = vmul.f32 %v12124_v48, %v12123_v49  ;;  %v12127_v49 = vld [vmem:[#allocation108_spill] sm:$0xff] }
 0x440   :  { %5385 = vrot.lane.b32.xlu0 %v4835_v21, %s7297_s5  ;;  %v5332_v5 = vpop.permute.xlu1 %5331  ;;  %v12126_v21 = vld [vmem:[#allocation113_spill] sm:$0xff]  ;;  %7178 = vtanh.f32 %v4838_v29 }
 0x441   :  { %5512 = vst.msk [vmem:[%s11439_s6 + $0x58] sm:$0xff] %vm789_vm2, %v5332_v5  ;;  %v4199_v4 = vmul.f32 %v12126_v21, %v12125_v36  ;;  %v4840_v35 = vadd.f32 %v10399_v7, %v4200_v43  ;;  %7180 = vtanh.f32 %v4837_v11 }
 0x442   :  { %v5330_v34 = vpop.permute.xlu0 %5329  ;;  %5059 = vrot.lane.b32.xlu1 %v7167_v40, %s7296_s30 }
 0x443   :  { %5511 = vst.msk [vmem:[%s11439_s6 + $0x50] sm:$0xff] %vm789_vm2, %v5330_v34  ;;  %v7171_v34 = vpop.eup %7170  ;;  %v4839_v20 = vadd.f32 %v10401_v63, %v4199_v4  ;;  %v4202_v63 = vmul.f32 %v10170_v50, %v12127_v49  ;;  %7182 = vtanh.f32 %v4840_v35  ;;  %v12129_v49 = vld [vmem:[#allocation131_spill] sm:$0xff] }
 0x444   :  { %5057 = vrot.lane.b32.xlu0 %v7169_v23, %s7296_s30  ;;  %v10602_v5 = vpop.permute.xlu1 %5003  ;;  %v7173_v23 = vpop.eup %7172 }
 0x445   :  { %v4842_v43 = vadd.f32 %v10421_v47, %v4202_v63  ;;  %7184 = vtanh.f32 %v4839_v20  ;;  %v12130_v63 = vld [vmem:[#allocation106_spill] sm:$0xff] }
 0x446   :  { %v10605_v16 = vpop.permute.xlu0 %5001  ;;  %5391 = vrot.lane.b32.xlu1 %v4838_v29, %s7297_s5 }
 0x447   :  { %7186 = vtanh.f32 %v4842_v43 }
 0x448   :  { %5389 = vrot.lane.b32.xlu0 %v4837_v11, %s7297_s5  ;;  %v5336_v40 = vpop.permute.xlu1 %5335  ;;  %v12128_v11 = vld [vmem:[#allocation112_spill] sm:$0xff] }
 0x449   :  { %5514 = vst.msk [vmem:[%s11439_s6 + $0x68] sm:$0xff] %vm789_vm2, %v5336_v40  ;;  %v4201_v29 = vmul.f32 %v10176_v62, %v12128_v11 }
 0x44a   :  { %v5334_v37 = vpop.permute.xlu0 %5333  ;;  %5063 = vrot.lane.b32.xlu1 %v7171_v34, %s7296_s30 }
 0x44b   :  { %5513 = vst.msk [vmem:[%s11439_s6 + $0x60] sm:$0xff] %vm789_vm2, %v5334_v37  ;;  %v7175_v37 = vpop.eup %7174  ;;  %v4841_v4 = vadd.f32 %v10423_v15, %v4201_v29  ;;  %v4204_v15 = vmul.f32 %v12130_v63, %v12129_v49 }
 0x44c   :  { %5061 = vrot.lane.b32.xlu0 %v7173_v23, %s7296_s30  ;;  %v10624_v40 = vpop.permute.xlu1 %5007  ;;  %v7177_v23 = vpop.eup %7176 }
 0x44d   :  { %v4844_v11 = vadd.f32 %v10432_v6, %v4204_v15  ;;  %v12133_v15 = vld [vmem:[#allocation121_spill] sm:$0xff]  ;;  %7188 = vtanh.f32 %v4841_v4 }
 0x44e   :  { %v10627_v17 = vpop.permute.xlu0 %5005  ;;  %5395 = vrot.lane.b32.xlu1 %v4840_v35, %s7297_s5 }
 0x44f   :  { %7190 = vtanh.f32 %v4844_v11 }
 0x450   :  { %5393 = vrot.lane.b32.xlu0 %v4839_v20, %s7297_s5  ;;  %v5340_v34 = vpop.permute.xlu1 %5339  ;;  %v12131_v20 = vld [vmem:[#allocation51_spill] sm:$0xff] }
 0x451   :  { %5516 = vst.msk [vmem:[%s11439_s6 + $0x78] sm:$0xff] %vm789_vm2, %v5340_v34  ;;  %v4203_v35 = vmul.f32 %v10187_v60, %v12131_v20 }
 0x452   :  { %v5338_v7 = vpop.permute.xlu0 %5337  ;;  %5067 = vrot.lane.b32.xlu1 %v7175_v37, %s7296_s30 }
 0x453   :  { %5515 = vst.msk [vmem:[%s11439_s6 + $0x70] sm:$0xff] %vm789_vm2, %v5338_v7  ;;  %v7179_v7 = vpop.eup %7178 }
 0x454   :  { %5065 = vrot.lane.b32.xlu0 %v7177_v23, %s7296_s30  ;;  %v10646_v36 = vpop.permute.xlu1 %5011  ;;  %v7181_v23 = vpop.eup %7180 }
 0x455   :  { %v7183_v6 = vpop.eup %7182 }
 0x456   :  { %v10649_v34 = vpop.permute.xlu0 %5009  ;;  %5399 = vrot.lane.b32.xlu1 %v4842_v43, %s7297_s5 }
 0x458   :  { %5397 = vrot.lane.b32.xlu0 %v4841_v4, %s7297_s5  ;;  %v5344_v37 = vpop.permute.xlu1 %5343 }
 0x459   :  { %5518 = vst.msk [vmem:[%s11439_s6 + $0x88] sm:$0xff] %vm789_vm2, %v5344_v37  ;;  %v4843_v37 = vadd.f32 %v10435_v55, %v4203_v35  ;;  %v7185_v55 = vpop.eup %7184  ;;  %v12134_v35 = vld [vmem:[#allocation56_spill] sm:$0xff] }
 0x45a   :  { %v5342_v47 = vpop.permute.xlu0 %5341  ;;  %5071 = vrot.lane.b32.xlu1 %v7179_v7, %s7296_s30 }
 0x45b   :  { %5517 = vst.msk [vmem:[%s11439_s6 + $0x80] sm:$0xff] %vm789_vm2, %v5342_v47  ;;  %7192 = vtanh.f32 %v4843_v37 }
 0x45c   :  { %5069 = vrot.lane.b32.xlu0 %v7181_v23, %s7296_s30  ;;  %v5376_v29 = vpop.permute.xlu1 %5375  ;;  %v12132_v23 = vld [vmem:[#allocation53_spill] sm:$0xff] }
 0x45d   :  { %5534 = vst.msk [vmem:[%s11439_s6 + $0x108] sm:$0xff] %vm789_vm2, %v5376_v29  ;;  %v4206_v20 = vmul.f32 %v12133_v15, %v12132_v23  ;;  %v12135_v29 = vld [vmem:[#allocation117_spill] sm:$0xff] }
 0x45e   :  { %v5374_v49 = vpop.permute.xlu0 %5373  ;;  %5403 = vrot.lane.b32.xlu1 %v4844_v11, %s7297_s5  ;;  %v4205_v60 = vmul.f32 %v12135_v29, %v12134_v35  ;;  %v12138_v35 = vld [vmem:[#allocation54_spill] sm:$0xff]  ;;  %v12139_v11 = vld [vmem:[#allocation116_spill] sm:$0xff] }
 0x45f   :  { %5533 = vst.msk [vmem:[%s11439_s6 + $0x100] sm:$0xff] %vm789_vm2, %v5374_v49  ;;  %v4846_v49 = vadd.f32 %v10439_v41, %v4206_v20  ;;  %v12136_v41 = vld [vmem:[#allocation149_spill] sm:$0xff] }
 0x460   :  { %5401 = vrot.lane.b32.xlu0 %v4843_v37, %s7297_s5  ;;  %v10679_v7 = vpop.permute.xlu1 %5015  ;;  %v4845_v62 = vadd.f32 %v10441_v46, %v4205_v60  ;;  %v5182_v43 = vmul.f32 %v12136_v41, %v10445_v12  ;;  %v12137_v60 = vld [vmem:[#allocation15_spill] sm:$0xff]  ;;  %v4207_v37 = vmul.f32 %v10208_v33, %v12139_v11 }
 0x461   :  { %v5181_v46 = vmul.f32 %v12137_v60, %v10447_v14  ;;  %v4208_v14 = vmul.f32 %v10205_v52, %v12138_v35  ;;  %7194 = vtanh.f32 %v4846_v49 }
 0x462   :  { %v10681_v47 = vpop.permute.xlu0 %5013  ;;  %5075 = vrot.lane.b32.xlu1 %v7183_v6, %s7296_s30  ;;  %7196 = vtanh.f32 %v4845_v62 }
 0x464   :  { %5073 = vrot.lane.b32.xlu0 %v7185_v55, %s7296_s30  ;;  %v5348_v63 = vpop.permute.xlu1 %5347  ;;  %v7187_v55 = vpop.eup %7186 }
 0x465   :  { %5520 = vst.msk [vmem:[%s11439_s6 + $0x98] sm:$0xff] %vm789_vm2, %v5348_v63  ;;  %v7189_v20 = vpop.eup %7188 }
 0x466   :  { %v5346_v23 = vpop.permute.xlu0 %5345  ;;  %5407 = vrot.lane.b32.xlu1 %v4846_v49, %s7297_s5 }
 0x467   :  { %5519 = vst.msk [vmem:[%s11439_s6 + $0x90] sm:$0xff] %vm789_vm2, %v5346_v23  ;;  %v4848_v23 = vadd.f32 %v10456_v8, %v4208_v14 }
 0x468   :  { %5405 = vrot.lane.b32.xlu0 %v4845_v62, %s7297_s5  ;;  %v10703_v4 = vpop.permute.xlu1 %5019  ;;  %v12142_v62 = vld [vmem:[#allocation139_spill] sm:$0xff] }
 0x469   :  { %v4209_v49 = vmul.f32 %v10217_v58, %v12142_v62  ;;  %7198 = vtanh.f32 %v4848_v23  ;;  %v12146_v62 = vld [vmem:[#allocation133_spill] sm:$0xff] }
 0x46a   :  { %v10707_v6 = vpop.permute.xlu0 %5017  ;;  %5631 = vrot.lane.b32.xlu1 %v5182_v43, %s7297_s5  ;;  %v4847_v43 = vadd.f32 %v10459_v19, %v4207_v37 }
 0x46b   :  { %v4849_v11 = vadd.f32 %v10465_v13, %v4209_v49  ;;  %v12145_v13 = vld [vmem:[#allocation58_spill] sm:$0xff] }
 0x46c   :  { %5629 = vrot.lane.b32.xlu0 %v5181_v46, %s7297_s5  ;;  %v5352_v63 = vpop.permute.xlu1 %5351  ;;  %7200 = vtanh.f32 %v4847_v43  ;;  %v4211_v49 = vmul.f32 %v12146_v62, %v12145_v13  ;;  %v12149_v13 = vld [vmem:[#allocation114_spill] sm:$0xff] }
 0x46d   :  { %5522 = vst.msk [vmem:[%s11439_s6 + $0xa8] sm:$0xff] %vm789_vm2, %v5352_v63  ;;  %v7191_v63 = vpop.eup %7190 }
 0x46e   :  { %v5350_v12 = vpop.permute.xlu0 %5349  ;;  %5079 = vrot.lane.b32.xlu1 %v7187_v55, %s7296_s30  ;;  %v7193_v55 = vpop.eup %7192 }
 0x46f   :  { %5521 = vst.msk [vmem:[%s11439_s6 + $0xa0] sm:$0xff] %vm789_vm2, %v5350_v12  ;;  %v12140_v12 = vld [vmem:[#allocation120_spill] sm:$0xff] }
 0x470   :  { %5077 = vrot.lane.b32.xlu0 %v7189_v20, %s7296_s30  ;;  %v10726_v41 = vpop.permute.xlu1 %5023  ;;  %v12141_v20 = vld [vmem:[#allocation129_spill] sm:$0xff] }
 0x471   :  { %v4210_v19 = vmul.f32 %v12141_v20, %v12140_v12  ;;  %v12143_v12 = vld [vmem:[#allocation59_spill] sm:$0xff] }
 0x472   :  { %v10729_v60 = vpop.permute.xlu0 %5021  ;;  %5411 = vrot.lane.b32.xlu1 %v4848_v23, %s7297_s5 }
 0x473   :  { %v4850_v35 = vadd.f32 %v10463_v61, %v4210_v19  ;;  %v12144_v61 = vld [vmem:[#allocation137_spill] sm:$0xff] }
 0x474   :  { %5409 = vrot.lane.b32.xlu0 %v4847_v43, %s7297_s5  ;;  %v5356_v46 = vpop.permute.xlu1 %5355  ;;  %v4212_v19 = vmul.f32 %v12144_v61, %v12143_v12  ;;  %v4851_v43 = vadd.f32 %v10477_v26, %v4211_v49  ;;  %v12147_v12 = vld [vmem:[#allocation61_spill] sm:$0xff] }
 0x475   :  { %5524 = vst.msk [vmem:[%s11439_s6 + $0xb8] sm:$0xff] %vm789_vm2, %v5356_v46  ;;  %7202 = vtanh.f32 %v4850_v35 }
 0x476   :  { %v5354_v8 = vpop.permute.xlu0 %5353  ;;  %5083 = vrot.lane.b32.xlu1 %v7191_v63, %s7296_s30  ;;  %v7195_v63 = vpop.eup %7194  ;;  %v4852_v23 = vadd.f32 %v10474_v53, %v4212_v19  ;;  %7204 = vtanh.f32 %v4849_v11  ;;  %v12148_v19 = vld [vmem:[#allocation124_spill] sm:$0xff] }
 0x477   :  { %5523 = vst.msk [vmem:[%s11439_s6 + $0xb0] sm:$0xff] %vm789_vm2, %v5354_v8 }
 0x478   :  { %5081 = vrot.lane.b32.xlu0 %v7193_v55, %s7296_s30  ;;  %v10748_v14 = vpop.permute.xlu1 %5055  ;;  %v7197_v55 = vpop.eup %7196  ;;  %7206 = vtanh.f32 %v4852_v23 }
 0x479   :  { %v7199_v26 = vpop.eup %7198  ;;  %7208 = vtanh.f32 %v4851_v43 }
 0x47a   :  { %v10751_v37 = vpop.permute.xlu0 %5053  ;;  %5415 = vrot.lane.b32.xlu1 %v4850_v35, %s7297_s5 }
 0x47c   :  { %5413 = vrot.lane.b32.xlu0 %v4849_v11, %s7297_s5  ;;  %v10755_v46 = vpop.permute.xlu1 %5027 }
 0x47e   :  { %v10757_v8 = vpop.permute.xlu0 %5025  ;;  %5087 = vrot.lane.b32.xlu1 %v7195_v63, %s7296_s30 }
 0x480   :  { %5085 = vrot.lane.b32.xlu0 %v7197_v55, %s7296_s30  ;;  %v5360_v58 = vpop.permute.xlu1 %5359  ;;  %v7201_v55 = vpop.eup %7200 }
 0x481   :  { %5526 = vst.msk [vmem:[%s11439_s6 + $0xc8] sm:$0xff] %vm789_vm2, %v5360_v58  ;;  %v4214_v58 = vmul.f32 %v10230_v0, %v12147_v12  ;;  %v12150_v12 = vld [vmem:[#allocation128_spill] sm:$0xff] }
 0x482   :  { %v5358_v20 = vpop.permute.xlu0 %5357  ;;  %5419 = vrot.lane.b32.xlu1 %v4852_v23, %s7297_s5 }
 0x483   :  { %5525 = vst.msk [vmem:[%s11439_s6 + $0xc0] sm:$0xff] %vm789_vm2, %v5358_v20  ;;  %v4213_v20 = vmul.f32 %v12149_v13, %v12148_v19  ;;  %v4854_v35 = vadd.f32 %v10481_v10, %v4214_v58  ;;  %v12151_v58 = vld [vmem:[#allocation122_spill] sm:$0xff] }
 0x484   :  { %5417 = vrot.lane.b32.xlu0 %v4851_v43, %s7297_s5  ;;  %v10777_v53 = vpop.permute.xlu1 %5031  ;;  %v4216_v19 = vmul.f32 %v12151_v58, %v12150_v12  ;;  %v12154_v12 = vld [vmem:[#allocation60_spill] sm:$0xff] }
 0x485   :  { %v4853_v11 = vadd.f32 %v10483_v2, %v4213_v20  ;;  %v7203_v2 = vpop.eup %7202  ;;  %v12152_v20 = vld [vmem:[#allocation127_spill] sm:$0xff]  ;;  %7210 = vtanh.f32 %v4854_v35 }
 0x486   :  { %v10779_v63 = vpop.permute.xlu0 %5029  ;;  %5091 = vrot.lane.b32.xlu1 %v7199_v26, %s7296_s30  ;;  %v4856_v23 = vadd.f32 %v10492_v59, %v4216_v19  ;;  %v12155_v19 = vld [vmem:[#allocation135_spill] sm:$0xff] }
 0x487   :  { %7212 = vtanh.f32 %v4853_v11 }
 0x488   :  { %5089 = vrot.lane.b32.xlu0 %v7201_v55, %s7296_s30  ;;  %v5364_v49 = vpop.permute.xlu1 %5363  ;;  %v7205_v55 = vpop.eup %7204  ;;  %7214 = vtanh.f32 %v4856_v23 }
 0x489   :  { %5528 = vst.msk [vmem:[%s11439_s6 + $0xd8] sm:$0xff] %vm789_vm2, %v5364_v49  ;;  %v12153_v49 = vld [vmem:[#allocation144_spill] sm:$0xff] }
 0x48a   :  { %v5362_v62 = vpop.permute.xlu0 %5361  ;;  %5423 = vrot.lane.b32.xlu1 %v4854_v35, %s7297_s5 }
 0x48b   :  { %5527 = vst.msk [vmem:[%s11439_s6 + $0xd0] sm:$0xff] %vm789_vm2, %v5362_v62  ;;  %v4215_v62 = vmul.f32 %v12153_v49, %v12152_v20  ;;  %v12156_v20 = vld [vmem:[#allocation118_spill] sm:$0xff] }
 0x48c   :  { %5421 = vrot.lane.b32.xlu0 %v4853_v11, %s7297_s5  ;;  %v10799_v10 = vpop.permute.xlu1 %5035 }
 0x48d   :  { %v4855_v43 = vadd.f32 %v10495_v54, %v4215_v62  ;;  %v7207_v54 = vpop.eup %7206 }
 0x48e   :  { %v10801_v26 = vpop.permute.xlu0 %5033  ;;  %5095 = vrot.lane.b32.xlu1 %v7203_v2, %s7296_s30 }
 0x48f   :  { %7216 = vtanh.f32 %v4855_v43 }
 0x490   :  { %5093 = vrot.lane.b32.xlu0 %v7205_v55, %s7296_s30  ;;  %v5368_v13 = vpop.permute.xlu1 %5367  ;;  %v7209_v55 = vpop.eup %7208 }
 0x491   :  { %5530 = vst.msk [vmem:[%s11439_s6 + $0xe8] sm:$0xff] %vm789_vm2, %v5368_v13  ;;  %v4218_v13 = vmul.f32 %v10246_v24, %v12154_v12  ;;  %v12157_v12 = vld [vmem:[#allocation55_spill] sm:$0xff] }
 0x492   :  { %v5366_v0 = vpop.permute.xlu0 %5365  ;;  %5427 = vrot.lane.b32.xlu1 %v4856_v23, %s7297_s5 }
 0x493   :  { %5529 = vst.msk [vmem:[%s11439_s6 + $0xe0] sm:$0xff] %vm789_vm2, %v5366_v0  ;;  %v4217_v0 = vmul.f32 %v12156_v20, %v12155_v19  ;;  %v4858_v35 = vadd.f32 %v10499_v38, %v4218_v13  ;;  %v12158_v13 = vld [vmem:[#allocation130_spill] sm:$0xff] }
 0x494   :  { %5425 = vrot.lane.b32.xlu0 %v4855_v43, %s7297_s5  ;;  %v10821_v59 = vpop.permute.xlu1 %5039  ;;  %v4220_v19 = vmul.f32 %v12158_v13, %v12157_v12 }
 0x495   :  { %v4857_v11 = vadd.f32 %v10501_v51, %v4217_v0  ;;  %v7211_v51 = vpop.eup %7210  ;;  %7218 = vtanh.f32 %v4858_v35  ;;  %v12159_v0 = vld [vmem:[#allocation57_spill] sm:$0xff] }
 0x496   :  { %v10823_v2 = vpop.permute.xlu0 %5037  ;;  %5099 = vrot.lane.b32.xlu1 %v7207_v54, %s7296_s30  ;;  %v4860_v23 = vadd.f32 %v10521_v56, %v4220_v19 }
 0x497   :  { %7220 = vtanh.f32 %v4857_v11 }
 0x498   :  { %5097 = vrot.lane.b32.xlu0 %v7209_v55, %s7296_s30  ;;  %v5372_v62 = vpop.permute.xlu1 %5371  ;;  %v7213_v55 = vpop.eup %7212  ;;  %7222 = vtanh.f32 %v4860_v23 }
 0x499   :  { %5532 = vst.msk [vmem:[%s11439_s6 + $0xf8] sm:$0xff] %vm789_vm2, %v5372_v62 }
 0x49a   :  { %v5370_v49 = vpop.permute.xlu0 %5369  ;;  %5431 = vrot.lane.b32.xlu1 %v4858_v35, %s7297_s5  ;;  %v7215_v35 = vpop.eup %7214 }
 0x49b   :  { %5531 = vst.msk [vmem:[%s11439_s6 + $0xf0] sm:$0xff] %vm789_vm2, %v5370_v49  ;;  %v12160_v49 = vld [vmem:[#allocation138_spill] sm:$0xff] }
 0x49c   :  { %5429 = vrot.lane.b32.xlu0 %v4857_v11, %s7297_s5  ;;  %v10843_v38 = vpop.permute.xlu1 %5043  ;;  %v4219_v62 = vmul.f32 %v12160_v49, %v12159_v0  ;;  %v12161_v0 = vld [vmem:[#allocation151_spill] sm:$0xff] }
 0x49e   :  { %v10845_v54 = vpop.permute.xlu0 %5041  ;;  %5103 = vrot.lane.b32.xlu1 %v7211_v51, %s7296_s30  ;;  %v4859_v20 = vadd.f32 %v10523_v32, %v4219_v62  ;;  %v5184_v62 = vmul.f32 %v12161_v0, %v10553_v31  ;;  %v5185_v0 = vmul.f32 %v9918_v45, %v10583_v42  ;;  %v12165_v45 = vld [vmem:[#allocation16_spill] sm:$0xff] }
 0x4a0   :  { %5101 = vrot.lane.b32.xlu0 %v7213_v55, %s7296_s30  ;;  %v10854_v43 = vpop.permute.xlu1 %5047  ;;  %v7217_v55 = vpop.eup %7216  ;;  %7224 = vtanh.f32 %v4859_v20 }
 0x4a1   :  { %v7219_v32 = vpop.eup %7218 }
 0x4a2   :  { %v10857_v24 = vpop.permute.xlu0 %5045  ;;  %5435 = vrot.lane.b32.xlu1 %v4860_v23, %s7297_s5  ;;  %v7221_v19 = vpop.eup %7220 }
 0x4a4   :  { %5433 = vrot.lane.b32.xlu0 %v4859_v20, %s7297_s5  ;;  %v5380_v51 = vpop.permute.xlu1 %5379 }
 0x4a5   :  { %5536 = vst.msk [vmem:[%s11439_s6 + $0x118] sm:$0xff] %vm789_vm2, %v5380_v51 }
 0x4a6   :  { %v5378_v11 = vpop.permute.xlu0 %5377  ;;  %5107 = vrot.lane.b32.xlu1 %v7215_v35, %s7296_s30  ;;  %v12162_v35 = vld [vmem:[#allocation68_spill] sm:$0xff] }
 0x4a7   :  { %5535 = vst.msk [vmem:[%s11439_s6 + $0x110] sm:$0xff] %vm789_vm2, %v5378_v11  ;;  %v5183_v23 = vmul.f32 %v12162_v35, %v10555_v22  ;;  %v7223_v11 = vpop.eup %7222 }
 0x4a8   :  { %5105 = vrot.lane.b32.xlu0 %v7217_v55, %s7296_s30  ;;  %v10871_v56 = vpop.permute.xlu1 %5051 }
 0x4aa   :  { %v10873_v12 = vpop.permute.xlu0 %5049  ;;  %5111 = vrot.lane.b32.xlu1 %v7219_v32, %s7296_s30  ;;  %v7225_v55 = vpop.eup %7224  ;;  %v5186_v32 = vmul.f32 %v9913_v25, %v10580_v57  ;;  %v5190_v57 = vmul.f32 %v12165_v45, %v10624_v40 }
 0x4ac   :  { %5109 = vrot.lane.b32.xlu0 %v7221_v19, %s7296_s30  ;;  %v5384_v51 = vpop.permute.xlu1 %5383 }
 0x4ad   :  { %5538 = vst.msk [vmem:[%s11439_s6 + $0x128] sm:$0xff] %vm789_vm2, %v5384_v51  ;;  %v12163_v51 = vld [vmem:[#allocation65_spill] sm:$0xff] }
 0x4ae   :  { %v5382_v20 = vpop.permute.xlu0 %5381  ;;  %5635 = vrot.lane.b32.xlu1 %v5184_v62, %s7297_s5  ;;  %v5188_v35 = vmul.f32 %v12163_v51, %v10602_v5 }
 0x4af   :  { %5537 = vst.msk [vmem:[%s11439_s6 + $0x120] sm:$0xff] %vm789_vm2, %v5382_v20  ;;  %v12164_v20 = vld [vmem:[#allocation75_spill] sm:$0xff] }
 0x4b0   :  { %5633 = vrot.lane.b32.xlu0 %v5183_v23, %s7297_s5  ;;  %v5388_v31 = vpop.permute.xlu1 %5387 }
 0x4b1   :  { %5540 = vst.msk [vmem:[%s11439_s6 + $0x138] sm:$0xff] %vm789_vm2, %v5388_v31  ;;  %v5187_v31 = vmul.f32 %v12164_v20, %v10605_v16  ;;  %v12166_v16 = vld [vmem:[#allocation150_spill] sm:$0xff] }
 0x4b2   :  { %v5386_v22 = vpop.permute.xlu0 %5385  ;;  %5115 = vrot.lane.b32.xlu1 %v7223_v11, %s7296_s30  ;;  %v5189_v5 = vmul.f32 %v12166_v16, %v10627_v17  ;;  %v12169_v17 = vld [vmem:[#allocation30_spill] sm:$0xff] }
 0x4b3   :  { %5539 = vst.msk [vmem:[%s11439_s6 + $0x130] sm:$0xff] %vm789_vm2, %v5386_v22  ;;  %v12167_v22 = vld [vmem:[#allocation152_spill] sm:$0xff] }
 0x4b4   :  { %5113 = vrot.lane.b32.xlu0 %v7225_v55, %s7296_s30  ;;  %v10903_v19 = vpop.permute.xlu1 %5059  ;;  %v5192_v55 = vmul.f32 %v12167_v22, %v10646_v36  ;;  %v5194_v36 = vmul.f32 %v12169_v17, %v10679_v7  ;;  %v5214_v22 = vmul.f32 %v10029_v9, %v10748_v14  ;;  %v5201_v17 = vmul.f32 %v10056_v18, %v10779_v63 }
 0x4b6   :  { %v10907_v62 = vpop.permute.xlu0 %5057  ;;  %5639 = vrot.lane.b32.xlu1 %v5186_v32, %s7297_s5 }
 0x4b8   :  { %5637 = vrot.lane.b32.xlu0 %v5185_v0, %s7297_s5  ;;  %v5392_v23 = vpop.permute.xlu1 %5391  ;;  %v12168_v0 = vld [vmem:[#allocation27_spill] sm:$0xff] }
 0x4b9   :  { %5542 = vst.msk [vmem:[%s11439_s6 + $0x148] sm:$0xff] %vm789_vm2, %v5392_v23  ;;  %v5191_v51 = vmul.f32 %v12168_v0, %v10649_v34  ;;  %v12170_v34 = vld [vmem:[#allocation71_spill] sm:$0xff] }
 0x4ba   :  { %v5390_v25 = vpop.permute.xlu0 %5389  ;;  %5643 = vrot.lane.b32.xlu1 %v5188_v35, %s7297_s5  ;;  %v5193_v23 = vmul.f32 %v12170_v34, %v10681_v47  ;;  %v5198_v47 = vmul.f32 %v10012_v39, %v10726_v41 }
 0x4bb   :  { %5541 = vst.msk [vmem:[%s11439_s6 + $0x140] sm:$0xff] %vm789_vm2, %v5390_v25 }
 0x4bc   :  { %5641 = vrot.lane.b32.xlu0 %v5187_v31, %s7297_s5  ;;  %v10927_v42 = vpop.permute.xlu1 %5063  ;;  %v12171_v31 = vld [vmem:[#allocation9_spill] sm:$0xff] }
 0x4bd   :  { %v5196_v25 = vmul.f32 %v12171_v31, %v10703_v4 }
 0x4be   :  { %v10931_v11 = vpop.permute.xlu0 %5061  ;;  %5647 = vrot.lane.b32.xlu1 %v5190_v57, %s7297_s5  ;;  %v12172_v57 = vld [vmem:[#allocation13_spill] sm:$0xff] }
 0x4bf   :  { %v5195_v16 = vmul.f32 %v12172_v57, %v10707_v6  ;;  %v5197_v6 = vmul.f32 %v10016_v3, %v10729_v60  ;;  %v12174_v3 = vld [vmem:[#allocation69_spill] sm:$0xff]  ;;  %v12175_v60 = vld [vmem:[#allocation82_spill] sm:$0xff] }
 0x4c0   :  { %5645 = vrot.lane.b32.xlu0 %v5189_v5, %s7297_s5  ;;  %v5396_v32 = vpop.permute.xlu1 %5395  ;;  %v5200_v9 = vmul.f32 %v12174_v3, %v10755_v46  ;;  %v5199_v14 = vmul.f32 %v12175_v60, %v10757_v8  ;;  %v5217_v60 = vmul.f32 %v12114_v1, %v10931_v11  ;;  %v12187_v1 = vld [vmem:[#allocation90_spill] sm:$0xff] }
 0x4c1   :  { %5544 = vst.msk [vmem:[%s11439_s6 + $0x158] sm:$0xff] %vm789_vm2, %v5396_v32  ;;  %v12173_v32 = vld [vmem:[#allocation66_spill] sm:$0xff] }
 0x4c2   :  { %v5394_v40 = vpop.permute.xlu0 %5393  ;;  %5651 = vrot.lane.b32.xlu1 %v5192_v55, %s7297_s5  ;;  %v5213_v0 = vmul.f32 %v12173_v32, %v10751_v37 }
 0x4c3   :  { %5543 = vst.msk [vmem:[%s11439_s6 + $0x150] sm:$0xff] %vm789_vm2, %v5394_v40 }
 0x4c4   :  { %5649 = vrot.lane.b32.xlu0 %v5191_v51, %s7297_s5  ;;  %v10951_v35 = vpop.permute.xlu1 %5067  ;;  %v5202_v51 = vmul.f32 %v10047_v28, %v10777_v53  ;;  %v12176_v28 = vld [vmem:[#allocation78_spill] sm:$0xff]  ;;  %v12177_v53 = vld [vmem:[#allocation89_spill] sm:$0xff] }
 0x4c5   :  { %v5204_v8 = vmul.f32 %v12176_v28, %v10799_v10  ;;  %v5203_v63 = vmul.f32 %v12177_v53, %v10801_v26  ;;  %v12178_v10 = vld [vmem:[#allocation85_spill] sm:$0xff] }
 0x4c6   :  { %v10955_v20 = vpop.permute.xlu0 %5065  ;;  %5655 = vrot.lane.b32.xlu1 %v5194_v36, %s7297_s5  ;;  %v5206_v34 = vmul.f32 %v12178_v10, %v10821_v59  ;;  %v12179_v26 = vld [vmem:[#allocation97_spill] sm:$0xff] }
 0x4c7   :  { %v5205_v31 = vmul.f32 %v12179_v26, %v10823_v2  ;;  %v5210_v2 = vmul.f32 %v10094_v27, %v10854_v43  ;;  %v5219_v11 = vmul.f32 %v12187_v1, %v10955_v20  ;;  %v12189_v28 = vld [vmem:[#allocation101_spill] sm:$0xff] }
 0x4c8   :  { %5653 = vrot.lane.b32.xlu0 %v5193_v23, %s7297_s5  ;;  %v5400_v45 = vpop.permute.xlu1 %5399 }
 0x4c9   :  { %5546 = vst.msk [vmem:[%s11439_s6 + $0x168] sm:$0xff] %vm789_vm2, %v5400_v45  ;;  %v12180_v45 = vld [vmem:[#allocation19_spill] sm:$0xff] }
 0x4ca   :  { %v5398_v7 = vpop.permute.xlu0 %5397  ;;  %5659 = vrot.lane.b32.xlu1 %v5196_v25, %s7297_s5  ;;  %v5208_v57 = vmul.f32 %v12180_v45, %v10843_v38 }
 0x4cb   :  { %5545 = vst.msk [vmem:[%s11439_s6 + $0x160] sm:$0xff] %vm789_vm2, %v5398_v7  ;;  %v12181_v7 = vld [vmem:[#allocation93_spill] sm:$0xff] }
 0x4cc   :  { %5657 = vrot.lane.b32.xlu0 %v5195_v16, %s7297_s5  ;;  %v10975_v4 = vpop.permute.xlu1 %5071 }
 0x4ce   :  { %v10979_v5 = vpop.permute.xlu0 %5069  ;;  %5663 = vrot.lane.b32.xlu1 %v5198_v47, %s7297_s5  ;;  %v5207_v47 = vmul.f32 %v12181_v7, %v10845_v54  ;;  %v12182_v54 = vld [vmem:[#allocation105_spill] sm:$0xff] }
 0x4cf   :  { %v12193_v7 = vld [vmem:[#allocation129_spill] sm:$0xff] }
 0x4d0   :  { %5661 = vrot.lane.b32.xlu0 %v5197_v6, %s7297_s5  ;;  %v5404_v55 = vpop.permute.xlu1 %5403  ;;  %v5209_v6 = vmul.f32 %v12182_v54, %v10857_v24 }
 0x4d1   :  { %5548 = vst.msk [vmem:[%s11439_s6 + $0x178] sm:$0xff] %vm789_vm2, %v5404_v55  ;;  %v5212_v55 = vmul.f32 %v10106_v44, %v10871_v56  ;;  %v12183_v44 = vld [vmem:[#allocation72_spill] sm:$0xff] }
 0x4d2   :  { %v5402_v39 = vpop.permute.xlu0 %5401  ;;  %5695 = vrot.lane.b32.xlu1 %v5214_v22, %s7297_s5  ;;  %v5216_v24 = vmul.f32 %v12183_v44, %v10903_v19  ;;  %v12197_v44 = vld [vmem:[#allocation114_spill] sm:$0xff] }
 0x4d3   :  { %5547 = vst.msk [vmem:[%s11439_s6 + $0x170] sm:$0xff] %vm789_vm2, %v5402_v39  ;;  %v12185_v39 = vld [vmem:[#allocation79_spill] sm:$0xff] }
 0x4d4   :  { %5693 = vrot.lane.b32.xlu0 %v5213_v0, %s7297_s5  ;;  %v10999_v41 = vpop.permute.xlu1 %5075  ;;  %v5211_v0 = vmul.f32 %v10109_v30, %v10873_v12  ;;  %v12184_v30 = vld [vmem:[#allocation76_spill] sm:$0xff]  ;;  %v5218_v3 = vmul.f32 %v12185_v39, %v10927_v42 }
 0x4d5   :  { %v5215_v56 = vmul.f32 %v12184_v30, %v10907_v62  ;;  %v12186_v62 = vld [vmem:[#allocation86_spill] sm:$0xff]  ;;  %v5224_v20 = vmul.f32 %v12124_v48, %v10999_v41 }
 0x4d6   :  { %v11003_v37 = vpop.permute.xlu0 %5073  ;;  %5667 = vrot.lane.b32.xlu1 %v5200_v9, %s7297_s5  ;;  %v5220_v42 = vmul.f32 %v12186_v62, %v10951_v35 }
 0x4d8   :  { %5665 = vrot.lane.b32.xlu0 %v5199_v14, %s7297_s5  ;;  %v5408_v40 = vpop.permute.xlu1 %5407 }
 0x4d9   :  { %5550 = vst.msk [vmem:[%s11439_s6 + $0x188] sm:$0xff] %vm789_vm2, %v5408_v40  ;;  %v12188_v40 = vld [vmem:[#allocation98_spill] sm:$0xff] }
 0x4da   :  { %v5406_v46 = vpop.permute.xlu0 %5405  ;;  %5671 = vrot.lane.b32.xlu1 %v5202_v51, %s7297_s5 }
 0x4db   :  { %5549 = vst.msk [vmem:[%s11439_s6 + $0x180] sm:$0xff] %vm789_vm2, %v5406_v46 }
 0x4dc   :  { %5669 = vrot.lane.b32.xlu0 %v5201_v17, %s7297_s5  ;;  %v5632_v18 = vpop.permute.xlu1 %5631  ;;  %v5222_v17 = vmul.f32 %v12188_v40, %v10975_v4 }
 0x4dd   :  { %5823 = vst.msk [vmem:[%s11439_s6 + $0x8] sm:$0xff] %vm5821_vm4, %v5632_v18 }
 0x4de   :  { %v5630_v36 = vpop.permute.xlu0 %5629  ;;  %5675 = vrot.lane.b32.xlu1 %v5204_v8, %s7297_s5  ;;  %v5221_v8 = vmul.f32 %v12189_v28, %v10979_v5  ;;  %v5223_v5 = vmul.f32 %v12126_v21, %v11003_v37  ;;  %v12191_v21 = vld [vmem:[#allocation106_spill] sm:$0xff]  ;;  %v12192_v37 = vld [vmem:[#allocation109_spill] sm:$0xff] }
 0x4df   :  { %5822 = vst.msk [vmem:[%s11439_s6] sm:$0xff] %vm5821_vm4, %v5630_v36  ;;  %v12190_v36 = vld [vmem:[#allocation102_spill] sm:$0xff] }
 0x4e0   :  { %5673 = vrot.lane.b32.xlu0 %v5203_v63, %s7297_s5  ;;  %v5080_v23 = vpop.permute.xlu1 %5079 }
 0x4e1   :  { %v5226_v53 = vmul.f32 %v10170_v50, %v5080_v23 }
 0x4e2   :  { %v5078_v25 = vpop.permute.xlu0 %5077  ;;  %5679 = vrot.lane.b32.xlu1 %v5206_v34, %s7297_s5 }
 0x4e3   :  { %v5225_v10 = vmul.f32 %v12190_v36, %v5078_v25 }
 0x4e4   :  { %5677 = vrot.lane.b32.xlu0 %v5205_v31, %s7297_s5  ;;  %v5412_v16 = vpop.permute.xlu1 %5411 }
 0x4e5   :  { %5552 = vst.msk [vmem:[%s11439_s6 + $0x198] sm:$0xff] %vm789_vm2, %v5412_v16 }
 0x4e6   :  { %v5410_v59 = vpop.permute.xlu0 %5409  ;;  %5683 = vrot.lane.b32.xlu1 %v5208_v57, %s7297_s5 }
 0x4e7   :  { %5551 = vst.msk [vmem:[%s11439_s6 + $0x190] sm:$0xff] %vm789_vm2, %v5410_v59 }
 0x4e8   :  { %5681 = vrot.lane.b32.xlu0 %v5207_v47, %s7297_s5  ;;  %v5084_v38 = vpop.permute.xlu1 %5083 }
 0x4e9   :  { %v5228_v50 = vmul.f32 %v12191_v21, %v5084_v38 }
 0x4ea   :  { %v5082_v22 = vpop.permute.xlu0 %5081  ;;  %5687 = vrot.lane.b32.xlu1 %v5210_v2, %s7297_s5  ;;  %v12194_v2 = vld [vmem:[#allocation125_spill] sm:$0xff] }
 0x4eb   :  { %v5227_v34 = vmul.f32 %v12192_v37, %v5082_v22 }
 0x4ec   :  { %5685 = vrot.lane.b32.xlu0 %v5209_v6, %s7297_s5  ;;  %v5416_v32 = vpop.permute.xlu1 %5415  ;;  %v12195_v6 = vld [vmem:[#allocation133_spill] sm:$0xff] }
 0x4ed   :  { %5554 = vst.msk [vmem:[%s11439_s6 + $0x1a8] sm:$0xff] %vm789_vm2, %v5416_v32  ;;  %v12196_v32 = vld [vmem:[#allocation110_spill] sm:$0xff] }
 0x4ee   :  { %v5414_v27 = vpop.permute.xlu0 %5413  ;;  %5691 = vrot.lane.b32.xlu1 %v5212_v55, %s7297_s5 }
 0x4ef   :  { %5553 = vst.msk [vmem:[%s11439_s6 + $0x1a0] sm:$0xff] %vm789_vm2, %v5414_v27 }
 0x4f0   :  { %5689 = vrot.lane.b32.xlu0 %v5211_v0, %s7297_s5  ;;  %v5088_v43 = vpop.permute.xlu1 %5087 }
 0x4f1   :  { %v5230_v26 = vmul.f32 %v12133_v15, %v5088_v43 }
 0x4f2   :  { %v5086_v12 = vpop.permute.xlu0 %5085  ;;  %5699 = vrot.lane.b32.xlu1 %v5216_v24, %s7297_s5 }
 0x4f3   :  { %v5229_v25 = vmul.f32 %v12135_v29, %v5086_v12 }
 0x4f4   :  { %5697 = vrot.lane.b32.xlu0 %v5215_v56, %s7297_s5  ;;  %v5420_v9 = vpop.permute.xlu1 %5419  ;;  %v12198_v56 = vld [vmem:[#allocation144_spill] sm:$0xff] }
 0x4f5   :  { %5556 = vst.msk [vmem:[%s11439_s6 + $0x1b8] sm:$0xff] %vm789_vm2, %v5420_v9 }
 0x4f6   :  { %v5418_v19 = vpop.permute.xlu0 %5417  ;;  %5703 = vrot.lane.b32.xlu1 %v5218_v3, %s7297_s5  ;;  %v12199_v3 = vld [vmem:[#allocation141_spill] sm:$0xff] }
 0x4f7   :  { %5555 = vst.msk [vmem:[%s11439_s6 + $0x1b0] sm:$0xff] %vm789_vm2, %v5418_v19 }
 0x4f8   :  { %5701 = vrot.lane.b32.xlu0 %v5217_v60, %s7297_s5  ;;  %v5092_v14 = vpop.permute.xlu1 %5091  ;;  %v12200_v60 = vld [vmem:[#allocation118_spill] sm:$0xff] }
 0x4f9   :  { %v5232_v15 = vmul.f32 %v10205_v52, %v5092_v14 }
 0x4fa   :  { %v5090_v51 = vpop.permute.xlu0 %5089  ;;  %5707 = vrot.lane.b32.xlu1 %v5220_v42, %s7297_s5 }
 0x4fb   :  { %v5231_v29 = vmul.f32 %v10208_v33, %v5090_v51 }
 0x4fc   :  { %5705 = vrot.lane.b32.xlu0 %v5219_v11, %s7297_s5  ;;  %v5424_v46 = vpop.permute.xlu1 %5423 }
 0x4fd   :  { %5558 = vst.msk [vmem:[%s11439_s6 + $0x1c8] sm:$0xff] %vm789_vm2, %v5424_v46 }
 0x4fe   :  { %v5422_v35 = vpop.permute.xlu0 %5421  ;;  %5711 = vrot.lane.b32.xlu1 %v5222_v17, %s7297_s5 }
 0x4ff   :  { %5557 = vst.msk [vmem:[%s11439_s6 + $0x1c0] sm:$0xff] %vm789_vm2, %v5422_v35 }
 0x500   :  { %5709 = vrot.lane.b32.xlu0 %v5221_v8, %s7297_s5  ;;  %v5096_v4 = vpop.permute.xlu1 %5095 }
 0x501   :  { %v5234_v47 = vmul.f32 %v12193_v7, %v5096_v4 }
 0x502   :  { %v5094_v18 = vpop.permute.xlu0 %5093  ;;  %5715 = vrot.lane.b32.xlu1 %v5224_v20, %s7297_s5 }
 0x503   :  { %v5233_v38 = vmul.f32 %v12194_v2, %v5094_v18 }
 0x504   :  { %5713 = vrot.lane.b32.xlu0 %v5223_v5, %s7297_s5  ;;  %v5428_v63 = vpop.permute.xlu1 %5427 }
 0x505   :  { %5560 = vst.msk [vmem:[%s11439_s6 + $0x1d8] sm:$0xff] %vm789_vm2, %v5428_v63 }
 0x506   :  { %v5426_v48 = vpop.permute.xlu0 %5425  ;;  %5719 = vrot.lane.b32.xlu1 %v5226_v53, %s7297_s5 }
 0x507   :  { %5559 = vst.msk [vmem:[%s11439_s6 + $0x1d0] sm:$0xff] %vm789_vm2, %v5426_v48 }
 0x508   :  { %5717 = vrot.lane.b32.xlu0 %v5225_v10, %s7297_s5  ;;  %v5100_v41 = vpop.permute.xlu1 %5099 }
 0x509   :  { %v5236_v52 = vmul.f32 %v12144_v61, %v5100_v41 }
 0x50a   :  { %v5098_v23 = vpop.permute.xlu0 %5097  ;;  %5723 = vrot.lane.b32.xlu1 %v5228_v50, %s7297_s5 }
 0x50b   :  { %v5235_v22 = vmul.f32 %v12195_v6, %v5098_v23 }
 0x50c   :  { %5721 = vrot.lane.b32.xlu0 %v5227_v34, %s7297_s5  ;;  %v5432_v31 = vpop.permute.xlu1 %5431 }
 0x50d   :  { %5562 = vst.msk [vmem:[%s11439_s6 + $0x1e8] sm:$0xff] %vm789_vm2, %v5432_v31 }
 0x50e   :  { %v5430_v45 = vpop.permute.xlu0 %5429  ;;  %5727 = vrot.lane.b32.xlu1 %v5230_v26, %s7297_s5 }
 0x50f   :  { %5561 = vst.msk [vmem:[%s11439_s6 + $0x1e0] sm:$0xff] %vm789_vm2, %v5430_v45 }
 0x510   :  { %5725 = vrot.lane.b32.xlu0 %v5229_v25, %s7297_s5  ;;  %v5104_v57 = vpop.permute.xlu1 %5103 }
 0x511   :  { %v5238_v0 = vmul.f32 %v12196_v32, %v5104_v57 }
 0x512   :  { %v5102_v16 = vpop.permute.xlu0 %5101  ;;  %5731 = vrot.lane.b32.xlu1 %v5232_v15, %s7297_s5 }
 0x513   :  { %v5237_v24 = vmul.f32 %v12197_v44, %v5102_v16 }
 0x514   :  { %5729 = vrot.lane.b32.xlu0 %v5231_v29, %s7297_s5  ;;  %v5436_v59 = vpop.permute.xlu1 %5435 }
 0x515   :  { %5564 = vst.msk [vmem:[%s11439_s6 + $0x1f8] sm:$0xff] %vm789_vm2, %v5436_v59 }
 0x516   :  { %v5434_v54 = vpop.permute.xlu0 %5433  ;;  %5735 = vrot.lane.b32.xlu1 %v5234_v47, %s7297_s5 }
 0x517   :  { %5563 = vst.msk [vmem:[%s11439_s6 + $0x1f0] sm:$0xff] %vm789_vm2, %v5434_v54 }
 0x518   :  { %5733 = vrot.lane.b32.xlu0 %v5233_v38, %s7297_s5  ;;  %v5108_v33 = vpop.permute.xlu1 %5107 }
 0x519   :  { %v5240_v61 = vmul.f32 %v12151_v58, %v5108_v33 }
 0x51a   :  { %v5106_v55 = vpop.permute.xlu0 %5105  ;;  %5739 = vrot.lane.b32.xlu1 %v5236_v52, %s7297_s5 }
 0x51b   :  { %v5239_v12 = vmul.f32 %v12198_v56, %v5106_v55 }
 0x51c   :  { %5737 = vrot.lane.b32.xlu0 %v5235_v22, %s7297_s5  ;;  %v5112_v27 = vpop.permute.xlu1 %5111 }
 0x51d   :  { %v5242_v58 = vmul.f32 %v12199_v3, %v5112_v27 }
 0x51e   :  { %v5110_v43 = vpop.permute.xlu0 %5109  ;;  %5743 = vrot.lane.b32.xlu1 %v5238_v0, %s7297_s5 }
 0x51f   :  { %v5241_v19 = vmul.f32 %v12200_v60, %v5110_v43 }
 0x520   :  { %5741 = vrot.lane.b32.xlu0 %v5237_v24, %s7297_s5  ;;  %v5636_v30 = vpop.permute.xlu1 %5635 }
 0x521   :  { %5825 = vst.msk [vmem:[%s11439_s6 + $0x18] sm:$0xff] %vm5821_vm4, %v5636_v30 }
 0x522   :  { %v5634_v39 = vpop.permute.xlu0 %5633  ;;  %5747 = vrot.lane.b32.xlu1 %v5240_v61, %s7297_s5 }
 0x523   :  { %5824 = vst.msk [vmem:[%s11439_s6 + $0x10] sm:$0xff] %vm5821_vm4, %v5634_v39 }
 0x524   :  { %5745 = vrot.lane.b32.xlu0 %v5239_v12, %s7297_s5  ;;  %v5116_v9 = vpop.permute.xlu1 %5115 }
 0x525   :  { %v5244_v42 = vmul.f32 %v12158_v13, %v5116_v9 }
 0x526   :  { %v5114_v62 = vpop.permute.xlu0 %5113  ;;  %5751 = vrot.lane.b32.xlu1 %v5242_v58, %s7297_s5 }
 0x527   :  { %v5243_v1 = vmul.f32 %v12160_v49, %v5114_v62 }
 0x528   :  { %5749 = vrot.lane.b32.xlu0 %v5241_v19, %s7297_s5  ;;  %v5640_v14 = vpop.permute.xlu1 %5639 }
 0x529   :  { %5827 = vst.msk [vmem:[%s11439_s6 + $0x28] sm:$0xff] %vm5821_vm4, %v5640_v14 }
 0x52a   :  { %v5638_v11 = vpop.permute.xlu0 %5637  ;;  %5755 = vrot.lane.b32.xlu1 %v5244_v42, %s7297_s5 }
 0x52b   :  { %5826 = vst.msk [vmem:[%s11439_s6 + $0x20] sm:$0xff] %vm5821_vm4, %v5638_v11 }
 0x52c   :  { %5753 = vrot.lane.b32.xlu0 %v5243_v1, %s7297_s5  ;;  %v5644_v51 = vpop.permute.xlu1 %5643 }
 0x52d   :  { %5829 = vst.msk [vmem:[%s11439_s6 + $0x38] sm:$0xff] %vm5821_vm4, %v5644_v51 }
 0x52e   :  { %v5642_v13 = vpop.permute.xlu0 %5641 }
 0x52f   :  { %5828 = vst.msk [vmem:[%s11439_s6 + $0x30] sm:$0xff] %vm5821_vm4, %v5642_v13 }
 0x530   :  { %v5648_v49 = vpop.permute.xlu1 %5647 }
 0x531   :  { %5831 = vst.msk [vmem:[%s11439_s6 + $0x48] sm:$0xff] %vm5821_vm4, %v5648_v49 }
 0x532   :  { %v5646_v40 = vpop.permute.xlu0 %5645 }
 0x533   :  { %5830 = vst.msk [vmem:[%s11439_s6 + $0x40] sm:$0xff] %vm5821_vm4, %v5646_v40 }
 0x534   :  { %v5652_v17 = vpop.permute.xlu1 %5651 }
 0x535   :  { %5833 = vst.msk [vmem:[%s11439_s6 + $0x58] sm:$0xff] %vm5821_vm4, %v5652_v17 }
 0x536   :  { %v5650_v46 = vpop.permute.xlu0 %5649 }
 0x537   :  { %5832 = vst.msk [vmem:[%s11439_s6 + $0x50] sm:$0xff] %vm5821_vm4, %v5650_v46 }
 0x538   :  { %v5656_v28 = vpop.permute.xlu1 %5655 }
 0x539   :  { %5835 = vst.msk [vmem:[%s11439_s6 + $0x68] sm:$0xff] %vm5821_vm4, %v5656_v28 }
 0x53a   :  { %v5654_v8 = vpop.permute.xlu0 %5653 }
 0x53b   :  { %5834 = vst.msk [vmem:[%s11439_s6 + $0x60] sm:$0xff] %vm5821_vm4, %v5654_v8 }
 0x53c   :  { %v5660_v35 = vpop.permute.xlu1 %5659 }
 0x53d   :  { %5837 = vst.msk [vmem:[%s11439_s6 + $0x78] sm:$0xff] %vm5821_vm4, %v5660_v35 }
 0x53e   :  { %v5658_v20 = vpop.permute.xlu0 %5657 }
 0x53f   :  { %5836 = vst.msk [vmem:[%s11439_s6 + $0x70] sm:$0xff] %vm5821_vm4, %v5658_v20 }
 0x540   :  { %v5664_v4 = vpop.permute.xlu1 %5663 }
 0x541   :  { %5839 = vst.msk [vmem:[%s11439_s6 + $0x88] sm:$0xff] %vm5821_vm4, %v5664_v4 }
 0x542   :  { %v5662_v5 = vpop.permute.xlu0 %5661 }
 0x543   :  { %5838 = vst.msk [vmem:[%s11439_s6 + $0x80] sm:$0xff] %vm5821_vm4, %v5662_v5 }
 0x544   :  { %v5696_v18 = vpop.permute.xlu1 %5695 }
 0x545   :  { %5855 = vst.msk [vmem:[%s11439_s6 + $0x108] sm:$0xff] %vm5821_vm4, %v5696_v18 }
 0x546   :  { %v5694_v53 = vpop.permute.xlu0 %5693 }
 0x547   :  { %5854 = vst.msk [vmem:[%s11439_s6 + $0x100] sm:$0xff] %vm5821_vm4, %v5694_v53 }
 0x548   :  { %v5668_v63 = vpop.permute.xlu1 %5667 }
 0x549   :  { %5841 = vst.msk [vmem:[%s11439_s6 + $0x98] sm:$0xff] %vm5821_vm4, %v5668_v63 }
 0x54a   :  { %v5666_v36 = vpop.permute.xlu0 %5665 }
 0x54b   :  { %5840 = vst.msk [vmem:[%s11439_s6 + $0x90] sm:$0xff] %vm5821_vm4, %v5666_v36 }
 0x54c   :  { %v5672_v10 = vpop.permute.xlu1 %5671 }
 0x54d   :  { %5843 = vst.msk [vmem:[%s11439_s6 + $0xa8] sm:$0xff] %vm5821_vm4, %v5672_v10 }
 0x54e   :  { %v5670_v48 = vpop.permute.xlu0 %5669 }
 0x54f   :  { %5842 = vst.msk [vmem:[%s11439_s6 + $0xa0] sm:$0xff] %vm5821_vm4, %v5670_v48 }
 0x550   :  { %v5676_v21 = vpop.permute.xlu1 %5675 }
 0x551   :  { %5845 = vst.msk [vmem:[%s11439_s6 + $0xb8] sm:$0xff] %vm5821_vm4, %v5676_v21 }
 0x552   :  { %v5674_v50 = vpop.permute.xlu0 %5673 }
 0x553   :  { %5844 = vst.msk [vmem:[%s11439_s6 + $0xb0] sm:$0xff] %vm5821_vm4, %v5674_v50 }
 0x554   :  { %v5680_v41 = vpop.permute.xlu1 %5679 }
 0x555   :  { %5847 = vst.msk [vmem:[%s11439_s6 + $0xc8] sm:$0xff] %vm5821_vm4, %v5680_v41 }
 0x556   :  { %v5678_v37 = vpop.permute.xlu0 %5677 }
 0x557   :  { %5846 = vst.msk [vmem:[%s11439_s6 + $0xc0] sm:$0xff] %vm5821_vm4, %v5678_v37 }
 0x558   :  { %v5684_v34 = vpop.permute.xlu1 %5683 }
 0x559   :  { %5849 = vst.msk [vmem:[%s11439_s6 + $0xd8] sm:$0xff] %vm5821_vm4, %v5684_v34 }
 0x55a   :  { %v5682_v23 = vpop.permute.xlu0 %5681 }
 0x55b   :  { %5848 = vst.msk [vmem:[%s11439_s6 + $0xd0] sm:$0xff] %vm5821_vm4, %v5682_v23 }
 0x55c   :  { %v5688_v26 = vpop.permute.xlu1 %5687 }
 0x55d   :  { %5851 = vst.msk [vmem:[%s11439_s6 + $0xe8] sm:$0xff] %vm5821_vm4, %v5688_v26 }
 0x55e   :  { %v5686_v31 = vpop.permute.xlu0 %5685 }
 0x55f   :  { %5850 = vst.msk [vmem:[%s11439_s6 + $0xe0] sm:$0xff] %vm5821_vm4, %v5686_v31 }
 0x560   :  { %v5692_v25 = vpop.permute.xlu1 %5691 }
 0x561   :  { %5853 = vst.msk [vmem:[%s11439_s6 + $0xf8] sm:$0xff] %vm5821_vm4, %v5692_v25 }
 0x562   :  { %v5690_v45 = vpop.permute.xlu0 %5689 }
 0x563   :  { %5852 = vst.msk [vmem:[%s11439_s6 + $0xf0] sm:$0xff] %vm5821_vm4, %v5690_v45 }
 0x564   :  { %v5700_v15 = vpop.permute.xlu1 %5699 }
 0x565   :  { %5857 = vst.msk [vmem:[%s11439_s6 + $0x118] sm:$0xff] %vm5821_vm4, %v5700_v15 }
 0x566   :  { %v5698_v57 = vpop.permute.xlu0 %5697 }
 0x567   :  { %5856 = vst.msk [vmem:[%s11439_s6 + $0x110] sm:$0xff] %vm5821_vm4, %v5698_v57 }
 0x568   :  { %v5704_v29 = vpop.permute.xlu1 %5703 }
 0x569   :  { %5859 = vst.msk [vmem:[%s11439_s6 + $0x128] sm:$0xff] %vm5821_vm4, %v5704_v29 }
 0x56a   :  { %v5702_v16 = vpop.permute.xlu0 %5701 }
 0x56b   :  { %5858 = vst.msk [vmem:[%s11439_s6 + $0x120] sm:$0xff] %vm5821_vm4, %v5702_v16 }
 0x56c   :  { %v5708_v7 = vpop.permute.xlu1 %5707 }
 0x56d   :  { %5861 = vst.msk [vmem:[%s11439_s6 + $0x138] sm:$0xff] %vm5821_vm4, %v5708_v7 }
 0x56e   :  { %v5706_v47 = vpop.permute.xlu0 %5705 }
 0x56f   :  { %5860 = vst.msk [vmem:[%s11439_s6 + $0x130] sm:$0xff] %vm5821_vm4, %v5706_v47 }
 0x570   :  { %v5712_v59 = vpop.permute.xlu1 %5711 }
 0x571   :  { %5863 = vst.msk [vmem:[%s11439_s6 + $0x148] sm:$0xff] %vm5821_vm4, %v5712_v59 }
 0x572   :  { %v5710_v2 = vpop.permute.xlu0 %5709 }
 0x573   :  { %5862 = vst.msk [vmem:[%s11439_s6 + $0x140] sm:$0xff] %vm5821_vm4, %v5710_v2 }
 0x574   :  { %v5716_v38 = vpop.permute.xlu1 %5715 }
 0x575   :  { %5865 = vst.msk [vmem:[%s11439_s6 + $0x158] sm:$0xff] %vm5821_vm4, %v5716_v38 }
 0x576   :  { %v5714_v54 = vpop.permute.xlu0 %5713 }
 0x577   :  { %5864 = vst.msk [vmem:[%s11439_s6 + $0x150] sm:$0xff] %vm5821_vm4, %v5714_v54 }
 0x578   :  { %v5720_v52 = vpop.permute.xlu1 %5719 }
 0x579   :  { %5867 = vst.msk [vmem:[%s11439_s6 + $0x168] sm:$0xff] %vm5821_vm4, %v5720_v52 }
 0x57a   :  { %v5718_v33 = vpop.permute.xlu0 %5717 }
 0x57b   :  { %5866 = vst.msk [vmem:[%s11439_s6 + $0x160] sm:$0xff] %vm5821_vm4, %v5718_v33 }
 0x57c   :  { %v5724_v6 = vpop.permute.xlu1 %5723 }
 0x57d   :  { %5869 = vst.msk [vmem:[%s11439_s6 + $0x178] sm:$0xff] %vm5821_vm4, %v5724_v6 }
 0x57e   :  { %v5722_v22 = vpop.permute.xlu0 %5721 }
 0x57f   :  { %5868 = vst.msk [vmem:[%s11439_s6 + $0x170] sm:$0xff] %vm5821_vm4, %v5722_v22 }
 0x580   :  { %v5728_v55 = vpop.permute.xlu1 %5727 }
 0x581   :  { %5871 = vst.msk [vmem:[%s11439_s6 + $0x188] sm:$0xff] %vm5821_vm4, %v5728_v55 }
 0x582   :  { %v5726_v32 = vpop.permute.xlu0 %5725 }
 0x583   :  { %5870 = vst.msk [vmem:[%s11439_s6 + $0x180] sm:$0xff] %vm5821_vm4, %v5726_v32 }
 0x584   :  { %v5732_v0 = vpop.permute.xlu1 %5731 }
 0x585   :  { %5873 = vst.msk [vmem:[%s11439_s6 + $0x198] sm:$0xff] %vm5821_vm4, %v5732_v0 }
 0x586   :  { %v5730_v27 = vpop.permute.xlu0 %5729 }
 0x587   :  { %5872 = vst.msk [vmem:[%s11439_s6 + $0x190] sm:$0xff] %vm5821_vm4, %v5730_v27 }
 0x588   :  { %v5736_v44 = vpop.permute.xlu1 %5735 }
 0x589   :  { %5875 = vst.msk [vmem:[%s11439_s6 + $0x1a8] sm:$0xff] %vm5821_vm4, %v5736_v44 }
 0x58a   :  { %v5734_v24 = vpop.permute.xlu0 %5733 }
 0x58b   :  { %5874 = vst.msk [vmem:[%s11439_s6 + $0x1a0] sm:$0xff] %vm5821_vm4, %v5734_v24 }
 0x58c   :  { %v5740_v43 = vpop.permute.xlu1 %5739 }
 0x58d   :  { %5877 = vst.msk [vmem:[%s11439_s6 + $0x1b8] sm:$0xff] %vm5821_vm4, %v5740_v43 }
 0x58e   :  { %v5738_v61 = vpop.permute.xlu0 %5737 }
 0x58f   :  { %5876 = vst.msk [vmem:[%s11439_s6 + $0x1b0] sm:$0xff] %vm5821_vm4, %v5738_v61 }
 0x590   :  { %v5744_v30 = vpop.permute.xlu1 %5743 }
 0x591   :  { %5879 = vst.msk [vmem:[%s11439_s6 + $0x1c8] sm:$0xff] %vm5821_vm4, %v5744_v30 }
 0x592   :  { %v5742_v56 = vpop.permute.xlu0 %5741 }
 0x593   :  { %5878 = vst.msk [vmem:[%s11439_s6 + $0x1c0] sm:$0xff] %vm5821_vm4, %v5742_v56 }
 0x594   :  { %v5748_v12 = vpop.permute.xlu1 %5747 }
 0x595   :  { %5881 = vst.msk [vmem:[%s11439_s6 + $0x1d8] sm:$0xff] %vm5821_vm4, %v5748_v12 }
 0x596   :  { %v5746_v39 = vpop.permute.xlu0 %5745 }
 0x597   :  { %5880 = vst.msk [vmem:[%s11439_s6 + $0x1d0] sm:$0xff] %vm5821_vm4, %v5746_v39 }
 0x598   :  { %v5752_v3 = vpop.permute.xlu1 %5751 }
 0x599   :  { %5883 = vst.msk [vmem:[%s11439_s6 + $0x1e8] sm:$0xff] %vm5821_vm4, %v5752_v3 }
 0x59a   :  { %v5750_v58 = vpop.permute.xlu0 %5749 }
 0x59b   :  { %5882 = vst.msk [vmem:[%s11439_s6 + $0x1e0] sm:$0xff] %vm5821_vm4, %v5750_v58 }
 0x59c   :  { %v5756_v9 = vpop.permute.xlu1 %5755 }
 0x59d   :  { %5885 = vst.msk [vmem:[%s11439_s6 + $0x1f8] sm:$0xff] %vm5821_vm4, %v5756_v9 }
 0x59e   :  { %v5754_v60 = vpop.permute.xlu0 %5753 }
 0x59f   :  { %5884 = vst.msk [vmem:[%s11439_s6 + $0x1f0] sm:$0xff] %vm5821_vm4, %v5754_v60 }
 0x5a0   :  { %5890 = vsyncpa [#allocation4], 1 }
 0x5a1   :  { %5891 = vsyncpa [#allocation6], 1 }

</bundles_post_ra>
